<compile_context>
chip_gen: v7x
topology: tpu7x:2x2x1
jax: 0.10.0
libtpu: 0.0.40
codegen_flags: <defaults>
</compile_context>

<pallas_src>
import math

import jax
import jax.numpy as jnp
from jax import lax
from jax.experimental import pallas as pl
from jax.experimental.pallas import tpu as pltpu


def lambda_init_fn(depth):
    return 0.8 - 0.6 * math.exp(-0.3 * depth)


# ----------------------------------------------------------------------------
# Pallas kernel.  Grid = (B, T // TQ), both axes parallel (no carried state).
# Inputs are pre-projected, pre-transposed, bf16:
#   q  : (1, 2H, TQ, hd)   per-tile   (scaling folded into wq)
#   k  : (1, 2H, S,  hd)   per-batch  (repeat_kv folded into wk)
#   v  : (1, H,  S, 2hd)   per-batch  (repeat_kv folded into wv)
#   wo : (H, 2hd, E)       per-head slices of out_proj ((1-lambda_init) folded)
# ----------------------------------------------------------------------------
def diff_attn_kernel(lam_ref, q_ref, k_ref, v_ref, wo_ref, out_ref):
    _, H2, TQ, hd = q_ref.shape
    H = H2 // 2
    S = k_ref.shape[2]

    lam = lam_ref[0]                     # f32 scalar from SMEM
    q = q_ref[0]                         # (2H, TQ, hd) bf16
    k = k_ref[0]                         # (2H, S,  hd) bf16
    v = v_ref[0]                         # (H,  S, 2hd) bf16

    # Scores for all 2H streams in one batched MXU call: (2H, TQ, S) f32.
    s = lax.dot_general(q, k, (((2,), (2,)), ((0,), (0,))),
                        preferred_element_type=jnp.float32)

    # Fused f32 softmax over the whole slab (single back-to-back EUP stream);
    # reciprocal uses the otherwise-idle EUP slot.
    s = s - jnp.max(s, axis=-1, keepdims=True)
    e = jnp.exp(s)
    p = e * pl.reciprocal(jnp.sum(e, axis=-1, keepdims=True), approx=True)

    # Differential combination of the two streams of each head.
    p = p.reshape(H, 2, TQ, S)
    aw = (p[:, 0] - lam * p[:, 1]).astype(jnp.bfloat16)          # (H, TQ, S)

    # Attention output per head: (H, TQ, 2hd) f32.
    attn = lax.dot_general(aw, v, (((2,), (1,)), ((0,), (0,))),
                           preferred_element_type=jnp.float32)

    # RMSNorm(2*hd), eps=1e-5, no affine; (1 - lambda_init) is folded into wo.
    ms = jnp.mean(attn * attn, axis=-1, keepdims=True)
    attn = (attn * lax.rsqrt(ms + 1e-5)).astype(jnp.bfloat16)

    # Output projection: per-head (TQ, 2hd) x (2hd, E) batched matmul, then a
    # cheap f32 sum over heads (avoids any in-kernel transpose / masked store).
    o = lax.dot_general(attn, wo_ref[...], (((2,), (1,)), ((0,), (0,))),
                        preferred_element_type=jnp.float32)       # (H, TQ, E)
    out_ref[0] = jnp.sum(o, axis=0).astype(out_ref.dtype)


def _diff_attn_pallas(lam_full, q, k, v, wo_h, *, tq, out_dtype, single_buffer):
    B, H2, T, hd = q.shape
    H = H2 // 2
    S = k.shape[2]
    E = wo_h.shape[-1]
    NT = T // tq

    # Blocks whose index is constant along the inner (t) axis never re-DMA;
    # request single buffering for them (halves their VMEM footprint).
    resident = dict(pipeline_mode=pl.Buffered(1)) if single_buffer else {}

    in_specs = [
        pl.BlockSpec(memory_space=pltpu.MemorySpace.SMEM),                      # lambda_full
        pl.BlockSpec((1, H2, tq, hd), lambda b, t: (b, 0, t, 0)),               # Q tile
        pl.BlockSpec((1, H2, S, hd), lambda b, t: (b, 0, 0, 0), **resident),    # K (per batch)
        pl.BlockSpec((1, H, S, 2 * hd), lambda b, t: (b, 0, 0, 0), **resident), # V (per batch)
        pl.BlockSpec((H, 2 * hd, E), lambda b, t: (0, 0, 0), **resident),       # wo per-head
    ]
    out_specs = pl.BlockSpec((1, tq, E), lambda b, t: (b, t, 0))

    return pl.pallas_call(
        diff_attn_kernel,
        out_shape=jax.ShapeDtypeStruct((B, T, E), out_dtype),
        grid=(B, NT),
        in_specs=in_specs,
        out_specs=out_specs,
        compiler_params=pltpu.CompilerParams(
            dimension_semantics=("parallel", "parallel"),
            vmem_limit_bytes=48 * 1024 * 1024,
        ),
    )(lam_full, q, k, v, wo_h)


# ----------------------------------------------------------------------------
# Wrapper: weight plumbing (transpose, scalar + repeat_kv folding, bf16),
# hoisted Q/K/V projections (full-MXU batched XLA matmuls), lambda_full
# precompute, then the pallas_call.
# ----------------------------------------------------------------------------
def multihead_diff_attn_cross(x, q_dec, params, *, num_heads, num_kv_heads,
                              depth, tq=128):
    B, T, E = x.shape
    S = T
    H = num_heads
    hd = E // num_heads // 2
    n_rep = num_heads // num_kv_heads
    scaling = hd ** -0.5
    lam_init = lambda_init_fn(depth)
    out_dtype = x.dtype

    # --- weights: (in, out) layout, fold scalars + repeat_kv, bf16 ------------
    wq = (params["wq"].T * scaling).astype(jnp.bfloat16)          # scaling folded
    wk = params["wk"].T
    wv = params["wv"].T
    if n_rep > 1:
        wk = jnp.repeat(wk.reshape(E, 2 * num_kv_heads, hd), n_rep, axis=1
                        ).reshape(E, 2 * H * hd)
        wv = jnp.repeat(wv.reshape(E, num_kv_heads, 2 * hd), n_rep, axis=1
                        ).reshape(E, H * 2 * hd)
    wk = wk.astype(jnp.bfloat16)
    wv = wv.astype(jnp.bfloat16)
    # (1 - lambda_init) folded into wo; reshape input dim head-major -> (H, 2hd, E).
    wo_h = (params["wo"].T * (1.0 - lam_init)).reshape(H, 2 * hd, E).astype(jnp.bfloat16)

    xb = x.astype(jnp.bfloat16)
    qb = q_dec.astype(jnp.bfloat16)

    # --- hoisted projections (one batched matmul each, f32 accum, bf16 out) ---
    q = jnp.einsum("bte,ef->btf", qb, wq,
                   preferred_element_type=jnp.float32).astype(jnp.bfloat16)
    k = jnp.einsum("bse,ef->bsf", xb, wk,
                   preferred_element_type=jnp.float32).astype(jnp.bfloat16)
    v = jnp.einsum("bse,ef->bsf", xb, wv,
                   preferred_element_type=jnp.float32).astype(jnp.bfloat16)
    q = q.reshape(B, T, 2 * H, hd).transpose(0, 2, 1, 3)          # (B, 2H, T, hd)
    k = k.reshape(B, S, 2 * H, hd).transpose(0, 2, 1, 3)          # (B, 2H, S, hd)
    v = v.reshape(B, S, H, 2 * hd).transpose(0, 2, 1, 3)          # (B, H,  S, 2hd)

    # --- lambda_full precomputed once (depends only on parameters) ------------
    l1 = jnp.exp(jnp.sum(params["lq1"].astype(jnp.float32) *
                         params["lk1"].astype(jnp.float32)))
    l2 = jnp.exp(jnp.sum(params["lq2"].astype(jnp.float32) *
                         params["lk2"].astype(jnp.float32)))
    lam_full = jnp.reshape(l1 - l2 + lam_init, (1,)).astype(jnp.float32)

    # --- query tiling ----------------------------------------------------------
    tq = min(tq, T)
    assert T % tq == 0 and tq % 8 == 0, "T must be divisible by the query tile"

    try:
        return _diff_attn_pallas(lam_full, q, k, v, wo_h, tq=tq,
                                 out_dtype=out_dtype, single_buffer=True)
    except Exception:
        # pipeline_mode=pl.Buffered(1) not supported on this jax/libtpu build;
        # fall back to default double buffering (correctness identical).
        return _diff_attn_pallas(lam_full, q, k, v, wo_h, tq=tq,
                                 out_dtype=out_dtype, single_buffer=False)


# ----------------------------------------------------------------------------
# Pure-JAX f32 reference (mirrors the PyTorch forward exactly, incl. repeat_kv).
# ----------------------------------------------------------------------------
def reference(x, q_dec, params, *, num_heads, num_kv_heads, depth):
    B, T, E = x.shape
    head_dim = E // num_heads // 2
    n_rep = num_heads // num_kv_heads
    scaling = head_dim ** -0.5
    lam_init = lambda_init_fn(depth)

    q = q_dec @ params["wq"].T
    k = x @ params["wk"].T
    v = x @ params["wv"].T
    q = q.reshape(B, T, 2 * num_heads, head_dim).transpose(0, 2, 1, 3)
    k = k.reshape(B, T, 2 * num_kv_heads, head_dim).transpose(0, 2, 1, 3)
    v = v.reshape(B, T, num_kv_heads, 2 * head_dim).transpose(0, 2, 1, 3)
    k = jnp.repeat(k, n_rep, axis=1)
    v = jnp.repeat(v, n_rep, axis=1)
    q = q * scaling
    aw = jnp.einsum("bhtd,bhsd->bhts", q, k)
    # NOTE: reference forward builds a causal mask but never applies it.
    aw = jax.nn.softmax(jnp.nan_to_num(aw), axis=-1)
    l1 = jnp.exp(jnp.sum(params["lq1"] * params["lk1"]))
    l2 = jnp.exp(jnp.sum(params["lq2"] * params["lk2"]))
    lam = l1 - l2 + lam_init
    aw = aw.reshape(B, num_heads, 2, T, T)
    aw = aw[:, :, 0] - lam * aw[:, :, 1]
    attn = jnp.einsum("bhts,bhsd->bhtd", aw, v)
    ms = jnp.mean(attn * attn, axis=-1, keepdims=True)
    attn = attn * jax.lax.rsqrt(ms + 1e-5)
    attn = attn * (1.0 - lam_init)
    attn = attn.transpose(0, 2, 1, 3).reshape(B, T, E)
    return attn @ params["wo"].T


if __name__ == "__main__":
    # Small config consistent with the module's constraints.
    B, T = 2, 128
    embed_dim, num_heads, depth = 128, 4, 2
    decoder_kv_attention_heads = 2            # exercises n_rep = 2
    num_kv_heads = decoder_kv_attention_heads
    n_rep = num_heads // num_kv_heads
    head_dim = embed_dim // num_heads // 2    # = 16

    key = jax.random.PRNGKey(0)
    kx, kq, k1, k2, k3, k4, k5, k6, k7, k8 = jax.random.split(key, 10)

    x = jax.random.normal(kx, (B, T, embed_dim), dtype=jnp.float32)
    q_dec = jax.random.normal(kq, (B, T, embed_dim), dtype=jnp.float32)

    params = {
        "wq": 0.05 * jax.random.normal(k1, (embed_dim, embed_dim), dtype=jnp.float32),
        "wk": 0.05 * jax.random.normal(k2, (embed_dim // n_rep, embed_dim), dtype=jnp.float32),
        "wv": 0.05 * jax.random.normal(k3, (embed_dim // n_rep, embed_dim), dtype=jnp.float32),
        "wo": 0.05 * jax.random.normal(k4, (embed_dim, embed_dim), dtype=jnp.float32),
        "lq1": 0.1 * jax.random.normal(k5, (head_dim,), dtype=jnp.float32),
        "lk1": 0.1 * jax.random.normal(k6, (head_dim,), dtype=jnp.float32),
        "lq2": 0.1 * jax.random.normal(k7, (head_dim,), dtype=jnp.float32),
        "lk2": 0.1 * jax.random.normal(k8, (head_dim,), dtype=jnp.float32),
    }

    out = multihead_diff_attn_cross(x, q_dec, params, num_heads=num_heads,
                                    num_kv_heads=num_kv_heads, depth=depth, tq=128)
    out = jax.block_until_ready(out)

    ref = reference(x, q_dec, params, num_heads=num_heads,
                    num_kv_heads=num_kv_heads, depth=depth)
    ref = jax.block_until_ready(ref)

    assert out.shape == (B, T, embed_dim)
    # bf16 MXU operands + approx reciprocal -> compare to the f32 reference
    # with a bf16-appropriate tolerance.
    max_err = float(jnp.max(jnp.abs(out.astype(jnp.float32) - ref)))
    assert jnp.allclose(out.astype(jnp.float32), ref, rtol=3e-2, atol=3e-2), max_err
    print("KERNEL_OK")
</pallas_src>

<mosaic_0001>
module attributes {stable_mosaic.version = 11 : i64} {
  func.func @diff_attn_kernel(%arg0: i32, %arg1: i32, %arg2: memref<1xf32, #tpu.memory_space<smem>>, %arg3: memref<1x8x128x16xbf16, #tpu.memory_space<vmem>>, %arg4: memref<1x8x128x16xbf16, #tpu.memory_space<vmem>>, %arg5: memref<1x4x128x32xbf16, #tpu.memory_space<vmem>>, %arg6: memref<4x32x128xbf16, #tpu.memory_space<vmem>>, %arg7: memref<1x128x128xf32, #tpu.memory_space<vmem>>) attributes {dimension_semantics = [#tpu.dimension_semantics<parallel>, #tpu.dimension_semantics<parallel>], iteration_bounds = array<i64: 2, 1>, scalar_prefetch = 0 : i64, scratch_operands = 0 : i64, tpu.core_type = #tpu.core_type<tc>, window_params = [{transform_indices = @transform_0, window_bounds = array<i64: 1>}, {transform_indices = @transform_1, window_bounds = array<i64: 1, 8, 128, 16>}, {pipeline_mode = #tpu.pipeline_mode<synchronous>, transform_indices = @transform_2, window_bounds = array<i64: 1, 8, 128, 16>}, {pipeline_mode = #tpu.pipeline_mode<synchronous>, transform_indices = @transform_3, window_bounds = array<i64: 1, 4, 128, 32>}, {pipeline_mode = #tpu.pipeline_mode<synchronous>, transform_indices = @transform_4, window_bounds = array<i64: 4, 32, 128>}, {transform_indices = @transform_5, window_bounds = array<i64: 1, 128, 128>}]} {
    %c0 = arith.constant 0 : index
    %0 = memref.load %arg2[%c0] : memref<1xf32, #tpu.memory_space<smem>>
    %c0_0 = arith.constant 0 : index
    %c0_1 = arith.constant 0 : index
    %c0_2 = arith.constant 0 : index
    %c0_3 = arith.constant 0 : index
    %1 = vector.load %arg3[%c0_0, %c0_1, %c0_2, %c0_3] : memref<1x8x128x16xbf16, #tpu.memory_space<vmem>>, vector<1x8x128x16xbf16>
    %2 = vector.shape_cast %1 : vector<1x8x128x16xbf16> to vector<8x128x16xbf16>
    %c0_4 = arith.constant 0 : index
    %c0_5 = arith.constant 0 : index
    %c0_6 = arith.constant 0 : index
    %c0_7 = arith.constant 0 : index
    %3 = vector.load %arg4[%c0_4, %c0_5, %c0_6, %c0_7] : memref<1x8x128x16xbf16, #tpu.memory_space<vmem>>, vector<1x8x128x16xbf16>
    %4 = vector.shape_cast %3 : vector<1x8x128x16xbf16> to vector<8x128x16xbf16>
    %c0_8 = arith.constant 0 : index
    %c0_9 = arith.constant 0 : index
    %c0_10 = arith.constant 0 : index
    %c0_11 = arith.constant 0 : index
    %5 = vector.load %arg5[%c0_8, %c0_9, %c0_10, %c0_11] : memref<1x4x128x32xbf16, #tpu.memory_space<vmem>>, vector<1x4x128x32xbf16>
    %6 = vector.shape_cast %5 : vector<1x4x128x32xbf16> to vector<4x128x32xbf16>
    %cst = arith.constant dense<0.000000e+00> : vector<8x128x128xf32>
    %7 = tpu.matmul %2, %4, %cst {dimension_numbers = #tpu.dot_dimension_numbers<[2], [2], [1], [1], [0, 0, 0, 1, 1, 1], [0], [0]>} : vector<8x128x16xbf16>, vector<8x128x16xbf16>, vector<8x128x128xf32> -> vector<8x128x128xf32>
    %cst_12 = arith.constant dense<0xFF800000> : vector<8x128xf32>
    %8 = vector.multi_reduction <maximumf>, %7, %cst_12 [2] : vector<8x128x128xf32> to vector<8x128xf32>
    %9 = vector.shape_cast %8 : vector<8x128xf32> to vector<8x128x1xf32>
    %10 = vector.broadcast %9 : vector<8x128x1xf32> to vector<8x128x128xf32>
    %11 = arith.subf %7, %10 : vector<8x128x128xf32>
    %12 = math.exp %11 : vector<8x128x128xf32>
    %cst_13 = arith.constant dense<0.000000e+00> : vector<8x128xf32>
    %13 = vector.multi_reduction <add>, %12, %cst_13 [2] : vector<8x128x128xf32> to vector<8x128xf32>
    %14 = vector.shape_cast %13 : vector<8x128xf32> to vector<8x128x1xf32>
    %15 = tpu.reciprocal %14 {approx = true} : vector<8x128x1xf32> -> vector<8x128x1xf32>
    %16 = vector.broadcast %15 : vector<8x128x1xf32> to vector<8x128x128xf32>
    %17 = arith.mulf %12, %16 : vector<8x128x128xf32>
    %18 = vector.shape_cast %17 : vector<8x128x128xf32> to vector<4x2x128x128xf32>
    %19 = vector.extract_strided_slice %18 {offsets = [0, 0, 0, 0], sizes = [4, 1, 128, 128], strides = [1, 1, 1, 1]} : vector<4x2x128x128xf32> to vector<4x1x128x128xf32>
    %20 = vector.shape_cast %19 : vector<4x1x128x128xf32> to vector<4x128x128xf32>
    %21 = vector.extract_strided_slice %18 {offsets = [0, 1, 0, 0], sizes = [4, 1, 128, 128], strides = [1, 1, 1, 1]} : vector<4x2x128x128xf32> to vector<4x1x128x128xf32>
    %22 = vector.shape_cast %21 : vector<4x1x128x128xf32> to vector<4x128x128xf32>
    %23 = vector.broadcast %0 : f32 to vector<4x128x128xf32>
    %24 = arith.mulf %23, %22 : vector<4x128x128xf32>
    %25 = arith.subf %20, %24 : vector<4x128x128xf32>
    %26 = arith.truncf %25 : vector<4x128x128xf32> to vector<4x128x128xbf16>
    %cst_14 = arith.constant dense<0.000000e+00> : vector<4x128x32xf32>
    %27 = tpu.matmul %26, %6, %cst_14 {dimension_numbers = #tpu.dot_dimension_numbers<[2], [1], [1], [2], [0, 0, 0, 1, 1, 2], [0], [0]>} : vector<4x128x128xbf16>, vector<4x128x32xbf16>, vector<4x128x32xf32> -> vector<4x128x32xf32>
    %28 = arith.mulf %27, %27 : vector<4x128x32xf32>
    %cst_15 = arith.constant dense<0.000000e+00> : vector<4x128xf32>
    %29 = vector.multi_reduction <add>, %28, %cst_15 [2] : vector<4x128x32xf32> to vector<4x128xf32>
    %30 = vector.shape_cast %29 : vector<4x128xf32> to vector<4x128x1xf32>
    %cst_16 = arith.constant 3.200000e+01 : f32
    %31 = vector.broadcast %cst_16 : f32 to vector<4x128x1xf32>
    %32 = arith.divf %30, %31 : vector<4x128x1xf32>
    %cst_17 = arith.constant 9.99999974E-6 : f32
    %33 = vector.broadcast %cst_17 : f32 to vector<4x128x1xf32>
    %34 = arith.addf %32, %33 : vector<4x128x1xf32>
    %35 = math.rsqrt %34 : vector<4x128x1xf32>
    %36 = vector.broadcast %35 : vector<4x128x1xf32> to vector<4x128x32xf32>
    %37 = arith.mulf %27, %36 : vector<4x128x32xf32>
    %38 = arith.truncf %37 : vector<4x128x32xf32> to vector<4x128x32xbf16>
    %c0_18 = arith.constant 0 : index
    %c0_19 = arith.constant 0 : index
    %c0_20 = arith.constant 0 : index
    %39 = vector.load %arg6[%c0_18, %c0_19, %c0_20] : memref<4x32x128xbf16, #tpu.memory_space<vmem>>, vector<4x32x128xbf16>
    %cst_21 = arith.constant dense<0.000000e+00> : vector<4x128x128xf32>
    %40 = tpu.matmul %38, %39, %cst_21 {dimension_numbers = #tpu.dot_dimension_numbers<[2], [1], [1], [2], [0, 0, 0, 1, 1, 2], [0], [0]>} : vector<4x128x32xbf16>, vector<4x32x128xbf16>, vector<4x128x128xf32> -> vector<4x128x128xf32>
    %cst_22 = arith.constant dense<0.000000e+00> : vector<128x128xf32>
    %41 = vector.multi_reduction <add>, %40, %cst_22 [0] : vector<4x128x128xf32> to vector<128x128xf32>
    %c0_23 = arith.constant 0 : index
    %c0_24 = arith.constant 0 : index
    %c0_25 = arith.constant 0 : index
    %42 = vector.load %arg7[%c0_23, %c0_24, %c0_25] : memref<1x128x128xf32, #tpu.memory_space<vmem>>, vector<1x128x128xf32>
    %43 = vector.shape_cast %42 : vector<1x128x128xf32> to vector<128x128xf32>
    %44 = vector.shape_cast %41 : vector<128x128xf32> to vector<1x128x128xf32>
    tpu.vector_store %arg7[%c0_23, %c0_24, %c0_25], %44 {strides = array<i32>} : memref<1x128x128xf32, #tpu.memory_space<vmem>>, vector<1x128x128xf32>,
    return
  }
  func.func @transform_0(%arg0: i32, %arg1: i32) -> i32 {
    %c0_i32 = arith.constant 0 : i32
    %c0_i32_0 = arith.constant 0 : i32
    return %c0_i32 : i32
  }
  func.func @transform_1(%arg0: i32, %arg1: i32) -> (i32, i32, i32, i32) {
    %c0_i32 = arith.constant 0 : i32
    %c0_i32_0 = arith.constant 0 : i32
    %c0_i32_1 = arith.constant 0 : i32
    return %arg0, %c0_i32, %arg1, %c0_i32_0 : i32, i32, i32, i32
  }
  func.func @transform_2(%arg0: i32, %arg1: i32) -> (i32, i32, i32, i32) {
    %c0_i32 = arith.constant 0 : i32
    %c0_i32_0 = arith.constant 0 : i32
    %c0_i32_1 = arith.constant 0 : i32
    %c0_i32_2 = arith.constant 0 : i32
    return %arg0, %c0_i32, %c0_i32_0, %c0_i32_1 : i32, i32, i32, i32
  }
  func.func @transform_3(%arg0: i32, %arg1: i32) -> (i32, i32, i32, i32) {
    %c0_i32 = arith.constant 0 : i32
    %c0_i32_0 = arith.constant 0 : i32
    %c0_i32_1 = arith.constant 0 : i32
    %c0_i32_2 = arith.constant 0 : i32
    return %arg0, %c0_i32, %c0_i32_0, %c0_i32_1 : i32, i32, i32, i32
  }
  func.func @transform_4(%arg0: i32, %arg1: i32) -> (i32, i32, i32) {
    %c0_i32 = arith.constant 0 : i32
    %c0_i32_0 = arith.constant 0 : i32
    %c0_i32_1 = arith.constant 0 : i32
    %c0_i32_2 = arith.constant 0 : i32
    return %c0_i32, %c0_i32_0, %c0_i32_1 : i32, i32, i32
  }
  func.func @transform_5(%arg0: i32, %arg1: i32) -> (i32, i32, i32) {
    %c0_i32 = arith.constant 0 : i32
    %c0_i32_0 = arith.constant 0 : i32
    return %arg0, %arg1, %c0_i32 : i32, i32, i32
  }
}

module attributes {stable_mosaic.version = 11 : i64} {
  func.func @diff_attn_kernel(%arg0: i32, %arg1: i32, %arg2: memref<1xf32, #tpu.memory_space<smem>>, %arg3: memref<1x8x128x16xbf16, #tpu.memory_space<vmem>>, %arg4: memref<1x8x128x16xbf16, #tpu.memory_space<vmem>>, %arg5: memref<1x4x128x32xbf16, #tpu.memory_space<vmem>>, %arg6: memref<4x32x128xbf16, #tpu.memory_space<vmem>>, %arg7: memref<1x128x128xf32, #tpu.memory_space<vmem>>) attributes {dimension_semantics = [#tpu.dimension_semantics<parallel>, #tpu.dimension_semantics<parallel>], iteration_bounds = array<i64: 2, 1>, scalar_prefetch = 0 : i64, scratch_operands = 0 : i64, tpu.core_type = #tpu.core_type<tc>, window_params = [{transform_indices = @transform_0, window_bounds = array<i64: 1>}, {transform_indices = @transform_1, window_bounds = array<i64: 1, 8, 128, 16>}, {transform_indices = @transform_2, window_bounds = array<i64: 1, 8, 128, 16>}, {transform_indices = @transform_3, window_bounds = array<i64: 1, 4, 128, 32>}, {pipeline_mode = #tpu.pipeline_mode<synchronous>, transform_indices = @transform_4, window_bounds = array<i64: 4, 32, 128>}, {transform_indices = @transform_5, window_bounds = array<i64: 1, 128, 128>}]} {
    %c0 = arith.constant 0 : index
    %0 = memref.load %arg2[%c0] : memref<1xf32, #tpu.memory_space<smem>>
    %c0_0 = arith.constant 0 : index
    %c0_1 = arith.constant 0 : index
    %c0_2 = arith.constant 0 : index
    %c0_3 = arith.constant 0 : index
    %1 = vector.load %arg3[%c0_0, %c0_1, %c0_2, %c0_3] : memref<1x8x128x16xbf16, #tpu.memory_space<vmem>>, vector<1x8x128x16xbf16>
    %2 = vector.shape_cast %1 : vector<1x8x128x16xbf16> to vector<8x128x16xbf16>
    %c0_4 = arith.constant 0 : index
    %c0_5 = arith.constant 0 : index
    %c0_6 = arith.constant 0 : index
    %c0_7 = arith.constant 0 : index
    %3 = vector.load %arg4[%c0_4, %c0_5, %c0_6, %c0_7] : memref<1x8x128x16xbf16, #tpu.memory_space<vmem>>, vector<1x8x128x16xbf16>
    %4 = vector.shape_cast %3 : vector<1x8x128x16xbf16> to vector<8x128x16xbf16>
    %c0_8 = arith.constant 0 : index
    %c0_9 = arith.constant 0 : index
    %c0_10 = arith.constant 0 : index
    %c0_11 = arith.constant 0 : index
    %5 = vector.load %arg5[%c0_8, %c0_9, %c0_10, %c0_11] : memref<1x4x128x32xbf16, #tpu.memory_space<vmem>>, vector<1x4x128x32xbf16>
    %6 = vector.shape_cast %5 : vector<1x4x128x32xbf16> to vector<4x128x32xbf16>
    %cst = arith.constant dense<0.000000e+00> : vector<8x128x128xf32>
    %7 = tpu.matmul %2, %4, %cst {dimension_numbers = #tpu.dot_dimension_numbers<[2], [2], [1], [1], [0, 0, 0, 1, 1, 1], [0], [0]>} : vector<8x128x16xbf16>, vector<8x128x16xbf16>, vector<8x128x128xf32> -> vector<8x128x128xf32>
    %cst_12 = arith.constant dense<0xFF800000> : vector<8x128xf32>
    %8 = vector.multi_reduction <maximumf>, %7, %cst_12 [2] : vector<8x128x128xf32> to vector<8x128xf32>
    %9 = vector.shape_cast %8 : vector<8x128xf32> to vector<8x128x1xf32>
    %10 = vector.broadcast %9 : vector<8x128x1xf32> to vector<8x128x128xf32>
    %11 = arith.subf %7, %10 : vector<8x128x128xf32>
    %12 = math.exp %11 : vector<8x128x128xf32>
    %cst_13 = arith.constant dense<0.000000e+00> : vector<8x128xf32>
    %13 = vector.multi_reduction <add>, %12, %cst_13 [2] : vector<8x128x128xf32> to vector<8x128xf32>
    %14 = vector.shape_cast %13 : vector<8x128xf32> to vector<8x128x1xf32>
    %15 = tpu.reciprocal %14 {approx = true} : vector<8x128x1xf32> -> vector<8x128x1xf32>
    %16 = vector.broadcast %15 : vector<8x128x1xf32> to vector<8x128x128xf32>
    %17 = arith.mulf %12, %16 : vector<8x128x128xf32>
    %18 = vector.shape_cast %17 : vector<8x128x128xf32> to vector<4x2x128x128xf32>
    %19 = vector.extract_strided_slice %18 {offsets = [0, 0, 0, 0], sizes = [4, 1, 128, 128], strides = [1, 1, 1, 1]} : vector<4x2x128x128xf32> to vector<4x1x128x128xf32>
    %20 = vector.shape_cast %19 : vector<4x1x128x128xf32> to vector<4x128x128xf32>
    %21 = vector.extract_strided_slice %18 {offsets = [0, 1, 0, 0], sizes = [4, 1, 128, 128], strides = [1, 1, 1, 1]} : vector<4x2x128x128xf32> to vector<4x1x128x128xf32>
    %22 = vector.shape_cast %21 : vector<4x1x128x128xf32> to vector<4x128x128xf32>
    %23 = vector.broadcast %0 : f32 to vector<4x128x128xf32>
    %24 = arith.mulf %23, %22 : vector<4x128x128xf32>
    %25 = arith.subf %20, %24 : vector<4x128x128xf32>
    %26 = arith.truncf %25 : vector<4x128x128xf32> to vector<4x128x128xbf16>
    %cst_14 = arith.constant dense<0.000000e+00> : vector<4x128x32xf32>
    %27 = tpu.matmul %26, %6, %cst_14 {dimension_numbers = #tpu.dot_dimension_numbers<[2], [1], [1], [2], [0, 0, 0, 1, 1, 2], [0], [0]>} : vector<4x128x128xbf16>, vector<4x128x32xbf16>, vector<4x128x32xf32> -> vector<4x128x32xf32>
    %28 = arith.mulf %27, %27 : vector<4x128x32xf32>
    %cst_15 = arith.constant dense<0.000000e+00> : vector<4x128xf32>
    %29 = vector.multi_reduction <add>, %28, %cst_15 [2] : vector<4x128x32xf32> to vector<4x128xf32>
    %30 = vector.shape_cast %29 : vector<4x128xf32> to vector<4x128x1xf32>
    %cst_16 = arith.constant 3.200000e+01 : f32
    %31 = vector.broadcast %cst_16 : f32 to vector<4x128x1xf32>
    %32 = arith.divf %30, %31 : vector<4x128x1xf32>
    %cst_17 = arith.constant 9.99999974E-6 : f32
    %33 = vector.broadcast %cst_17 : f32 to vector<4x128x1xf32>
    %34 = arith.addf %32, %33 : vector<4x128x1xf32>
    %35 = math.rsqrt %34 : vector<4x128x1xf32>
    %36 = vector.broadcast %35 : vector<4x128x1xf32> to vector<4x128x32xf32>
    %37 = arith.mulf %27, %36 : vector<4x128x32xf32>
    %38 = arith.truncf %37 : vector<4x128x32xf32> to vector<4x128x32xbf16>
    %c0_18 = arith.constant 0 : index
    %c0_19 = arith.constant 0 : index
    %c0_20 = arith.constant 0 : index
    %39 = vector.load %arg6[%c0_18, %c0_19, %c0_20] : memref<4x32x128xbf16, #tpu.memory_space<vmem>>, vector<4x32x128xbf16>
    %cst_21 = arith.constant dense<0.000000e+00> : vector<4x128x128xf32>
    %40 = tpu.matmul %38, %39, %cst_21 {dimension_numbers = #tpu.dot_dimension_numbers<[2], [1], [1], [2], [0, 0, 0, 1, 1, 2], [0], [0]>} : vector<4x128x32xbf16>, vector<4x32x128xbf16>, vector<4x128x128xf32> -> vector<4x128x128xf32>
    %cst_22 = arith.constant dense<0.000000e+00> : vector<128x128xf32>
    %41 = vector.multi_reduction <add>, %40, %cst_22 [0] : vector<4x128x128xf32> to vector<128x128xf32>
    %c0_23 = arith.constant 0 : index
    %c0_24 = arith.constant 0 : index
    %c0_25 = arith.constant 0 : index
    %42 = vector.load %arg7[%c0_23, %c0_24, %c0_25] : memref<1x128x128xf32, #tpu.memory_space<vmem>>, vector<1x128x128xf32>
    %43 = vector.shape_cast %42 : vector<1x128x128xf32> to vector<128x128xf32>
    %44 = vector.shape_cast %41 : vector<128x128xf32> to vector<1x128x128xf32>
    tpu.vector_store %arg7[%c0_23, %c0_24, %c0_25], %44 {strides = array<i32>} : memref<1x128x128xf32, #tpu.memory_space<vmem>>, vector<1x128x128xf32>,
    return
  }
  func.func @transform_0(%arg0: i32, %arg1: i32) -> i32 {
    %c0_i32 = arith.constant 0 : i32
    %c0_i32_0 = arith.constant 0 : i32
    return %c0_i32 : i32
  }
  func.func @transform_1(%arg0: i32, %arg1: i32) -> (i32, i32, i32, i32) {
    %c0_i32 = arith.constant 0 : i32
    %c0_i32_0 = arith.constant 0 : i32
    %c0_i32_1 = arith.constant 0 : i32
    return %arg0, %c0_i32, %arg1, %c0_i32_0 : i32, i32, i32, i32
  }
  func.func @transform_2(%arg0: i32, %arg1: i32) -> (i32, i32, i32, i32) {
    %c0_i32 = arith.constant 0 : i32
    %c0_i32_0 = arith.constant 0 : i32
    %c0_i32_1 = arith.constant 0 : i32
    %c0_i32_2 = arith.constant 0 : i32
    return %arg0, %c0_i32, %c0_i32_0, %c0_i32_1 : i32, i32, i32, i32
  }
  func.func @transform_3(%arg0: i32, %arg1: i32) -> (i32, i32, i32, i32) {
    %c0_i32 = arith.constant 0 : i32
    %c0_i32_0 = arith.constant 0 : i32
    %c0_i32_1 = arith.constant 0 : i32
    %c0_i32_2 = arith.constant 0 : i32
    return %arg0, %c0_i32, %c0_i32_0, %c0_i32_1 : i32, i32, i32, i32
  }
  func.func @transform_4(%arg0: i32, %arg1: i32) -> (i32, i32, i32) {
    %c0_i32 = arith.constant 0 : i32
    %c0_i32_0 = arith.constant 0 : i32
    %c0_i32_1 = arith.constant 0 : i32
    %c0_i32_2 = arith.constant 0 : i32
    return %c0_i32, %c0_i32_0, %c0_i32_1 : i32, i32, i32
  }
  func.func @transform_5(%arg0: i32, %arg1: i32) -> (i32, i32, i32) {
    %c0_i32 = arith.constant 0 : i32
    %c0_i32_0 = arith.constant 0 : i32
    return %arg0, %arg1, %c0_i32 : i32, i32, i32
  }
}

</mosaic_0001>

<bundles_post_ra>
// kernel: tpu_custom_call.1
= control target key start
LH: loop header
LB: loop body
LE: loop exit
PB: predicated region body
PF: predicated region fallthrough
CT: control target
= control target key end

     0   :  { %s10410_s0 = inlined_call_operand.<no memory space> [shape: f32[1], index: 0, kind: input, shape index: {}]   ;;  %s10411_s1 = inlined_call_operand.vmem [shape: bf16[2,8,128,16], index: 1, kind: input, shape index: {}]   ;;  %s10412_s2 = inlined_call_operand.vmem [shape: bf16[2,8,128,16], index: 2, kind: input, shape index: {}]   ;;  %s10413_s3 = inlined_call_operand.vmem [shape: bf16[2,4,128,32], index: 3, kind: input, shape index: {}]   ;;  %s10414_s4 = inlined_call_operand.vmem [shape: bf16[4,32,128], index: 4, kind: input, shape index: {}]   ;;  %s10415_s5 = inlined_call_operand.hbm [shape: f32[2,128,128], index: 5, kind: output, shape index: {}]  }
   0x1   :  { %10 = sst [smem:[#allocation2]] %s10410_s0 }
   0x2   :  { %11 = vsyncpa [#allocation4], 0 }
   0x3   :  { %13 = vsyncpa [#allocation4 + $0x1], 0  ;;  %s7668_s20 = smov 0   ;;  %s7670_s21 = smov 0  }
   0x4   :  { %s7672_s22 = smov 0   ;;  %s7674_s23 = smov 0  }
   0x5   :  { %s7676_s24 = smov 0   ;;  %s7678_s25 = smov 0  }
   0x6 LB: > { %s5594_s0 = sadd.s32 4294967295, %s7630_s25   ;;  %s5595_s26 = sadd.s32 4294967294, %s7630_s25   ;;  %s7630_s25 = sphi %s7678_s25, %s19_s25   ;;  %s7626_s24 = sphi %s7676_s24, %s11286_s24   ;;  %s7622_s23 = sphi %s7674_s23, %s11285_s23   ;;  %s7618_s22 = sphi %s7672_s22, %s11284_s22   ;;  %s7614_s21 = sphi %s7670_s21, %s11283_s21   ;;  %s7610_s20 = sphi %s7668_s20, %s11282_s20  }
   0x7   : > { %s31_s27 = sadd.s32 1, %s7626_s24  ;;  %s162_s28 = sadd.s32 1, %s7618_s22 }
   0x8   : > { %p33_p0 = scmp.ge.s32.totalorder %s31_s27, 2  ;;  %p172_p1 = scmp.ne.s32.totalorder %s7618_s22, %s7614_s21 }
   0x9   : > { %p173_p2 = scmp.eq.s32.totalorder %s5594_s0, 1  ;;  %p178_p3 = scmp.ne.s32.totalorder %s7614_s21, %s7610_s20 }
   0xa   : > { %s11288_s27 = smov (%p33_p0, %s31_s27), 0  ;;  %p179_p5 = scmp.eq.s32.totalorder %s5595_s26, 1 }
   0xb   : > { %p7708_p4 = por %p173_p2, %p172_p1  ;;  %s157_s30 = ssub.s32 %s7626_s24, %s11288_s27 }
   0xc   : > { %p5598_p6 = scmp.ge.s32.totalorder %s7630_s25, 1  ;;  %p160_p7 = scmp.eq.s32.totalorder %s157_s30, 0 }
   0xd   : > { %p7715_p8 = por %p179_p5, %p178_p3  ;;  %p232_p9 = scmp.lt.s32.totalorder %s7630_s25, 3 }
   0xe   : > { %s7721_s7 = scalar_select %p160_p7, %s7618_s22, %s162_s28  }
   0xf   : > { %p233_p10 = pnand %p5598_p6, %p232_p9 }
  0x11   : > { %236 = sbr.rel (%p233_p10) target bundleno = 1623 (0x657), region = 40 }
  0x18   : > { %p275_p11 = scmp.lt.s32.totalorder %s7622_s23, 1  ;;  %vm697_vm0 = vcmask 130048   ;;  %s9389_s0 = sld [smem:[#allocation2]]  ;;  %vm4375_vm1 = vcmask 261120  }
  0x19   : > { %s271_s26 = sand.u32 1, %s7614_s21   ;;  %s7632_s14 = smov [#allocation3]  }
  0x1a   : > { %s7725_s8 = scalar_select %p275_p11, %s7622_s23, 1 }
  0x1b   : > { %s5599_s28 = sshll.u32 %s271_s26, 7 }
  0x1c   : > { %s5875_s9 = sshll.u32 %s7725_s8, 9  ;;  %s5877_s16 = sshll.u32 %s7725_s8, 8 }
  0x1d   : > { %s7731_s12 = scalar_lea.vmem %s10412_s2, %s5875_s9  ;;  %s7752_s15 = scalar_lea.vmem %s10411_s1, %s5875_s9 }
  0x1e   : > { %v6744_v0 = vld [vmem:[%s7731_s12] sm:$0xff]   ;;  %v6746_v3 = vld [vmem:[%s7731_s12 + $0x8] sm:$0xff]   ;;  %v6748_v7 = vld [vmem:[%s7731_s12 + $0x10] sm:$0xff]   ;;  %s8878_s19 = scalar_lea.vmem %s10413_s3, %s5877_s16  ;;  %s10335_s30 = scalar_lea.vmem [#allocation3], %s5599_s28 }
  0x1f   : > { %v6745_v1 = vld [vmem:[%s7731_s12 + $0x80] sm:$0xff]   ;;  %6623 = vmatprep.subr.msk.bf16.mxu1 %vm697_vm0, %v6744_v0  ;;  %v723_v2 = vsel %vm697_vm0, %v6744_v0, 0  ;;  %v6747_v5 = vld [vmem:[%s7731_s12 + $0x88] sm:$0xff]   ;;  %v726_v6 = vsel %vm697_vm0, %v6746_v3, 0  ;;  %v6749_v9 = vld [vmem:[%s7731_s12 + $0x90] sm:$0xff]   ;;  %v729_v12 = vsel %vm697_vm0, %v6748_v7, 0 }
  0x20   : > { %6639 = vmatprep.subr.msk.bf16.mxu0 %vm697_vm0, %v6745_v1  ;;  %6112 = vmatpush3.bf16.xpose.msra.mxu1 %v723_v2  ;;  %v1173_v4 = vsel %vm697_vm0, %v6745_v1, 0  ;;  %v1176_v8 = vsel %vm697_vm0, %v6747_v5, 0  ;;  %v6750_v10 = vld [vmem:[%s7731_s12 + $0x18] sm:$0xff]   ;;  %v6760_v13 = vld [vmem:[%s7752_s15] sm:$0xff]   ;;  %v1179_v14 = vsel %vm697_vm0, %v6749_v9, 0  ;;  %v6754_v21 = vld [vmem:[%s7731_s12 + $0x28] sm:$0xff]  }
  0x21   : > { %6176 = vmatpush3.bf16.xpose.msra.mxu0 %v1173_v4  ;;  %6624 = vmatprep.subr.msk.bf16.mxu1 %vm697_vm0, %v6746_v3  ;;  %v6751_v11 = vld [vmem:[%s7731_s12 + $0x98] sm:$0xff]   ;;  %v6761_v15 = vld [vmem:[%s7752_s15 + $0x80] sm:$0xff]   ;;  %v732_v16 = vsel %vm697_vm0, %v6750_v10, 0  ;;  %v6755_v23 = vld [vmem:[%s7731_s12 + $0xa8] sm:$0xff]   ;;  %v738_v24 = vsel %vm697_vm0, %v6754_v21, 0  ;;  %s5878_s8 = sshll.u32 %s7622_s23, 11 }
  0x22   : > { %6640 = vmatprep.subr.msk.bf16.mxu0 %vm697_vm0, %v6747_v5  ;;  %6127 = vmatprep.mubr.msk.bf16.mxu1 %vm697_vm0, %v6760_v13  ;;  %v6752_v17 = vld [vmem:[%s7731_s12 + $0x20] sm:$0xff]   ;;  %v1182_v18 = vsel %vm697_vm0, %v6751_v11, 0  ;;  %v6756_v25 = vld [vmem:[%s7731_s12 + $0x30] sm:$0xff]   ;;  %v1188_v26 = vsel %vm697_vm0, %v6755_v23, 0  ;;  %v6758_v29 = vld [vmem:[%s7731_s12 + $0x38] sm:$0xff]   ;;  %s5485_s9 = sshll.u32 %s10335_s30, 4  ;;  %s10357_s9 = int_to_ptr.vmem [resolvable:$true] %s5485_s9 }
  0x23   : > { %6191 = vmatprep.mubr.msk.bf16.mxu0 %vm697_vm0, %v6761_v15  ;;  %v6753_v19 = vld [vmem:[%s7731_s12 + $0xa0] sm:$0xff]   ;;  %v735_v20 = vsel %vm697_vm0, %v6752_v17, 0  ;;  %v6757_v27 = vld [vmem:[%s7731_s12 + $0xb0] sm:$0xff]   ;;  %v741_v28 = vsel %vm697_vm0, %v6756_v25, 0  ;;  %v6759_v31 = vld [vmem:[%s7731_s12 + $0xb8] sm:$0xff]   ;;  %v744_v32 = vsel %vm697_vm0, %v6758_v29, 0 }
  0x24   : > { %v1185_v22 = vsel %vm697_vm0, %v6753_v19, 0  ;;  %v1191_v30 = vsel %vm697_vm0, %v6757_v27, 0  ;;  %v6763_v33 = vld [vmem:[%s7731_s12 + $0x40] sm:$0xff]   ;;  %v1194_v34 = vsel %vm697_vm0, %v6759_v31, 0  ;;  %v6762_v36 = vld [vmem:[%s7752_s15 + $0x8] sm:$0xff]   ;;  %v6768_v42 = vld [vmem:[%s7752_s15 + $0x10] sm:$0xff]  }
  0x25   : > { %v6765_v35 = vld [vmem:[%s7731_s12 + $0x100] sm:$0xff]   ;;  %v6764_v37 = vld [vmem:[%s7752_s15 + $0x88] sm:$0xff]   ;;  %v948_v39 = vsel %vm697_vm0, %v6763_v33, 0  ;;  %v6771_v43 = vld [vmem:[%s7752_s15 + $0x90] sm:$0xff]   ;;  %s10364_s23 = scalar_lea.sflag [#allocation4], %s271_s26  ;;  %s7552_s13 = scalar_lea.vmem %s10357_s9, 2048 }
  0x26   : > { %v6766_v38 = vld [vmem:[%s7731_s12 + $0x48] sm:$0xff]   ;;  %v1623_v41 = vsel %vm697_vm0, %v6765_v35, 0  ;;  %v6769_v44 = vld [vmem:[%s7752_s15 + $0x18] sm:$0xff]   ;;  %v6770_v45 = vld [vmem:[%s7731_s12 + $0x50] sm:$0xff]   ;;  %p7553_p12 = scmp.ne.s32.totalorder %s10357_s9, %s7552_s13 }
  0x27   : > { %v6767_v40 = vld [vmem:[%s7731_s12 + $0x108] sm:$0xff]   ;;  %v6773_v46 = vld [vmem:[%s7752_s15 + $0x98] sm:$0xff]   ;;  %v951_v47 = vsel %vm697_vm0, %v6766_v38, 0  ;;  %v6772_v48 = vld [vmem:[%s7731_s12 + $0x110] sm:$0xff]   ;;  %v954_v55 = vsel %vm697_vm0, %v6770_v45, 0 }
  0x28   : > { %6114 = vmatpush3.bf16.xpose.msra.mxu1 %v726_v6  ;;  %v1626_v49 = vsel %vm697_vm0, %v6767_v40, 0  ;;  %v6776_v50 = vld [vmem:[%s7752_s15 + $0x20] sm:$0xff]   ;;  %v6774_v52 = vld [vmem:[%s7731_s12 + $0x58] sm:$0xff]   ;;  %v6777_v53 = vld [vmem:[%s7752_s15 + $0x28] sm:$0xff]   ;;  %v1629_v57 = vsel %vm697_vm0, %v6772_v48, 0  ;;  %p7554_p13 = pnand %p7553_p12, %p7708_p4 }
  0x29   : > { %6178 = vmatpush3.bf16.xpose.msra.mxu0 %v1176_v8  ;;  %6625 = vmatprep.subr.msk.bf16.mxu1 %vm697_vm0, %v6748_v7  ;;  %v6779_v51 = vld [vmem:[%s7752_s15 + $0xa0] sm:$0xff]   ;;  %v6781_v54 = vld [vmem:[%s7752_s15 + $0xa8] sm:$0xff]   ;;  %v6775_v56 = vld [vmem:[%s7731_s12 + $0x118] sm:$0xff]   ;;  %v957_v63 = vsel %vm697_vm0, %v6774_v52, 0 }
  0x2a   : > { %6641 = vmatprep.subr.msk.bf16.mxu0 %vm697_vm0, %v6749_v9  ;;  %v6784_v58 = vld [vmem:[%s7752_s15 + $0x30] sm:$0xff]   ;;  %v6778_v60 = vld [vmem:[%s7731_s12 + $0x60] sm:$0xff]   ;;  %v6785_v61 = vld [vmem:[%s7752_s15 + $0x38] sm:$0xff]   ;;  %v1632_v1 = vsel %vm697_vm0, %v6775_v56, 0  ;;  %p7555_p0 = pneg %p7554_p13 }
  0x2b   : > { %v6787_v59 = vld [vmem:[%s7752_s15 + $0xb0] sm:$0xff]   ;;  %v6789_v62 = vld [vmem:[%s7752_s15 + $0xb8] sm:$0xff]   ;;  %v6780_v0 = vld [vmem:[%s7731_s12 + $0x120] sm:$0xff]   ;;  %v960_v7 = vsel %vm697_vm0, %v6778_v60, 0 }
  0x2c   : > { %v6792_v2 = vld [vmem:[%s7752_s15 + $0x40] sm:$0xff]   ;;  %v6782_v4 = vld [vmem:[%s7731_s12 + $0x68] sm:$0xff]   ;;  %v6786_v6 = vld [vmem:[%s7731_s12 + $0x70] sm:$0xff]   ;;  %v1635_v9 = vsel %vm697_vm0, %v6780_v0, 0 }
  0x2d   : > { %v6793_v3 = vld [vmem:[%s7752_s15 + $0x100] sm:$0xff]   ;;  %v6783_v5 = vld [vmem:[%s7731_s12 + $0x128] sm:$0xff]   ;;  %v6788_v8 = vld [vmem:[%s7731_s12 + $0x130] sm:$0xff]  }
  0x2e   : > { %v1641_v13 = vsel %vm697_vm0, %v6788_v8, 0  ;;  %v6791_v15 = vld [vmem:[%s7731_s12 + $0x138] sm:$0xff]  }
  0x30   : > { %6116 = vmatpush3.bf16.xpose.msra.mxu1 %v729_v12  ;;  %v966_v12 = vsel %vm697_vm0, %v6786_v6, 0 }
  0x31   : > { %6180 = vmatpush3.bf16.xpose.msra.mxu0 %v1179_v14  ;;  %6626 = vmatprep.subr.msk.bf16.mxu1 %vm697_vm0, %v6750_v10  ;;  %v963_v10 = vsel %vm697_vm0, %v6782_v4, 0  ;;  %v6790_v14 = vld [vmem:[%s7731_s12 + $0x78] sm:$0xff]  }
  0x32   : > { %6642 = vmatprep.subr.msk.bf16.mxu0 %vm697_vm0, %v6751_v11  ;;  %v1638_v11 = vsel %vm697_vm0, %v6783_v5, 0 }
  0x38   : > { %6118 = vmatpush3.bf16.xpose.msra.mxu1 %v732_v16  ;;  %v969_v16 = vsel %vm697_vm0, %v6790_v14, 0 }
  0x39   : > { %6182 = vmatpush3.bf16.xpose.msra.mxu0 %v1182_v18  ;;  %6627 = vmatprep.subr.msk.bf16.mxu1 %vm697_vm0, %v6752_v17  ;;  %v6795_v17 = vld [vmem:[%s7731_s12 + $0xc0] sm:$0xff]   ;;  %v1644_v18 = vsel %vm697_vm0, %v6791_v15, 0 }
  0x3a   : > { %6643 = vmatprep.subr.msk.bf16.mxu0 %vm697_vm0, %v6753_v19  ;;  %v6797_v19 = vld [vmem:[%s7731_s12 + $0x180] sm:$0xff]  }
  0x40   : > { %6120 = vmatpush3.bf16.xpose.msra.mxu1 %v735_v20  ;;  %v6794_v20 = vld [vmem:[%s7752_s15 + $0x48] sm:$0xff]  }
  0x41   : > { %6184 = vmatpush3.bf16.xpose.msra.mxu0 %v1185_v22  ;;  %6628 = vmatprep.subr.msk.bf16.mxu1 %vm697_vm0, %v6754_v21  ;;  %v6796_v21 = vld [vmem:[%s7752_s15 + $0x108] sm:$0xff]   ;;  %v1398_v22 = vsel %vm697_vm0, %v6795_v17, 0 }
  0x42   : > { %6644 = vmatprep.subr.msk.bf16.mxu0 %vm697_vm0, %v6755_v23  ;;  %v6798_v23 = vld [vmem:[%s7731_s12 + $0xc8] sm:$0xff]  }
  0x48   : > { %6122 = vmatpush3.bf16.xpose.msra.mxu1 %v738_v24  ;;  %v2073_v24 = vsel %vm697_vm0, %v6797_v19, 0 }
  0x49   : > { %6186 = vmatpush3.bf16.xpose.msra.mxu0 %v1188_v26  ;;  %6629 = vmatprep.subr.msk.bf16.mxu1 %vm697_vm0, %v6756_v25  ;;  %v6799_v25 = vld [vmem:[%s7731_s12 + $0x188] sm:$0xff]   ;;  %v6800_v26 = vld [vmem:[%s7752_s15 + $0x50] sm:$0xff]  }
  0x4a   : > { %6645 = vmatprep.subr.msk.bf16.mxu0 %vm697_vm0, %v6757_v27  ;;  %v6803_v27 = vld [vmem:[%s7752_s15 + $0x110] sm:$0xff]  }
  0x50   : > { %6124 = vmatpush3.bf16.xpose.msra.mxu1 %v741_v28  ;;  %v6801_v28 = vld [vmem:[%s7752_s15 + $0x58] sm:$0xff]  }
  0x51   : > { %6188 = vmatpush3.bf16.xpose.msra.mxu0 %v1191_v30  ;;  %6630 = vmatprep.subr.msk.bf16.mxu1 %vm697_vm0, %v6758_v29  ;;  %v6804_v29 = vld [vmem:[%s7752_s15 + $0x118] sm:$0xff]   ;;  %v1401_v30 = vsel %vm697_vm0, %v6798_v23, 0 }
  0x52   : > { %6646 = vmatprep.subr.msk.bf16.mxu0 %vm697_vm0, %v6759_v31  ;;  %v6802_v31 = vld [vmem:[%s7731_s12 + $0xd0] sm:$0xff]  }
  0x58   : > { %6126 = vmatpush3.bf16.xpose.msra.mxu1 %v744_v32  ;;  %v2076_v32 = vsel %vm697_vm0, %v6799_v25, 0 }
  0x59   : > { %6190 = vmatpush3.bf16.xpose.msra.mxu0 %v1194_v34  ;;  %6631 = vmatprep.subr.msk.bf16.mxu1 %vm697_vm0, %v6763_v33  ;;  %v6805_v33 = vld [vmem:[%s7731_s12 + $0x190] sm:$0xff]   ;;  %v6808_v34 = vld [vmem:[%s7752_s15 + $0x60] sm:$0xff]  }
  0x5a   : > { %6655 = vmatprep.subr.msk.bf16.mxu0 %vm697_vm0, %v6765_v35  ;;  %v6811_v35 = vld [vmem:[%s7752_s15 + $0x120] sm:$0xff]  }
  0x5f   : > { %6128 = vmatmul.mubr.msk.bf16.vlgmr.msra.gmra.mrb[0].mxu1 %vm697_vm0, %v6762_v36  ;;  %v6809_v36 = vld [vmem:[%s7752_s15 + $0x68] sm:$0xff]  }
  0x60   : > { %6192 = vmatmul.mubr.msk.bf16.vlgmr.msra.gmra.mrb[0].mxu0 %vm697_vm0, %v6764_v37  ;;  %6144 = vmatpush3.bf16.xpose.msra.mxu1 %v948_v39  ;;  %v6812_v37 = vld [vmem:[%s7752_s15 + $0x128] sm:$0xff]   ;;  %v6806_v39 = vld [vmem:[%s7731_s12 + $0xd8] sm:$0xff]  }
  0x61   : > { %6240 = vmatpush3.bf16.xpose.msra.mxu0 %v1623_v41  ;;  %6632 = vmatprep.subr.msk.bf16.mxu1 %vm697_vm0, %v6766_v38  ;;  %v1404_v38 = vsel %vm697_vm0, %v6802_v31, 0  ;;  %v6807_v41 = vld [vmem:[%s7731_s12 + $0x198] sm:$0xff]  }
  0x62   : > { %6656 = vmatprep.subr.msk.bf16.mxu0 %vm697_vm0, %v6767_v40  ;;  %6131 = vmatprep.mubr.msk.bf16.mxu1 %vm697_vm0, %v6768_v42  ;;  %v2079_v40 = vsel %vm697_vm0, %v6805_v33, 0  ;;  %v6816_v42 = vld [vmem:[%s7752_s15 + $0x70] sm:$0xff]  }
  0x63   : > { %6195 = vmatprep.mubr.msk.bf16.mxu0 %vm697_vm0, %v6771_v43  ;;  %v6819_v43 = vld [vmem:[%s7752_s15 + $0x130] sm:$0xff]  }
  0x67   : > { %6132 = vmatmul.mubr.msk.bf16.gmra.mrb[4].mxu1 %vm697_vm0, %v6769_v44  ;;  %v6817_v44 = vld [vmem:[%s7752_s15 + $0x78] sm:$0xff]  }
  0x68   : > { %6146 = vmatpush3.bf16.xpose.msra.mxu1 %v951_v47  ;;  %6196 = vmatmul.mubr.msk.bf16.gmra.mrb[4].mxu0 %vm697_vm0, %v6773_v46  ;;  %v1407_v46 = vsel %vm697_vm0, %v6806_v39, 0  ;;  %v6810_v47 = vld [vmem:[%s7731_s12 + $0xe0] sm:$0xff]  }
  0x69   : > { %6242 = vmatpush3.bf16.xpose.msra.mxu0 %v1626_v49  ;;  %6633 = vmatprep.subr.msk.bf16.mxu1 %vm697_vm0, %v6770_v45  ;;  %v6820_v45 = vld [vmem:[%s7752_s15 + $0x138] sm:$0xff]   ;;  %v6813_v49 = vld [vmem:[%s7731_s12 + $0x1a0] sm:$0xff]  }
  0x6a   : > { %6657 = vmatprep.subr.msk.bf16.mxu0 %vm697_vm0, %v6772_v48  ;;  %6135 = vmatprep.mubr.msk.bf16.mxu1 %vm697_vm0, %v6776_v50  ;;  %v2082_v48 = vsel %vm697_vm0, %v6807_v41, 0  ;;  %v6824_v50 = vld [vmem:[%s7752_s15 + $0xc0] sm:$0xff]  }
  0x6b   : > { %6199 = vmatprep.mubr.msk.bf16.mxu0 %vm697_vm0, %v6779_v51  ;;  %v6826_v51 = vld [vmem:[%s7752_s15 + $0x180] sm:$0xff]  }
  0x6f   : > { %6136 = vmatmul.mubr.msk.bf16.gmra.mrb[8].mxu1 %vm697_vm0, %v6777_v53  ;;  %v6814_v53 = vld [vmem:[%s7731_s12 + $0xe8] sm:$0xff]  }
  0x70   : > { %6148 = vmatpush3.bf16.xpose.msra.mxu1 %v954_v55  ;;  %6200 = vmatmul.mubr.msk.bf16.gmra.mrb[8].mxu0 %vm697_vm0, %v6781_v54  ;;  %v2085_v54 = vsel %vm697_vm0, %v6813_v49, 0  ;;  %v6815_v55 = vld [vmem:[%s7731_s12 + $0x1a8] sm:$0xff]  }
  0x71   : > { %6244 = vmatpush3.bf16.xpose.msra.mxu0 %v1629_v57  ;;  %6634 = vmatprep.subr.msk.bf16.mxu1 %vm697_vm0, %v6774_v52  ;;  %v1410_v52 = vsel %vm697_vm0, %v6810_v47, 0  ;;  %v6818_v57 = vld [vmem:[%s7731_s12 + $0xf0] sm:$0xff]  }
  0x72   : > { %6658 = vmatprep.subr.msk.bf16.mxu0 %vm697_vm0, %v6775_v56  ;;  %6139 = vmatprep.mubr.msk.bf16.mxu1 %vm697_vm0, %v6784_v58  ;;  %v1413_v56 = vsel %vm697_vm0, %v6814_v53, 0  ;;  %v2088_v58 = vsel %vm697_vm0, %v6815_v55, 0 }
  0x73   : > { %6203 = vmatprep.mubr.msk.bf16.mxu0 %vm697_vm0, %v6787_v59  ;;  %v6821_v59 = vld [vmem:[%s7731_s12 + $0x1b0] sm:$0xff]  }
  0x77   : > { %6140 = vmatmul.mubr.msk.bf16.gmra.mrb[12].mxu1 %vm697_vm0, %v6785_v61  ;;  %v6822_v61 = vld [vmem:[%s7731_s12 + $0xf8] sm:$0xff]  }
  0x78   : > { %6150 = vmatpush3.bf16.xpose.msra.mxu1 %v957_v63  ;;  %6204 = vmatmul.mubr.msk.bf16.gmra.mrb[12].mxu0 %vm697_vm0, %v6789_v62  ;;  %v2091_v62 = vsel %vm697_vm0, %v6821_v59, 0  ;;  %v6823_v63 = vld [vmem:[%s7731_s12 + $0x1b8] sm:$0xff]  }
  0x79   : > { %6246 = vmatpush3.bf16.xpose.msra.mxu0 %v1632_v1  ;;  %6635 = vmatprep.subr.msk.bf16.mxu1 %vm697_vm0, %v6778_v60  ;;  %v1416_v60 = vsel %vm697_vm0, %v6818_v57, 0  ;;  %v6840_v1 = vld [vmem:[%s7731_s12 + $0x140] sm:$0xff]  }
  0x7a   : > { %6659 = vmatprep.subr.msk.bf16.mxu0 %vm697_vm0, %v6780_v0  ;;  %6159 = vmatprep.mubr.msk.bf16.mxu1 %vm697_vm0, %v6792_v2  ;;  %v1419_v0 = vsel %vm697_vm0, %v6822_v61, 0  ;;  %v2094_v2 = vsel %vm697_vm0, %v6823_v63, 0 }
  0x7b   : > { %6255 = vmatprep.mubr.msk.bf16.mxu0 %vm697_vm0, %v6793_v3  ;;  %v6825_v3 = vld [vmem:[%s7752_s15 + $0xc8] sm:$0xff]  }
  0x80   : > { %6152 = vmatpush3.bf16.xpose.msra.mxu1 %v960_v7  ;;  %v1848_v7 = vsel %vm697_vm0, %v6840_v1, 0 }
  0x81   : > { %6248 = vmatpush3.bf16.xpose.msra.mxu0 %v1635_v9  ;;  %6636 = vmatprep.subr.msk.bf16.mxu1 %vm697_vm0, %v6782_v4  ;;  %v6827_v4 = vld [vmem:[%s7752_s15 + $0x188] sm:$0xff]   ;;  %v6829_v9 = vld [vmem:[%s7752_s15 + $0xd8] sm:$0xff]  }
  0x82   : > { %6660 = vmatprep.subr.msk.bf16.mxu0 %vm697_vm0, %v6783_v5  ;;  %v6828_v5 = vld [vmem:[%s7752_s15 + $0xd0] sm:$0xff]  }
  0x88   : > { %6154 = vmatpush3.bf16.xpose.msra.mxu1 %v963_v10  ;;  %v6831_v10 = vld [vmem:[%s7752_s15 + $0x198] sm:$0xff]  }
  0x89   : > { %6250 = vmatpush3.bf16.xpose.msra.mxu0 %v1638_v11  ;;  %6637 = vmatprep.subr.msk.bf16.mxu1 %vm697_vm0, %v6786_v6  ;;  %v6830_v6 = vld [vmem:[%s7752_s15 + $0x190] sm:$0xff]   ;;  %v6832_v11 = vld [vmem:[%s7752_s15 + $0xe0] sm:$0xff]  }
  0x8a   : > { %6661 = vmatprep.subr.msk.bf16.mxu0 %vm697_vm0, %v6788_v8  ;;  %v6841_v8 = vld [vmem:[%s7731_s12 + $0x148] sm:$0xff]  }
  0x90   : > { %6156 = vmatpush3.bf16.xpose.msra.mxu1 %v966_v12  ;;  %v6834_v12 = vld [vmem:[%s7752_s15 + $0x1a0] sm:$0xff]  }
  0x91   : > { %6252 = vmatpush3.bf16.xpose.msra.mxu0 %v1641_v13  ;;  %6638 = vmatprep.subr.msk.bf16.mxu1 %vm697_vm0, %v6790_v14  ;;  %v1851_v13 = vsel %vm697_vm0, %v6841_v8, 0  ;;  %v6842_v14 = vld [vmem:[%s7731_s12 + $0x150] sm:$0xff]  }
  0x92   : > { %6662 = vmatprep.subr.msk.bf16.mxu0 %vm697_vm0, %v6791_v15  ;;  %v6833_v15 = vld [vmem:[%s7752_s15 + $0xe8] sm:$0xff]  }
  0x98   : > { %6158 = vmatpush3.bf16.xpose.msra.mxu1 %v969_v16  ;;  %v6835_v16 = vld [vmem:[%s7752_s15 + $0x1a8] sm:$0xff]  }
  0x99   : > { %6254 = vmatpush3.bf16.xpose.msra.mxu0 %v1644_v18  ;;  %6647 = vmatprep.subr.msk.bf16.mxu1 %vm697_vm0, %v6795_v17  ;;  %v6836_v17 = vld [vmem:[%s7752_s15 + $0xf0] sm:$0xff]  }
  0x9a   : > { %6671 = vmatprep.subr.msk.bf16.mxu0 %vm697_vm0, %v6797_v19  ;;  %v6838_v18 = vld [vmem:[%s7752_s15 + $0x1b0] sm:$0xff]   ;;  %v1854_v19 = vsel %vm697_vm0, %v6842_v14, 0 }
  0x9f   : > { %6160 = vmatmul.mubr.msk.bf16.vlgmr.msra.gmra.mrb[16].mxu1 %vm697_vm0, %v6794_v20  ;;  %v6843_v20 = vld [vmem:[%s7731_s12 + $0x158] sm:$0xff]  }
  0xa0   : > { %6256 = vmatmul.mubr.msk.bf16.vlgmr.msra.gmra.mrb[16].mxu0 %vm697_vm0, %v6796_v21  ;;  %6208 = vmatpush3.bf16.xpose.msra.mxu1 %v1398_v22  ;;  %v6837_v21 = vld [vmem:[%s7752_s15 + $0xf8] sm:$0xff]  }
  0xa1   : > { %6304 = vmatpush3.bf16.xpose.msra.mxu0 %v2073_v24  ;;  %6648 = vmatprep.subr.msk.bf16.mxu1 %vm697_vm0, %v6798_v23  ;;  %v6839_v22 = vld [vmem:[%s7752_s15 + $0x1b8] sm:$0xff]   ;;  %v6848_v23 = vld [vmem:[%s7752_s15 + $0x140] sm:$0xff]   ;;  %v1857_v24 = vsel %vm697_vm0, %v6843_v20, 0 }
  0xa2   : > { %6672 = vmatprep.subr.msk.bf16.mxu0 %vm697_vm0, %v6799_v25  ;;  %6163 = vmatprep.mubr.msk.bf16.mxu1 %vm697_vm0, %v6800_v26  ;;  %v6844_v25 = vld [vmem:[%s7731_s12 + $0x160] sm:$0xff]  }
  0xa3   : > { %6259 = vmatprep.mubr.msk.bf16.mxu0 %vm697_vm0, %v6803_v27  ;;  %v1860_v26 = vsel %vm697_vm0, %v6844_v25, 0  ;;  %v6845_v27 = vld [vmem:[%s7731_s12 + $0x168] sm:$0xff]  }
  0xa7   : > { %6164 = vmatmul.mubr.msk.bf16.gmra.mrb[20].mxu1 %vm697_vm0, %v6801_v28  ;;  %v1863_v28 = vsel %vm697_vm0, %v6845_v27, 0 }
  0xa8   : > { %6210 = vmatpush3.bf16.xpose.msra.mxu1 %v1401_v30  ;;  %6260 = vmatmul.mubr.msk.bf16.gmra.mrb[20].mxu0 %vm697_vm0, %v6804_v29  ;;  %v6846_v29 = vld [vmem:[%s7731_s12 + $0x170] sm:$0xff]  }
  0xa9   : > { %6306 = vmatpush3.bf16.xpose.msra.mxu0 %v2076_v32  ;;  %6649 = vmatprep.subr.msk.bf16.mxu1 %vm697_vm0, %v6802_v31  ;;  %v1866_v30 = vsel %vm697_vm0, %v6846_v29, 0  ;;  %v6847_v31 = vld [vmem:[%s7731_s12 + $0x178] sm:$0xff]  }
  0xaa   : > { %6673 = vmatprep.subr.msk.bf16.mxu0 %vm697_vm0, %v6805_v33  ;;  %6167 = vmatprep.mubr.msk.bf16.mxu1 %vm697_vm0, %v6808_v34  ;;  %v1869_v32 = vsel %vm697_vm0, %v6847_v31, 0  ;;  %v6856_v33 = vld [vmem:[%s7731_s12 + $0x1c0] sm:$0xff]   ;;  %v6849_v34 = vld [vmem:[%s7752_s15 + $0x148] sm:$0xff]  }
  0xab   : > { %6263 = vmatprep.mubr.msk.bf16.mxu0 %vm697_vm0, %v6811_v35  ;;  %v6850_v35 = vld [vmem:[%s7752_s15 + $0x150] sm:$0xff]  }
  0xaf   : > { %6168 = vmatmul.mubr.msk.bf16.gmra.mrb[24].mxu1 %vm697_vm0, %v6809_v36  ;;  %v2298_v36 = vsel %vm697_vm0, %v6856_v33, 0 }
  0xb0   : > { %6212 = vmatpush3.bf16.xpose.msra.mxu1 %v1404_v38  ;;  %6264 = vmatmul.mubr.msk.bf16.gmra.mrb[24].mxu0 %vm697_vm0, %v6812_v37  ;;  %v6857_v37 = vld [vmem:[%s7731_s12 + $0x1c8] sm:$0xff]   ;;  %v6851_v38 = vld [vmem:[%s7752_s15 + $0x158] sm:$0xff]  }
  0xb1   : > { %6308 = vmatpush3.bf16.xpose.msra.mxu0 %v2079_v40  ;;  %6650 = vmatprep.subr.msk.bf16.mxu1 %vm697_vm0, %v6806_v39  ;;  %v6852_v39 = vld [vmem:[%s7752_s15 + $0x160] sm:$0xff]   ;;  %v2301_v40 = vsel %vm697_vm0, %v6857_v37, 0 }
  0xb2   : > { %6674 = vmatprep.subr.msk.bf16.mxu0 %vm697_vm0, %v6807_v41  ;;  %6171 = vmatprep.mubr.msk.bf16.mxu1 %vm697_vm0, %v6816_v42  ;;  %v6858_v41 = vld [vmem:[%s7731_s12 + $0x1d0] sm:$0xff]   ;;  %v6853_v42 = vld [vmem:[%s7752_s15 + $0x168] sm:$0xff]  }
  0xb3   : > { %6267 = vmatprep.mubr.msk.bf16.mxu0 %vm697_vm0, %v6819_v43  ;;  %v6854_v43 = vld [vmem:[%s7752_s15 + $0x170] sm:$0xff]  }
  0xb7   : > { %6172 = vmatmul.mubr.msk.bf16.gmra.mrb[28].mxu1 %vm697_vm0, %v6817_v44  ;;  %v2304_v44 = vsel %vm697_vm0, %v6858_v41, 0 }
  0xb8   : > { %6214 = vmatpush3.bf16.xpose.msra.mxu1 %v1407_v46  ;;  %6268 = vmatmul.mubr.msk.bf16.gmra.mrb[28].mxu0 %vm697_vm0, %v6820_v45  ;;  %v6859_v45 = vld [vmem:[%s7731_s12 + $0x1d8] sm:$0xff]  }
  0xb9   : > { %6310 = vmatpush3.bf16.xpose.msra.mxu0 %v2082_v48  ;;  %6651 = vmatprep.subr.msk.bf16.mxu1 %vm697_vm0, %v6810_v47 }
  0xba   : > { %6675 = vmatprep.subr.msk.bf16.mxu0 %vm697_vm0, %v6813_v49  ;;  %6223 = vmatprep.mubr.msk.bf16.mxu1 %vm697_vm0, %v6824_v50 }
  0xbb   : > { %6319 = vmatprep.mubr.msk.bf16.mxu0 %vm697_vm0, %v6826_v51  ;;  %v6855_v51 = vld [vmem:[%s7752_s15 + $0x178] sm:$0xff]  }
  0xc0   : > { %6216 = vmatpush3.bf16.xpose.msra.mxu1 %v1410_v52 }
  0xc1   : > { %6312 = vmatpush3.bf16.xpose.msra.mxu0 %v2085_v54  ;;  %6652 = vmatprep.subr.msk.bf16.mxu1 %vm697_vm0, %v6814_v53 }
  0xc2   : > { %6676 = vmatprep.subr.msk.bf16.mxu0 %vm697_vm0, %v6815_v55  ;;  %v2307_v55 = vsel %vm697_vm0, %v6859_v45, 0 }
  0xc8   : > { %6218 = vmatpush3.bf16.xpose.msra.mxu1 %v1413_v56  ;;  %v6860_v56 = vld [vmem:[%s7731_s12 + $0x1e0] sm:$0xff]  }
  0xc9   : > { %6314 = vmatpush3.bf16.xpose.msra.mxu0 %v2088_v58  ;;  %6653 = vmatprep.subr.msk.bf16.mxu1 %vm697_vm0, %v6818_v57  ;;  %v6864_v57 = vld [vmem:[%s7752_s15 + $0x1c0] sm:$0xff]  }
  0xca   : > { %6677 = vmatprep.subr.msk.bf16.mxu0 %vm697_vm0, %v6821_v59 }
  0xd0   : > { %6220 = vmatpush3.bf16.xpose.msra.mxu1 %v1416_v60 }
  0xd1   : > { %6316 = vmatpush3.bf16.xpose.msra.mxu0 %v2091_v62  ;;  %6654 = vmatprep.subr.msk.bf16.mxu1 %vm697_vm0, %v6822_v61 }
  0xd2   : > { %6678 = vmatprep.subr.msk.bf16.mxu0 %vm697_vm0, %v6823_v63 }
  0xd8   : > { %6222 = vmatpush3.bf16.xpose.msra.mxu1 %v1419_v0 }
  0xd9   : > { %6318 = vmatpush3.bf16.xpose.msra.mxu0 %v2094_v2  ;;  %6663 = vmatprep.subr.msk.bf16.mxu1 %vm697_vm0, %v6840_v1  ;;  %v2310_v2 = vsel %vm697_vm0, %v6860_v56, 0 }
  0xdf   : > { %6224 = vmatmul.mubr.msk.bf16.vlgmr.msra.gmra.mrb[32].mxu1 %vm697_vm0, %v6825_v3  ;;  %v6861_v3 = vld [vmem:[%s7731_s12 + $0x1e8] sm:$0xff]  }
  0xe0   : > { %6320 = vmatmul.mubr.msk.bf16.vlgmr.msra.gmra.mrb[32].mxu0 %vm697_vm0, %v6827_v4  ;;  %6227 = vmatprep.mubr.msk.bf16.mxu1 %vm697_vm0, %v6828_v5 }
  0xe1   : > { %6323 = vmatprep.mubr.msk.bf16.mxu0 %vm697_vm0, %v6830_v6  ;;  %6272 = vmatpush3.bf16.xpose.msra.mxu1 %v1848_v7 }
  0xe2   : > { %6664 = vmatprep.subr.msk.bf16.mxu1 %vm697_vm0, %v6841_v8 }
  0xe7   : > { %6228 = vmatmul.mubr.msk.bf16.gmra.mrb[36].mxu1 %vm697_vm0, %v6829_v9 }
  0xe8   : > { %6324 = vmatmul.mubr.msk.bf16.gmra.mrb[36].mxu0 %vm697_vm0, %v6831_v10  ;;  %6231 = vmatprep.mubr.msk.bf16.mxu1 %vm697_vm0, %v6832_v11 }
  0xe9   : > { %6327 = vmatprep.mubr.msk.bf16.mxu0 %vm697_vm0, %v6834_v12  ;;  %6274 = vmatpush3.bf16.xpose.msra.mxu1 %v1851_v13  ;;  %v2313_v12 = vsel %vm697_vm0, %v6861_v3, 0  ;;  %v6862_v13 = vld [vmem:[%s7731_s12 + $0x1f0] sm:$0xff]  }
  0xea   : > { %6665 = vmatprep.subr.msk.bf16.mxu1 %vm697_vm0, %v6842_v14 }
  0xef   : > { %6232 = vmatmul.mubr.msk.bf16.gmra.mrb[40].mxu1 %vm697_vm0, %v6833_v15 }
  0xf0   : > { %6328 = vmatmul.mubr.msk.bf16.gmra.mrb[40].mxu0 %vm697_vm0, %v6835_v16  ;;  %6235 = vmatprep.mubr.msk.bf16.mxu1 %vm697_vm0, %v6836_v17 }
  0xf1   : > { %6331 = vmatprep.mubr.msk.bf16.mxu0 %vm697_vm0, %v6838_v18  ;;  %6276 = vmatpush3.bf16.xpose.msra.mxu1 %v1854_v19 }
  0xf2   : > { %6666 = vmatprep.subr.msk.bf16.mxu1 %vm697_vm0, %v6843_v20 }
  0xf7   : > { %6236 = vmatmul.mubr.msk.bf16.gmra.mrb[44].mxu1 %vm697_vm0, %v6837_v21 }
  0xf8   : > { %6332 = vmatmul.mubr.msk.bf16.gmra.mrb[44].mxu0 %vm697_vm0, %v6839_v22  ;;  %6287 = vmatprep.mubr.msk.bf16.mxu1 %vm697_vm0, %v6848_v23  ;;  %v2316_v22 = vsel %vm697_vm0, %v6862_v13, 0  ;;  %v6863_v23 = vld [vmem:[%s7731_s12 + $0x1f8] sm:$0xff]   ;;  %s10355_s12 = scalar_lea.hbm %s10415_s5, %s5878_s8 }
  0xf9   : > { %6278 = vmatpush3.bf16.xpose.msra.mxu1 %v1857_v24  ;;  %v2319_v24 = vsel %vm697_vm0, %v6863_v23, 0 }
  0xfa   : > { %6667 = vmatprep.subr.msk.bf16.mxu1 %vm697_vm0, %v6844_v25  ;;  %v6865_v25 = vld [vmem:[%s7752_s15 + $0x1c8] sm:$0xff]  }
 0x101   : > { %6280 = vmatpush3.bf16.xpose.msra.mxu1 %v1860_v26  ;;  %v6866_v26 = vld [vmem:[%s7752_s15 + $0x1d0] sm:$0xff]  }
 0x102   : > { %6668 = vmatprep.subr.msk.bf16.mxu1 %vm697_vm0, %v6845_v27  ;;  %v6867_v27 = vld [vmem:[%s7752_s15 + $0x1d8] sm:$0xff]  }
 0x109   : > { %6282 = vmatpush3.bf16.xpose.msra.mxu1 %v1863_v28  ;;  %v6868_v28 = vld [vmem:[%s7752_s15 + $0x1e0] sm:$0xff]  }
 0x10a   : > { %6669 = vmatprep.subr.msk.bf16.mxu1 %vm697_vm0, %v6846_v29  ;;  %v6869_v29 = vld [vmem:[%s7752_s15 + $0x1e8] sm:$0xff]  }
 0x111   : > { %6284 = vmatpush3.bf16.xpose.msra.mxu1 %v1866_v30  ;;  %v6870_v30 = vld [vmem:[%s7752_s15 + $0x1f0] sm:$0xff]  }
 0x112   : > { %6670 = vmatprep.subr.msk.bf16.mxu1 %vm697_vm0, %v6847_v31 }
 0x119   : > { %6286 = vmatpush3.bf16.xpose.msra.mxu1 %v1869_v32 }
 0x11a   : > { %6679 = vmatprep.subr.msk.bf16.mxu1 %vm697_vm0, %v6856_v33 }
 0x120   : > { %6288 = vmatmul.mubr.msk.bf16.vlgmr.msra.gmra.mrb[48].mxu1 %vm697_vm0, %v6849_v34 }
 0x121   : > { %6291 = vmatprep.mubr.msk.bf16.mxu1 %vm697_vm0, %v6850_v35  ;;  %6336 = vmatpush3.bf16.xpose.msra.mxu1 %v2298_v36  ;;  %v6871_v36 = vld [vmem:[%s7752_s15 + $0x1f8] sm:$0xff]   ;;  %s7556_s15 = sshll.u32 %s7632_s14, 4  ;;  %s7557_s15 = int_to_ptr.vmem [resolvable:$false] %s7556_s15 }
 0x122   : > { %6680 = vmatprep.subr.msk.bf16.mxu1 %vm697_vm0, %v6857_v37  ;;  %s7558_s16 = scalar_lea.vmem %s7557_s15, 4096  ;;  %p7559_p1 = scmp.lt.s32.totalorder %s10357_s9, %s7557_s15 }
 0x123   : > { %p7560_p2 = scmp.lt.s32.totalorder %s7558_s16, %s7552_s13 }
 0x125   : > { %p7561_p3 = por %p7560_p2, %p7559_p1 }
 0x127   : > { %p7562_p5 = pnand %p7561_p3, %p7555_p0 }
 0x128   : > { %6292 = vmatmul.mubr.msk.bf16.gmra.mrb[52].mxu1 %vm697_vm0, %v6851_v38 }
 0x129   : > { %6295 = vmatprep.mubr.msk.bf16.mxu1 %vm697_vm0, %v6852_v39  ;;  %6338 = vmatpush3.bf16.xpose.msra.mxu1 %v2301_v40 }
 0x12a   : > { %6681 = vmatprep.subr.msk.bf16.mxu1 %vm697_vm0, %v6858_v41 }
 0x130   : > { %6296 = vmatmul.mubr.msk.bf16.gmra.mrb[56].mxu1 %vm697_vm0, %v6853_v42 }
 0x131   : > { %6299 = vmatprep.mubr.msk.bf16.mxu1 %vm697_vm0, %v6854_v43  ;;  %6340 = vmatpush3.bf16.xpose.msra.mxu1 %v2304_v44 }
 0x132   : > { %v8026_v46 = vpop.f32.mrb[0].mxu1  ;;  %6682 = vmatprep.subr.msk.bf16.mxu1 %vm697_vm0, %v6859_v45 }
 0x133   : > { %v8029_v47 = vpop.f32.mrb[0].mxu0  ;;  %2422 = vmax.xlane.f32.xlu0 %v8026_v46  ;;  %v8032_v48 = vpop.f32.mrb[1].mxu1 }
 0x134   : > { %v8034_v49 = vpop.f32.mrb[1].mxu0  ;;  %v8036_v50 = vpop.f32.mrb[2].mxu1 }
 0x135   : > { %v8039_v52 = vpop.f32.mrb[2].mxu0  ;;  %2424 = vmax.xlane.f32.xlu1 %v8036_v50  ;;  %v8042_v53 = vpop.f32.mrb[3].mxu1 }
 0x136   : > { %v8044_v54 = vpop.f32.mrb[3].mxu0 }
 0x137   : > { %2486 = vmax.xlane.f32.xlu0 %v8029_v47 }
 0x138   : > { %6300 = vmatmul.mubr.msk.bf16.gmra.mrb[60].mxu1 %vm697_vm0, %v6855_v51 }
 0x139   : > { %2488 = vmax.xlane.f32.xlu1 %v8039_v52  ;;  %6342 = vmatpush3.bf16.xpose.msra.mxu1 %v2307_v55 }
 0x13a   : > { %v8052_v58 = vpop.f32.mrb[4].mxu1  ;;  %6683 = vmatprep.subr.msk.bf16.mxu1 %vm697_vm0, %v6860_v56  ;;  %6351 = vmatprep.mubr.msk.bf16.mxu1 %vm697_vm0, %v6864_v57 }
 0x13b   : > { %2418 = vmax.xlane.f32.xlu0 %v8032_v48  ;;  %v8056_v59 = vpop.f32.mrb[5].mxu1  ;;  %v8058_v60 = vpop.f32.mrb[4].mxu0 }
 0x13c   : > { %v8061_v61 = vpop.f32.mrb[6].mxu1  ;;  %v8063_v62 = vpop.f32.mrb[5].mxu0 }
 0x13d   : > { %2420 = vmax.xlane.f32.xlu1 %v8042_v53  ;;  %v8066_v63 = vpop.f32.mrb[7].mxu1  ;;  %v8068_v0 = vpop.f32.mrb[6].mxu0 }
 0x13e   : > { %v8070_v1 = vpop.f32.mrb[7].mxu0 }
 0x13f   : > { %2482 = vmax.xlane.f32.xlu0 %v8034_v49 }
 0x141   : > { %2484 = vmax.xlane.f32.xlu1 %v8044_v54  ;;  %6344 = vmatpush3.bf16.xpose.msra.mxu1 %v2310_v2 }
 0x142   : > { %v8076_v4 = vpop.f32.mrb[8].mxu1  ;;  %6684 = vmatprep.subr.msk.bf16.mxu1 %vm697_vm0, %v6861_v3 }
 0x143   : > { %2430 = vmax.xlane.f32.xlu0 %v8052_v58  ;;  %v8080_v5 = vpop.f32.mrb[9].mxu1  ;;  %v8082_v6 = vpop.f32.mrb[8].mxu0 }
 0x144   : > { %v8084_v7 = vpop.f32.mrb[10].mxu1  ;;  %v8086_v8 = vpop.f32.mrb[9].mxu0 }
 0x145   : > { %2432 = vmax.xlane.f32.xlu1 %v8061_v61  ;;  %v8089_v9 = vpop.f32.mrb[11].mxu1  ;;  %v8091_v10 = vpop.f32.mrb[10].mxu0 }
 0x146   : > { %v8093_v11 = vpop.f32.mrb[11].mxu0 }
 0x147   : > { %2494 = vmax.xlane.f32.xlu0 %v8058_v60 }
 0x149   : > { %2496 = vmax.xlane.f32.xlu1 %v8068_v0  ;;  %6346 = vmatpush3.bf16.xpose.msra.mxu1 %v2313_v12 }
 0x14a   : > { %v8099_v14 = vpop.f32.mrb[12].mxu1  ;;  %6685 = vmatprep.subr.msk.bf16.mxu1 %vm697_vm0, %v6862_v13 }
 0x14b   : > { %10701 = vst [vmem:[#allocation6_spill] sm:$0xff] %v8099_v14  ;;  %2426 = vmax.xlane.f32.xlu0 %v8056_v59  ;;  %v8103_v15 = vpop.f32.mrb[13].mxu1  ;;  %v8105_v16 = vpop.f32.mrb[12].mxu0 }
 0x14c   : > { %10702 = vst [vmem:[#allocation7_spill] sm:$0xff] %v8103_v15  ;;  %10703 = vst [vmem:[#allocation8_spill] sm:$0xff] %v8105_v16  ;;  %v8107_v17 = vpop.f32.mrb[14].mxu1  ;;  %v8109_v18 = vpop.f32.mrb[13].mxu0 }
 0x14d   : > { %10704 = vst [vmem:[#allocation9_spill] sm:$0xff] %v8107_v17  ;;  %10705 = vst [vmem:[#allocation10_spill] sm:$0xff] %v8109_v18  ;;  %2428 = vmax.xlane.f32.xlu1 %v8066_v63  ;;  %v8112_v19 = vpop.f32.mrb[15].mxu1  ;;  %v8114_v20 = vpop.f32.mrb[14].mxu0 }
 0x14e   : > { %10706 = vst [vmem:[#allocation11_spill] sm:$0xff] %v8112_v19  ;;  %10707 = vst [vmem:[#allocation12_spill] sm:$0xff] %v8114_v20  ;;  %v8116_v21 = vpop.f32.mrb[15].mxu0 }
 0x14f   : > { %10708 = vst [vmem:[#allocation13_spill] sm:$0xff] %v8116_v21  ;;  %2490 = vmax.xlane.f32.xlu0 %v8063_v62 }
 0x151   : > { %2492 = vmax.xlane.f32.xlu1 %v8070_v1  ;;  %6348 = vmatpush3.bf16.xpose.msra.mxu1 %v2316_v22 }
 0x152   : > { %6686 = vmatprep.subr.msk.bf16.mxu1 %vm697_vm0, %v6863_v23 }
 0x153   : > { %2438 = vmax.xlane.f32.xlu0 %v8076_v4 }
 0x155   : > { %2440 = vmax.xlane.f32.xlu1 %v8084_v7 }
 0x157   : > { %2502 = vmax.xlane.f32.xlu0 %v8082_v6 }
 0x159   : > { %2504 = vmax.xlane.f32.xlu1 %v8091_v10  ;;  %6350 = vmatpush3.bf16.xpose.msra.mxu1 %v2319_v24 }
 0x15b   : > { %2434 = vmax.xlane.f32.xlu0 %v8080_v5 }
 0x15d   : > { %2436 = vmax.xlane.f32.xlu1 %v8089_v9 }
 0x15f   : > { %2498 = vmax.xlane.f32.xlu0 %v8086_v8 }
 0x160   : > { %6352 = vmatmul.mubr.msk.bf16.vlgmr.msra.gmra.mrb[64].mxu1 %vm697_vm0, %v6865_v25 }
 0x161   : > { %2500 = vmax.xlane.f32.xlu1 %v8093_v11  ;;  %6355 = vmatprep.mubr.msk.bf16.mxu1 %vm697_vm0, %v6866_v26 }
 0x163   : > { %2446 = vmax.xlane.f32.xlu0 %v8099_v14 }
 0x165   : > { %2448 = vmax.xlane.f32.xlu1 %v8107_v17 }
 0x167   : > { %2510 = vmax.xlane.f32.xlu0 %v8105_v16 }
 0x168   : > { %6356 = vmatmul.mubr.msk.bf16.gmra.mrb[68].mxu1 %vm697_vm0, %v6867_v27 }
 0x169   : > { %2512 = vmax.xlane.f32.xlu1 %v8114_v20  ;;  %6359 = vmatprep.mubr.msk.bf16.mxu1 %vm697_vm0, %v6868_v28 }
 0x16b   : > { %2442 = vmax.xlane.f32.xlu0 %v8103_v15 }
 0x16d   : > { %2444 = vmax.xlane.f32.xlu1 %v8112_v19 }
 0x16f   : > { %2506 = vmax.xlane.f32.xlu0 %v8109_v18 }
 0x170   : > { %6360 = vmatmul.mubr.msk.bf16.gmra.mrb[72].mxu1 %vm697_vm0, %v6869_v29 }
 0x171   : > { %2508 = vmax.xlane.f32.xlu1 %v8116_v21  ;;  %6363 = vmatprep.mubr.msk.bf16.mxu1 %vm697_vm0, %v6870_v30 }
 0x172   : > { %v8152_v31 = vpop.f32.mrb[16].mxu1 }
 0x173   : > { %v8154_v32 = vpop.f32.mrb[16].mxu0  ;;  %v8156_v33 = vpop.f32.mrb[17].mxu1 }
 0x174   : > { %v8158_v34 = vpop.f32.mrb[17].mxu0  ;;  %2550 = vmax.xlane.f32.xlu0 %v8154_v32  ;;  %v8161_v35 = vpop.f32.mrb[18].mxu1 }
 0x175   : > { %10709 = vst [vmem:[#allocation14_spill] sm:$0xff] %v8161_v35  ;;  %v8164_v37 = vpop.f32.mrb[18].mxu0  ;;  %2454 = vmax.xlane.f32.xlu1 %v8152_v31  ;;  %v8167_v38 = vpop.f32.mrb[19].mxu1 }
 0x176   : > { %10710 = vst [vmem:[#allocation15_spill] sm:$0xff] %v8164_v37  ;;  %v8169_v39 = vpop.f32.mrb[19].mxu0 }
 0x177   : > { %10711 = vst [vmem:[#allocation16_spill] sm:$0xff] %v8169_v39 }
 0x178   : > { %2450 = vmax.xlane.f32.xlu0 %v8156_v33  ;;  %6364 = vmatmul.mubr.msk.bf16.gmra.mrb[76].mxu1 %vm697_vm0, %v6871_v36 }
 0x179   : > { %2456 = vmax.xlane.f32.xlu1 %v8161_v35 }
 0x17a   : > { %v8174_v40 = vpop.f32.mrb[20].mxu1 }
 0x17b   : > { %10712 = vst [vmem:[#allocation17_spill] sm:$0xff] %v8174_v40  ;;  %v8176_v41 = vpop.f32.mrb[21].mxu1  ;;  %v8178_v42 = vpop.f32.mrb[20].mxu0 }
 0x17c   : > { %10713 = vst [vmem:[#allocation18_spill] sm:$0xff] %v8176_v41  ;;  %10714 = vst [vmem:[#allocation19_spill] sm:$0xff] %v8178_v42  ;;  %2546 = vmax.xlane.f32.xlu0 %v8158_v34  ;;  %v8181_v43 = vpop.f32.mrb[22].mxu1  ;;  %v8183_v44 = vpop.f32.mrb[21].mxu0 }
 0x17d   : > { %10715 = vst [vmem:[#allocation20_spill] sm:$0xff] %v8181_v43  ;;  %10716 = vst [vmem:[#allocation21_spill] sm:$0xff] %v8183_v44  ;;  %2552 = vmax.xlane.f32.xlu1 %v8164_v37  ;;  %v8186_v45 = vpop.f32.mrb[23].mxu1  ;;  %v8188_v51 = vpop.f32.mrb[22].mxu0 }
 0x17e   : > { %10717 = vst [vmem:[#allocation22_spill] sm:$0xff] %v8186_v45  ;;  %10718 = vst [vmem:[#allocation23_spill] sm:$0xff] %v8188_v51  ;;  %v8190_v55 = vpop.f32.mrb[23].mxu0 }
 0x17f   : > { %10719 = vst [vmem:[#allocation24_spill] sm:$0xff] %v8190_v55 }
 0x180   : > { %2452 = vmax.xlane.f32.xlu0 %v8167_v38 }
 0x181   : > { %2548 = vmax.xlane.f32.xlu1 %v8169_v39 }
 0x182   : > { %v8194_v56 = vpop.f32.mrb[24].mxu1 }
 0x183   : > { %10720 = vst [vmem:[#allocation25_spill] sm:$0xff] %v8194_v56  ;;  %v8196_v57 = vpop.f32.mrb[25].mxu1  ;;  %v8198_v2 = vpop.f32.mrb[24].mxu0 }
 0x184   : > { %10721 = vst [vmem:[#allocation26_spill] sm:$0xff] %v8196_v57  ;;  %10722 = vst [vmem:[#allocation27_spill] sm:$0xff] %v8198_v2  ;;  %2462 = vmax.xlane.f32.xlu0 %v8174_v40  ;;  %v8201_v3 = vpop.f32.mrb[26].mxu1  ;;  %v8203_v12 = vpop.f32.mrb[25].mxu0 }
 0x185   : > { %10723 = vst [vmem:[#allocation28_spill] sm:$0xff] %v8201_v3  ;;  %10724 = vst [vmem:[#allocation29_spill] sm:$0xff] %v8203_v12  ;;  %2464 = vmax.xlane.f32.xlu1 %v8181_v43  ;;  %v8206_v13 = vpop.f32.mrb[27].mxu1  ;;  %v8208_v22 = vpop.f32.mrb[26].mxu0 }
 0x186   : > { %10725 = vst [vmem:[#allocation30_spill] sm:$0xff] %v8206_v13  ;;  %10726 = vst [vmem:[#allocation31_spill] sm:$0xff] %v8208_v22  ;;  %v8210_v23 = vpop.f32.mrb[27].mxu0 }
 0x187   : > { %10727 = vst [vmem:[#allocation32_spill] sm:$0xff] %v8210_v23 }
 0x188   : > { %2558 = vmax.xlane.f32.xlu0 %v8178_v42 }
 0x189   : > { %2560 = vmax.xlane.f32.xlu1 %v8188_v51 }
 0x18a   : > { %v8214_v24 = vpop.f32.mrb[28].mxu1 }
 0x18b   : > { %10728 = vst [vmem:[#allocation33_spill] sm:$0xff] %v8214_v24  ;;  %v8216_v25 = vpop.f32.mrb[29].mxu1  ;;  %v8218_v26 = vpop.f32.mrb[28].mxu0 }
 0x18c   : > { %10729 = vst [vmem:[#allocation34_spill] sm:$0xff] %v8216_v25  ;;  %10730 = vst [vmem:[#allocation35_spill] sm:$0xff] %v8218_v26  ;;  %2458 = vmax.xlane.f32.xlu0 %v8176_v41  ;;  %v8221_v27 = vpop.f32.mrb[30].mxu1  ;;  %v8223_v28 = vpop.f32.mrb[29].mxu0 }
 0x18d   : > { %10731 = vst [vmem:[#allocation36_spill] sm:$0xff] %v8221_v27  ;;  %10732 = vst [vmem:[#allocation37_spill] sm:$0xff] %v8223_v28  ;;  %2460 = vmax.xlane.f32.xlu1 %v8186_v45  ;;  %v8226_v29 = vpop.f32.mrb[31].mxu1  ;;  %v8228_v30 = vpop.f32.mrb[30].mxu0 }
 0x18e   : > { %10733 = vst [vmem:[#allocation38_spill] sm:$0xff] %v8226_v29  ;;  %10734 = vst [vmem:[#allocation39_spill] sm:$0xff] %v8228_v30  ;;  %v8230_v36 = vpop.f32.mrb[31].mxu0 }
 0x18f   : > { %10735 = vst [vmem:[#allocation40_spill] sm:$0xff] %v8230_v36 }
 0x190   : > { %2554 = vmax.xlane.f32.xlu0 %v8183_v44 }
 0x191   : > { %2556 = vmax.xlane.f32.xlu1 %v8190_v55 }
 0x194   : > { %2470 = vmax.xlane.f32.xlu0 %v8194_v56 }
 0x195   : > { %2472 = vmax.xlane.f32.xlu1 %v8201_v3 }
 0x198   : > { %2566 = vmax.xlane.f32.xlu0 %v8198_v2 }
 0x199   : > { %2568 = vmax.xlane.f32.xlu1 %v8208_v22 }
 0x19c   : > { %2466 = vmax.xlane.f32.xlu0 %v8196_v57 }
 0x19d   : > { %2468 = vmax.xlane.f32.xlu1 %v8206_v13 }
 0x1a0   : > { %2562 = vmax.xlane.f32.xlu0 %v8203_v12 }
 0x1a1   : > { %2564 = vmax.xlane.f32.xlu1 %v8210_v23 }
 0x1a4   : > { %2478 = vmax.xlane.f32.xlu0 %v8214_v24 }
 0x1a5   : > { %2480 = vmax.xlane.f32.xlu1 %v8221_v27 }
 0x1a8   : > { %2574 = vmax.xlane.f32.xlu0 %v8218_v26 }
 0x1a9   : > { %2576 = vmax.xlane.f32.xlu1 %v8228_v30 }
 0x1ac   : > { %2474 = vmax.xlane.f32.xlu0 %v8216_v25 }
 0x1ad   : > { %2476 = vmax.xlane.f32.xlu1 %v8226_v29 }
 0x1b0   : > { %2570 = vmax.xlane.f32.xlu0 %v8223_v28 }
 0x1b1   : > { %2572 = vmax.xlane.f32.xlu1 %v8230_v36 }
 0x1b2   : > { %v8250_v37 = vpop.f32.mrb[32].mxu1 }
 0x1b3   : > { %10736 = vst [vmem:[#allocation41_spill] sm:$0xff] %v8250_v37  ;;  %v8252_v35 = vpop.f32.mrb[32].mxu0  ;;  %v8254_v23 = vpop.f32.mrb[33].mxu1 }
 0x1b4   : > { %10737 = vst [vmem:[#allocation42_spill] sm:$0xff] %v8252_v35  ;;  %10738 = vst [vmem:[#allocation43_spill] sm:$0xff] %v8254_v23  ;;  %2518 = vmax.xlane.f32.xlu0 %v8250_v37  ;;  %v8257_v27 = vpop.f32.mrb[34].mxu1  ;;  %v8259_v26 = vpop.f32.mrb[33].mxu0 }
 0x1b5   : > { %10739 = vst [vmem:[#allocation44_spill] sm:$0xff] %v8257_v27  ;;  %10740 = vst [vmem:[#allocation45_spill] sm:$0xff] %v8259_v26  ;;  %v8261_v30 = vpop.f32.mrb[34].mxu0  ;;  %2520 = vmax.xlane.f32.xlu1 %v8257_v27  ;;  %v8264_v29 = vpop.f32.mrb[35].mxu1 }
 0x1b6   : > { %10741 = vst [vmem:[#allocation46_spill] sm:$0xff] %v8261_v30  ;;  %10742 = vst [vmem:[#allocation47_spill] sm:$0xff] %v8264_v29  ;;  %v8266_v28 = vpop.f32.mrb[35].mxu0 }
 0x1b7   : > { %10743 = vst [vmem:[#allocation48_spill] sm:$0xff] %v8266_v28 }
 0x1b8   : > { %2614 = vmax.xlane.f32.xlu0 %v8252_v35 }
 0x1b9   : > { %2616 = vmax.xlane.f32.xlu1 %v8261_v30 }
 0x1ba   : > { %v8270_v36 = vpop.f32.mrb[36].mxu1 }
 0x1bb   : > { %10744 = vst [vmem:[#allocation49_spill] sm:$0xff] %v8270_v36  ;;  %v8272_v25 = vpop.f32.mrb[37].mxu1  ;;  %v8274_v37 = vpop.f32.mrb[36].mxu0 }
 0x1bc   : > { %10745 = vst [vmem:[#allocation50_spill] sm:$0xff] %v8272_v25  ;;  %10746 = vst [vmem:[#allocation51_spill] sm:$0xff] %v8274_v37  ;;  %2514 = vmax.xlane.f32.xlu0 %v8254_v23  ;;  %v8277_v24 = vpop.f32.mrb[38].mxu1  ;;  %v8279_v12 = vpop.f32.mrb[37].mxu0 }
 0x1bd   : > { %10747 = vst [vmem:[#allocation52_spill] sm:$0xff] %v8277_v24  ;;  %10748 = vst [vmem:[#allocation53_spill] sm:$0xff] %v8279_v12  ;;  %2516 = vmax.xlane.f32.xlu1 %v8264_v29  ;;  %v8282_v27 = vpop.f32.mrb[39].mxu1  ;;  %v8284_v13 = vpop.f32.mrb[38].mxu0 }
 0x1be   : > { %10749 = vst [vmem:[#allocation54_spill] sm:$0xff] %v8282_v27  ;;  %10750 = vst [vmem:[#allocation55_spill] sm:$0xff] %v8284_v13  ;;  %v8286_v35 = vpop.f32.mrb[39].mxu0 }
 0x1bf   : > { %10751 = vst [vmem:[#allocation56_spill] sm:$0xff] %v8286_v35 }
 0x1c0   : > { %2610 = vmax.xlane.f32.xlu0 %v8259_v26  ;;  %v2423_v30 = vpop.xlane.xlu0 %2422 }
 0x1c1   : > { %2612 = vmax.xlane.f32.xlu1 %v8266_v28 }
 0x1c2   : > { %v2425_v57 = vpop.xlane.xlu1 %2424  ;;  %v8290_v22 = vpop.f32.mrb[40].mxu1 }
 0x1c3   : > { %10752 = vst [vmem:[#allocation57_spill] sm:$0xff] %v8290_v22  ;;  %v8292_v23 = vpop.f32.mrb[41].mxu1  ;;  %v8294_v2 = vpop.f32.mrb[40].mxu0 }
 0x1c4   : > { %10753 = vst [vmem:[#allocation58_spill] sm:$0xff] %v8292_v23  ;;  %10754 = vst [vmem:[#allocation59_spill] sm:$0xff] %v8294_v2  ;;  %2526 = vmax.xlane.f32.xlu0 %v8270_v36  ;;  %v2487_v29 = vpop.xlane.xlu0 %2486  ;;  %v8297_v3 = vpop.f32.mrb[42].mxu1 }
 0x1c5   : > { %10755 = vst [vmem:[#allocation60_spill] sm:$0xff] %v8297_v3  ;;  %2528 = vmax.xlane.f32.xlu1 %v8277_v24  ;;  %v8300_v56 = vpop.f32.mrb[43].mxu1  ;;  %v8302_v26 = vpop.f32.mrb[41].mxu0 }
 0x1c6   : > { %10756 = vst [vmem:[#allocation61_spill] sm:$0xff] %v8300_v56  ;;  %10757 = vst [vmem:[#allocation62_spill] sm:$0xff] %v8302_v26  ;;  %v2489_v55 = vpop.xlane.xlu1 %2488  ;;  %v8304_v28 = vpop.f32.mrb[42].mxu0 }
 0x1c7   : > { %10758 = vst [vmem:[#allocation63_spill] sm:$0xff] %v8304_v28  ;;  %v8306_v44 = vpop.f32.mrb[43].mxu0  ;;  %v2709_v14 = vsub.f32 %v8039_v52, %v2489_v55 }
 0x1c8   : > { %10759 = vst [vmem:[#allocation64_spill] sm:$0xff] %v8306_v44  ;;  %2622 = vmax.xlane.f32.xlu0 %v8274_v37  ;;  %v2419_v21 = vpop.xlane.xlu0 %2418 }
 0x1c9   : > { %2624 = vmax.xlane.f32.xlu1 %v8284_v13 }
 0x1ca   : > { %v2421_v36 = vpop.xlane.xlu1 %2420  ;;  %v8310_v18 = vpop.f32.mrb[44].mxu1 }
 0x1cb   : > { %10760 = vst [vmem:[#allocation65_spill] sm:$0xff] %v8310_v18  ;;  %v8312_v45 = vpop.f32.mrb[45].mxu1  ;;  %v8314_v24 = vpop.f32.mrb[44].mxu0 }
 0x1cc   : > { %10761 = vst [vmem:[#allocation66_spill] sm:$0xff] %v8312_v45  ;;  %10762 = vst [vmem:[#allocation67_spill] sm:$0xff] %v8314_v24  ;;  %2522 = vmax.xlane.f32.xlu0 %v8272_v25  ;;  %v2483_v41 = vpop.xlane.xlu0 %2482  ;;  %v8317_v19 = vpop.f32.mrb[46].mxu1 }
 0x1cd   : > { %10763 = vst [vmem:[#allocation68_spill] sm:$0xff] %v8317_v19  ;;  %2524 = vmax.xlane.f32.xlu1 %v8282_v27  ;;  %v8320_v15 = vpop.f32.mrb[47].mxu1  ;;  %v8322_v37 = vpop.f32.mrb[45].mxu0 }
 0x1ce   : > { %10764 = vst [vmem:[#allocation69_spill] sm:$0xff] %v8320_v15  ;;  %10765 = vst [vmem:[#allocation70_spill] sm:$0xff] %v8322_v37  ;;  %v2485_v51 = vpop.xlane.xlu1 %2484  ;;  %v8324_v13 = vpop.f32.mrb[46].mxu0 }
 0x1cf   : > { %10766 = vst [vmem:[#allocation71_spill] sm:$0xff] %v8324_v13  ;;  %v8326_v42 = vpop.f32.mrb[47].mxu0 }
 0x1d0   : > { %10767 = vst [vmem:[#allocation72_spill] sm:$0xff] %v8326_v42  ;;  %2618 = vmax.xlane.f32.xlu0 %v8279_v12  ;;  %v8329_v20 = vpop.xlane.xlu0 %2430 }
 0x1d1   : > { %2620 = vmax.xlane.f32.xlu1 %v8286_v35 }
 0x1d2   : > { %v8332_v25 = vpop.xlane.xlu1 %2432 }
 0x1d4   : > { %2534 = vmax.xlane.f32.xlu0 %v8290_v22  ;;  %v8335_v27 = vpop.xlane.xlu0 %2494 }
 0x1d5   : > { %2536 = vmax.xlane.f32.xlu1 %v8297_v3 }
 0x1d6   : > { %v8338_v16 = vpop.xlane.xlu1 %2496 }
 0x1d8   : > { %2630 = vmax.xlane.f32.xlu0 %v8294_v2  ;;  %v8341_v43 = vpop.xlane.xlu0 %2426  ;;  %v2676_v2 = vsub.f32 %v8026_v46, %v2423_v30 }
 0x1d9   : > { %2632 = vmax.xlane.f32.xlu1 %v8304_v28  ;;  %v2677_v28 = vsub.f32 %v8036_v50, %v2425_v57  ;;  %v2674_v57 = vsub.f32 %v8032_v48, %v2419_v21 }
 0x1da   : > { %v8344_v12 = vpop.xlane.xlu1 %2428  ;;  %v2806_v17 = vmul.f32 1.442695, %v2676_v2  ;;  %v2872_v2 = vmul.f32 1.442695, %v2709_v14 }
 0x1db   : > { %v2802_v55 = vmul.f32 1.442695, %v2674_v57  ;;  %v2713_v57 = vsub.f32 %v8068_v0, %v8338_v16  ;;  %v2679_v16 = vsub.f32 %v8066_v63, %v8344_v12 }
 0x1dc   : > { %2530 = vmax.xlane.f32.xlu0 %v8292_v23  ;;  %v8347_v35 = vpop.xlane.xlu0 %2490  ;;  %6912 = vpow2.f32 %v2806_v17  ;;  %v2707_v17 = vsub.f32 %v8044_v54, %v2485_v51 }
 0x1dd   : > { %2532 = vmax.xlane.f32.xlu1 %v8300_v56  ;;  %v2708_v56 = vsub.f32 %v8029_v47, %v2487_v29  ;;  %v2675_v47 = vsub.f32 %v8042_v53, %v2421_v36  ;;  %v2880_v0 = vmul.f32 1.442695, %v2713_v57  ;;  %v2812_v12 = vmul.f32 1.442695, %v2679_v16 }
 0x1de   : > { %v8350_v22 = vpop.xlane.xlu1 %2492 }
 0x1df   : > { %v2870_v50 = vmul.f32 1.442695, %v2708_v56  ;;  %v2804_v48 = vmul.f32 1.442695, %v2675_v47  ;;  %v2680_v56 = vsub.f32 %v8052_v58, %v8329_v20 }
 0x1e0   : > { %2626 = vmax.xlane.f32.xlu0 %v8302_v26  ;;  %v8353_v3 = vpop.xlane.xlu0 %2438  ;;  %v2808_v26 = vmul.f32 1.442695, %v2677_v28  ;;  %v2706_v28 = vsub.f32 %v8034_v49, %v2483_v41  ;;  %v2868_v49 = vmul.f32 1.442695, %v2707_v17  ;;  %v2681_v41 = vsub.f32 %v8061_v61, %v8332_v25 }
 0x1e1   : > { %2628 = vmax.xlane.f32.xlu1 %v8306_v44  ;;  %v2814_v20 = vmul.f32 1.442695, %v2680_v56 }
 0x1e2   : > { %v8358_v40 = vpop.xlane.xlu1 %2440  ;;  %6914 = vpow2.f32 %v2808_v26  ;;  %v2866_v14 = vmul.f32 1.442695, %v2706_v28  ;;  %v2816_v25 = vmul.f32 1.442695, %v2681_v41 }
 0x1e3   : > { %6916 = vpow2.f32 %v2870_v50  ;;  %v2712_v50 = vsub.f32 %v8058_v60, %v8335_v27 }
 0x1e4   : > { %2542 = vmax.xlane.f32.xlu0 %v8310_v18  ;;  %v8361_v23 = vpop.xlane.xlu0 %2502  ;;  %6918 = vpow2.f32 %v2872_v2  ;;  %v10839_v18 = vld [vmem:[#allocation30_spill] sm:$0xff] }
 0x1e5   : > { %2544 = vmax.xlane.f32.xlu1 %v8317_v19  ;;  %6920 = vpow2.f32 %v2802_v55  ;;  %v2878_v27 = vmul.f32 1.442695, %v2712_v50  ;;  %v2711_v50 = vsub.f32 %v8070_v1, %v8350_v22  ;;  %v2685_v22 = vsub.f32 %v8084_v7, %v8358_v40 }
 0x1e6   : > { %v8366_v39 = vpop.xlane.xlu1 %2504  ;;  %6922 = vpow2.f32 %v2804_v48  ;;  %v8394_v54 = vpop.eup %6912  ;;  %v2678_v48 = vsub.f32 %v8056_v59, %v8341_v43  ;;  %v2716_v40 = vsub.f32 %v8082_v6, %v8361_v23 }
 0x1e7   : > { %10768 = vst [vmem:[#allocation73_spill] sm:$0xff] %v8394_v54  ;;  %6924 = vpow2.f32 %v2866_v14  ;;  %v2876_v1 = vmul.f32 1.442695, %v2711_v50 }
 0x1e8   : > { %2638 = vmax.xlane.f32.xlu0 %v8314_v24  ;;  %v8369_v46 = vpop.xlane.xlu0 %2434  ;;  %6926 = vpow2.f32 %v2868_v49  ;;  %v2810_v43 = vmul.f32 1.442695, %v2678_v48  ;;  %v2886_v23 = vmul.f32 1.442695, %v2716_v40 }
 0x1e9   : > { %2640 = vmax.xlane.f32.xlu1 %v8324_v13  ;;  %6928 = vpow2.f32 %v2814_v20  ;;  %v2710_v20 = vsub.f32 %v8063_v62, %v8347_v35  ;;  %v2684_v35 = vsub.f32 %v8076_v4, %v8353_v3 }
 0x1ea   : > { %v8374_v29 = vpop.xlane.xlu1 %2436  ;;  %6930 = vpow2.f32 %v2816_v25 }
 0x1eb   : > { %6932 = vpow2.f32 %v2878_v27  ;;  %v2874_v62 = vmul.f32 1.442695, %v2710_v20  ;;  %v2822_v7 = vmul.f32 1.442695, %v2684_v35 }
 0x1ec   : > { %2538 = vmax.xlane.f32.xlu0 %v8312_v45  ;;  %v8377_v52 = vpop.xlane.xlu0 %2498  ;;  %v8398_v30 = vpop.eup %6914  ;;  %6934 = vpow2.f32 %v2880_v0  ;;  %v2824_v0 = vmul.f32 1.442695, %v2685_v22 }
 0x1ed   : > { %2540 = vmax.xlane.f32.xlu1 %v8320_v15  ;;  %10770 = vst [vmem:[#allocation75_spill] sm:$0xff] %v8398_v30  ;;  %v8416_v55 = vpop.eup %6916  ;;  %6936 = vpow2.f32 %v2810_v43  ;;  %v2717_v43 = vsub.f32 %v8091_v10, %v8366_v39  ;;  %v2683_v39 = vsub.f32 %v8089_v9, %v8374_v29  ;;  %v2714_v9 = vsub.f32 %v8086_v8, %v8377_v52  ;;  %v10799_v8 = vld [vmem:[#allocation16_spill] sm:$0xff]  ;;  %v10803_v52 = vld [vmem:[#allocation17_spill] sm:$0xff] }
 0x1ee   : > { %v8382_v21 = vpop.xlane.xlu1 %2500  ;;  %10774 = vst [vmem:[#allocation79_spill] sm:$0xff] %v8416_v55  ;;  %v8418_v28 = vpop.eup %6918  ;;  %6938 = vpow2.f32 %v2812_v12 }
 0x1ef   : > { %10775 = vst [vmem:[#allocation80_spill] sm:$0xff] %v8418_v28  ;;  %v8430_v14 = vpop.eup %6920  ;;  %6940 = vpow2.f32 %v2874_v62  ;;  %v2888_v10 = vmul.f32 1.442695, %v2717_v43  ;;  %v2820_v43 = vmul.f32 1.442695, %v2683_v39 }
 0x1f0   : > { %2634 = vmax.xlane.f32.xlu0 %v8322_v37  ;;  %v8385_v53 = vpop.xlane.xlu0 %2446  ;;  %10776 = vst [vmem:[#allocation81_spill] sm:$0xff] %v8430_v14  ;;  %v8434_v49 = vpop.eup %6922  ;;  %6942 = vpow2.f32 %v2876_v1  ;;  %v2682_v1 = vsub.f32 %v8080_v5, %v8369_v46  ;;  %v10820_v37 = vld [vmem:[#allocation13_spill] sm:$0xff] }
 0x1f1   : > { %2636 = vmax.xlane.f32.xlu1 %v8326_v42  ;;  %10778 = vst [vmem:[#allocation83_spill] sm:$0xff] %v8434_v49  ;;  %6944 = vpow2.f32 %v2822_v7 }
 0x1f2   : > { %v8392_v26 = vpop.xlane.xlu1 %2448  ;;  %6946 = vpow2.f32 %v2824_v0  ;;  %v2818_v46 = vmul.f32 1.442695, %v2682_v1 }
 0x1f3   : > { %v8396_v51 = vpop.f32.mrb[48].mxu1  ;;  %6948 = vpow2.f32 %v2886_v23 }
 0x1f4   : > { %10769 = vst [vmem:[#allocation74_spill] sm:$0xff] %v8396_v51  ;;  %3062 = vadd.xlane.f32.xlu0 %v8394_v54  ;;  %v8401_v36 = vpop.xlane.xlu0 %2510  ;;  %v8403_v58 = vpop.f32.mrb[49].mxu1  ;;  %6950 = vpow2.f32 %v2888_v10  ;;  %v2882_v10 = vmul.f32 1.442695, %v2714_v9  ;;  %v10809_v9 = vld [vmem:[#allocation19_spill] sm:$0xff] }
 0x1f5   : > { %10771 = vst [vmem:[#allocation76_spill] sm:$0xff] %v8403_v58  ;;  %3064 = vadd.xlane.f32.xlu1 %v8398_v30  ;;  %v8408_v61 = vpop.f32.mrb[50].mxu1  ;;  %6952 = vpow2.f32 %v2818_v46  ;;  %v10805_v46 = vld [vmem:[#allocation20_spill] sm:$0xff]  ;;  %v10814_v54 = vld [vmem:[#allocation11_spill] sm:$0xff] }
 0x1f6   : > { %10772 = vst [vmem:[#allocation77_spill] sm:$0xff] %v8408_v61  ;;  %v8412_v2 = vpop.xlane.xlu1 %2512  ;;  %v8414_v47 = vpop.f32.mrb[51].mxu1  ;;  %6954 = vpow2.f32 %v2820_v43 }
 0x1f7   : > { %10773 = vst [vmem:[#allocation78_spill] sm:$0xff] %v8414_v47 }
 0x1f8   : > { %3126 = vadd.xlane.f32.xlu0 %v8416_v55  ;;  %v8421_v60 = vpop.xlane.xlu0 %2442 }
 0x1f9   : > { %3128 = vadd.xlane.f32.xlu1 %v8418_v28  ;;  %v8452_v28 = vpop.eup %6924  ;;  %6956 = vpow2.f32 %v2882_v10  ;;  %v10811_v10 = vld [vmem:[#allocation23_spill] sm:$0xff] }
 0x1fa   : > { %v8428_v17 = vpop.xlane.xlu1 %2444  ;;  %10782 = vst [vmem:[#allocation87_spill] sm:$0xff] %v8452_v28  ;;  %v8454_v27 = vpop.eup %6926 }
 0x1fb   : > { %v8432_v56 = vpop.f32.mrb[52].mxu1  ;;  %10783 = vst [vmem:[#allocation88_spill] sm:$0xff] %v8454_v27 }
 0x1fc   : > { %10777 = vst [vmem:[#allocation82_spill] sm:$0xff] %v8432_v56  ;;  %3058 = vadd.xlane.f32.xlu0 %v8430_v14  ;;  %v8437_v41 = vpop.xlane.xlu0 %2506  ;;  %v8439_v59 = vpop.f32.mrb[53].mxu1  ;;  %v10808_v14 = vld [vmem:[#allocation12_spill] sm:$0xff] }
 0x1fd   : > { %10779 = vst [vmem:[#allocation84_spill] sm:$0xff] %v8439_v59  ;;  %3060 = vadd.xlane.f32.xlu1 %v8434_v49  ;;  %v8444_v63 = vpop.f32.mrb[54].mxu1 }
 0x1fe   : > { %10780 = vst [vmem:[#allocation85_spill] sm:$0xff] %v8444_v63  ;;  %v8448_v25 = vpop.xlane.xlu1 %2508  ;;  %v8450_v57 = vpop.f32.mrb[55].mxu1 }
 0x1ff   : > { %10781 = vst [vmem:[#allocation86_spill] sm:$0xff] %v8450_v57 }
 0x200   : > { %3122 = vadd.xlane.f32.xlu0 %v8452_v28  ;;  %v8468_v28 = vpop.eup %6928 }
 0x201   : > { %v8459_v48 = vpop.xlane.xlu0 %2550  ;;  %3124 = vadd.xlane.f32.xlu1 %v8454_v27  ;;  %10784 = vst [vmem:[#allocation89_spill] sm:$0xff] %v8468_v28  ;;  %v8474_v3 = vpop.eup %6930  ;;  %v2715_v27 = vsub.f32 %v8093_v11, %v8382_v21  ;;  %v10801_v11 = vld [vmem:[#allocation6_spill] sm:$0xff] }
 0x202   : > { %v8466_v16 = vpop.xlane.xlu1 %2454  ;;  %10786 = vst [vmem:[#allocation91_spill] sm:$0xff] %v8474_v3  ;;  %v8494_v35 = vpop.eup %6932  ;;  %v2688_v21 = vsub.f32 %v10801_v11, %v8385_v53 }
 0x203   : > { %v8472_v4 = vpop.f32.mrb[56].mxu1  ;;  %10790 = vst [vmem:[#allocation95_spill] sm:$0xff] %v8494_v35  ;;  %v8496_v6 = vpop.eup %6934 }
 0x204   : > { %10785 = vst [vmem:[#allocation90_spill] sm:$0xff] %v8472_v4  ;;  %3070 = vadd.xlane.f32.xlu0 %v8468_v28  ;;  %v8477_v20 = vpop.f32.mrb[57].mxu1  ;;  %10791 = vst [vmem:[#allocation96_spill] sm:$0xff] %v8496_v6  ;;  %v10802_v28 = vld [vmem:[#allocation9_spill] sm:$0xff]  ;;  %v2830_v43 = vmul.f32 1.442695, %v2688_v21 }
 0x205   : > { %10787 = vst [vmem:[#allocation92_spill] sm:$0xff] %v8477_v20  ;;  %v8481_v12 = vpop.xlane.xlu0 %2450  ;;  %3072 = vadd.xlane.f32.xlu1 %v8474_v3  ;;  %v8484_v50 = vpop.f32.mrb[58].mxu1  ;;  %v2689_v49 = vsub.f32 %v10802_v28, %v8392_v26  ;;  %v10815_v21 = vld [vmem:[#allocation18_spill] sm:$0xff] }
 0x206   : > { %10788 = vst [vmem:[#allocation93_spill] sm:$0xff] %v8484_v50  ;;  %v8490_v55 = vpop.xlane.xlu1 %2456  ;;  %v8492_v62 = vpop.f32.mrb[59].mxu1 }
 0x207   : > { %10789 = vst [vmem:[#allocation94_spill] sm:$0xff] %v8492_v62  ;;  %v2832_v28 = vmul.f32 1.442695, %v2689_v49  ;;  %v10813_v49 = vld [vmem:[#allocation7_spill] sm:$0xff] }
 0x208   : > { %3134 = vadd.xlane.f32.xlu0 %v8494_v35  ;;  %v8510_v35 = vpop.eup %6936 }
 0x209   : > { %v8501_v22 = vpop.xlane.xlu0 %2546  ;;  %3136 = vadd.xlane.f32.xlu1 %v8496_v6  ;;  %10792 = vst [vmem:[#allocation97_spill] sm:$0xff] %v8510_v35  ;;  %v8514_v40 = vpop.eup %6938  ;;  %v2884_v6 = vmul.f32 1.442695, %v2715_v27  ;;  %v10807_v27 = vld [vmem:[#allocation8_spill] sm:$0xff] }
 0x20a   : > { %v8508_v3 = vpop.xlane.xlu1 %2552  ;;  %10794 = vst [vmem:[#allocation99_spill] sm:$0xff] %v8514_v40  ;;  %v8534_v1 = vpop.eup %6940  ;;  %v2720_v11 = vsub.f32 %v10807_v27, %v8401_v36  ;;  %v2686_v27 = vsub.f32 %v10813_v49, %v8421_v60 }
 0x20b   : > { %v8512_v7 = vpop.f32.mrb[60].mxu1  ;;  %10798 = vst [vmem:[#allocation103_spill] sm:$0xff] %v8534_v1  ;;  %6958 = vpow2.f32 %v2884_v6 }
 0x20c   : > { %10793 = vst [vmem:[#allocation98_spill] sm:$0xff] %v8512_v7  ;;  %3066 = vadd.xlane.f32.xlu0 %v8510_v35  ;;  %v8517_v5 = vpop.f32.mrb[61].mxu1  ;;  %6960 = vpow2.f32 %v2830_v43  ;;  %v2894_v6 = vmul.f32 1.442695, %v2720_v11  ;;  %v10817_v43 = vld [vmem:[#allocation22_spill] sm:$0xff]  ;;  %v10821_v11 = vld [vmem:[#allocation21_spill] sm:$0xff] }
 0x20d   : > { %10795 = vst [vmem:[#allocation100_spill] sm:$0xff] %v8517_v5  ;;  %v8521_v29 = vpop.xlane.xlu0 %2452  ;;  %3068 = vadd.xlane.f32.xlu1 %v8514_v40  ;;  %v8524_v0 = vpop.f32.mrb[62].mxu1  ;;  %6962 = vpow2.f32 %v2832_v28  ;;  %v2826_v28 = vmul.f32 1.442695, %v2686_v27  ;;  %v10827_v27 = vld [vmem:[#allocation28_spill] sm:$0xff] }
 0x20e   : > { %10796 = vst [vmem:[#allocation101_spill] sm:$0xff] %v8524_v0  ;;  %v8530_v35 = vpop.xlane.xlu1 %2548  ;;  %v8532_v23 = vpop.f32.mrb[63].mxu1  ;;  %6964 = vpow2.f32 %v2894_v6  ;;  %v10823_v6 = vld [vmem:[#allocation24_spill] sm:$0xff] }
 0x20f   : > { %10797 = vst [vmem:[#allocation102_spill] sm:$0xff] %v8532_v23  ;;  %v8538_v40 = vpop.eup %6942 }
 0x210   : > { %10800 = vst [vmem:[#allocation16_spill] sm:$0xff] %v8538_v40  ;;  %3130 = vadd.xlane.f32.xlu0 %v8534_v1  ;;  %v8552_v1 = vpop.eup %6944 }
 0x211   : > { %v8543_v39 = vpop.xlane.xlu0 %2462  ;;  %3132 = vadd.xlane.f32.xlu1 %v8538_v40  ;;  %10804 = vst [vmem:[#allocation6_spill] sm:$0xff] %v8552_v1  ;;  %v8556_v53 = vpop.eup %6946  ;;  %v2721_v40 = vsub.f32 %v10808_v14, %v8412_v2 }
 0x212   : > { %v8550_v30 = vpop.xlane.xlu1 %2464  ;;  %10806 = vst [vmem:[#allocation9_spill] sm:$0xff] %v8556_v53 }
 0x213   : > { %v2896_v14 = vmul.f32 1.442695, %v2721_v40  ;;  %v10819_v40 = vld [vmem:[#allocation10_spill] sm:$0xff] }
 0x214   : > { %3078 = vadd.xlane.f32.xlu0 %v8552_v1  ;;  %v8570_v1 = vpop.eup %6948  ;;  %v2718_v49 = vsub.f32 %v10819_v40, %v8437_v41 }
 0x215   : > { %v8561_v26 = vpop.xlane.xlu0 %2558  ;;  %3080 = vadd.xlane.f32.xlu1 %v8556_v53  ;;  %10810 = vst [vmem:[#allocation17_spill] sm:$0xff] %v8570_v1  ;;  %v8574_v36 = vpop.eup %6950  ;;  %v2687_v53 = vsub.f32 %v10814_v54, %v8428_v17  ;;  %6966 = vpow2.f32 %v2896_v14 }
 0x216   : > { %v8568_v42 = vpop.xlane.xlu1 %2560  ;;  %10812 = vst [vmem:[#allocation20_spill] sm:$0xff] %v8574_v36  ;;  %6968 = vpow2.f32 %v2826_v28  ;;  %v2890_v14 = vmul.f32 1.442695, %v2718_v49 }
 0x217   : > { %v2828_v17 = vmul.f32 1.442695, %v2687_v53 }
 0x218   : > { %3142 = vadd.xlane.f32.xlu0 %v8570_v1  ;;  %v8588_v1 = vpop.eup %6952 }
 0x219   : > { %v8579_v2 = vpop.xlane.xlu0 %2458  ;;  %3144 = vadd.xlane.f32.xlu1 %v8574_v36  ;;  %10816 = vst [vmem:[#allocation8_spill] sm:$0xff] %v8588_v1  ;;  %v8592_v60 = vpop.eup %6954  ;;  %v2719_v36 = vsub.f32 %v10820_v37, %v8448_v25  ;;  %6970 = vpow2.f32 %v2828_v17  ;;  %v10825_v25 = vld [vmem:[#allocation25_spill] sm:$0xff] }
 0x21a   : > { %v8586_v15 = vpop.xlane.xlu1 %2460  ;;  %10818 = vst [vmem:[#allocation12_spill] sm:$0xff] %v8592_v60  ;;  %6972 = vpow2.f32 %v2890_v14 }
 0x21b   : > { %v2892_v37 = vmul.f32 1.442695, %v2719_v36  ;;  %v10830_v36 = vld [vmem:[#allocation27_spill] sm:$0xff] }
 0x21c   : > { %3074 = vadd.xlane.f32.xlu0 %v8588_v1  ;;  %v8606_v1 = vpop.eup %6956 }
 0x21d   : > { %v8597_v54 = vpop.xlane.xlu0 %2554  ;;  %3076 = vadd.xlane.f32.xlu1 %v8592_v60  ;;  %10822 = vst [vmem:[#allocation19_spill] sm:$0xff] %v8606_v1  ;;  %v8610_v41 = vpop.eup %6958  ;;  %6974 = vpow2.f32 %v2892_v37 }
 0x21e   : > { %v8604_v13 = vpop.xlane.xlu1 %2556  ;;  %10824 = vst [vmem:[#allocation23_spill] sm:$0xff] %v8610_v41  ;;  %v8620_v60 = vpop.eup %6960 }
 0x21f   : > { %10826 = vst [vmem:[#allocation7_spill] sm:$0xff] %v8620_v60  ;;  %v8624_v19 = vpop.eup %6962 }
 0x220   : > { %3138 = vadd.xlane.f32.xlu0 %v8606_v1  ;;  %10828 = vst [vmem:[#allocation11_spill] sm:$0xff] %v8624_v19  ;;  %v8634_v40 = vpop.eup %6964 }
 0x221   : > { %v8613_v53 = vpop.xlane.xlu0 %2470  ;;  %3140 = vadd.xlane.f32.xlu1 %v8610_v41  ;;  %10832 = vst [vmem:[#allocation10_spill] sm:$0xff] %v8634_v40  ;;  %v8638_v1 = vpop.eup %6966 }
 0x222   : > { %v8618_v45 = vpop.xlane.xlu1 %2472  ;;  %10834 = vst [vmem:[#allocation13_spill] sm:$0xff] %v8638_v1  ;;  %v8648_v49 = vpop.eup %6968 }
 0x223   : > { %10838 = vst [vmem:[#allocation25_spill] sm:$0xff] %v8648_v49 }
 0x224   : > { %3086 = vadd.xlane.f32.xlu0 %v8620_v60 }
 0x225   : > { %v8627_v28 = vpop.xlane.xlu0 %2566  ;;  %3088 = vadd.xlane.f32.xlu1 %v8624_v19 }
 0x226   : > { %10829 = vst [vmem:[#allocation18_spill] sm:$0xff] %v8627_v28  ;;  %v8632_v17 = vpop.xlane.xlu1 %2568  ;;  %v8652_v28 = vpop.eup %6970 }
 0x227   : > { %10831 = vst [vmem:[#allocation22_spill] sm:$0xff] %v8632_v17  ;;  %10840 = vst [vmem:[#allocation28_spill] sm:$0xff] %v8652_v28  ;;  %v8662_v19 = vpop.eup %6972 }
 0x228   : > { %3150 = vadd.xlane.f32.xlu0 %v8634_v40  ;;  %10844 = vst [vmem:[#allocation104_spill] sm:$0xff] %v8662_v19  ;;  %v8666_v41 = vpop.eup %6974  ;;  %v10849_v40 = vld [vmem:[#allocation36_spill] sm:$0xff] }
 0x229   : > { %v8641_v14 = vpop.xlane.xlu0 %2466  ;;  %3152 = vadd.xlane.f32.xlu1 %v8638_v1 }
 0x22a   : > { %10835 = vst [vmem:[#allocation21_spill] sm:$0xff] %v8641_v14  ;;  %v8646_v60 = vpop.xlane.xlu1 %2468  ;;  %v10845_v14 = vld [vmem:[#allocation32_spill] sm:$0xff] }
 0x22b   : > { %10837 = vst [vmem:[#allocation24_spill] sm:$0xff] %v8646_v60  ;;  %10846 = vst [vmem:[#allocation32_spill] sm:$0xff] %v8666_v41 }
 0x22c   : > { %3082 = vadd.xlane.f32.xlu0 %v8648_v49  ;;  %v10860_v49 = vld [vmem:[#allocation38_spill] sm:$0xff] }
 0x22d   : > { %v8655_v24 = vpop.xlane.xlu0 %2562  ;;  %3084 = vadd.xlane.f32.xlu1 %v8652_v28 }
 0x22e   : > { %10841 = vst [vmem:[#allocation27_spill] sm:$0xff] %v8655_v24  ;;  %v8660_v17 = vpop.xlane.xlu1 %2564  ;;  %v10856_v24 = vld [vmem:[#allocation39_spill] sm:$0xff] }
 0x22f   : > { %10843 = vst [vmem:[#allocation30_spill] sm:$0xff] %v8660_v17 }
 0x230   : > { %3146 = vadd.xlane.f32.xlu0 %v8662_v19 }
 0x231   : > { %v8669_v44 = vpop.xlane.xlu0 %2478  ;;  %3148 = vadd.xlane.f32.xlu1 %v8666_v41 }
 0x232   : > { %10847 = vst [vmem:[#allocation105_spill] sm:$0xff] %v8669_v44  ;;  %v8674_v60 = vpop.xlane.xlu1 %2480 }
 0x233   : > { %v8678_v1 = vpop.f32.mrb[64].mxu1 }
 0x234   : > { %10850 = vst [vmem:[#allocation36_spill] sm:$0xff] %v8678_v1  ;;  %2582 = vmax.xlane.f32.xlu0 %v8396_v51  ;;  %v8681_v37 = vpop.f32.mrb[65].mxu1 }
 0x235   : > { %10851 = vst [vmem:[#allocation106_spill] sm:$0xff] %v8681_v37  ;;  %v8683_v17 = vpop.xlane.xlu0 %2574  ;;  %2584 = vmax.xlane.f32.xlu1 %v8408_v61  ;;  %v8686_v19 = vpop.f32.mrb[66].mxu1 }
 0x236   : > { %10852 = vst [vmem:[#allocation107_spill] sm:$0xff] %v8683_v17  ;;  %10853 = vst [vmem:[#allocation108_spill] sm:$0xff] %v8686_v19  ;;  %v8690_v44 = vpop.xlane.xlu1 %2576  ;;  %v8692_v28 = vpop.f32.mrb[67].mxu1  ;;  %v10868_v17 = vld [vmem:[#allocation40_spill] sm:$0xff] }
 0x237   : > { %10855 = vst [vmem:[#allocation109_spill] sm:$0xff] %v8692_v28 }
 0x238   : > { %2578 = vmax.xlane.f32.xlu0 %v8403_v58 }
 0x239   : > { %v8697_v51 = vpop.xlane.xlu0 %2474  ;;  %2580 = vmax.xlane.f32.xlu1 %v8414_v47 }
 0x23a   : > { %10857 = vst [vmem:[#allocation39_spill] sm:$0xff] %v8697_v51  ;;  %v8702_v19 = vpop.xlane.xlu1 %2476 }
 0x23b   : > { %10859 = vst [vmem:[#allocation110_spill] sm:$0xff] %v8702_v19  ;;  %v8706_v41 = vpop.f32.mrb[68].mxu1  ;;  %v10876_v19 = vld [vmem:[#allocation15_spill] sm:$0xff] }
 0x23c   : > { %10861 = vst [vmem:[#allocation38_spill] sm:$0xff] %v8706_v41  ;;  %2590 = vmax.xlane.f32.xlu0 %v8432_v56  ;;  %v8709_v28 = vpop.f32.mrb[69].mxu1 }
 0x23d   : > { %10862 = vst [vmem:[#allocation111_spill] sm:$0xff] %v8709_v28  ;;  %v8711_v1 = vpop.xlane.xlu0 %2570  ;;  %2592 = vmax.xlane.f32.xlu1 %v8444_v63  ;;  %v8714_v58 = vpop.f32.mrb[70].mxu1  ;;  %v10869_v63 = vld [vmem:[#allocation14_spill] sm:$0xff] }
 0x23e   : > { %10863 = vst [vmem:[#allocation112_spill] sm:$0xff] %v8711_v1  ;;  %10864 = vst [vmem:[#allocation113_spill] sm:$0xff] %v8714_v58  ;;  %v8718_v51 = vpop.xlane.xlu1 %2572  ;;  %v8720_v61 = vpop.f32.mrb[71].mxu1  ;;  %v2693_v28 = vsub.f32 %v10869_v63, %v8490_v55  ;;  %v10870_v58 = vld [vmem:[#allocation41_spill] sm:$0xff] }
 0x23f   : > { %10866 = vst [vmem:[#allocation114_spill] sm:$0xff] %v8718_v51  ;;  %10867 = vst [vmem:[#allocation115_spill] sm:$0xff] %v8720_v61  ;;  %v2741_v61 = vsub.f32 %v10876_v19, %v8508_v3  ;;  %v10882_v3 = vld [vmem:[#allocation43_spill] sm:$0xff]  ;;  %v10886_v1 = vld [vmem:[#allocation45_spill] sm:$0xff] }
 0x240   : > { %2586 = vmax.xlane.f32.xlu0 %v8439_v59  ;;  %v2840_v63 = vmul.f32 1.442695, %v2693_v28 }
 0x241   : > { %v8725_v56 = vpop.xlane.xlu0 %2518  ;;  %2588 = vmax.xlane.f32.xlu1 %v8450_v57  ;;  %v10875_v57 = vsub.f32 %v8152_v31, %v8466_v16  ;;  %v10880_v31 = vld [vmem:[#allocation46_spill] sm:$0xff]  ;;  %v10881_v16 = vsub.f32 %v8154_v32, %v8459_v48  ;;  %v2936_v19 = vmul.f32 1.442695, %v2741_v61 }
 0x242   : > { %v8732_v37 = vpop.xlane.xlu1 %2520 }
 0x243   : > { %10871 = vst [vmem:[#allocation40_spill] sm:$0xff] %v8732_v37  ;;  %v8736_v47 = vpop.f32.mrb[72].mxu1  ;;  %v2838_v59 = vmul.f32 1.442695, %v10875_v57  ;;  %v10877_v37 = vld [vmem:[#allocation42_spill] sm:$0xff]  ;;  %v10883_v57 = vld [vmem:[#allocation47_spill] sm:$0xff] }
 0x244   : > { %10873 = vst [vmem:[#allocation14_spill] sm:$0xff] %v8736_v47  ;;  %2598 = vmax.xlane.f32.xlu0 %v8472_v4  ;;  %v8739_v41 = vpop.f32.mrb[73].mxu1 }
 0x245   : > { %10874 = vst [vmem:[#allocation41_spill] sm:$0xff] %v8739_v41  ;;  %v8744_v51 = vpop.xlane.xlu0 %2614  ;;  %2600 = vmax.xlane.f32.xlu1 %v8484_v50  ;;  %v8747_v55 = vpop.f32.mrb[74].mxu1  ;;  %v2934_v50 = vmul.f32 1.442695, %v10881_v16  ;;  %6976 = vpow2.f32 %v2838_v59  ;;  %v10884_v59 = vsub.f32 %v8156_v33, %v8481_v12  ;;  %v10885_v16 = vsub.f32 %v8167_v38, %v8521_v29  ;;  %v10887_v33 = vld [vmem:[#allocation48_spill] sm:$0xff] }
 0x246   : > { %v8753_v4 = vpop.xlane.xlu1 %2616  ;;  %v8755_v41 = vpop.f32.mrb[75].mxu1  ;;  %6978 = vpow2.f32 %v2840_v63  ;;  %v10889_v38 = vsub.f32 %v10799_v8, %v8530_v35 }
 0x247   : > { %10878 = vst [vmem:[#allocation15_spill] sm:$0xff] %v8753_v4  ;;  %10879 = vst [vmem:[#allocation42_spill] sm:$0xff] %v8755_v41  ;;  %6980 = vpow2.f32 %v2934_v50  ;;  %v2834_v48 = vmul.f32 1.442695, %v10884_v59  ;;  %v2836_v4 = vmul.f32 1.442695, %v10885_v16 }
 0x248   : > { %2594 = vmax.xlane.f32.xlu0 %v8477_v20  ;;  %6982 = vpow2.f32 %v2936_v19  ;;  %v10888_v19 = vsub.f32 %v8158_v34, %v8501_v22  ;;  %v2932_v29 = vmul.f32 1.442695, %v10889_v38  ;;  %v10890_v16 = vld [vmem:[#allocation49_spill] sm:$0xff]  ;;  %v10896_v34 = vld [vmem:[#allocation51_spill] sm:$0xff] }
 0x249   : > { %v8763_v28 = vpop.xlane.xlu0 %2514  ;;  %2596 = vmax.xlane.f32.xlu1 %v8492_v62  ;;  %6984 = vpow2.f32 %v2834_v48  ;;  %v10892_v48 = vld [vmem:[#allocation52_spill] sm:$0xff] }
 0x24a   : > { %v8768_v41 = vpop.xlane.xlu1 %2516  ;;  %v2930_v59 = vmul.f32 1.442695, %v10888_v19  ;;  %6986 = vpow2.f32 %v2836_v4  ;;  %v10894_v4 = vsub.f32 %v10803_v52, %v8543_v39  ;;  %v10895_v19 = vsub.f32 %v10805_v46, %v8550_v30  ;;  %v10902_v52 = vld [vmem:[#allocation50_spill] sm:$0xff] }
 0x24b   : > { %v8772_v20 = vpop.f32.mrb[76].mxu1 }
 0x24c   : > { %2606 = vmax.xlane.f32.xlu0 %v8512_v7  ;;  %v8775_v32 = vpop.f32.mrb[77].mxu1  ;;  %6988 = vpow2.f32 %v2930_v59  ;;  %v2846_v35 = vmul.f32 1.442695, %v10894_v4  ;;  %v2848_v38 = vmul.f32 1.442695, %v10895_v19  ;;  %v10898_v59 = vld [vmem:[#allocation55_spill] sm:$0xff]  ;;  %v10901_v4 = vsub.f32 %v10811_v10, %v8568_v42 }
 0x24d   : > { %v8780_v61 = vpop.xlane.xlu0 %2610  ;;  %2608 = vmax.xlane.f32.xlu1 %v8524_v0  ;;  %v8783_v63 = vpop.f32.mrb[78].mxu1  ;;  %6990 = vpow2.f32 %v2932_v29  ;;  %v10900_v29 = vsub.f32 %v10809_v9, %v8561_v26  ;;  %v10904_v9 = vld [vmem:[#allocation54_spill] sm:$0xff]  ;;  %v10906_v42 = vsub.f32 %v10815_v21, %v8579_v2  ;;  %v10908_v26 = vld [vmem:[#allocation53_spill] sm:$0xff]  ;;  %v10911_v21 = vld [vmem:[#allocation56_spill] sm:$0xff] }
 0x24e   : > { %v8790_v62 = vpop.xlane.xlu1 %2612  ;;  %v8792_v50 = vpop.f32.mrb[79].mxu1  ;;  %6992 = vpow2.f32 %v2846_v35  ;;  %v2944_v19 = vmul.f32 1.442695, %v10901_v4  ;;  %v10907_v4 = vsub.f32 %v10817_v43, %v8586_v15  ;;  %v10913_v15 = vsub.f32 %v10821_v11, %v8597_v54  ;;  %v10917_v54 = vld [vmem:[#allocation60_spill] sm:$0xff] }
 0x24f   : > { %v2942_v30 = vmul.f32 1.442695, %v10900_v29  ;;  %6994 = vpow2.f32 %v2848_v38  ;;  %v2842_v10 = vmul.f32 1.442695, %v10906_v42  ;;  %v10914_v42 = vsub.f32 %v10823_v6, %v8604_v13 }
 0x250   : > { %2602 = vmax.xlane.f32.xlu0 %v8517_v5  ;;  %v8810_v5 = vpop.eup %6976  ;;  %v2844_v7 = vmul.f32 1.442695, %v10907_v4  ;;  %v2938_v43 = vmul.f32 1.442695, %v10913_v15  ;;  %v10919_v13 = vsub.f32 %v10825_v25, %v8613_v53 }
 0x251   : > { %v8800_v0 = vpop.xlane.xlu0 %2526  ;;  %2604 = vmax.xlane.f32.xlu1 %v8532_v23  ;;  %10891 = vst [vmem:[#allocation46_spill] sm:$0xff] %v8810_v5  ;;  %v8814_v22 = vpop.eup %6978  ;;  %6996 = vpow2.f32 %v2942_v30  ;;  %v2940_v4 = vmul.f32 1.442695, %v10914_v42  ;;  %v10920_v42 = vsub.f32 %v10827_v27, %v8618_v45  ;;  %v10927_v45 = vld [vmem:[#allocation18_spill] sm:$0xff] }
 0x252   : > { %v8808_v12 = vpop.xlane.xlu1 %2528  ;;  %10893 = vst [vmem:[#allocation43_spill] sm:$0xff] %v8814_v22  ;;  %6998 = vpow2.f32 %v2944_v19  ;;  %v2854_v6 = vmul.f32 1.442695, %v10919_v13  ;;  %v10928_v27 = vsub.f32 %v10830_v36, %v10927_v45 }
 0x253   : > { %7000 = vpow2.f32 %v2842_v10 }
 0x254   : > { %3094 = vadd.xlane.f32.xlu0 %v8810_v5  ;;  %v8830_v5 = vpop.eup %6980  ;;  %7002 = vpow2.f32 %v2844_v7  ;;  %v6873_v7 = vld [vmem:[%s8878_s19 + $0x8] sm:$0xff]  }
 0x255   : > { %v8820_v8 = vpop.xlane.xlu0 %2622  ;;  %3096 = vadd.xlane.f32.xlu1 %v8814_v22  ;;  %10897 = vst [vmem:[#allocation47_spill] sm:$0xff] %v8830_v5  ;;  %v8834_v39 = vpop.eup %6982  ;;  %7004 = vpow2.f32 %v2938_v43 }
 0x256   : > { %v8828_v23 = vpop.xlane.xlu1 %2624  ;;  %10899 = vst [vmem:[#allocation45_spill] sm:$0xff] %v8834_v39  ;;  %v8850_v35 = vpop.eup %6984  ;;  %7006 = vpow2.f32 %v2940_v4  ;;  %v6874_v4 = vld [vmem:[%s8878_s19 + $0x10] sm:$0xff]  }
 0x257   : > { %10903 = vst [vmem:[#allocation48_spill] sm:$0xff] %v8850_v35  ;;  %v8854_v29 = vpop.eup %6986  ;;  %7008 = vpow2.f32 %v2854_v6 }
 0x258   : > { %3190 = vadd.xlane.f32.xlu0 %v8830_v5  ;;  %10905 = vst [vmem:[#allocation49_spill] sm:$0xff] %v8854_v29  ;;  %v8871_v30 = vpop.eup %6988  ;;  %v6872_v5 = vld [vmem:[%s8878_s19] sm:$0xff]  }
 0x259   : > { %v8840_v46 = vpop.xlane.xlu0 %2522  ;;  %3192 = vadd.xlane.f32.xlu1 %v8834_v39  ;;  %10910 = vst [vmem:[#allocation51_spill] sm:$0xff] %v8871_v30  ;;  %v8880_v19 = vpop.eup %6990  ;;  %6367 = vmatprep.subr.bf16.mxu0 %v6872_v5 }
 0x25a   : > { %v8848_v22 = vpop.xlane.xlu1 %2524  ;;  %10912 = vst [vmem:[#allocation55_spill] sm:$0xff] %v8880_v19  ;;  %v8897_v11 = vpop.eup %6992  ;;  %6368 = vmatpush3.bf16.msra.mxu0 %v6872_v5  ;;  %v10925_v5 = vld [vmem:[#allocation63_spill] sm:$0xff] }
 0x25b   : > { %10916 = vst [vmem:[#allocation50_spill] sm:$0xff] %v8897_v11  ;;  %v8901_v15 = vpop.eup %6994  ;;  %6369 = vmatprep.subr.bf16.mxu0 %v6873_v7 }
 0x25c   : > { %3090 = vadd.xlane.f32.xlu0 %v8850_v35  ;;  %10918 = vst [vmem:[#allocation54_spill] sm:$0xff] %v8901_v15  ;;  %v2856_v35 = vmul.f32 1.442695, %v10920_v42  ;;  %v8918_v25 = vpop.eup %6996  ;;  %v2950_v42 = vmul.f32 1.442695, %v10928_v27 }
 0x25d   : > { %v8860_v38 = vpop.xlane.xlu0 %2618  ;;  %3092 = vadd.xlane.f32.xlu1 %v8854_v29  ;;  %v10915_v29 = vld [vmem:[#allocation57_spill] sm:$0xff]  ;;  %v8922_v13 = vpop.eup %6998 }
 0x25e   : > { %v8868_v39 = vpop.xlane.xlu1 %2620  ;;  %10924 = vst [vmem:[#allocation57_spill] sm:$0xff] %v8918_v25  ;;  %10926 = vst [vmem:[#allocation60_spill] sm:$0xff] %v8922_v13  ;;  %6370 = vmatpush3.bf16.msra.mxu0 %v6873_v7  ;;  %7010 = vpow2.f32 %v2856_v35  ;;  %v8939_v45 = vpop.eup %7000  ;;  %v10936_v7 = vld [vmem:[#allocation61_spill] sm:$0xff] }
 0x25f   : > { %10909 = vst [vmem:[#allocation52_spill] sm:$0xff] %v8868_v39  ;;  %6371 = vmatprep.subr.bf16.mxu0 %v6874_v4  ;;  %v8943_v27 = vpop.eup %7002  ;;  %v6875_v35 = vld [vmem:[%s8878_s19 + $0x18] sm:$0xff]   ;;  %7012 = vpow2.f32 %v2950_v42 }
 0x260   : > { %3186 = vadd.xlane.f32.xlu0 %v8871_v30  ;;  %v10929_v30 = vld [vmem:[#allocation31_spill] sm:$0xff]  ;;  %v10954_v42 = vld [vmem:[#allocation65_spill] sm:$0xff] }
 0x261   : > { %v8889_v2 = vpop.xlane.xlu0 %2534  ;;  %3188 = vadd.xlane.f32.xlu1 %v8880_v19  ;;  %10935 = vst [vmem:[#allocation31_spill] sm:$0xff] %v8939_v45 }
 0x262   : > { %v8895_v39 = vpop.xlane.xlu1 %2536  ;;  %6372 = vmatpush3.bf16.msra.mxu0 %v6874_v4 }
 0x263   : > { %6373 = vmatprep.subr.bf16.mxu0 %v6875_v35 }
 0x264   : > { %3102 = vadd.xlane.f32.xlu0 %v8897_v11 }
 0x265   : > { %v8911_v19 = vpop.xlane.xlu0 %2630  ;;  %3104 = vadd.xlane.f32.xlu1 %v8901_v15  ;;  %v10930_v15 = vld [vmem:[#allocation22_spill] sm:$0xff] }
 0x266   : > { %10921 = vst [vmem:[#allocation53_spill] sm:$0xff] %v8911_v19  ;;  %v8916_v53 = vpop.xlane.xlu1 %2632  ;;  %v10931_v11 = vsub.f32 %v10929_v30, %v10930_v15  ;;  %10937 = vst [vmem:[#allocation22_spill] sm:$0xff] %v8943_v27  ;;  %v10938_v30 = vld [vmem:[#allocation26_spill] sm:$0xff]  ;;  %6374 = vmatpush3.bf16.msra.mxu0 %v6875_v35 }
 0x267   : > { %10923 = vst [vmem:[#allocation56_spill] sm:$0xff] %v8916_v53  ;;  %v10941_v53 = vld [vmem:[#allocation24_spill] sm:$0xff] }
 0x268   : > { %3198 = vadd.xlane.f32.xlu0 %v8918_v25  ;;  %v2952_v19 = vmul.f32 1.442695, %v10931_v11  ;;  %v10939_v11 = vld [vmem:[#allocation21_spill] sm:$0xff] }
 0x269   : > { %v8932_v10 = vpop.xlane.xlu0 %2530  ;;  %3200 = vadd.xlane.f32.xlu1 %v8922_v13  ;;  %v10940_v15 = vsub.f32 %v10938_v30, %v10939_v11  ;;  %v10942_v13 = vsub.f32 %v10839_v18, %v10941_v53  ;;  %v8960_v11 = vpop.eup %7004  ;;  %v10949_v18 = vld [vmem:[#allocation29_spill] sm:$0xff]  ;;  %v10950_v53 = vld [vmem:[#allocation27_spill] sm:$0xff] }
 0x26a   : > { %10932 = vst [vmem:[#allocation63_spill] sm:$0xff] %v8932_v10  ;;  %v8937_v36 = vpop.xlane.xlu1 %2532  ;;  %7014 = vpow2.f32 %v2952_v19  ;;  %10946 = vst [vmem:[#allocation21_spill] sm:$0xff] %v8960_v11  ;;  %v6876_v19 = vld [vmem:[%s8878_s19 + $0x20] sm:$0xff]  }
 0x26b   : > { %10934 = vst [vmem:[#allocation18_spill] sm:$0xff] %v8937_v36  ;;  %v2850_v25 = vmul.f32 1.442695, %v10940_v15  ;;  %v2852_v10 = vmul.f32 1.442695, %v10942_v13  ;;  %v8964_v15 = vpop.eup %7006  ;;  %v10951_v13 = vsub.f32 %v10949_v18, %v10950_v53  ;;  %v10952_v36 = vld [vmem:[#allocation30_spill] sm:$0xff]  ;;  %6375 = vmatprep.subr.bf16.mxu0 %v6876_v19 }
 0x26c   : > { %3098 = vadd.xlane.f32.xlu0 %v8939_v45  ;;  %10948 = vst [vmem:[#allocation24_spill] sm:$0xff] %v8964_v15  ;;  %v8981_v18 = vpop.eup %7008  ;;  %v6877_v53 = vld [vmem:[%s8878_s19 + $0x28] sm:$0xff]   ;;  %6376 = vmatpush3.bf16.msra.mxu0 %v6876_v19 }
 0x26d   : > { %v8953_v43 = vpop.xlane.xlu0 %2626  ;;  %3100 = vadd.xlane.f32.xlu1 %v8943_v27  ;;  %v2946_v45 = vmul.f32 1.442695, %v10951_v13  ;;  %7016 = vpow2.f32 %v2850_v25  ;;  %v10953_v27 = vsub.f32 %v10845_v14, %v10952_v36  ;;  %10956 = vst [vmem:[#allocation27_spill] sm:$0xff] %v8981_v18  ;;  %v8986_v14 = vpop.eup %7010  ;;  %v10959_v36 = vld [vmem:[#allocation33_spill] sm:$0xff]  ;;  %6377 = vmatprep.subr.bf16.mxu0 %v6877_v53  ;;  %v10983_v25 = vld [vmem:[#allocation70_spill] sm:$0xff] }
 0x26e   : > { %10943 = vst [vmem:[#allocation61_spill] sm:$0xff] %v8953_v43  ;;  %v8958_v30 = vpop.xlane.xlu1 %2628  ;;  %7018 = vpow2.f32 %v2852_v10  ;;  %10958 = vst [vmem:[#allocation30_spill] sm:$0xff] %v8986_v14  ;;  %v10962_v10 = vsub.f32 %v10849_v40, %v8674_v60  ;;  %v10969_v40 = vld [vmem:[#allocation35_spill] sm:$0xff] }
 0x26f   : > { %10945 = vst [vmem:[#allocation26_spill] sm:$0xff] %v8958_v30  ;;  %v2948_v43 = vmul.f32 1.442695, %v10953_v27  ;;  %v10960_v27 = vld [vmem:[#allocation105_spill] sm:$0xff]  ;;  %7020 = vpow2.f32 %v2946_v45  ;;  %v10973_v45 = vld [vmem:[#allocation66_spill] sm:$0xff] }
 0x270   : > { %3194 = vadd.xlane.f32.xlu0 %v8960_v11  ;;  %v10961_v13 = vsub.f32 %v10959_v36, %v10960_v27  ;;  %v2864_v30 = vmul.f32 1.442695, %v10962_v10  ;;  %v9002_v36 = vpop.eup %7012  ;;  %v6878_v27 = vld [vmem:[%s8878_s19 + $0x30] sm:$0xff]   ;;  %6378 = vmatpush3.bf16.msra.mxu0 %v6877_v53  ;;  %v10975_v53 = vld [vmem:[#allocation69_spill] sm:$0xff] }
 0x271   : > { %v8974_v6 = vpop.xlane.xlu0 %2542  ;;  %3196 = vadd.xlane.f32.xlu1 %v8964_v15  ;;  %7022 = vpow2.f32 %v2948_v43  ;;  %10966 = vst [vmem:[#allocation105_spill] sm:$0xff] %v9002_v36  ;;  %v10972_v43 = vsub.f32 %v10856_v24, %v8690_v44  ;;  %6379 = vmatprep.subr.bf16.mxu0 %v6878_v27  ;;  %v10977_v44 = vld [vmem:[#allocation34_spill] sm:$0xff]  ;;  %v10978_v24 = vld [vmem:[#allocation39_spill] sm:$0xff] }
 0x272   : > { %v8979_v4 = vpop.xlane.xlu1 %2544  ;;  %v2862_v15 = vmul.f32 1.442695, %v10961_v13  ;;  %v10970_v13 = vld [vmem:[#allocation107_spill] sm:$0xff] }
 0x273   : > { %10955 = vst [vmem:[#allocation29_spill] sm:$0xff] %v8979_v4  ;;  %v10971_v10 = vsub.f32 %v10969_v40, %v10970_v13  ;;  %v2960_v4 = vmul.f32 1.442695, %v10972_v43  ;;  %v6879_v13 = vld [vmem:[%s8878_s19 + $0x38] sm:$0xff]  }
 0x274   : > { %3110 = vadd.xlane.f32.xlu0 %v8981_v18  ;;  %v9007_v60 = vpop.eup %7014  ;;  %7024 = vpow2.f32 %v2862_v15  ;;  %6380 = vmatpush3.bf16.msra.mxu0 %v6878_v27  ;;  %v10986_v27 = vld [vmem:[#allocation72_spill] sm:$0xff]  ;;  %v10991_v18 = vld [vmem:[#allocation114_spill] sm:$0xff] }
 0x275   : > { %v8995_v11 = vpop.xlane.xlu0 %2638  ;;  %3112 = vadd.xlane.f32.xlu1 %v8986_v14  ;;  %10968 = vst [vmem:[#allocation116_spill] sm:$0xff] %v9007_v60  ;;  %v2958_v14 = vmul.f32 1.442695, %v10971_v10  ;;  %7026 = vpow2.f32 %v2864_v30  ;;  %v10979_v30 = vsub.f32 %v10977_v44, %v10978_v24  ;;  %6381 = vmatprep.subr.bf16.mxu0 %v6879_v13 }
 0x276   : > { %10963 = vst [vmem:[#allocation65_spill] sm:$0xff] %v8995_v11  ;;  %v9000_v35 = vpop.xlane.xlu1 %2640 }
 0x277   : > { %10965 = vst [vmem:[#allocation33_spill] sm:$0xff] %v9000_v35  ;;  %v9023_v40 = vpop.eup %7016  ;;  %7028 = vpow2.f32 %v2958_v14  ;;  %v2858_v43 = vmul.f32 1.442695, %v10979_v30  ;;  %v10981_v35 = vld [vmem:[#allocation110_spill] sm:$0xff]  ;;  %v10989_v30 = vld [vmem:[#allocation112_spill] sm:$0xff] }
 0x278   : > { %3206 = vadd.xlane.f32.xlu0 %v9002_v36  ;;  %10974 = vst [vmem:[#allocation35_spill] sm:$0xff] %v9023_v40  ;;  %v9028_v10 = vpop.eup %7018  ;;  %7030 = vpow2.f32 %v2960_v4  ;;  %v10982_v15 = vsub.f32 %v10860_v49, %v10981_v35  ;;  %6382 = vmatpush3.bf16.msra.mxu0 %v6879_v13  ;;  %v10988_v4 = vld [vmem:[#allocation37_spill] sm:$0xff] }
 0x279   : > { %v9016_v11 = vpop.xlane.xlu0 %2538  ;;  %3208 = vadd.xlane.f32.xlu1 %v9007_v60  ;;  %10976 = vst [vmem:[#allocation107_spill] sm:$0xff] %v9028_v10  ;;  %v9044_v14 = vpop.eup %7020  ;;  %7032 = vpow2.f32 %v2858_v43  ;;  %v10990_v49 = vsub.f32 %v10988_v4, %v10989_v30 }
 0x27a   : > { %v9021_v19 = vpop.xlane.xlu1 %2540  ;;  %v2860_v60 = vmul.f32 1.442695, %v10982_v15  ;;  %10985 = vst [vmem:[#allocation34_spill] sm:$0xff] %v9044_v14 }
 0x27b   : > { %v9048_v24 = vpop.eup %7022  ;;  %v2954_v35 = vmul.f32 1.442695, %v10990_v49 }
 0x27c   : > { %3106 = vadd.xlane.f32.xlu0 %v9023_v40  ;;  %10987 = vst [vmem:[#allocation39_spill] sm:$0xff] %v9048_v24  ;;  %7034 = vpow2.f32 %v2860_v60 }
 0x27d   : > { %v9034_v36 = vpop.xlane.xlu0 %2634  ;;  %3108 = vadd.xlane.f32.xlu1 %v9028_v10  ;;  %v10992_v10 = vsub.f32 %v10868_v17, %v10991_v18  ;;  %7036 = vpow2.f32 %v2954_v35 }
 0x27e   : > { %10980 = vst [vmem:[#allocation66_spill] sm:$0xff] %v9034_v36  ;;  %v9042_v40 = vpop.xlane.xlu1 %2636 }
 0x27f   : > { %10984 = vst [vmem:[#allocation69_spill] sm:$0xff] %v9042_v40  ;;  %v2956_v36 = vmul.f32 1.442695, %v10992_v10  ;;  %v9062_v40 = vpop.eup %7024 }
 0x280   : > { %3202 = vadd.xlane.f32.xlu0 %v9044_v14  ;;  %10993 = vst [vmem:[#allocation110_spill] sm:$0xff] %v9062_v40  ;;  %v9064_v14 = vpop.eup %7026 }
 0x281   : > { %v9054_v15 = vpop.xlane.xlu0 %3062  ;;  %3204 = vadd.xlane.f32.xlu1 %v9048_v24  ;;  %10994 = vst [vmem:[#allocation70_spill] sm:$0xff] %v9064_v14  ;;  %7038 = vpow2.f32 %v2956_v36  ;;  %v9072_v60 = vpop.eup %7028 }
 0x282   : > { %v9060_v44 = vpop.xlane.xlu1 %3064  ;;  %10997 = vst [vmem:[#allocation112_spill] sm:$0xff] %v9072_v60  ;;  %v9074_v17 = vpop.eup %7030 }
 0x283   : > { %10998 = vst [vmem:[#allocation114_spill] sm:$0xff] %v9074_v17  ;;  %v9082_v4 = vpop.eup %7032 }
 0x284   : > { %3118 = vadd.xlane.f32.xlu0 %v9062_v40  ;;  %10999 = vst [vmem:[#allocation117_spill] sm:$0xff] %v9082_v4  ;;  %v11014_v40 = vld [vmem:[#allocation38_spill] sm:$0xff] }
 0x285   : > { %v9067_v13 = vpop.xlane.xlu0 %3126  ;;  %3120 = vadd.xlane.f32.xlu1 %v9064_v14  ;;  %v11012_v14 = vld [vmem:[#allocation109_spill] sm:$0xff] }
 0x286   : > { %10995 = vst [vmem:[#allocation72_spill] sm:$0xff] %v9067_v13  ;;  %v9070_v43 = vpop.xlane.xlu1 %3128  ;;  %v9084_v30 = vpop.eup %7034 }
 0x287   : > { %10996 = vst [vmem:[#allocation37_spill] sm:$0xff] %v9070_v43  ;;  %11000 = vst [vmem:[#allocation118_spill] sm:$0xff] %v9084_v30  ;;  %v9092_v35 = vpop.eup %7036  ;;  %v11006_v43 = vld [vmem:[#allocation36_spill] sm:$0xff] }
 0x288   : > { %3214 = vadd.xlane.f32.xlu0 %v9072_v60  ;;  %11003 = vst [vmem:[#allocation121_spill] sm:$0xff] %v9092_v35 }
 0x289   : > { %v9077_v18 = vpop.xlane.xlu0 %3058  ;;  %3216 = vadd.xlane.f32.xlu1 %v9074_v17 }
 0x28a   : > { %v9080_v10 = vpop.xlane.xlu1 %3060 }
 0x28b   : > { %v9094_v60 = vpop.eup %7038 }
 0x28c   : > { %3114 = vadd.xlane.f32.xlu0 %v9082_v4  ;;  %11004 = vst [vmem:[#allocation122_spill] sm:$0xff] %v9094_v60 }
 0x28d   : > { %v9087_v36 = vpop.xlane.xlu0 %3122  ;;  %3116 = vadd.xlane.f32.xlu1 %v9084_v30 }
 0x28e   : > { %11001 = vst [vmem:[#allocation119_spill] sm:$0xff] %v9087_v36  ;;  %v9090_v49 = vpop.xlane.xlu1 %3124  ;;  %v11008_v36 = vld [vmem:[#allocation108_spill] sm:$0xff] }
 0x28f   : > { %11002 = vst [vmem:[#allocation120_spill] sm:$0xff] %v9090_v49  ;;  %v11010_v49 = vld [vmem:[#allocation106_spill] sm:$0xff] }
 0x290   : > { %3210 = vadd.xlane.f32.xlu0 %v9092_v35 }
 0x291   : > { %v9097_v17 = vpop.xlane.xlu0 %3070  ;;  %3212 = vadd.xlane.f32.xlu1 %v9094_v60 }
 0x292   : > { %v9100_v24 = vpop.xlane.xlu1 %3072 }
 0x293   : > { %11005 = vst [vmem:[#allocation123_spill] sm:$0xff] %v9100_v24  ;;  %v11016_v24 = vld [vmem:[#allocation113_spill] sm:$0xff] }
 0x294   : > { %2646 = vmax.xlane.f32.xlu0 %v11006_v43 }
 0x295   : > { %v9103_v13 = vpop.xlane.xlu0 %3134  ;;  %2648 = vmax.xlane.f32.xlu1 %v11008_v36 }
 0x296   : > { %11007 = vst [vmem:[#allocation124_spill] sm:$0xff] %v9103_v13  ;;  %v9106_v30 = vpop.xlane.xlu1 %3136  ;;  %v11018_v13 = vld [vmem:[#allocation111_spill] sm:$0xff] }
 0x297   : > { %11009 = vst [vmem:[#allocation125_spill] sm:$0xff] %v9106_v30  ;;  %v11020_v30 = vld [vmem:[#allocation115_spill] sm:$0xff] }
 0x298   : > { %2642 = vmax.xlane.f32.xlu0 %v11010_v49 }
 0x299   : > { %v9109_v4 = vpop.xlane.xlu0 %3066  ;;  %2644 = vmax.xlane.f32.xlu1 %v11012_v14  ;;  %v11022_v14 = vsub.f32 %v10870_v58, %v8725_v56  ;;  %v11029_v58 = vld [vmem:[#allocation42_spill] sm:$0xff]  ;;  %v11030_v56 = vld [vmem:[#allocation15_spill] sm:$0xff] }
 0x29a   : > { %11011 = vst [vmem:[#allocation126_spill] sm:$0xff] %v9109_v4  ;;  %v9112_v35 = vpop.xlane.xlu1 %3068 }
 0x29b   : > { %11013 = vst [vmem:[#allocation127_spill] sm:$0xff] %v9112_v35 }
 0x29c   : > { %2654 = vmax.xlane.f32.xlu0 %v11014_v40  ;;  %v2902_v40 = vmul.f32 1.442695, %v11022_v14  ;;  %v11031_v14 = vsub.f32 %v10880_v31, %v11030_v56 }
 0x29d   : > { %v9115_v60 = vpop.xlane.xlu0 %3130  ;;  %2656 = vmax.xlane.f32.xlu1 %v11016_v24 }
 0x29e   : > { %11015 = vst [vmem:[#allocation128_spill] sm:$0xff] %v9115_v60  ;;  %v9118_v43 = vpop.xlane.xlu1 %3132  ;;  %v11024_v60 = vld [vmem:[#allocation44_spill] sm:$0xff]  ;;  %7040 = vpow2.f32 %v2902_v40  ;;  %v11032_v40 = vsub.f32 %v10882_v3, %v8763_v28  ;;  %v11035_v3 = vsub.f32 %v10887_v33, %v8790_v62  ;;  %v11037_v62 = vsub.f32 %v10892_v48, %v8808_v12 }
 0x29f   : > { %11017 = vst [vmem:[#allocation129_spill] sm:$0xff] %v9118_v43  ;;  %v11025_v43 = vld [vmem:[#allocation40_spill] sm:$0xff]  ;;  %v11042_v12 = vsub.f32 %v10898_v59, %v8828_v23  ;;  %v11045_v23 = vsub.f32 %v10904_v9, %v8848_v22 }
 0x2a0   : > { %2650 = vmax.xlane.f32.xlu0 %v11018_v13  ;;  %v11026_v24 = vsub.f32 %v11024_v60, %v11025_v43  ;;  %v2912_v33 = vmul.f32 1.442695, %v11037_v62  ;;  %v11050_v22 = vld [vmem:[#allocation52_spill] sm:$0xff] }
 0x2a1   : > { %v9121_v36 = vpop.xlane.xlu0 %3078  ;;  %2652 = vmax.xlane.f32.xlu1 %v11020_v30  ;;  %v3008_v48 = vmul.f32 1.442695, %v11042_v12  ;;  %v2908_v59 = vmul.f32 1.442695, %v11045_v23  ;;  %v11051_v9 = vsub.f32 %v10911_v21, %v11050_v22  ;;  %v11053_v21 = vsub.f32 %v10917_v54, %v8895_v39  ;;  %v11059_v39 = vld [vmem:[#allocation56_spill] sm:$0xff] }
 0x2a2   : > { %11019 = vst [vmem:[#allocation130_spill] sm:$0xff] %v9121_v36  ;;  %v9124_v49 = vpop.xlane.xlu1 %3080  ;;  %v2904_v13 = vmul.f32 1.442695, %v11026_v24  ;;  %v11027_v36 = vld [vmem:[#allocation41_spill] sm:$0xff]  ;;  %v2898_v24 = vmul.f32 1.442695, %v11032_v40  ;;  %v11060_v54 = vsub.f32 %v10925_v5, %v11059_v39 }
 0x2a3   : > { %11021 = vst [vmem:[#allocation131_spill] sm:$0xff] %v9124_v49  ;;  %v2920_v23 = vmul.f32 1.442695, %v11053_v21  ;;  %v11064_v5 = vld [vmem:[#allocation18_spill] sm:$0xff] }
 0x2a4   : > { %2662 = vmax.xlane.f32.xlu0 %v8736_v47  ;;  %v11028_v47 = vsub.f32 %v10877_v37, %v8744_v51  ;;  %7042 = vpow2.f32 %v2904_v13  ;;  %v11034_v13 = vsub.f32 %v10886_v1, %v8780_v61  ;;  %v11036_v1 = vsub.f32 %v10890_v16, %v8800_v0 }
 0x2a5   : > { %v9130_v35 = vpop.xlane.xlu0 %3142  ;;  %2664 = vmax.xlane.f32.xlu1 %v8747_v55  ;;  %v11041_v0 = vsub.f32 %v10896_v34, %v8820_v8  ;;  %v11043_v34 = vsub.f32 %v10902_v52, %v8840_v46  ;;  %v6880_v52 = vld [vmem:[%s8878_s19 + $0x40] sm:$0xff]   ;;  %v11049_v46 = vsub.f32 %v10908_v26, %v8860_v38  ;;  %v6881_v26 = vld [vmem:[%s8878_s19 + $0x48] sm:$0xff]   ;;  %v11052_v38 = vsub.f32 %v10915_v29, %v8889_v2  ;;  %v6882_v29 = vld [vmem:[%s8878_s19 + $0x50] sm:$0xff]  }
 0x2a6   : > { %11023 = vst [vmem:[#allocation132_spill] sm:$0xff] %v9130_v35  ;;  %v9136_v4 = vpop.xlane.xlu1 %3144  ;;  %v2998_v30 = vmul.f32 1.442695, %v11028_v47  ;;  %v3000_v35 = vmul.f32 1.442695, %v11031_v14  ;;  %v11033_v47 = vsub.f32 %v10883_v57, %v8768_v41  ;;  %6399 = vmatprep.subr.bf16.mxu1 %v6880_v52  ;;  %v11056_v2 = vld [vmem:[#allocation59_spill] sm:$0xff]  ;;  %v11065_v39 = vsub.f32 %v10936_v7, %v11064_v5 }
 0x2a7   : > { %v2994_v60 = vmul.f32 1.442695, %v11034_v13  ;;  %v2910_v61 = vmul.f32 1.442695, %v11036_v1  ;;  %v3006_v16 = vmul.f32 1.442695, %v11041_v0  ;;  %6400 = vmatpush3.bf16.msra.mxu1 %v6880_v52 }
 0x2a8   : > { %2658 = vmax.xlane.f32.xlu0 %v11027_v36  ;;  %7044 = vpow2.f32 %v2998_v30  ;;  %v2900_v37 = vmul.f32 1.442695, %v11033_v47  ;;  %v2996_v30 = vmul.f32 1.442695, %v11035_v3  ;;  %v9174_v57 = vpop.eup %7040  ;;  %v2906_v8 = vmul.f32 1.442695, %v11043_v34  ;;  %6401 = vmatprep.subr.bf16.mxu1 %v6881_v26 }
 0x2a9   : > { %v9142_v49 = vpop.xlane.xlu0 %3074  ;;  %2660 = vmax.xlane.f32.xlu1 %v11029_v58  ;;  %7046 = vpow2.f32 %v3000_v35  ;;  %v3002_v62 = vmul.f32 1.442695, %v11049_v46  ;;  %v3004_v0 = vmul.f32 1.442695, %v11051_v9  ;;  %v2918_v34 = vmul.f32 1.442695, %v11052_v38 }
 0x2aa   : > { %v9148_v43 = vpop.xlane.xlu1 %3076  ;;  %7048 = vpow2.f32 %v2898_v24  ;;  %v11071_v7 = vld [vmem:[#allocation64_spill] sm:$0xff]  ;;  %v11072_v5 = vld [vmem:[#allocation26_spill] sm:$0xff] }
 0x2ab   : > { %7050 = vpow2.f32 %v2900_v37  ;;  %6402 = vmatpush3.bf16.msra.mxu1 %v6881_v26  ;;  %v3016_v26 = vmul.f32 1.442695, %v11060_v54 }
 0x2ac   : > { %2670 = vmax.xlane.f32.xlu0 %v8772_v20  ;;  %7052 = vpow2.f32 %v2994_v60  ;;  %6403 = vmatprep.subr.bf16.mxu1 %v6882_v29 }
 0x2ad   : > { %v9154_v51 = vpop.xlane.xlu0 %3138  ;;  %2672 = vmax.xlane.f32.xlu1 %v8783_v63  ;;  %7054 = vpow2.f32 %v2996_v30 }
 0x2ae   : > { %v9160_v31 = vpop.xlane.xlu1 %3140  ;;  %v9176_v35 = vpop.eup %7042  ;;  %7056 = vpow2.f32 %v2910_v61 }
 0x2af   : > { %7058 = vpow2.f32 %v2912_v33  ;;  %6404 = vmatpush3.bf16.msra.mxu1 %v6882_v29  ;;  %v2916_v29 = vmul.f32 1.442695, %v11065_v39  ;;  %v11073_v39 = vsub.f32 %v11071_v7, %v11072_v5  ;;  %v11076_v7 = vld [vmem:[#allocation29_spill] sm:$0xff] }
 0x2b0   : > { %2666 = vmax.xlane.f32.xlu0 %v8775_v32  ;;  %7060 = vpow2.f32 %v3006_v16 }
 0x2b1   : > { %v9166_v28 = vpop.xlane.xlu0 %3086  ;;  %2668 = vmax.xlane.f32.xlu1 %v8792_v50  ;;  %7062 = vpow2.f32 %v3008_v48 }
 0x2b2   : > { %v9172_v41 = vpop.xlane.xlu1 %3088  ;;  %v9190_v40 = vpop.eup %7044  ;;  %7064 = vpow2.f32 %v2906_v8 }
 0x2b3   : > { %11039 = vst [vmem:[#allocation40_spill] sm:$0xff] %v9190_v40  ;;  %v9192_v24 = vpop.eup %7046  ;;  %7066 = vpow2.f32 %v2908_v59 }
 0x2b4   : > { %3158 = vadd.xlane.f32.xlu0 %v9174_v57  ;;  %11040 = vst [vmem:[#allocation41_spill] sm:$0xff] %v9192_v24  ;;  %v9206_v13 = vpop.eup %7048  ;;  %7068 = vpow2.f32 %v3002_v62  ;;  %v11057_v62 = vld [vmem:[#allocation53_spill] sm:$0xff] }
 0x2b5   : > { %v9182_v56 = vpop.xlane.xlu0 %3150  ;;  %3160 = vadd.xlane.f32.xlu1 %v9176_v35  ;;  %v9208_v60 = vpop.eup %7050  ;;  %7070 = vpow2.f32 %v3004_v0  ;;  %v11058_v22 = vsub.f32 %v11056_v2, %v11057_v62  ;;  %v6883_v2 = vld [vmem:[%s8878_s19 + $0x58] sm:$0xff]   ;;  %v11061_v62 = vld [vmem:[#allocation58_spill] sm:$0xff] }
 0x2b6   : > { %v9188_v14 = vpop.xlane.xlu1 %3152  ;;  %v9222_v1 = vpop.eup %7052  ;;  %7072 = vpow2.f32 %v2918_v34  ;;  %6405 = vmatprep.subr.bf16.mxu1 %v6883_v2 }
 0x2b7   : > { %11038 = vst [vmem:[#allocation44_spill] sm:$0xff] %v9188_v14  ;;  %11047 = vst [vmem:[#allocation133_spill] sm:$0xff] %v9222_v1  ;;  %v9224_v61 = vpop.eup %7054  ;;  %v3014_v9 = vmul.f32 1.442695, %v11058_v22  ;;  %7074 = vpow2.f32 %v2920_v23  ;;  %v11062_v22 = vld [vmem:[#allocation63_spill] sm:$0xff]  ;;  %6406 = vmatpush3.bf16.msra.mxu1 %v6883_v2 }
 0x2b8   : > { %3254 = vadd.xlane.f32.xlu0 %v9190_v40  ;;  %11048 = vst [vmem:[#allocation134_spill] sm:$0xff] %v9224_v61  ;;  %v9239_v12 = vpop.eup %7056  ;;  %v11063_v23 = vsub.f32 %v11061_v62, %v11062_v22  ;;  %v6884_v62 = vld [vmem:[%s8878_s19 + $0x60] sm:$0xff]  }
 0x2b9   : > { %v9198_v47 = vpop.xlane.xlu0 %3082  ;;  %3256 = vadd.xlane.f32.xlu1 %v9192_v24  ;;  %v9241_v48 = vpop.eup %7058  ;;  %7076 = vpow2.f32 %v3014_v9  ;;  %v11068_v22 = vld [vmem:[#allocation62_spill] sm:$0xff]  ;;  %v3012_v24 = vmul.f32 1.442695, %v11073_v39  ;;  %6407 = vmatprep.subr.bf16.mxu1 %v6884_v62 }
 0x2ba   : > { %v9204_v37 = vpop.xlane.xlu1 %3084  ;;  %v9256_v52 = vpop.eup %7060  ;;  %7078 = vpow2.f32 %v3016_v26 }
 0x2bb   : > { %11054 = vst [vmem:[#allocation52_spill] sm:$0xff] %v9256_v52  ;;  %v9258_v46 = vpop.eup %7062  ;;  %6408 = vmatpush3.bf16.msra.mxu1 %v6884_v62 }
 0x2bc   : > { %3154 = vadd.xlane.f32.xlu0 %v9206_v13  ;;  %11055 = vst [vmem:[#allocation135_spill] sm:$0xff] %v9258_v46  ;;  %v9273_v21 = vpop.eup %7064 }
 0x2bd   : > { %v9214_v3 = vpop.xlane.xlu0 %3146  ;;  %3156 = vadd.xlane.f32.xlu1 %v9208_v60  ;;  %v9275_v34 = vpop.eup %7066 }
 0x2be   : > { %11044 = vst [vmem:[#allocation42_spill] sm:$0xff] %v9214_v3  ;;  %v9220_v30 = vpop.xlane.xlu1 %3148 }
 0x2bf   : > { %11046 = vst [vmem:[#allocation15_spill] sm:$0xff] %v9220_v30 }
 0x2c0   : > { %3250 = vadd.xlane.f32.xlu0 %v9222_v1 }
 0x2c1   : > { %v9231_v33 = vpop.xlane.xlu0 %2582  ;;  %3252 = vadd.xlane.f32.xlu1 %v9224_v61  ;;  %v9290_v61 = vpop.eup %7068 }
 0x2c2   : > { %v9237_v16 = vpop.xlane.xlu1 %2584  ;;  %11066 = vst [vmem:[#allocation59_spill] sm:$0xff] %v9290_v61  ;;  %v9292_v9 = vpop.eup %7070 }
 0x2c3   : > { %11067 = vst [vmem:[#allocation53_spill] sm:$0xff] %v9292_v9 }
 0x2c4   : > { %3166 = vadd.xlane.f32.xlu0 %v9239_v12 }
 0x2c5   : > { %v9248_v8 = vpop.xlane.xlu0 %2578  ;;  %3168 = vadd.xlane.f32.xlu1 %v9241_v48 }
 0x2c6   : > { %v9254_v59 = vpop.xlane.xlu1 %2580 }
 0x2c8   : > { %3262 = vadd.xlane.f32.xlu0 %v9256_v52  ;;  %v2914_v52 = vmul.f32 1.442695, %v11063_v23  ;;  %v11069_v23 = vld [vmem:[#allocation61_spill] sm:$0xff] }
 0x2c9   : > { %v9265_v0 = vpop.xlane.xlu0 %2590  ;;  %3264 = vadd.xlane.f32.xlu1 %v9258_v46  ;;  %v11070_v26 = vsub.f32 %v11068_v22, %v11069_v23 }
 0x2ca   : > { %v9271_v38 = vpop.xlane.xlu1 %2592  ;;  %7080 = vpow2.f32 %v2914_v52  ;;  %v6885_v52 = vld [vmem:[%s8878_s19 + $0x68] sm:$0xff]  }
 0x2cb   : > { %v3010_v1 = vmul.f32 1.442695, %v11070_v26  ;;  %7082 = vpow2.f32 %v2916_v29  ;;  %v11074_v29 = vsub.f32 %v10954_v42, %v8974_v6  ;;  %6409 = vmatprep.subr.bf16.mxu1 %v6885_v52  ;;  %v11075_v26 = vld [vmem:[#allocation68_spill] sm:$0xff]  ;;  %v11080_v6 = vsub.f32 %v10973_v45, %v9016_v11  ;;  %v11084_v45 = vld [vmem:[#allocation69_spill] sm:$0xff] }
 0x2cc   : > { %3162 = vadd.xlane.f32.xlu0 %v9273_v21  ;;  %v11077_v5 = vsub.f32 %v11075_v26, %v11076_v7  ;;  %6410 = vmatpush3.bf16.msra.mxu1 %v6885_v52  ;;  %v11082_v52 = vld [vmem:[#allocation66_spill] sm:$0xff] }
 0x2cd   : > { %v9282_v46 = vpop.xlane.xlu0 %2586  ;;  %3164 = vadd.xlane.f32.xlu1 %v9275_v34  ;;  %7084 = vpow2.f32 %v3010_v1  ;;  %v2926_v22 = vmul.f32 1.442695, %v11074_v29  ;;  %v6886_v1 = vld [vmem:[%s8878_s19 + $0x70] sm:$0xff]   ;;  %v2922_v42 = vmul.f32 1.442695, %v11080_v6  ;;  %v11083_v7 = vsub.f32 %v10983_v25, %v11082_v52 }
 0x2ce   : > { %v9288_v54 = vpop.xlane.xlu1 %2588  ;;  %7086 = vpow2.f32 %v3012_v24  ;;  %v2928_v62 = vmul.f32 1.442695, %v11077_v5  ;;  %v11081_v24 = vsub.f32 %v10975_v53, %v9021_v19  ;;  %6411 = vmatprep.subr.bf16.mxu1 %v6886_v1  ;;  %v11086_v19 = vld [vmem:[#allocation74_spill] sm:$0xff] }
 0x2cf   : > { %7088 = vpow2.f32 %v2926_v22  ;;  %v3018_v5 = vmul.f32 1.442695, %v11083_v7  ;;  %v11085_v22 = vsub.f32 %v10986_v27, %v11084_v45  ;;  %v2756_v53 = vsub.f32 %v11086_v19, %v9231_v33  ;;  %v11087_v27 = vld [vmem:[#allocation77_spill] sm:$0xff] }
 0x2d0   : > { %3258 = vadd.xlane.f32.xlu0 %v9290_v61  ;;  %v9307_v61 = vpop.eup %7072  ;;  %v2924_v29 = vmul.f32 1.442695, %v11081_v24  ;;  %7090 = vpow2.f32 %v2928_v62  ;;  %6412 = vmatpush3.bf16.msra.mxu1 %v6886_v1  ;;  %v6887_v24 = vld [vmem:[%s8878_s19 + $0x78] sm:$0xff]   ;;  %v2757_v62 = vsub.f32 %v11087_v27, %v9237_v16  ;;  %v11091_v16 = vld [vmem:[#allocation78_spill] sm:$0xff] }
 0x2d1   : > { %v9299_v40 = vpop.xlane.xlu0 %2598  ;;  %3260 = vadd.xlane.f32.xlu1 %v9292_v9  ;;  %v9310_v30 = vpop.eup %7074  ;;  %v3020_v6 = vmul.f32 1.442695, %v11085_v22  ;;  %7092 = vpow2.f32 %v2922_v42  ;;  %6413 = vmatprep.subr.bf16.mxu1 %v6887_v24  ;;  %v2966_v1 = vmul.f32 1.442695, %v2756_v53  ;;  %v11092_v53 = vld [vmem:[#allocation82_spill] sm:$0xff]  ;;  %v11095_v27 = vld [vmem:[#allocation85_spill] sm:$0xff] }
 0x2d2   : > { %v9305_v2 = vpop.xlane.xlu1 %2600  ;;  %v9324_v9 = vpop.eup %7076  ;;  %7094 = vpow2.f32 %v2924_v29  ;;  %v11090_v29 = vld [vmem:[#allocation76_spill] sm:$0xff]  ;;  %v2968_v22 = vmul.f32 1.442695, %v2757_v62  ;;  %v2761_v62 = vsub.f32 %v11095_v27, %v9271_v38 }
 0x2d3   : > { %11078 = vst [vmem:[#allocation56_spill] sm:$0xff] %v9324_v9  ;;  %v9327_v3 = vpop.eup %7078  ;;  %7096 = vpow2.f32 %v3018_v5  ;;  %v2754_v7 = vsub.f32 %v11090_v29, %v9248_v8  ;;  %v2755_v5 = vsub.f32 %v11091_v16, %v9254_v59  ;;  %v2760_v59 = vsub.f32 %v11092_v53, %v9265_v0 }
 0x2d4   : > { %3174 = vadd.xlane.f32.xlu0 %v9307_v61  ;;  %11079 = vst [vmem:[#allocation58_spill] sm:$0xff] %v9327_v3  ;;  %v9344_v11 = vpop.eup %7080  ;;  %7098 = vpow2.f32 %v3020_v6  ;;  %6414 = vmatpush3.bf16.msra.mxu1 %v6887_v24 }
 0x2d5   : > { %v9316_v23 = vpop.xlane.xlu0 %2594  ;;  %3176 = vadd.xlane.f32.xlu1 %v9310_v30  ;;  %7100 = vrcp.f32 %v9054_v15  ;;  %v2962_v8 = vmul.f32 1.442695, %v2754_v7  ;;  %v11098_v7 = vld [vmem:[#allocation84_spill] sm:$0xff]  ;;  %v2974_v38 = vmul.f32 1.442695, %v2760_v59  ;;  %v11102_v59 = vld [vmem:[#allocation90_spill] sm:$0xff] }
 0x2d6   : > { %v9322_v39 = vpop.xlane.xlu1 %2596  ;;  %7102 = vrcp.f32 %v9060_v44  ;;  %v2964_v44 = vmul.f32 1.442695, %v2755_v5  ;;  %v2758_v16 = vsub.f32 %v11098_v7, %v9282_v46 }
 0x2d7   : > { %7104 = vrcp.f32 %v9077_v18 }
 0x2d8   : > { %3270 = vadd.xlane.f32.xlu0 %v9324_v9  ;;  %v9352_v9 = vpop.eup %7082  ;;  %7106 = vpow2.f32 %v2966_v1  ;;  %v2970_v7 = vmul.f32 1.442695, %v2758_v16 }
 0x2d9   : > { %v9336_v26 = vpop.xlane.xlu0 %2606  ;;  %3272 = vadd.xlane.f32.xlu1 %v9327_v3  ;;  %v9362_v33 = vpop.eup %7084 }
 0x2da   : > { %v9342_v14 = vpop.xlane.xlu1 %2608  ;;  %11088 = vst [vmem:[#allocation63_spill] sm:$0xff] %v9362_v33  ;;  %v9364_v42 = vpop.eup %7086 }
 0x2db   : > { %11089 = vst [vmem:[#allocation18_spill] sm:$0xff] %v9364_v42  ;;  %v9375_v19 = vpop.eup %7088 }
 0x2dc   : > { %3170 = vadd.xlane.f32.xlu0 %v9344_v11  ;;  %v9377_v15 = vpop.eup %7090 }
 0x2dd   : > { %v9355_v25 = vpop.xlane.xlu0 %2602  ;;  %3172 = vadd.xlane.f32.xlu1 %v9352_v9  ;;  %v9385_v18 = vpop.eup %7092 }
 0x2de   : > { %v9360_v52 = vpop.xlane.xlu1 %2604  ;;  %11094 = vst [vmem:[#allocation61_spill] sm:$0xff] %v9385_v18  ;;  %v9393_v29 = vpop.eup %7094 }
 0x2df   : > { %11096 = vst [vmem:[#allocation64_spill] sm:$0xff] %v9393_v29  ;;  %v9396_v0 = vpop.eup %7096 }
 0x2e0   : > { %3266 = vadd.xlane.f32.xlu0 %v9362_v33  ;;  %11097 = vst [vmem:[#allocation26_spill] sm:$0xff] %v9396_v0  ;;  %v9401_v5 = vpop.eup %7098  ;;  %v11104_v33 = vld [vmem:[#allocation123_spill] sm:$0xff] }
 0x2e1   : > { %v3095_v45 = vpop.xlane.xlu0 %3094  ;;  %3268 = vadd.xlane.f32.xlu1 %v9364_v42  ;;  %11099 = vst [vmem:[#allocation68_spill] sm:$0xff] %v9401_v5  ;;  %v7101_v53 = vpop.eup %7100 }
 0x2e2   : > { %v3097_v6 = vpop.xlane.xlu1 %3096  ;;  %7108 = vrcp.f32 %v3095_v45  ;;  %v11100_v45 = vld [vmem:[#allocation86_spill] sm:$0xff] }
 0x2e3   : > { %7110 = vrcp.f32 %v3097_v6 }
 0x2e4   : > { %3182 = vadd.xlane.f32.xlu0 %v9375_v19  ;;  %7112 = vpow2.f32 %v2968_v22  ;;  %v2759_v22 = vsub.f32 %v11100_v45, %v9288_v54  ;;  %v2764_v45 = vsub.f32 %v11102_v59, %v9299_v40  ;;  %v11107_v40 = vld [vmem:[#allocation73_spill] sm:$0xff] }
 0x2e5   : > { %v9382_v24 = vpop.xlane.xlu0 %3190  ;;  %3184 = vadd.xlane.f32.xlu1 %v9377_v15  ;;  %7114 = vrcp.f32 %v9080_v10  ;;  %v2976_v10 = vmul.f32 1.442695, %v2761_v62  ;;  %v3444_v59 = vmul.f32 %v7101_v53, %v11107_v40 }
 0x2e6   : > { %11093 = vst [vmem:[#allocation62_spill] sm:$0xff] %v9382_v24  ;;  %v9391_v1 = vpop.xlane.xlu1 %3192  ;;  %7116 = vpow2.f32 %v2962_v8  ;;  %v7103_v8 = vpop.eup %7102  ;;  %v2972_v54 = vmul.f32 1.442695, %v2759_v22  ;;  %v11109_v24 = vld [vmem:[#allocation43_spill] sm:$0xff] }
 0x2e7   : > { %7118 = vpow2.f32 %v2964_v44  ;;  %v7105_v46 = vpop.eup %7104 }
 0x2e8   : > { %3178 = vadd.xlane.f32.xlu0 %v9385_v18  ;;  %v9408_v44 = vpop.eup %7106  ;;  %v11110_v18 = vld [vmem:[#allocation94_spill] sm:$0xff] }
 0x2e9   : > { %v3091_v6 = vpop.xlane.xlu0 %3090  ;;  %3180 = vadd.xlane.f32.xlu1 %v9393_v29  ;;  %11101 = vst [vmem:[#allocation29_spill] sm:$0xff] %v9408_v44 }
 0x2ea   : > { %7120 = vrcp.f32 %v3091_v6  ;;  %v3093_v27 = vpop.xlane.xlu1 %3092  ;;  %v11103_v6 = vld [vmem:[#allocation93_spill] sm:$0xff] }
 0x2eb   : > { %7122 = vrcp.f32 %v3093_v27  ;;  %v2765_v27 = vsub.f32 %v11103_v6, %v9305_v2  ;;  %v2982_v6 = vmul.f32 1.442695, %v2764_v45  ;;  %v11114_v45 = vld [vmem:[#allocation126_spill] sm:$0xff] }
 0x2ec   : > { %7124 = vrcp.f32 %v9097_v17  ;;  %3274 = vadd.xlane.f32.xlu0 %v9396_v0  ;;  %v7109_v62 = vpop.eup %7108  ;;  %v9418_v17 = vstv %s9389_s0 }
 0x2ed   : > { %7126 = vpow2.f32 %v2974_v38  ;;  %v9412_v42 = vpop.xlane.xlu0 %3186  ;;  %3276 = vadd.xlane.f32.xlu1 %v9401_v5  ;;  %v7111_v0 = vpop.eup %7110  ;;  %v11105_v38 = vld [vmem:[#allocation46_spill] sm:$0xff]  ;;  %v11108_v5 = vld [vmem:[#allocation92_spill] sm:$0xff] }
 0x2ee   : > { %7128 = vpow2.f32 %v2976_v10  ;;  %v9420_v16 = vpop.xlane.xlu1 %3188  ;;  %v3460_v22 = vmul.f32 %v7109_v62, %v11105_v38  ;;  %v9424_v3 = vpop.eup %7112  ;;  %v2762_v10 = vsub.f32 %v11108_v5, %v9316_v23  ;;  %v3461_v29 = vmul.f32 %v7111_v0, %v11109_v24 }
 0x2ef   : > { %7130 = vrcp.f32 %v11104_v33  ;;  %11106 = vst [vmem:[#allocation66_spill] sm:$0xff] %v9424_v3  ;;  %v7115_v2 = vpop.eup %7114  ;;  %v2763_v33 = vsub.f32 %v11110_v18, %v9322_v39  ;;  %v2984_v23 = vmul.f32 1.442695, %v2765_v27  ;;  %v11115_v27 = vld [vmem:[#allocation98_spill] sm:$0xff] }
 0x2f0   : > { %7132 = vpow2.f32 %v2970_v7  ;;  %3222 = vadd.xlane.f32.xlu0 %v9408_v44  ;;  %v3573_v62 = vmul.f32 %v9418_v17, %v3460_v22  ;;  %v9435_v53 = vpop.eup %7116  ;;  %v11112_v7 = vld [vmem:[#allocation75_spill] sm:$0xff]  ;;  %v3574_v24 = vmul.f32 %v9418_v17, %v3461_v29  ;;  %v2978_v39 = vmul.f32 1.442695, %v2762_v10  ;;  %v11117_v10 = vld [vmem:[#allocation101_spill] sm:$0xff] }
 0x2f1   : > { %7134 = vpow2.f32 %v2972_v54  ;;  %v3103_v38 = vpop.xlane.xlu0 %3102  ;;  %3224 = vadd.xlane.f32.xlu1 %v9424_v3  ;;  %11111 = vst [vmem:[#allocation69_spill] sm:$0xff] %v9435_v53  ;;  %v3445_v40 = vmul.f32 %v7103_v8, %v11112_v7  ;;  %v9439_v5 = vpop.eup %7118  ;;  %v2980_v8 = vmul.f32 1.442695, %v2763_v33  ;;  %v2768_v29 = vsub.f32 %v11115_v27, %v9336_v26  ;;  %v11116_v7 = vld [vmem:[#allocation48_spill] sm:$0xff]  ;;  %v11121_v26 = vld [vmem:[#allocation81_spill] sm:$0xff] }
 0x2f2   : > { %7136 = vrcp.f32 %v3103_v38  ;;  %v3105_v0 = vpop.xlane.xlu1 %3104  ;;  %11113 = vst [vmem:[#allocation74_spill] sm:$0xff] %v9439_v5  ;;  %v3637_v18 = vsub.f32 %v3444_v59, %v3573_v62  ;;  %v11118_v62 = vld [vmem:[#allocation49_spill] sm:$0xff]  ;;  %v3442_v27 = vmul.f32 %v7105_v46, %v11121_v26  ;;  %v11124_v46 = vld [vmem:[#allocation102_spill] sm:$0xff] }
 0x2f3   : > { %7138 = vrcp.f32 %v3105_v0  ;;  %v3638_v22 = vsub.f32 %v3445_v40, %v3574_v24  ;;  %v11120_v24 = vld [vmem:[#allocation127_spill] sm:$0xff] }
 0x2f4   : > { %v7121_v54 = vpop.eup %7120  ;;  %7140 = vrcp.f32 %v11114_v45  ;;  %3218 = vadd.xlane.f32.xlu0 %v9435_v53  ;;  %v2769_v45 = vsub.f32 %v11117_v10, %v9342_v14  ;;  %v6888_v53 = vld [vmem:[%s8878_s19 + $0x80] sm:$0xff]   ;;  %v2990_v10 = vmul.f32 1.442695, %v2768_v29 }
 0x2f5   : > { %v7123_v44 = vpop.eup %7122  ;;  %7142 = vpow2.f32 %v2982_v6  ;;  %v9445_v38 = vpop.xlane.xlu0 %3198  ;;  %3220 = vadd.xlane.f32.xlu1 %v9439_v5  ;;  %v3458_v0 = vmul.f32 %v7121_v54, %v11116_v7  ;;  %v3700_v40 = vpack.c.bf16 %v3638_v22, %v3637_v18  ;;  %v11123_v7 = vld [vmem:[#allocation83_spill] sm:$0xff]  ;;  %6431 = vmatprep.subr.bf16.mxu0 %v6888_v53  ;;  %v11127_v29 = vld [vmem:[#allocation130_spill] sm:$0xff] }
 0x2f6   : > { %v7125_v3 = vpop.eup %7124  ;;  %7144 = vpow2.f32 %v2984_v23  ;;  %v9451_v59 = vpop.xlane.xlu1 %3200  ;;  %v3459_v6 = vmul.f32 %v7123_v44, %v11118_v62  ;;  %v11122_v23 = vld [vmem:[#allocation100_spill] sm:$0xff]  ;;  %v3443_v44 = vmul.f32 %v7115_v2, %v11123_v7  ;;  %v2767_v62 = vsub.f32 %v11124_v46, %v9360_v52 }
 0x2f7   : > { %v9454_v33 = vpop.eup %7126  ;;  %7146 = vrcp.f32 %v11120_v24  ;;  %v3571_v5 = vmul.f32 %v9418_v17, %v3458_v0  ;;  %v2766_v14 = vsub.f32 %v11122_v23, %v9355_v25  ;;  %v2992_v24 = vmul.f32 1.442695, %v2769_v45  ;;  %v11128_v45 = vld [vmem:[#allocation50_spill] sm:$0xff] }
 0x2f8   : > { %11119 = vst [vmem:[#allocation77_spill] sm:$0xff] %v9454_v33  ;;  %v9460_v54 = vpop.eup %7128  ;;  %7148 = vpow2.f32 %v2978_v39  ;;  %3230 = vadd.xlane.f32.xlu0 %v9454_v33  ;;  %v3572_v18 = vmul.f32 %v9418_v17, %v3459_v6  ;;  %v2988_v46 = vmul.f32 1.442695, %v2767_v62 }
 0x2f9   : > { %v7131_v22 = vpop.eup %7130  ;;  %7150 = vpow2.f32 %v2980_v8  ;;  %v3099_v0 = vpop.xlane.xlu0 %3098  ;;  %3232 = vadd.xlane.f32.xlu1 %v9460_v54  ;;  %v3635_v26 = vsub.f32 %v3442_v27, %v3571_v5  ;;  %v2986_v6 = vmul.f32 1.442695, %v2766_v14  ;;  %v6889_v27 = vld [vmem:[%s8878_s19 + $0x88] sm:$0xff]  }
 0x2fa   : > { %v9470_v39 = vpop.eup %7132  ;;  %7152 = vrcp.f32 %v3099_v0  ;;  %v3101_v25 = vpop.xlane.xlu1 %3100  ;;  %v3636_v2 = vsub.f32 %v3443_v44, %v3572_v18  ;;  %v11129_v0 = vld [vmem:[#allocation54_spill] sm:$0xff] }
 0x2fb   : > { %11125 = vst [vmem:[#allocation76_spill] sm:$0xff] %v9470_v39  ;;  %v9472_v23 = vpop.eup %7134  ;;  %7154 = vrcp.f32 %v3101_v25 }
 0x2fc   : > { %11126 = vst [vmem:[#allocation78_spill] sm:$0xff] %v9472_v23  ;;  %v7137_v8 = vpop.eup %7136  ;;  %7156 = vrcp.f32 %v11127_v29  ;;  %3226 = vadd.xlane.f32.xlu0 %v9470_v39  ;;  %v3699_v52 = vpack.c.bf16 %v3636_v2, %v3635_v26  ;;  %v11131_v26 = vld [vmem:[#allocation131_spill] sm:$0xff]  ;;  %v11133_v2 = vld [vmem:[#allocation89_spill] sm:$0xff] }
 0x2fd   : > { %v7139_v7 = vpop.eup %7138  ;;  %7158 = vpow2.f32 %v2990_v10  ;;  %v9476_v33 = vpop.xlane.xlu0 %3194  ;;  %3228 = vadd.xlane.f32.xlu1 %v9472_v23  ;;  %v3464_v5 = vmul.f32 %v7137_v8, %v11128_v45  ;;  %v11134_v8 = vld [vmem:[#allocation91_spill] sm:$0xff] }
 0x2fe   : > { %v7141_v44 = vpop.eup %7140  ;;  %7160 = vpow2.f32 %v2992_v24  ;;  %6383 = vmatprep.mubr.bf16.mxu0 %v3699_v52  ;;  %v9481_v18 = vpop.xlane.xlu1 %3196  ;;  %v3465_v14 = vmul.f32 %v7139_v7, %v11129_v0  ;;  %v3448_v24 = vmul.f32 %v7125_v3, %v11133_v2  ;;  %v3449_v29 = vmul.f32 %v7131_v22, %v11134_v8  ;;  %v11137_v2 = vld [vmem:[#allocation31_spill] sm:$0xff] }
 0x2ff   : > { %v9484_v25 = vpop.eup %7142  ;;  %7162 = vrcp.f32 %v11131_v26  ;;  %6384 = vmatmul.mubr.bf16.vlgmr.msra.gmra.mrb[48].mxu0 %v3700_v40  ;;  %v3577_v10 = vmul.f32 %v9418_v17, %v3464_v5  ;;  %v6890_v40 = vld [vmem:[%s8878_s19 + $0x90] sm:$0xff]  }
 0x300   : > { %11130 = vst [vmem:[#allocation82_spill] sm:$0xff] %v9484_v25  ;;  %v9488_v62 = vpop.eup %7144  ;;  %7164 = vpow2.f32 %v2986_v6  ;;  %3238 = vadd.xlane.f32.xlu0 %v9484_v25  ;;  %v3578_v52 = vmul.f32 %v9418_v17, %v3465_v14  ;;  %6432 = vmatpush3.bf16.msra.mxu0 %v6888_v53 }
 0x301   : > { %11132 = vst [vmem:[#allocation85_spill] sm:$0xff] %v9488_v62  ;;  %v7147_v7 = vpop.eup %7146  ;;  %7166 = vpow2.f32 %v2988_v46  ;;  %v3111_v45 = vpop.xlane.xlu0 %3110  ;;  %3240 = vadd.xlane.f32.xlu1 %v9488_v62  ;;  %6433 = vmatprep.subr.bf16.mxu0 %v6889_v27  ;;  %v3641_v0 = vsub.f32 %v3448_v24, %v3577_v10  ;;  %v11138_v24 = vld [vmem:[#allocation22_spill] sm:$0xff] }
 0x302   : > { %v9496_v5 = vpop.eup %7148  ;;  %7168 = vrcp.f32 %v3111_v45  ;;  %v3113_v6 = vpop.xlane.xlu1 %3112  ;;  %v3642_v26 = vsub.f32 %v3449_v29, %v3578_v52  ;;  %v6891_v45 = vld [vmem:[%s8878_s19 + $0x98] sm:$0xff]  }
 0x303   : > { %11135 = vst [vmem:[#allocation84_spill] sm:$0xff] %v9496_v5  ;;  %v9498_v3 = vpop.eup %7150  ;;  %7170 = vrcp.f32 %v3113_v6 }
 0x304   : > { %11136 = vst [vmem:[#allocation86_spill] sm:$0xff] %v9498_v3  ;;  %v7153_v22 = vpop.eup %7152  ;;  %3234 = vadd.xlane.f32.xlu0 %v9496_v5  ;;  %v3702_v53 = vpack.c.bf16 %v3642_v26, %v3641_v0  ;;  %6434 = vmatpush3.bf16.msra.mxu0 %v6889_v27  ;;  %7172 = vrcp.f32 %v9142_v49  ;;  %v11141_v0 = vld [vmem:[#allocation97_spill] sm:$0xff] }
 0x305   : > { %v7155_v46 = vpop.eup %7154  ;;  %v9501_v14 = vpop.xlane.xlu0 %3206  ;;  %3236 = vadd.xlane.f32.xlu1 %v9498_v3  ;;  %v3462_v8 = vmul.f32 %v7153_v22, %v11137_v2  ;;  %6435 = vmatprep.subr.bf16.mxu0 %v6890_v40  ;;  %v3446_v26 = vmul.f32 %v7141_v44, %v11141_v0  ;;  %v11142_v22 = vld [vmem:[#allocation99_spill] sm:$0xff]  ;;  %7174 = vrcp.f32 %v9148_v43 }
 0x306   : > { %v7157_v25 = vpop.eup %7156  ;;  %v9506_v10 = vpop.xlane.xlu1 %3208  ;;  %v3463_v29 = vmul.f32 %v7155_v46, %v11138_v24  ;;  %v3447_v2 = vmul.f32 %v7147_v7, %v11142_v22  ;;  %v11145_v22 = vld [vmem:[#allocation27_spill] sm:$0xff] }
 0x307   : > { %v9509_v52 = vpop.eup %7158  ;;  %v3575_v6 = vmul.f32 %v9418_v17, %v3462_v8  ;;  %v6892_v8 = vld [vmem:[%s8878_s19 + $0xa0] sm:$0xff]  }
 0x308   : > { %11139 = vst [vmem:[#allocation90_spill] sm:$0xff] %v9509_v52  ;;  %v9512_v27 = vpop.eup %7160  ;;  %3246 = vadd.xlane.f32.xlu0 %v9509_v52  ;;  %v3576_v3 = vmul.f32 %v9418_v17, %v3463_v29  ;;  %6436 = vmatpush3.bf16.msra.mxu0 %v6890_v40 }
 0x309   : > { %11140 = vst [vmem:[#allocation93_spill] sm:$0xff] %v9512_v27  ;;  %v7163_v5 = vpop.eup %7162  ;;  %v3107_v46 = vpop.xlane.xlu0 %3106  ;;  %3248 = vadd.xlane.f32.xlu1 %v9512_v27  ;;  %6437 = vmatprep.subr.bf16.mxu0 %v6891_v45  ;;  %v3639_v52 = vsub.f32 %v3446_v26, %v3575_v6  ;;  %v11146_v6 = vld [vmem:[#allocation30_spill] sm:$0xff] }
 0x30a   : > { %v9522_v24 = vpop.eup %7164  ;;  %7176 = vrcp.f32 %v3107_v46  ;;  %v3109_v49 = vpop.xlane.xlu1 %3108  ;;  %v3640_v44 = vsub.f32 %v3447_v2, %v3576_v3  ;;  %v6893_v46 = vld [vmem:[%s8878_s19 + $0xa8] sm:$0xff]  }
 0x30b   : > { %11143 = vst [vmem:[#allocation123_spill] sm:$0xff] %v9522_v24  ;;  %v9524_v0 = vpop.eup %7166  ;;  %7178 = vrcp.f32 %v3109_v49  ;;  %v11148_v49 = vld [vmem:[#allocation9_spill] sm:$0xff] }
 0x30c   : > { %11144 = vst [vmem:[#allocation46_spill] sm:$0xff] %v9524_v0  ;;  %v7169_v7 = vpop.eup %7168  ;;  %3242 = vadd.xlane.f32.xlu0 %v9522_v24  ;;  %v3701_v40 = vpack.c.bf16 %v3640_v44, %v3639_v52  ;;  %6438 = vmatpush3.bf16.msra.mxu0 %v6891_v45  ;;  %7180 = vrcp.f32 %v9166_v28  ;;  %v11147_v45 = vld [vmem:[#allocation6_spill] sm:$0xff]  ;;  %v3453_v44 = vmul.f32 %v7163_v5, %v11148_v49  ;;  %v11152_v24 = vld [vmem:[#allocation107_spill] sm:$0xff] }
 0x30d   : > { %v7171_v43 = vpop.eup %7170  ;;  %v9527_v29 = vpop.xlane.xlu0 %3202  ;;  %3244 = vadd.xlane.f32.xlu1 %v9524_v0  ;;  %v3468_v27 = vmul.f32 %v7169_v7, %v11145_v22  ;;  %6439 = vmatprep.subr.bf16.mxu0 %v6892_v8  ;;  %v3452_v52 = vmul.f32 %v7157_v25, %v11147_v45  ;;  %7182 = vrcp.f32 %v9172_v41  ;;  %v6895_v41 = vld [vmem:[%s8878_s19 + $0xb8] sm:$0xff]  }
 0x30e   : > { %6387 = vmatprep.mubr.bf16.mxu0 %v3701_v40  ;;  %v9532_v3 = vpop.xlane.xlu1 %3204  ;;  %v3469_v26 = vmul.f32 %v7171_v43, %v11146_v6  ;;  %v6894_v40 = vld [vmem:[%s8878_s19 + $0xb0] sm:$0xff]   ;;  %v7173_v22 = vpop.eup %7172 }
 0x30f   : > { %6388 = vmatmul.mubr.bf16.gmra.mrb[52].mxu0 %v3702_v53  ;;  %v3581_v2 = vmul.f32 %v9418_v17, %v3468_v27  ;;  %v7175_v6 = vpop.eup %7174 }
 0x310   : > { %v3582_v0 = vmul.f32 %v9418_v17, %v3469_v26  ;;  %6440 = vmatpush3.bf16.msra.mxu0 %v6892_v8  ;;  %v11150_v8 = vld [vmem:[#allocation35_spill] sm:$0xff] }
 0x311   : > { %v3119_v7 = vpop.xlane.xlu0 %3118  ;;  %6441 = vmatprep.subr.bf16.mxu0 %v6893_v46  ;;  %v3645_v43 = vsub.f32 %v3452_v52, %v3581_v2  ;;  %v11154_v52 = vld [vmem:[#allocation12_spill] sm:$0xff] }
 0x312   : > { %7184 = vrcp.f32 %v3119_v7  ;;  %v3121_v53 = vpop.xlane.xlu1 %3120  ;;  %v3646_v27 = vsub.f32 %v3453_v44, %v3582_v0  ;;  %v11153_v0 = vld [vmem:[#allocation8_spill] sm:$0xff]  ;;  %v3451_v44 = vmul.f32 %v7175_v6, %v11154_v52  ;;  %v11156_v6 = vld [vmem:[#allocation110_spill] sm:$0xff] }
 0x313   : > { %7186 = vrcp.f32 %v3121_v53  ;;  %v3450_v2 = vmul.f32 %v7173_v22, %v11153_v0 }
 0x314   : > { %v7177_v28 = vpop.eup %7176  ;;  %v3704_v25 = vpack.c.bf16 %v3646_v27, %v3645_v43  ;;  %6442 = vmatpush3.bf16.msra.mxu0 %v6893_v46  ;;  %7188 = vrcp.f32 %v9198_v47 }
 0x315   : > { %v7179_v5 = vpop.eup %7178  ;;  %v9542_v45 = vpop.xlane.xlu0 %3214  ;;  %v3466_v26 = vmul.f32 %v7177_v28, %v11150_v8  ;;  %6443 = vmatprep.subr.bf16.mxu0 %v6894_v40  ;;  %7190 = vrcp.f32 %v9204_v37  ;;  %v11158_v37 = vld [vmem:[#allocation70_spill] sm:$0xff] }
 0x316   : > { %11149 = vst [vmem:[#allocation73_spill] sm:$0xff] %v9542_v45  ;;  %v9546_v49 = vpop.xlane.xlu1 %3216  ;;  %v3467_v62 = vmul.f32 %v7179_v5, %v11152_v24  ;;  %v7181_v43 = vpop.eup %7180 }
 0x317   : > { %11151 = vst [vmem:[#allocation92_spill] sm:$0xff] %v9546_v49  ;;  %v3579_v7 = vmul.f32 %v9418_v17, %v3466_v26  ;;  %v7183_v5 = vpop.eup %7182  ;;  %v11165_v49 = vld [vmem:[#allocation118_spill] sm:$0xff] }
 0x318   : > { %v3580_v46 = vmul.f32 %v9418_v17, %v3467_v62  ;;  %6444 = vmatpush3.bf16.msra.mxu0 %v6894_v40 }
 0x319   : > { %v3115_v53 = vpop.xlane.xlu0 %3114  ;;  %6445 = vmatprep.subr.bf16.mxu0 %v6895_v41  ;;  %v3643_v28 = vsub.f32 %v3450_v2, %v3579_v7  ;;  %v11159_v7 = vld [vmem:[#allocation7_spill] sm:$0xff] }
 0x31a   : > { %7192 = vrcp.f32 %v3115_v53  ;;  %v3117_v27 = vpop.xlane.xlu1 %3116  ;;  %v3644_v24 = vsub.f32 %v3451_v44, %v3580_v46  ;;  %v3456_v2 = vmul.f32 %v7181_v43, %v11159_v7  ;;  %v11160_v44 = vld [vmem:[#allocation11_spill] sm:$0xff]  ;;  %v11163_v7 = vld [vmem:[#allocation117_spill] sm:$0xff] }
 0x31b   : > { %7194 = vrcp.f32 %v3117_v27  ;;  %v3457_v46 = vmul.f32 %v7183_v5, %v11160_v44 }
 0x31c   : > { %v7185_v8 = vpop.eup %7184  ;;  %v3703_v47 = vpack.c.bf16 %v3644_v24, %v3643_v28  ;;  %6446 = vmatpush3.bf16.msra.mxu0 %v6895_v41  ;;  %v11161_v28 = vld [vmem:[#allocation36_spill] sm:$0xff] }
 0x31d   : > { %v7187_v22 = vpop.eup %7186  ;;  %v9555_v26 = vpop.xlane.xlu0 %3210  ;;  %v3472_v62 = vmul.f32 %v7185_v8, %v11156_v6 }
 0x31e   : > { %11155 = vst [vmem:[#allocation43_spill] sm:$0xff] %v9555_v26  ;;  %6391 = vmatprep.mubr.bf16.mxu0 %v3703_v47  ;;  %v9558_v40 = vpop.xlane.xlu1 %3212  ;;  %v3473_v0 = vmul.f32 %v7187_v22, %v11158_v37  ;;  %v7189_v27 = vpop.eup %7188 }
 0x31f   : > { %11157 = vst [vmem:[#allocation94_spill] sm:$0xff] %v9558_v40  ;;  %6392 = vmatmul.mubr.bf16.gmra.mrb[56].mxu0 %v3704_v25  ;;  %v3585_v52 = vmul.f32 %v9418_v17, %v3472_v62  ;;  %v7191_v6 = vpop.eup %7190  ;;  %v11162_v40 = vld [vmem:[#allocation108_spill] sm:$0xff] }
 0x320   : > { %v3586_v53 = vmul.f32 %v9418_v17, %v3473_v0  ;;  %v11164_v0 = vld [vmem:[#allocation106_spill] sm:$0xff] }
 0x321   : > { %v2647_v41 = vpop.xlane.xlu0 %2646  ;;  %v3649_v8 = vsub.f32 %v3456_v2, %v3585_v52  ;;  %v11166_v52 = vld [vmem:[#allocation109_spill] sm:$0xff] }
 0x322   : > { %v2788_v24 = vsub.f32 %v11161_v28, %v2647_v41  ;;  %v2649_v45 = vpop.xlane.xlu1 %2648  ;;  %v3650_v47 = vsub.f32 %v3457_v46, %v3586_v53  ;;  %v11168_v28 = vld [vmem:[#allocation28_spill] sm:$0xff] }
 0x323   : > { %v2789_v26 = vsub.f32 %v11162_v40, %v2649_v45  ;;  %v11167_v40 = vld [vmem:[#allocation25_spill] sm:$0xff] }
 0x324   : > { %v7193_v22 = vpop.eup %7192  ;;  %v3030_v25 = vmul.f32 1.442695, %v2788_v24  ;;  %v3706_v37 = vpack.c.bf16 %v3650_v47, %v3649_v8  ;;  %v3454_v53 = vmul.f32 %v7189_v27, %v11167_v40  ;;  %v3455_v24 = vmul.f32 %v7191_v6, %v11168_v28  ;;  %v11171_v6 = vld [vmem:[#allocation111_spill] sm:$0xff] }
 0x325   : > { %v7195_v62 = vpop.eup %7194  ;;  %v3032_v23 = vmul.f32 1.442695, %v2789_v26  ;;  %v2643_v43 = vpop.xlane.xlu0 %2642  ;;  %v3470_v5 = vmul.f32 %v7193_v22, %v11163_v7  ;;  %v11169_v22 = vld [vmem:[#allocation38_spill] sm:$0xff] }
 0x326   : > { %7196 = vpow2.f32 %v3030_v25  ;;  %v2786_v44 = vsub.f32 %v11164_v0, %v2643_v43  ;;  %v2645_v39 = vpop.xlane.xlu1 %2644  ;;  %v3471_v41 = vmul.f32 %v7195_v62, %v11165_v49 }
 0x327   : > { %7198 = vpow2.f32 %v3032_v23  ;;  %v2787_v2 = vsub.f32 %v11166_v52, %v2645_v39  ;;  %v3583_v46 = vmul.f32 %v9418_v17, %v3470_v5  ;;  %v11170_v39 = vld [vmem:[#allocation113_spill] sm:$0xff]  ;;  %v11172_v52 = vld [vmem:[#allocation115_spill] sm:$0xff] }
 0x328   : > { %v3026_v45 = vmul.f32 1.442695, %v2786_v44  ;;  %v3584_v26 = vmul.f32 %v9418_v17, %v3471_v41 }
 0x329   : > { %v3028_v8 = vmul.f32 1.442695, %v2787_v2  ;;  %v2655_v47 = vpop.xlane.xlu0 %2654  ;;  %v3647_v49 = vsub.f32 %v3454_v53, %v3583_v46 }
 0x32a   : > { %7200 = vpow2.f32 %v3026_v45  ;;  %v2792_v25 = vsub.f32 %v11169_v22, %v2655_v47  ;;  %v2657_v43 = vpop.xlane.xlu1 %2656  ;;  %v3648_v23 = vsub.f32 %v3455_v24, %v3584_v26  ;;  %v9580_v45 = vld [vmem:[%s8878_s19 + $0xc0] sm:$0xff]  }
 0x32b   : > { %7202 = vpow2.f32 %v3028_v8  ;;  %v2793_v62 = vsub.f32 %v11170_v39, %v2657_v43  ;;  %6463 = vmatprep.subr.bf16.mxu1 %v9580_v45  ;;  %v11173_v26 = vld [vmem:[#allocation14_spill] sm:$0xff] }
 0x32c   : > { %v3038_v7 = vmul.f32 1.442695, %v2792_v25  ;;  %v3705_v5 = vpack.c.bf16 %v3648_v23, %v3647_v49 }
 0x32d   : > { %v3040_v0 = vmul.f32 1.442695, %v2793_v62  ;;  %v2651_v27 = vpop.xlane.xlu0 %2650 }
 0x32e   : > { %7204 = vpow2.f32 %v3038_v7  ;;  %v2790_v44 = vsub.f32 %v11171_v6, %v2651_v27  ;;  %6395 = vmatprep.mubr.bf16.mxu0 %v3705_v5  ;;  %v2653_v41 = vpop.xlane.xlu1 %2652 }
 0x32f   : > { %7206 = vpow2.f32 %v3040_v0  ;;  %v2791_v2 = vsub.f32 %v11172_v52, %v2653_v41  ;;  %6396 = vmatmul.mubr.bf16.gmra.mrb[60].mxu0 %v3706_v37 }
 0x330   : > { %v9582_v46 = vpop.eup %7196  ;;  %v3034_v40 = vmul.f32 1.442695, %v2790_v44 }
 0x331   : > { %v9584_v53 = vpop.eup %7198  ;;  %v3036_v28 = vmul.f32 1.442695, %v2791_v2  ;;  %v2663_v24 = vpop.xlane.xlu0 %2662  ;;  %3286 = vadd.xlane.f32.xlu0 %v9582_v46 }
 0x332   : > { %7208 = vpow2.f32 %v3034_v40  ;;  %v2796_v8 = vsub.f32 %v11173_v26, %v2663_v24  ;;  %v2665_v47 = vpop.xlane.xlu1 %2664  ;;  %3288 = vadd.xlane.f32.xlu1 %v9584_v53 }
 0x333   : > { %7210 = vpow2.f32 %v3036_v28  ;;  %v2797_v37 = vsub.f32 %v8747_v55, %v2665_v47 }
 0x334   : > { %v9591_v22 = vpop.eup %7200  ;;  %v3046_v25 = vmul.f32 1.442695, %v2796_v8 }
 0x335   : > { %v9593_v43 = vpop.eup %7202  ;;  %v3048_v49 = vmul.f32 1.442695, %v2797_v37  ;;  %v2659_v23 = vpop.xlane.xlu0 %2658  ;;  %3282 = vadd.xlane.f32.xlu0 %v9591_v22 }
 0x336   : > { %7212 = vpow2.f32 %v3046_v25  ;;  %v2794_v39 = vsub.f32 %v11027_v36, %v2659_v23  ;;  %v2661_v62 = vpop.xlane.xlu1 %2660  ;;  %3284 = vadd.xlane.f32.xlu1 %v9593_v43  ;;  %v11176_v25 = vld [vmem:[#allocation37_spill] sm:$0xff] }
 0x337   : > { %7214 = vpow2.f32 %v3048_v49  ;;  %v2795_v7 = vsub.f32 %v11029_v58, %v2661_v62 }
 0x338   : > { %v9599_v5 = vpop.eup %7204  ;;  %v3042_v55 = vmul.f32 1.442695, %v2794_v39  ;;  %v11178_v39 = vld [vmem:[#allocation65_spill] sm:$0xff] }
 0x339   : > { %v9601_v0 = vpop.eup %7206  ;;  %v3044_v27 = vmul.f32 1.442695, %v2795_v7  ;;  %v2671_v6 = vpop.xlane.xlu0 %2670  ;;  %3294 = vadd.xlane.f32.xlu0 %v9599_v5 }
 0x33a   : > { %7216 = vpow2.f32 %v3042_v55  ;;  %v2800_v44 = vsub.f32 %v8772_v20, %v2671_v6  ;;  %v2673_v41 = vpop.xlane.xlu1 %2672  ;;  %3296 = vadd.xlane.f32.xlu1 %v9601_v0  ;;  %v11180_v55 = vld [vmem:[#allocation71_spill] sm:$0xff] }
 0x33b   : > { %7218 = vpow2.f32 %v3044_v27  ;;  %v2801_v36 = vsub.f32 %v8783_v63, %v2673_v41  ;;  %v11174_v63 = vld [vmem:[#allocation72_spill] sm:$0xff]  ;;  %v11181_v27 = vld [vmem:[#allocation33_spill] sm:$0xff] }
 0x33c   : > { %v9607_v52 = vpop.eup %7208  ;;  %v3054_v58 = vmul.f32 1.442695, %v2800_v44  ;;  %v11182_v6 = vsub.f32 %v11180_v55, %v11181_v27 }
 0x33d   : > { %v9609_v2 = vpop.eup %7210  ;;  %v3056_v40 = vmul.f32 1.442695, %v2801_v36  ;;  %3290 = vadd.xlane.f32.xlu0 %v9607_v52  ;;  %v2667_v28 = vpop.xlane.xlu0 %2666 }
 0x33e   : > { %7220 = vpow2.f32 %v3054_v58  ;;  %v2798_v24 = vsub.f32 %v8775_v32, %v2667_v28  ;;  %3292 = vadd.xlane.f32.xlu1 %v9609_v2  ;;  %v2669_v20 = vpop.xlane.xlu1 %2668  ;;  %v11177_v32 = vld [vmem:[#allocation67_spill] sm:$0xff]  ;;  %v3024_v44 = vmul.f32 1.442695, %v11182_v6  ;;  %v11192_v6 = vld [vmem:[#allocation124_spill] sm:$0xff] }
 0x33f   : > { %7222 = vpow2.f32 %v3056_v40  ;;  %v2799_v26 = vsub.f32 %v8792_v50, %v2669_v20  ;;  %v11179_v62 = vsub.f32 %v11177_v32, %v11178_v39 }
 0x340   : > { %v9615_v8 = vpop.eup %7212  ;;  %7224 = vrcp.f32 %v11174_v63  ;;  %v3050_v47 = vmul.f32 1.442695, %v2798_v24  ;;  %v11186_v24 = vld [vmem:[#allocation119_spill] sm:$0xff] }
 0x341   : > { %v9618_v37 = vpop.eup %7214  ;;  %7226 = vrcp.f32 %v11176_v25  ;;  %v3052_v49 = vmul.f32 1.442695, %v2799_v26  ;;  %3302 = vadd.xlane.f32.xlu0 %v9615_v8  ;;  %v3159_v23 = vpop.xlane.xlu0 %3158  ;;  %v3022_v7 = vmul.f32 1.442695, %v11179_v62  ;;  %v11188_v26 = vld [vmem:[#allocation120_spill] sm:$0xff] }
 0x342   : > { %11175 = vst [vmem:[#allocation75_spill] sm:$0xff] %v9618_v37  ;;  %7228 = vpow2.f32 %v3050_v47  ;;  %3304 = vadd.xlane.f32.xlu1 %v9618_v37  ;;  %v3161_v50 = vpop.xlane.xlu1 %3160 }
 0x343   : > { %7230 = vpow2.f32 %v3052_v49 }
 0x344   : > { %v9629_v41 = vpop.eup %7216  ;;  %7232 = vrcp.f32 %v3159_v23 }
 0x345   : > { %11183 = vst [vmem:[#allocation126_spill] sm:$0xff] %v9629_v41  ;;  %v9631_v36 = vpop.eup %7218  ;;  %7234 = vrcp.f32 %v3161_v50  ;;  %3298 = vadd.xlane.f32.xlu0 %v9629_v41  ;;  %v9634_v58 = vpop.xlane.xlu0 %3254 }
 0x346   : > { %11184 = vst [vmem:[#allocation98_spill] sm:$0xff] %v9631_v36  ;;  %7236 = vpow2.f32 %v3022_v7  ;;  %3300 = vadd.xlane.f32.xlu1 %v9631_v36  ;;  %v9637_v40 = vpop.xlane.xlu1 %3256 }
 0x347   : > { %7238 = vpow2.f32 %v3024_v44 }
 0x348   : > { %v9639_v28 = vpop.eup %7220  ;;  %7240 = vrcp.f32 %v11186_v24 }
 0x349   : > { %11185 = vst [vmem:[#allocation48_spill] sm:$0xff] %v9639_v28  ;;  %v9642_v20 = vpop.eup %7222  ;;  %7242 = vrcp.f32 %v11188_v26  ;;  %3310 = vadd.xlane.f32.xlu0 %v9639_v28  ;;  %v3155_v63 = vpop.xlane.xlu0 %3154  ;;  %v11194_v26 = vld [vmem:[#allocation125_spill] sm:$0xff]  ;;  %v11196_v28 = vld [vmem:[#allocation80_spill] sm:$0xff] }
 0x34a   : > { %11187 = vst [vmem:[#allocation101_spill] sm:$0xff] %v9642_v20  ;;  %v7225_v47 = vpop.eup %7224  ;;  %7244 = vrcp.f32 %v3155_v63  ;;  %3312 = vadd.xlane.f32.xlu1 %v9642_v20  ;;  %v3157_v25 = vpop.xlane.xlu1 %3156 }
 0x34b   : > { %v7227_v49 = vpop.eup %7226  ;;  %7246 = vrcp.f32 %v3157_v25 }
 0x34c   : > { %v9647_v23 = vpop.eup %7228  ;;  %7248 = vrcp.f32 %v11192_v6 }
 0x34d   : > { %11189 = vst [vmem:[#allocation49_spill] sm:$0xff] %v9647_v23  ;;  %v9649_v32 = vpop.eup %7230  ;;  %3306 = vadd.xlane.f32.xlu0 %v9647_v23  ;;  %v9652_v39 = vpop.xlane.xlu0 %3250  ;;  %7250 = vrcp.f32 %v11194_v26 }
 0x34e   : > { %11190 = vst [vmem:[#allocation127_spill] sm:$0xff] %v9649_v32  ;;  %v7233_v62 = vpop.eup %7232  ;;  %3308 = vadd.xlane.f32.xlu1 %v9649_v32  ;;  %v9655_v7 = vpop.xlane.xlu1 %3252  ;;  %v11195_v32 = vld [vmem:[#allocation79_spill] sm:$0xff] }
 0x34f   : > { %v7235_v50 = vpop.eup %7234  ;;  %v3492_v55 = vmul.f32 %v7233_v62, %v9174_v57  ;;  %v3476_v23 = vmul.f32 %v7225_v47, %v11195_v32  ;;  %v3477_v57 = vmul.f32 %v7227_v49, %v11196_v28  ;;  %v11197_v32 = vld [vmem:[#allocation128_spill] sm:$0xff] }
 0x350   : > { %v9658_v27 = vpop.eup %7236  ;;  %v3493_v44 = vmul.f32 %v7235_v50, %v9176_v35 }
 0x351   : > { %11191 = vst [vmem:[#allocation81_spill] sm:$0xff] %v9658_v27  ;;  %v9662_v24 = vpop.eup %7238  ;;  %v3589_v63 = vmul.f32 %v9418_v17, %v3492_v55  ;;  %3278 = vadd.xlane.f32.xlu0 %v9658_v27  ;;  %v3167_v25 = vpop.xlane.xlu0 %3166 }
 0x352   : > { %11193 = vst [vmem:[#allocation100_spill] sm:$0xff] %v9662_v24  ;;  %v7241_v20 = vpop.eup %7240  ;;  %v3590_v62 = vmul.f32 %v9418_v17, %v3493_v44  ;;  %7252 = vrcp.f32 %v3167_v25  ;;  %3280 = vadd.xlane.f32.xlu1 %v9662_v24  ;;  %v3169_v35 = vpop.xlane.xlu1 %3168  ;;  %v11198_v44 = vld [vmem:[#allocation87_spill] sm:$0xff] }
 0x353   : > { %v7243_v50 = vpop.eup %7242  ;;  %7254 = vrcp.f32 %v3169_v35  ;;  %v3653_v26 = vsub.f32 %v3476_v23, %v3589_v63  ;;  %v3474_v25 = vmul.f32 %v7241_v20, %v11198_v44  ;;  %v11199_v35 = vld [vmem:[#allocation88_spill] sm:$0xff]  ;;  %v11200_v63 = vld [vmem:[#allocation129_spill] sm:$0xff] }
 0x354   : > { %v7245_v6 = vpop.eup %7244  ;;  %v3654_v36 = vsub.f32 %v3477_v57, %v3590_v62  ;;  %7256 = vrcp.f32 %v11197_v32  ;;  %v3475_v24 = vmul.f32 %v7243_v50, %v11199_v35  ;;  %v6897_v50 = vld [vmem:[%s8878_s19 + $0xc8] sm:$0xff]  }
 0x355   : > { %v7247_v55 = vpop.eup %7246  ;;  %v9671_v41 = vpop.xlane.xlu0 %3262  ;;  %v3490_v27 = vmul.f32 %v7245_v6, %v9206_v13  ;;  %7258 = vrcp.f32 %v11200_v63 }
 0x356   : > { %v9674_v37 = vpop.xlane.xlu1 %3264  ;;  %v3491_v28 = vmul.f32 %v7247_v55, %v9208_v60  ;;  %v3708_v47 = vpack.c.bf16 %v3654_v36, %v3653_v26  ;;  %v7249_v13 = vpop.eup %7248 }
 0x357   : > { %v3587_v49 = vmul.f32 %v9418_v17, %v3490_v27  ;;  %v7251_v36 = vpop.eup %7250 }
 0x358   : > { %v3588_v23 = vmul.f32 %v9418_v17, %v3491_v28 }
 0x359   : > { %v3163_v57 = vpop.xlane.xlu0 %3162  ;;  %v3651_v6 = vsub.f32 %v3474_v25, %v3587_v49  ;;  %v11202_v25 = vld [vmem:[#allocation95_spill] sm:$0xff] }
 0x35a   : > { %7260 = vrcp.f32 %v3163_v57  ;;  %v3165_v62 = vpop.xlane.xlu1 %3164  ;;  %v3652_v60 = vsub.f32 %v3475_v24, %v3588_v23  ;;  %v11201_v24 = vld [vmem:[#allocation132_spill] sm:$0xff]  ;;  %v3480_v35 = vmul.f32 %v7249_v13, %v11202_v25 }
 0x35b   : > { %7262 = vrcp.f32 %v3165_v62  ;;  %v11203_v23 = vld [vmem:[#allocation96_spill] sm:$0xff] }
 0x35c   : > { %v7253_v27 = vpop.eup %7252  ;;  %v3707_v26 = vpack.c.bf16 %v3652_v60, %v3651_v6  ;;  %7264 = vrcp.f32 %v11201_v24  ;;  %v3481_v63 = vmul.f32 %v7251_v36, %v11203_v23  ;;  %v6898_v62 = vld [vmem:[%s8878_s19 + $0xd0] sm:$0xff]   ;;  %v11204_v24 = vld [vmem:[#allocation103_spill] sm:$0xff] }
 0x35d   : > { %v7255_v55 = vpop.eup %7254  ;;  %v9683_v32 = vpop.xlane.xlu0 %3258  ;;  %v3496_v20 = vmul.f32 %v7253_v27, %v9239_v12  ;;  %7266 = vrcp.f32 %v9136_v4 }
 0x35e   : > { %6415 = vmatprep.mubr.bf16.mxu1 %v3707_v26  ;;  %v9687_v28 = vpop.xlane.xlu1 %3260  ;;  %v3497_v44 = vmul.f32 %v7255_v55, %v9241_v48  ;;  %v7257_v48 = vpop.eup %7256 }
 0x35f   : > { %6416 = vmatmul.mubr.bf16.vlgmr.msra.gmra.mrb[80].mxu1 %v3708_v47  ;;  %v3593_v49 = vmul.f32 %v9418_v17, %v3496_v20  ;;  %v7259_v27 = vpop.eup %7258  ;;  %v3478_v25 = vmul.f32 %v7257_v48, %v11204_v24 }
 0x360   : > { %v3594_v57 = vmul.f32 %v9418_v17, %v3497_v44  ;;  %6464 = vmatpush3.bf16.msra.mxu1 %v9580_v45  ;;  %v6899_v45 = vld [vmem:[%s8878_s19 + $0xd8] sm:$0xff]  }
 0x361   : > { %v3175_v12 = vpop.xlane.xlu0 %3174  ;;  %6465 = vmatprep.subr.bf16.mxu1 %v6897_v50  ;;  %v3657_v6 = vsub.f32 %v3480_v35, %v3593_v49  ;;  %v11205_v35 = vld [vmem:[#allocation16_spill] sm:$0xff] }
 0x362   : > { %7268 = vrcp.f32 %v3175_v12  ;;  %v3177_v47 = vpop.xlane.xlu1 %3176  ;;  %v3658_v60 = vsub.f32 %v3481_v63, %v3594_v57  ;;  %v6900_v63 = vld [vmem:[%s8878_s19 + $0xe0] sm:$0xff]  }
 0x363   : > { %7270 = vrcp.f32 %v3177_v47 }
 0x364   : > { %v7261_v13 = vpop.eup %7260  ;;  %v3710_v26 = vpack.c.bf16 %v3658_v60, %v3657_v6  ;;  %6466 = vmatpush3.bf16.msra.mxu1 %v6897_v50  ;;  %7272 = vrcp.f32 %v9154_v51  ;;  %v3479_v50 = vmul.f32 %v7259_v27, %v11205_v35 }
 0x365   : > { %v7263_v36 = vpop.eup %7262  ;;  %v9698_v55 = vpop.xlane.xlu0 %3270  ;;  %v3494_v4 = vmul.f32 %v7261_v13, %v9273_v21  ;;  %6467 = vmatprep.subr.bf16.mxu1 %v6898_v62  ;;  %7274 = vrcp.f32 %v9160_v31  ;;  %v6901_v31 = vld [vmem:[%s8878_s19 + $0xe8] sm:$0xff]  }
 0x366   : > { %v9702_v20 = vpop.xlane.xlu1 %3272  ;;  %v3495_v44 = vmul.f32 %v7263_v36, %v9275_v34  ;;  %v7265_v57 = vpop.eup %7264 }
 0x367   : > { %v3591_v49 = vmul.f32 %v9418_v17, %v3494_v4  ;;  %v7267_v6 = vpop.eup %7266 }
 0x368   : > { %v3592_v23 = vmul.f32 %v9418_v17, %v3495_v44  ;;  %6468 = vmatpush3.bf16.msra.mxu1 %v6898_v62  ;;  %v11206_v44 = vld [vmem:[#allocation17_spill] sm:$0xff] }
 0x369   : > { %v3171_v21 = vpop.xlane.xlu0 %3170  ;;  %6469 = vmatprep.subr.bf16.mxu1 %v6899_v45  ;;  %v3655_v12 = vsub.f32 %v3478_v25, %v3591_v49  ;;  %v11207_v49 = vld [vmem:[#allocation20_spill] sm:$0xff] }
 0x36a   : > { %7276 = vrcp.f32 %v3171_v21  ;;  %v3173_v34 = vpop.xlane.xlu1 %3172  ;;  %v3656_v47 = vsub.f32 %v3479_v50, %v3592_v23  ;;  %v3485_v24 = vmul.f32 %v7267_v6, %v11207_v49  ;;  %v6902_v50 = vld [vmem:[%s8878_s19 + $0xf0] sm:$0xff]  }
 0x36b   : > { %7278 = vrcp.f32 %v3173_v34 }
 0x36c   : > { %v7269_v51 = vpop.eup %7268  ;;  %v3709_v48 = vpack.c.bf16 %v3656_v47, %v3655_v12  ;;  %6470 = vmatpush3.bf16.msra.mxu1 %v6899_v45  ;;  %7280 = vrcp.f32 %v9182_v56  ;;  %v3484_v45 = vmul.f32 %v7265_v57, %v11206_v44  ;;  %v11209_v57 = vld [vmem:[#allocation42_spill] sm:$0xff] }
 0x36d   : > { %v7271_v60 = vpop.eup %7270  ;;  %v9712_v27 = vpop.xlane.xlu0 %3266  ;;  %v3500_v62 = vmul.f32 %v7269_v51, %v9307_v61  ;;  %6471 = vmatprep.subr.bf16.mxu1 %v6900_v63  ;;  %v11208_v61 = vld [vmem:[#allocation44_spill] sm:$0xff] }
 0x36e   : > { %6419 = vmatprep.mubr.bf16.mxu1 %v3709_v48  ;;  %v9716_v13 = vpop.xlane.xlu1 %3268  ;;  %v3501_v36 = vmul.f32 %v7271_v60, %v9310_v30  ;;  %7282 = vrcp.f32 %v11208_v61  ;;  %v7273_v23 = vpop.eup %7272  ;;  %v6903_v48 = vld [vmem:[%s8878_s19 + $0xf8] sm:$0xff]  }
 0x36f   : > { %6420 = vmatmul.mubr.bf16.gmra.mrb[84].mxu1 %v3710_v26  ;;  %v3597_v4 = vmul.f32 %v9418_v17, %v3500_v62  ;;  %v7275_v34 = vpop.eup %7274 }
 0x370   : > { %v3598_v25 = vmul.f32 %v9418_v17, %v3501_v36  ;;  %6472 = vmatpush3.bf16.msra.mxu1 %v6900_v63  ;;  %v11210_v63 = vld [vmem:[#allocation15_spill] sm:$0xff] }
 0x371   : > { %v3183_v35 = vpop.xlane.xlu0 %3182  ;;  %6473 = vmatprep.subr.bf16.mxu1 %v6901_v31  ;;  %v3661_v26 = vsub.f32 %v3484_v45, %v3597_v4  ;;  %v11211_v4 = vld [vmem:[#allocation19_spill] sm:$0xff] }
 0x372   : > { %7284 = vrcp.f32 %v3183_v35  ;;  %v3185_v30 = vpop.xlane.xlu1 %3184  ;;  %v3662_v21 = vsub.f32 %v3485_v24, %v3598_v25  ;;  %v3482_v44 = vmul.f32 %v7273_v23, %v11211_v4  ;;  %v11212_v45 = vld [vmem:[#allocation23_spill] sm:$0xff]  ;;  %v11215_v4 = vld [vmem:[#allocation61_spill] sm:$0xff] }
 0x373   : > { %7286 = vrcp.f32 %v3185_v30  ;;  %v3483_v49 = vmul.f32 %v7275_v34, %v11212_v45 }
 0x374   : > { %v7277_v56 = vpop.eup %7276  ;;  %7288 = vrcp.f32 %v11209_v57  ;;  %v3712_v12 = vpack.c.bf16 %v3662_v21, %v3661_v26  ;;  %6474 = vmatpush3.bf16.msra.mxu1 %v6901_v31 }
 0x375   : > { %v7279_v47 = vpop.eup %7278  ;;  %7290 = vrcp.f32 %v11210_v63  ;;  %v3179_v6 = vpop.xlane.xlu0 %3178  ;;  %v3498_v51 = vmul.f32 %v7277_v56, %v9344_v11  ;;  %6475 = vmatprep.subr.bf16.mxu1 %v6902_v50 }
 0x376   : > { %7292 = vrcp.f32 %v3179_v6  ;;  %v3181_v60 = vpop.xlane.xlu1 %3180  ;;  %v3499_v62 = vmul.f32 %v7279_v47, %v9352_v9  ;;  %v7281_v11 = vpop.eup %7280 }
 0x377   : > { %7294 = vrcp.f32 %v3181_v60  ;;  %v3595_v36 = vmul.f32 %v9418_v17, %v3498_v51  ;;  %v11213_v51 = vld [vmem:[#allocation10_spill] sm:$0xff] }
 0x378   : > { %v3596_v31 = vmul.f32 %v9418_v17, %v3499_v62  ;;  %6476 = vmatpush3.bf16.msra.mxu1 %v6902_v50  ;;  %v7283_v30 = vpop.eup %7282  ;;  %7296 = vrcp.f32 %v9391_v1  ;;  %v11214_v1 = vld [vmem:[#allocation13_spill] sm:$0xff] }
 0x379   : > { %v9735_v24 = vpop.xlane.xlu0 %3274  ;;  %6477 = vmatprep.subr.bf16.mxu1 %v6903_v48  ;;  %v3659_v61 = vsub.f32 %v3482_v44, %v3595_v36  ;;  %v3489_v60 = vmul.f32 %v7283_v30, %v11214_v1  ;;  %v11219_v30 = vld [vmem:[#allocation32_spill] sm:$0xff] }
 0x37a   : > { %v9737_v25 = vpop.xlane.xlu1 %3276  ;;  %v3660_v35 = vsub.f32 %v3483_v49, %v3596_v31 }
 0x37c   : > { %v7285_v9 = vpop.eup %7284  ;;  %v3711_v26 = vpack.c.bf16 %v3660_v35, %v3659_v61  ;;  %6478 = vmatpush3.bf16.msra.mxu1 %v6903_v48  ;;  %v3488_v48 = vmul.f32 %v7281_v11, %v11213_v51  ;;  %v11218_v35 = vld [vmem:[#allocation62_spill] sm:$0xff] }
 0x37d   : > { %v7287_v21 = vpop.eup %7286  ;;  %v3223_v23 = vpop.xlane.xlu0 %3222  ;;  %v3504_v34 = vmul.f32 %v7285_v9, %v9375_v19 }
 0x37e   : > { %v7289_v56 = vpop.eup %7288  ;;  %7298 = vrcp.f32 %v3223_v23  ;;  %6423 = vmatprep.mubr.bf16.mxu1 %v3711_v26  ;;  %v3225_v50 = vpop.xlane.xlu1 %3224  ;;  %v3505_v57 = vmul.f32 %v7287_v21, %v9377_v15 }
 0x37f   : > { %v7291_v47 = vpop.eup %7290  ;;  %7300 = vrcp.f32 %v3225_v50  ;;  %6424 = vmatmul.mubr.bf16.gmra.mrb[88].mxu1 %v3712_v12  ;;  %v3601_v63 = vmul.f32 %v9418_v17, %v3504_v34  ;;  %v11216_v12 = vld [vmem:[#allocation64_spill] sm:$0xff] }
 0x380   : > { %v7293_v6 = vpop.eup %7292  ;;  %7302 = vrcp.f32 %v9412_v42  ;;  %v3602_v19 = vmul.f32 %v9418_v17, %v3505_v57  ;;  %v11217_v42 = vld [vmem:[#allocation104_spill] sm:$0xff]  ;;  %v3487_v9 = vmul.f32 %v7291_v47, %v11219_v30 }
 0x381   : > { %v7295_v62 = vpop.eup %7294  ;;  %7304 = vrcp.f32 %v9420_v16  ;;  %v3219_v36 = vpop.xlane.xlu0 %3218  ;;  %v3502_v15 = vmul.f32 %v7293_v6, %v11215_v4  ;;  %v3665_v49 = vsub.f32 %v3488_v48, %v3601_v63  ;;  %v3486_v61 = vmul.f32 %v7289_v56, %v11217_v42  ;;  %v11220_v48 = vld [vmem:[#allocation66_spill] sm:$0xff] }
 0x382   : > { %7306 = vrcp.f32 %v3219_v36  ;;  %v3221_v44 = vpop.xlane.xlu1 %3220  ;;  %v3503_v45 = vmul.f32 %v7295_v62, %v11216_v12  ;;  %v3666_v31 = vsub.f32 %v3489_v60, %v3602_v19  ;;  %v7297_v57 = vpop.eup %7296  ;;  %v11221_v19 = vld [vmem:[#allocation29_spill] sm:$0xff] }
 0x383   : > { %7308 = vrcp.f32 %v3221_v44  ;;  %v3599_v11 = vmul.f32 %v9418_v17, %v3502_v15  ;;  %v11222_v15 = vld [vmem:[#allocation69_spill] sm:$0xff] }
 0x384   : > { %7310 = vrcp.f32 %v11218_v35  ;;  %v3600_v16 = vmul.f32 %v9418_v17, %v3503_v45  ;;  %v3714_v26 = vpack.c.bf16 %v3666_v31, %v3665_v49  ;;  %v11223_v49 = vld [vmem:[#allocation74_spill] sm:$0xff] }
 0x385   : > { %7312 = vrcp.f32 %v9451_v59  ;;  %v3231_v21 = vpop.xlane.xlu0 %3230  ;;  %v3663_v34 = vsub.f32 %v3486_v61, %v3599_v11  ;;  %v11224_v61 = vld [vmem:[#allocation45_spill] sm:$0xff] }
 0x386   : > { %7314 = vrcp.f32 %v3231_v21  ;;  %v3233_v23 = vpop.xlane.xlu1 %3232  ;;  %v3664_v50 = vsub.f32 %v3487_v9, %v3600_v16  ;;  %v3509_v11 = vmul.f32 %v7297_v57, %v11224_v61  ;;  %v11226_v16 = vld [vmem:[#allocation55_spill] sm:$0xff]  ;;  %v11232_v61 = vld [vmem:[#allocation60_spill] sm:$0xff] }
 0x387   : > { %7316 = vrcp.f32 %v3233_v23 }
 0x388   : > { %v7299_v63 = vpop.eup %7298  ;;  %7318 = vrcp.f32 %v9476_v33  ;;  %v3713_v56 = vpack.c.bf16 %v3664_v50, %v3663_v34  ;;  %v11227_v34 = vld [vmem:[#allocation47_spill] sm:$0xff] }
 0x389   : > { %v7301_v6 = vpop.eup %7300  ;;  %7320 = vrcp.f32 %v9481_v18  ;;  %v3227_v47 = vpop.xlane.xlu0 %3226  ;;  %v3524_v62 = vmul.f32 %v7299_v63, %v11221_v19 }
 0x38a   : > { %v7303_v51 = vpop.eup %7302  ;;  %v3525_v1 = vmul.f32 %v7301_v6, %v11220_v48  ;;  %7322 = vrcp.f32 %v3227_v47  ;;  %6427 = vmatprep.mubr.bf16.mxu1 %v3713_v56  ;;  %v3229_v59 = vpop.xlane.xlu1 %3228 }
 0x38b   : > { %v7305_v60 = vpop.eup %7304  ;;  %7324 = vrcp.f32 %v3229_v59  ;;  %6428 = vmatmul.mubr.bf16.gmra.mrb[92].mxu1 %v3714_v26  ;;  %v3605_v35 = vmul.f32 %v9418_v17, %v3524_v62  ;;  %v11228_v59 = vld [vmem:[#allocation77_spill] sm:$0xff] }
 0x38c   : > { %v7307_v36 = vpop.eup %7306  ;;  %7326 = vrcp.f32 %v9445_v38  ;;  %v3606_v18 = vmul.f32 %v9418_v17, %v3525_v1  ;;  %v3507_v26 = vmul.f32 %v7305_v60, %v11226_v16  ;;  %v11235_v16 = vld [vmem:[#allocation24_spill] sm:$0xff] }
 0x38d   : > { %v7309_v33 = vpop.eup %7308  ;;  %7328 = vrcp.f32 %v9506_v10  ;;  %v3239_v4 = vpop.xlane.xlu0 %3238  ;;  %v3522_v44 = vmul.f32 %v7307_v36, %v11222_v15  ;;  %v11225_v10 = vld [vmem:[#allocation51_spill] sm:$0xff] }
 0x38e   : > { %v7311_v12 = vpop.eup %7310  ;;  %7330 = vrcp.f32 %v3239_v4  ;;  %v3241_v45 = vpop.xlane.xlu1 %3240  ;;  %v3523_v31 = vmul.f32 %v7309_v33, %v11223_v49  ;;  %v3506_v9 = vmul.f32 %v7303_v51, %v11225_v10  ;;  %v3670_v63 = vsub.f32 %v3509_v11, %v3606_v18  ;;  %v11230_v4 = vld [vmem:[#allocation76_spill] sm:$0xff]  ;;  %v11234_v10 = vld [vmem:[#allocation21_spill] sm:$0xff] }
 0x38f   : > { %v7313_v42 = vpop.eup %7312  ;;  %7332 = vrcp.f32 %v3241_v45  ;;  %v3603_v38 = vmul.f32 %v9418_v17, %v3522_v44  ;;  %v3508_v50 = vmul.f32 %v7311_v12, %v11227_v34  ;;  %v11231_v45 = vld [vmem:[#allocation78_spill] sm:$0xff] }
 0x390   : > { %v7315_v30 = vpop.eup %7314  ;;  %7334 = vrcp.f32 %v9527_v29  ;;  %v3604_v21 = vmul.f32 %v9418_v17, %v3523_v31  ;;  %v3513_v11 = vmul.f32 %v7313_v42, %v11232_v61  ;;  %v11236_v34 = vld [vmem:[#allocation94_spill] sm:$0xff]  ;;  %v11243_v61 = vld [vmem:[#allocation116_spill] sm:$0xff] }
 0x391   : > { %v7317_v23 = vpop.eup %7316  ;;  %7336 = vrcp.f32 %v9532_v3  ;;  %v3235_v57 = vpop.xlane.xlu0 %3234  ;;  %v3667_v47 = vsub.f32 %v3506_v9, %v3603_v38  ;;  %v3669_v51 = vsub.f32 %v3508_v50, %v3605_v35  ;;  %v3528_v60 = vmul.f32 %v7315_v30, %v11228_v59  ;;  %v11229_v3 = vld [vmem:[#allocation92_spill] sm:$0xff]  ;;  %v11233_v30 = vld [vmem:[#allocation43_spill] sm:$0xff] }
 0x392   : > { %v7319_v56 = vpop.eup %7318  ;;  %7338 = vrcp.f32 %v3235_v57  ;;  %v3237_v6 = vpop.xlane.xlu1 %3236  ;;  %v3668_v48 = vsub.f32 %v3507_v26, %v3604_v21  ;;  %v3529_v29 = vmul.f32 %v7317_v23, %v9460_v54  ;;  %v11237_v57 = vld [vmem:[#allocation57_spill] sm:$0xff] }
 0x393   : > { %v7321_v1 = vpop.eup %7320  ;;  %7340 = vrcp.f32 %v3237_v6  ;;  %v3716_v18 = vpack.c.bf16 %v3670_v63, %v3669_v51  ;;  %v3609_v35 = vmul.f32 %v9418_v17, %v3528_v60  ;;  %v3510_v9 = vmul.f32 %v7319_v56, %v11234_v10  ;;  %v11238_v51 = vld [vmem:[#allocation85_spill] sm:$0xff] }
 0x394   : > { %v7323_v19 = vpop.eup %7322  ;;  %7342 = vrcp.f32 %v9501_v14  ;;  %v3715_v62 = vpack.c.bf16 %v3668_v48, %v3667_v47  ;;  %v3610_v44 = vmul.f32 %v9418_v17, %v3529_v29  ;;  %v3511_v26 = vmul.f32 %v7321_v1, %v11235_v16  ;;  %v11239_v1 = vld [vmem:[#allocation82_spill] sm:$0xff] }
 0x395   : > { %v7325_v36 = vpop.eup %7324  ;;  %7344 = vrcp.f32 %v11229_v3  ;;  %v3247_v33 = vpop.xlane.xlu0 %3246  ;;  %v3526_v15 = vmul.f32 %v7323_v19, %v11230_v4  ;;  %v11241_v4 = vld [vmem:[#allocation84_spill] sm:$0xff] }
 0x396   : > { %v7327_v12 = vpop.eup %7326  ;;  %7346 = vrcp.f32 %v3247_v33  ;;  %6447 = vmatprep.mubr.bf16.mxu0 %v3715_v62  ;;  %v3249_v54 = vpop.xlane.xlu1 %3248  ;;  %v3527_v49 = vmul.f32 %v7325_v36, %v11231_v45  ;;  %v3674_v6 = vsub.f32 %v3513_v11, %v3610_v44  ;;  %v11240_v36 = vld [vmem:[#allocation73_spill] sm:$0xff] }
 0x397   : > { %v7329_v31 = vpop.eup %7328  ;;  %7348 = vrcp.f32 %v3249_v54  ;;  %6448 = vmatmul.mubr.bf16.vlgmr.msra.gmra.mrb[64].mxu0 %v3716_v18  ;;  %v3607_v14 = vmul.f32 %v9418_v17, %v3526_v15  ;;  %v3512_v63 = vmul.f32 %v7327_v12, %v11237_v57  ;;  %v11242_v54 = vld [vmem:[#allocation86_spill] sm:$0xff] }
 0x398   : > { %v7331_v38 = vpop.eup %7330  ;;  %7350 = vrcp.f32 %v11233_v30  ;;  %v3608_v21 = vmul.f32 %v9418_v17, %v3527_v49  ;;  %v3517_v11 = vmul.f32 %v7329_v31, %v11243_v61  ;;  %v11244_v30 = vld [vmem:[#allocation34_spill] sm:$0xff] }
 0x399   : > { %v7333_v23 = vpop.eup %7332  ;;  %7352 = vrcp.f32 %v11236_v34  ;;  %v3243_v50 = vpop.xlane.xlu0 %3242  ;;  %v3671_v48 = vsub.f32 %v3510_v9, %v3607_v14  ;;  %v3673_v56 = vsub.f32 %v3512_v63, %v3609_v35  ;;  %v3532_v19 = vmul.f32 %v7331_v38, %v11239_v1  ;;  %v11245_v9 = vld [vmem:[#allocation39_spill] sm:$0xff] }
 0x39a   : > { %v7335_v47 = vpop.eup %7334  ;;  %7354 = vrcp.f32 %v3243_v50  ;;  %v3245_v42 = vpop.xlane.xlu1 %3244  ;;  %v3672_v29 = vsub.f32 %v3511_v26, %v3608_v21  ;;  %v3533_v59 = vmul.f32 %v7333_v23, %v11238_v51  ;;  %v11246_v23 = vld [vmem:[#allocation105_spill] sm:$0xff]  ;;  %v11248_v51 = vld [vmem:[#allocation90_spill] sm:$0xff] }
 0x39b   : > { %v7337_v60 = vpop.eup %7336  ;;  %7356 = vrcp.f32 %v3245_v42  ;;  %v3718_v18 = vpack.c.bf16 %v3674_v6, %v3673_v56  ;;  %v3613_v35 = vmul.f32 %v9418_v17, %v3532_v19  ;;  %v3514_v10 = vmul.f32 %v7335_v47, %v11244_v30  ;;  %v11247_v42 = vld [vmem:[#allocation93_spill] sm:$0xff] }
 0x39c   : > { %v7339_v62 = vpop.eup %7338  ;;  %7358 = vrcp.f32 %v11240_v36  ;;  %v3717_v3 = vpack.c.bf16 %v3672_v29, %v3671_v48  ;;  %v3614_v44 = vmul.f32 %v9418_v17, %v3533_v59  ;;  %v3515_v16 = vmul.f32 %v7337_v60, %v11245_v9  ;;  %v11249_v60 = vld [vmem:[#allocation123_spill] sm:$0xff] }
 0x39d   : > { %v7341_v33 = vpop.eup %7340  ;;  %v3530_v15 = vmul.f32 %v7339_v62, %v11241_v4  ;;  %7360 = vrcp.f32 %v9634_v58 }
 0x39e   : > { %v7343_v12 = vpop.eup %7342  ;;  %6451 = vmatprep.mubr.bf16.mxu0 %v3717_v3  ;;  %v3531_v45 = vmul.f32 %v7341_v33, %v11242_v54  ;;  %v3678_v50 = vsub.f32 %v3517_v11, %v3614_v44  ;;  %v11250_v33 = vld [vmem:[#allocation46_spill] sm:$0xff]  ;;  %v11252_v54 = vld [vmem:[#allocation121_spill] sm:$0xff]  ;;  %7362 = vrcp.f32 %v9637_v40 }
 0x39f   : > { %v7345_v49 = vpop.eup %7344  ;;  %6452 = vmatmul.mubr.bf16.gmra.mrb[68].mxu0 %v3718_v18  ;;  %v3611_v14 = vmul.f32 %v9418_v17, %v3530_v15  ;;  %v3516_v34 = vmul.f32 %v7343_v12, %v11246_v23  ;;  %v11251_v15 = vld [vmem:[#allocation114_spill] sm:$0xff] }
 0x3a0   : > { %v7347_v38 = vpop.eup %7346  ;;  %v3612_v26 = vmul.f32 %v9418_v17, %v3531_v45  ;;  %v3521_v44 = vmul.f32 %v7345_v49, %v11251_v15 }
 0x3a1   : > { %v7349_v21 = vpop.eup %7348  ;;  %v3675_v63 = vsub.f32 %v3514_v10, %v3611_v14  ;;  %v3677_v31 = vsub.f32 %v3516_v34, %v3613_v35  ;;  %v3536_v59 = vmul.f32 %v7347_v38, %v11248_v51  ;;  %v11253_v14 = vld [vmem:[#allocation122_spill] sm:$0xff]  ;;  %v11254_v35 = vld [vmem:[#allocation112_spill] sm:$0xff] }
 0x3a2   : > { %v7351_v57 = vpop.eup %7350  ;;  %v3676_v6 = vsub.f32 %v3515_v16, %v3612_v26  ;;  %v3537_v48 = vmul.f32 %v7349_v21, %v11247_v42 }
 0x3a3   : > { %v7353_v29 = vpop.eup %7352  ;;  %v3720_v19 = vpack.c.bf16 %v3678_v50, %v3677_v31  ;;  %v3617_v12 = vmul.f32 %v9418_v17, %v3536_v59  ;;  %v3518_v45 = vmul.f32 %v7351_v57, %v11252_v54 }
 0x3a4   : > { %v7355_v56 = vpop.eup %7354  ;;  %v3719_v1 = vpack.c.bf16 %v3676_v6, %v3675_v63  ;;  %v3618_v36 = vmul.f32 %v9418_v17, %v3537_v48  ;;  %v3519_v61 = vmul.f32 %v7353_v29, %v11253_v14 }
 0x3a5   : > { %v7357_v47 = vpop.eup %7356  ;;  %v3534_v62 = vmul.f32 %v7355_v56, %v11249_v60 }
 0x3a6   : > { %v7359_v3 = vpop.eup %7358  ;;  %6455 = vmatprep.mubr.bf16.mxu0 %v3719_v1  ;;  %v3535_v18 = vmul.f32 %v7357_v47, %v11250_v33  ;;  %v3682_v30 = vsub.f32 %v3521_v44, %v3618_v36  ;;  %v11257_v36 = vld [vmem:[#allocation133_spill] sm:$0xff] }
 0x3a7   : > { %6456 = vmatmul.mubr.bf16.gmra.mrb[72].mxu0 %v3720_v19  ;;  %v3615_v4 = vmul.f32 %v9418_v17, %v3534_v62  ;;  %v3520_v38 = vmul.f32 %v7359_v3, %v11254_v35  ;;  %v7361_v58 = vpop.eup %7360 }
 0x3a8   : > { %v3616_v11 = vmul.f32 %v9418_v17, %v3535_v18  ;;  %v7363_v63 = vpop.eup %7362 }
 0x3a9   : > { %v3679_v10 = vsub.f32 %v3518_v45, %v3615_v4  ;;  %v3681_v16 = vsub.f32 %v3520_v38, %v3617_v12 }
 0x3aa   : > { %v3680_v9 = vsub.f32 %v3519_v61, %v3616_v11 }
 0x3ab   : > { %v3722_v21 = vpack.c.bf16 %v3682_v30, %v3681_v16 }
 0x3ac   : > { %v3721_v26 = vpack.c.bf16 %v3680_v9, %v3679_v10 }
 0x3ae   : > { %6459 = vmatprep.mubr.bf16.mxu0 %v3721_v26 }
 0x3af   : > { %6460 = vmatmul.mubr.bf16.gmra.mrb[76].mxu0 %v3722_v21 }
 0x3be   : > { %v3287_v49 = vpop.xlane.xlu0 %3286 }
 0x3bf   : > { %7364 = vrcp.f32 %v3287_v49  ;;  %v3289_v23 = vpop.xlane.xlu1 %3288 }
 0x3c0   : > { %7366 = vrcp.f32 %v3289_v23  ;;  %v11259_v23 = vld [vmem:[#allocation135_spill] sm:$0xff] }
 0x3c1   : > { %7368 = vrcp.f32 %v9652_v39 }
 0x3c2   : > { %7370 = vrcp.f32 %v9655_v7  ;;  %v3283_v34 = vpop.xlane.xlu0 %3282 }
 0x3c3   : > { %7372 = vrcp.f32 %v3283_v34  ;;  %v3285_v50 = vpop.xlane.xlu1 %3284 }
 0x3c4   : > { %7374 = vrcp.f32 %v3285_v50 }
 0x3c5   : > { %7376 = vrcp.f32 %v9671_v41 }
 0x3c6   : > { %7378 = vrcp.f32 %v9674_v37  ;;  %v3295_v57 = vpop.xlane.xlu0 %3294 }
 0x3c7   : > { %7380 = vrcp.f32 %v3295_v57  ;;  %v3297_v40 = vpop.xlane.xlu1 %3296 }
 0x3c8   : > { %7382 = vrcp.f32 %v3297_v40 }
 0x3c9   : > { %v7365_v6 = vpop.eup %7364  ;;  %7384 = vrcp.f32 %v9683_v32 }
 0x3ca   : > { %v7367_v39 = vpop.eup %7366  ;;  %7386 = vrcp.f32 %v9687_v28  ;;  %v3556_v7 = vmul.f32 %v7365_v6, %v9582_v46  ;;  %v3291_v42 = vpop.xlane.xlu0 %3290 }
 0x3cb   : > { %v7369_v48 = vpop.eup %7368  ;;  %v3557_v41 = vmul.f32 %v7367_v39, %v9584_v53  ;;  %7388 = vrcp.f32 %v3291_v42  ;;  %v3293_v37 = vpop.xlane.xlu1 %3292  ;;  %v11255_v53 = vld [vmem:[#allocation41_spill] sm:$0xff]  ;;  %v11260_v39 = vld [vmem:[#allocation59_spill] sm:$0xff] }
 0x3cc   : > { %v7371_v29 = vpop.eup %7370  ;;  %7390 = vrcp.f32 %v3293_v37  ;;  %v3621_v32 = vmul.f32 %v9418_v17, %v3556_v7  ;;  %v3541_v1 = vmul.f32 %v7363_v63, %v11255_v53  ;;  %v3538_v3 = vmul.f32 %v7369_v48, %v11257_v36 }
 0x3cd   : > { %v7373_v31 = vpop.eup %7372  ;;  %7392 = vrcp.f32 %v9698_v55  ;;  %v3622_v51 = vmul.f32 %v9418_v17, %v3557_v41  ;;  %v11256_v55 = vld [vmem:[#allocation40_spill] sm:$0xff] }
 0x3ce   : > { %v7375_v59 = vpop.eup %7374  ;;  %7394 = vrcp.f32 %v9702_v20  ;;  %v3303_v28 = vpop.xlane.xlu0 %3302  ;;  %v3554_v46 = vmul.f32 %v7373_v31, %v9591_v22  ;;  %v3540_v62 = vmul.f32 %v7361_v58, %v11256_v55  ;;  %v11258_v22 = vld [vmem:[#allocation134_spill] sm:$0xff]  ;;  %v11261_v31 = vld [vmem:[#allocation53_spill] sm:$0xff] }
 0x3cf   : > { %v9830_v56 = vpop.eup %7376  ;;  %7396 = vrcp.f32 %v3303_v28  ;;  %v3305_v47 = vpop.xlane.xlu1 %3304  ;;  %v3555_v19 = vmul.f32 %v7375_v59, %v9593_v43  ;;  %v3539_v18 = vmul.f32 %v7371_v29, %v11258_v22  ;;  %v3686_v15 = vsub.f32 %v3541_v1, %v3622_v51  ;;  %v11262_v59 = vld [vmem:[#allocation52_spill] sm:$0xff] }
 0x3d0   : > { %v7379_v60 = vpop.eup %7378  ;;  %7398 = vrcp.f32 %v3305_v47  ;;  %v3619_v20 = vmul.f32 %v9418_v17, %v3554_v46  ;;  %v3685_v45 = vsub.f32 %v3540_v62, %v3621_v32  ;;  %v3544_v32 = vmul.f32 %v9830_v56, %v11262_v59  ;;  %v11263_v62 = vld [vmem:[#allocation75_spill] sm:$0xff] }
 0x3d1   : > { %v7381_v33 = vpop.eup %7380  ;;  %7400 = vrcp.f32 %v9712_v27  ;;  %v3620_v4 = vmul.f32 %v9418_v17, %v3555_v19  ;;  %v3545_v34 = vmul.f32 %v7379_v60, %v11259_v23 }
 0x3d2   : > { %v7383_v44 = vpop.eup %7382  ;;  %7402 = vrcp.f32 %v9716_v13  ;;  %v3299_v43 = vpop.xlane.xlu0 %3298  ;;  %v3683_v54 = vsub.f32 %v3538_v3, %v3619_v20  ;;  %v3560_v35 = vmul.f32 %v7381_v33, %v9599_v5  ;;  %v3724_v49 = vpack.c.bf16 %v3686_v15, %v3685_v45  ;;  %v11265_v45 = vld [vmem:[#allocation98_spill] sm:$0xff] }
 0x3d3   : > { %v9841_v12 = vpop.f32.mrb[48].mxu0  ;;  %v7385_v14 = vpop.eup %7384  ;;  %7404 = vrcp.f32 %v3299_v43  ;;  %v3684_v27 = vsub.f32 %v3539_v18, %v3620_v4  ;;  %v3561_v38 = vmul.f32 %v7383_v44, %v9601_v0  ;;  %v11264_v43 = vld [vmem:[#allocation126_spill] sm:$0xff] }
 0x3d4   : > { %v9843_v61 = vpop.f32.mrb[49].mxu0  ;;  %v3301_v11 = vpop.xlane.xlu1 %3300  ;;  %v4313_v16 = vmul.f32 %v9841_v12, %v9841_v12  ;;  %v3542_v7 = vmul.f32 %v7385_v14, %v11260_v39  ;;  %v3625_v48 = vmul.f32 %v9418_v17, %v3560_v35 }
 0x3d5   : > { %v7387_v30 = vpop.eup %7386  ;;  %v4311_v13 = vmul.f32 %v9843_v61, %v9843_v61  ;;  %7406 = vrcp.f32 %v3301_v11  ;;  %v9849_v10 = vpop.f32.mrb[50].mxu0  ;;  %v3723_v21 = vpack.c.bf16 %v3684_v27, %v3683_v54  ;;  %v3626_v40 = vmul.f32 %v9418_v17, %v3561_v38  ;;  %v11266_v11 = vld [vmem:[#allocation58_spill] sm:$0xff] }
 0x3d6   : > { %v7389_v9 = vpop.eup %7388  ;;  %v9853_v26 = vpop.f32.mrb[51].mxu0  ;;  %7408 = vrcp.f32 %v9735_v24  ;;  %v4314_v37 = vmul.f32 %v9849_v10, %v9849_v10  ;;  %v3543_v51 = vmul.f32 %v7387_v30, %v11261_v31  ;;  %v4382_v53 = vsel %vm4375_vm1, %v4313_v16, 0.0  ;;  %v11267_v30 = vld [vmem:[#allocation56_spill] sm:$0xff]  ;;  %v11268_v16 = vld [vmem:[#allocation63_spill] sm:$0xff] }
 0x3d7   : > { %v7391_v5 = vpop.eup %7390  ;;  %v4312_v0 = vmul.f32 %v9853_v26, %v9853_v26  ;;  %v3311_v50 = vpop.xlane.xlu0 %3310  ;;  %v4376_v57 = vsel %vm4375_vm1, %v4311_v13, 0.0  ;;  %v3558_v58 = vmul.f32 %v7389_v9, %v9607_v52  ;;  %6479 = vmatprep.mubr.bf16.mxu1 %v3723_v21  ;;  %v3690_v47 = vsub.f32 %v3545_v34, %v3626_v40 }
 0x3d8   : > { %v7393_v63 = vpop.eup %7392  ;;  %4377 = vadd.xlane.f32.xlu0 %v4376_v57  ;;  %v3313_v6 = vpop.xlane.xlu1 %3312  ;;  %v3559_v42 = vmul.f32 %v7391_v5, %v9609_v2  ;;  %7410 = vrcp.f32 %v3311_v50  ;;  %6480 = vmatmul.mubr.bf16.vlgmr.msra.gmra.mrb[96].mxu1 %v3724_v49  ;;  %v4385_v56 = vsel %vm4375_vm1, %v4314_v37, 0.0  ;;  %v3689_v20 = vsub.f32 %v3544_v32, %v3625_v48  ;;  %v11269_v49 = vld [vmem:[#allocation18_spill] sm:$0xff]  ;;  %v11271_v32 = vld [vmem:[#allocation49_spill] sm:$0xff] }
 0x3d9   : > { %v7395_v41 = vpop.eup %7394  ;;  %v4379_v52 = vsel %vm4375_vm1, %v4312_v0, 0.0  ;;  %v3623_v29 = vmul.f32 %v9418_v17, %v3558_v58  ;;  %7412 = vrcp.f32 %v9737_v25  ;;  %v3548_v13 = vmul.f32 %v7393_v63, %v11267_v30 }
 0x3da   : > { %v7397_v24 = vpop.eup %7396  ;;  %4380 = vadd.xlane.f32.xlu1 %v4379_v52  ;;  %v3624_v2 = vmul.f32 %v9418_v17, %v3559_v42  ;;  %7414 = vrcp.f32 %v3313_v6  ;;  %v3726_v44 = vpack.c.bf16 %v3690_v47, %v3689_v20  ;;  %v3549_v27 = vmul.f32 %v7395_v41, %v11266_v11 }
 0x3db   : > { %v7399_v28 = vpop.eup %7398  ;;  %v3307_v46 = vpop.xlane.xlu0 %3306  ;;  %v3687_v1 = vsub.f32 %v3542_v7, %v3623_v29  ;;  %v3564_v55 = vmul.f32 %v7397_v24, %v9615_v8  ;;  %v11270_v29 = vld [vmem:[#allocation48_spill] sm:$0xff] }
 0x3dc   : > { %v7401_v19 = vpop.eup %7400  ;;  %7416 = vrcp.f32 %v3307_v46  ;;  %4383 = vadd.xlane.f32.xlu0 %v4382_v53  ;;  %v3309_v60 = vpop.xlane.xlu1 %3308  ;;  %v3688_v25 = vsub.f32 %v3543_v51, %v3624_v2  ;;  %v3565_v36 = vmul.f32 %v7399_v28, %v11263_v62  ;;  %v11272_v46 = vld [vmem:[#allocation127_spill] sm:$0xff]  ;;  %v11274_v62 = vld [vmem:[#allocation26_spill] sm:$0xff] }
 0x3dd   : > { %v7403_v3 = vpop.eup %7402  ;;  %7418 = vrcp.f32 %v3309_v60  ;;  %v3629_v35 = vmul.f32 %v9418_v17, %v3564_v55  ;;  %v3546_v21 = vmul.f32 %v7401_v19, %v11268_v16 }
 0x3de   : > { %v7405_v33 = vpop.eup %7404  ;;  %4386 = vadd.xlane.f32.xlu1 %v4385_v56  ;;  %v3725_v22 = vpack.c.bf16 %v3688_v25, %v3687_v1  ;;  %v3630_v18 = vmul.f32 %v9418_v17, %v3565_v36  ;;  %v3547_v23 = vmul.f32 %v7403_v3, %v11269_v49  ;;  %v11273_v1 = vld [vmem:[#allocation101_spill] sm:$0xff]  ;;  %v11275_v3 = vld [vmem:[#allocation68_spill] sm:$0xff] }
 0x3df   : > { %v7407_v4 = vpop.eup %7406  ;;  %v3279_v15 = vpop.xlane.xlu0 %3278  ;;  %v3562_v54 = vmul.f32 %v7405_v33, %v11264_v43  ;;  %v3693_v39 = vsub.f32 %v3548_v13, %v3629_v35 }
 0x3e0   : > { %7420 = vrcp.f32 %v3279_v15  ;;  %6483 = vmatprep.mubr.bf16.mxu1 %v3725_v22  ;;  %v3281_v8 = vpop.xlane.xlu1 %3280  ;;  %v3563_v14 = vmul.f32 %v7407_v4, %v11265_v45  ;;  %v7409_v9 = vpop.eup %7408  ;;  %v3694_v5 = vsub.f32 %v3549_v27, %v3630_v18  ;;  %v11276_v18 = vld [vmem:[#allocation81_spill] sm:$0xff] }
 0x3e1   : > { %7422 = vrcp.f32 %v3281_v8  ;;  %6484 = vmatmul.mubr.bf16.gmra.mrb[100].mxu1 %v3726_v44  ;;  %v3627_v38 = vmul.f32 %v9418_v17, %v3562_v54  ;;  %v3550_v36 = vmul.f32 %v7409_v9, %v11274_v62  ;;  %v11277_v54 = vld [vmem:[#allocation100_spill] sm:$0xff] }
 0x3e2   : > { %v3628_v34 = vmul.f32 %v9418_v17, %v3563_v14  ;;  %v7411_v0 = vpop.eup %7410  ;;  %v9888_v50 = vpop.f32.mrb[52].mxu0  ;;  %v3728_v52 = vpack.c.bf16 %v3694_v5, %v3693_v39 }
 0x3e3   : > { %v7413_v57 = vpop.eup %7412  ;;  %v9890_v58 = vpop.f32.mrb[53].mxu0  ;;  %v3691_v40 = vsub.f32 %v3546_v21, %v3627_v38  ;;  %v3568_v24 = vmul.f32 %v7411_v0, %v11270_v29  ;;  %v4317_v51 = vmul.f32 %v9888_v50, %v9888_v50 }
 0x3e4   : > { %v3692_v6 = vsub.f32 %v3547_v23, %v3628_v34  ;;  %v7415_v7 = vpop.eup %7414  ;;  %v4315_v63 = vmul.f32 %v9890_v58, %v9890_v58  ;;  %v9894_v42 = vpop.f32.mrb[54].mxu0  ;;  %v3551_v56 = vmul.f32 %v7413_v57, %v11275_v3  ;;  %v6904_v34 = vld [vmem:[%s10414_s4] sm:$0xff]  }
 0x3e5   : > { %v9896_v41 = vpop.f32.mrb[55].mxu0  ;;  %v3569_v47 = vmul.f32 %v7415_v7, %v11273_v1  ;;  %v4318_v19 = vmul.f32 %v9894_v42, %v9894_v42  ;;  %v4394_v22 = vsel %vm4375_vm1, %v4317_v51, 0.0  ;;  %v3633_v15 = vmul.f32 %v9418_v17, %v3568_v24  ;;  %6495 = vmatprep.subr.bf16.mxu0 %v6904_v34 }
 0x3e6   : > { %v7417_v48 = vpop.eup %7416  ;;  %v3727_v37 = vpack.c.bf16 %v3692_v6, %v3691_v40  ;;  %v4316_v2 = vmul.f32 %v9896_v41, %v9896_v41  ;;  %v4388_v59 = vsel %vm4375_vm1, %v4315_v63, 0.0  ;;  %6496 = vmatpush3.bf16.msra.mxu0 %v6904_v34  ;;  %v6905_v40 = vld [vmem:[%s10414_s4 + $0x8] sm:$0xff]  }
 0x3e7   : > { %v7419_v31 = vpop.eup %7418  ;;  %v3566_v28 = vmul.f32 %v7417_v48, %v11271_v32  ;;  %4389 = vadd.xlane.f32.xlu0 %v4388_v59  ;;  %v3634_v45 = vmul.f32 %v9418_v17, %v3569_v47  ;;  %v4397_v14 = vsel %vm4375_vm1, %v4318_v19, 0.0  ;;  %6497 = vmatprep.subr.bf16.mxu0 %v6905_v40 }
 0x3e8   : > { %6487 = vmatprep.mubr.bf16.mxu1 %v3727_v37  ;;  %v3567_v53 = vmul.f32 %v7419_v31, %v11272_v46  ;;  %v4391_v60 = vsel %vm4375_vm1, %v4316_v2, 0.0 }
 0x3e9   : > { %6488 = vmatmul.mubr.bf16.gmra.mrb[104].mxu1 %v3728_v52  ;;  %v3631_v25 = vmul.f32 %v9418_v17, %v3566_v28  ;;  %4392 = vadd.xlane.f32.xlu1 %v4391_v60 }
 0x3ea   : > { %v7421_v55 = vpop.eup %7420  ;;  %v3632_v20 = vmul.f32 %v9418_v17, %v3567_v53  ;;  %6498 = vmatpush3.bf16.msra.mxu0 %v6905_v40 }
 0x3eb   : > { %v7423_v33 = vpop.eup %7422  ;;  %v3552_v4 = vmul.f32 %v7421_v55, %v11276_v18  ;;  %4395 = vadd.xlane.f32.xlu0 %v4394_v22  ;;  %v3695_v44 = vsub.f32 %v3550_v36, %v3631_v25 }
 0x3ec   : > { %v3696_v43 = vsub.f32 %v3551_v56, %v3632_v20  ;;  %v3553_v8 = vmul.f32 %v7423_v33, %v11277_v54 }
 0x3ed   : > { %4398 = vadd.xlane.f32.xlu1 %v4397_v14  ;;  %v3697_v27 = vsub.f32 %v3552_v4, %v3633_v15 }
 0x3ee   : > { %v3729_v11 = vpack.c.bf16 %v3696_v43, %v3695_v44  ;;  %v3698_v35 = vsub.f32 %v3553_v8, %v3634_v45 }
 0x3f0   : > { %6491 = vmatprep.mubr.bf16.mxu1 %v3729_v11  ;;  %v3730_v38 = vpack.c.bf16 %v3698_v35, %v3697_v27 }
 0x3f2   : > { %6492 = vmatmul.mubr.bf16.gmra.mrb[108].mxu1 %v3730_v38  ;;  %v9920_v30 = vpop.f32.mrb[56].mxu0 }
 0x3f3   : > { %v9922_v13 = vpop.f32.mrb[57].mxu0  ;;  %v4321_v17 = vmul.f32 %v9920_v30, %v9920_v30 }
 0x3f4   : > { %v4319_v9 = vmul.f32 %v9922_v13, %v9922_v13  ;;  %v9926_v16 = vpop.f32.mrb[58].mxu0 }
 0x3f5   : > { %v9928_v21 = vpop.f32.mrb[59].mxu0  ;;  %v4322_v5 = vmul.f32 %v9926_v16, %v9926_v16  ;;  %v4406_v57 = vsel %vm4375_vm1, %v4321_v17, 0.0 }
 0x3f6   : > { %v4320_v49 = vmul.f32 %v9928_v21, %v9928_v21  ;;  %v4400_v23 = vsel %vm4375_vm1, %v4319_v9, 0.0 }
 0x3f7   : > { %4401 = vadd.xlane.f32.xlu0 %v4400_v23  ;;  %v4409_v6 = vsel %vm4375_vm1, %v4322_v5, 0.0 }
 0x3f8   : > { %v4403_v0 = vsel %vm4375_vm1, %v4320_v49, 0.0  ;;  %v10024_v49 = vld [vmem:[%s10414_s4 + $0x10] sm:$0xff]  }
 0x3f9   : > { %4404 = vadd.xlane.f32.xlu1 %v4403_v0  ;;  %6515 = vmatprep.subr.bf16.mxu0 %v10024_v49 }
 0x3fb   : > { %4407 = vadd.xlane.f32.xlu0 %v4406_v57 }
 0x3fd   : > { %4410 = vadd.xlane.f32.xlu1 %v4409_v6 }
 0x402   : > { %v9946_v39 = vpop.f32.mrb[60].mxu0 }
 0x403   : > { %v9948_v7 = vpop.f32.mrb[61].mxu0  ;;  %v4325_v52 = vmul.f32 %v9946_v39, %v9946_v39 }
 0x404   : > { %v4323_v63 = vmul.f32 %v9948_v7, %v9948_v7  ;;  %v9952_v48 = vpop.f32.mrb[62].mxu0 }
 0x405   : > { %v9954_v37 = vpop.f32.mrb[63].mxu0  ;;  %v4326_v31 = vmul.f32 %v9952_v48, %v9952_v48  ;;  %v4418_v2 = vsel %vm4375_vm1, %v4325_v52, 0.0 }
 0x406   : > { %v4324_v29 = vmul.f32 %v9954_v37, %v9954_v37  ;;  %v4412_v24 = vsel %vm4375_vm1, %v4323_v63, 0.0 }
 0x407   : > { %4413 = vadd.xlane.f32.xlu0 %v4412_v24  ;;  %v4421_v59 = vsel %vm4375_vm1, %v4326_v31, 0.0 }
 0x408   : > { %v4415_v51 = vsel %vm4375_vm1, %v4324_v29, 0.0 }
 0x409   : > { %4416 = vadd.xlane.f32.xlu1 %v4415_v51 }
 0x40b   : > { %4419 = vadd.xlane.f32.xlu0 %v4418_v2 }
 0x40d   : > { %4422 = vadd.xlane.f32.xlu1 %v4421_v59 }
 0x432   : > { %v9966_v32 = vpop.f32.mrb[80].mxu1 }
 0x433   : > { %v9968_v28 = vpop.f32.mrb[81].mxu1  ;;  %v4329_v47 = vmul.f32 %v9966_v32, %v9966_v32 }
 0x434   : > { %v4327_v46 = vmul.f32 %v9968_v28, %v9968_v28  ;;  %v9972_v53 = vpop.f32.mrb[82].mxu1 }
 0x435   : > { %v9974_v1 = vpop.f32.mrb[83].mxu1  ;;  %v4330_v25 = vmul.f32 %v9972_v53, %v9972_v53  ;;  %v4430_v62 = vsel %vm4375_vm1, %v4329_v47, 0.0 }
 0x436   : > { %v4328_v19 = vmul.f32 %v9974_v1, %v9974_v1  ;;  %v4424_v60 = vsel %vm4375_vm1, %v4327_v46, 0.0 }
 0x437   : > { %4425 = vadd.xlane.f32.xlu0 %v4424_v60  ;;  %v4433_v36 = vsel %vm4375_vm1, %v4330_v25, 0.0 }
 0x438   : > { %v4427_v55 = vsel %vm4375_vm1, %v4328_v19, 0.0 }
 0x439   : > { %4428 = vadd.xlane.f32.xlu1 %v4427_v55 }
 0x43b   : > { %4431 = vadd.xlane.f32.xlu0 %v4430_v62 }
 0x43d   : > { %4434 = vadd.xlane.f32.xlu1 %v4433_v36 }
 0x442   : > { %v9986_v3 = vpop.f32.mrb[84].mxu1 }
 0x443   : > { %v9988_v56 = vpop.f32.mrb[85].mxu1  ;;  %v4333_v18 = vmul.f32 %v9986_v3, %v9986_v3 }
 0x444   : > { %v4331_v20 = vmul.f32 %v9988_v56, %v9988_v56  ;;  %v9992_v33 = vpop.f32.mrb[86].mxu1 }
 0x445   : > { %v9994_v22 = vpop.f32.mrb[87].mxu1  ;;  %v4334_v44 = vmul.f32 %v9992_v33, %v9992_v33  ;;  %v4442_v54 = vsel %vm4375_vm1, %v4333_v18, 0.0 }
 0x446   : > { %v4332_v4 = vmul.f32 %v9994_v22, %v9994_v22  ;;  %v4436_v15 = vsel %vm4375_vm1, %v4331_v20, 0.0 }
 0x447   : > { %4437 = vadd.xlane.f32.xlu0 %v4436_v15  ;;  %v4445_v8 = vsel %vm4375_vm1, %v4334_v44, 0.0 }
 0x448   : > { %v4439_v43 = vsel %vm4375_vm1, %v4332_v4, 0.0 }
 0x449   : > { %4440 = vadd.xlane.f32.xlu1 %v4439_v43 }
 0x44b   : > { %4443 = vadd.xlane.f32.xlu0 %v4442_v54 }
 0x44d   : > { %4446 = vadd.xlane.f32.xlu1 %v4445_v8 }
 0x452   : > { %v10006_v45 = vpop.f32.mrb[88].mxu1 }
 0x453   : > { %v10008_v14 = vpop.f32.mrb[89].mxu1  ;;  %v4337_v38 = vmul.f32 %v10006_v45, %v10006_v45 }
 0x454   : > { %v4335_v11 = vmul.f32 %v10008_v14, %v10008_v14  ;;  %v10012_v27 = vpop.f32.mrb[90].mxu1 }
 0x455   : > { %v10014_v35 = vpop.f32.mrb[91].mxu1  ;;  %v4338_v23 = vmul.f32 %v10012_v27, %v10012_v27  ;;  %v4454_v5 = vsel %vm4375_vm1, %v4337_v38, 0.0 }
 0x456   : > { %v4336_v9 = vmul.f32 %v10014_v35, %v10014_v35  ;;  %v4448_v17 = vsel %vm4375_vm1, %v4335_v11, 0.0 }
 0x457   : > { %4449 = vadd.xlane.f32.xlu0 %v4448_v17  ;;  %v4457_v0 = vsel %vm4375_vm1, %v4338_v23, 0.0 }
 0x458   : > { %v4451_v34 = vsel %vm4375_vm1, %v4336_v9, 0.0 }
 0x459   : > { %4452 = vadd.xlane.f32.xlu1 %v4451_v34 }
 0x45b   : > { %4455 = vadd.xlane.f32.xlu0 %v4454_v5 }
 0x45d   : > { %4458 = vadd.xlane.f32.xlu1 %v4457_v0 }
 0x45e   : > { %v10032_v57 = vpop.f32.mrb[92].mxu1 }
 0x45f   : > { %v10034_v40 = vpop.f32.mrb[93].mxu1  ;;  %v4341_v29 = vmul.f32 %v10032_v57, %v10032_v57 }
 0x460   : > { %v4339_v6 = vmul.f32 %v10034_v40, %v10034_v40  ;;  %v10038_v63 = vpop.f32.mrb[94].mxu1 }
 0x461   : > { %v10040_v52 = vpop.f32.mrb[95].mxu1  ;;  %v4342_v51 = vmul.f32 %v10038_v63, %v10038_v63  ;;  %v4466_v19 = vsel %vm4375_vm1, %v4341_v29, 0.0 }
 0x462   : > { %v4340_v24 = vmul.f32 %v10040_v52, %v10040_v52  ;;  %v4460_v31 = vsel %vm4375_vm1, %v4339_v6, 0.0 }
 0x463   : > { %4461 = vadd.xlane.f32.xlu0 %v4460_v31  ;;  %v4469_v62 = vsel %vm4375_vm1, %v4342_v51, 0.0 }
 0x464   : > { %v4463_v59 = vsel %vm4375_vm1, %v4340_v24, 0.0 }
 0x465   : > { %v4378_v2 = vpop.xlane.xlu0 %4377  ;;  %4464 = vadd.xlane.f32.xlu1 %v4463_v59 }
 0x466   : > { %v4569_v46 = vmul.f32 0.03125, %v4378_v2 }
 0x467   : > { %v4381_v47 = vpop.xlane.xlu1 %4380  ;;  %4467 = vadd.xlane.f32.xlu0 %v4466_v19 }
 0x468   : > { %v4633_v60 = vadd.f32 1e-05, %v4569_v46  ;;  %v4570_v25 = vmul.f32 0.03125, %v4381_v47 }
 0x469   : > { %v4384_v55 = vpop.xlane.xlu0 %4383  ;;  %4470 = vadd.xlane.f32.xlu1 %v4469_v62 }
 0x46a   : > { %7424 = vrsqrt.f32 %v4633_v60  ;;  %v4634_v36 = vadd.f32 1e-05, %v4570_v25  ;;  %v4571_v20 = vmul.f32 0.03125, %v4384_v55  ;;  %v10052_v18 = vpop.f32.mrb[64].mxu0 }
 0x46b   : > { %v4387_v4 = vpop.xlane.xlu1 %4386  ;;  %v10054_v43 = vpop.f32.mrb[65].mxu0  ;;  %v4345_v9 = vmul.f32 %v10052_v18, %v10052_v18 }
 0x46c   : > { %7426 = vrsqrt.f32 %v4634_v36  ;;  %v4635_v15 = vadd.f32 1e-05, %v4571_v20  ;;  %v4572_v44 = vmul.f32 0.03125, %v4387_v4  ;;  %v4343_v54 = vmul.f32 %v10054_v43, %v10054_v43  ;;  %v10058_v8 = vpop.f32.mrb[66].mxu0 }
 0x46d   : > { %v10060_v38 = vpop.f32.mrb[67].mxu0  ;;  %v4346_v34 = vmul.f32 %v10058_v8, %v10058_v8  ;;  %v4478_v6 = vsel %vm4375_vm1, %v4345_v9, 0.0 }
 0x46e   : > { %7428 = vrsqrt.f32 %v4635_v15  ;;  %v4636_v11 = vadd.f32 1e-05, %v4572_v44  ;;  %v4344_v17 = vmul.f32 %v10060_v38, %v10060_v38  ;;  %v4472_v23 = vsel %vm4375_vm1, %v4343_v54, 0.0 }
 0x46f   : > { %4473 = vadd.xlane.f32.xlu0 %v4472_v23  ;;  %v4481_v59 = vsel %vm4375_vm1, %v4346_v34, 0.0 }
 0x470   : > { %7430 = vrsqrt.f32 %v4636_v11  ;;  %v4475_v5 = vsel %vm4375_vm1, %v4344_v17, 0.0 }
 0x471   : > { %4476 = vadd.xlane.f32.xlu1 %v4475_v5 }
 0x472   : > { %v10070_v0 = vpop.f32.mrb[68].mxu0 }
 0x473   : > { %4479 = vadd.xlane.f32.xlu0 %v4478_v6  ;;  %v10073_v24 = vpop.f32.mrb[69].mxu0  ;;  %v4349_v47 = vmul.f32 %v10070_v0, %v10070_v0 }
 0x474   : > { %v7425_v29 = vpop.eup %7424  ;;  %v4347_v31 = vmul.f32 %v10073_v24, %v10073_v24  ;;  %v4390_v51 = vpop.xlane.xlu0 %4389 }
 0x475   : > { %v10077_v2 = vpop.f32.mrb[70].mxu0  ;;  %v4573_v19 = vmul.f32 0.03125, %v4390_v51  ;;  %4482 = vadd.xlane.f32.xlu1 %v4481_v59  ;;  %v4761_v36 = vmul.f32 %v7425_v29, %v9843_v61 }
 0x476   : > { %v7427_v46 = vpop.eup %7426  ;;  %v10082_v60 = vpop.f32.mrb[71].mxu0  ;;  %v4484_v62 = vsel %vm4375_vm1, %v4347_v31, 0.0  ;;  %v4350_v54 = vmul.f32 %v10077_v2, %v10077_v2  ;;  %v4490_v31 = vsel %vm4375_vm1, %v4349_v47, 0.0 }
 0x477   : > { %v4348_v25 = vmul.f32 %v10082_v60, %v10082_v60  ;;  %v4393_v55 = vpop.xlane.xlu1 %4392  ;;  %v4762_v20 = vmul.f32 %v7427_v46, %v9853_v26  ;;  %v4637_v15 = vadd.f32 1e-05, %v4573_v19  ;;  %4485 = vadd.xlane.f32.xlu0 %v4484_v62 }
 0x478   : > { %v7429_v4 = vpop.eup %7428  ;;  %v4574_v44 = vmul.f32 0.03125, %v4393_v55  ;;  %v4396_v11 = vpop.xlane.xlu0 %4395  ;;  %v6907_v55 = vld [vmem:[%s10414_s4 + $0x18] sm:$0xff]  }
 0x479   : > { %v4487_v9 = vsel %vm4375_vm1, %v4348_v25, 0.0  ;;  %v4825_v17 = vpack.c.bf16 %v4762_v20, %v4761_v36  ;;  %7432 = vrsqrt.f32 %v4637_v15  ;;  %v4575_v5 = vmul.f32 0.03125, %v4396_v11 }
 0x47a   : > { %v7431_v23 = vpop.eup %7430  ;;  %v4638_v34 = vadd.f32 1e-05, %v4574_v44  ;;  %4488 = vadd.xlane.f32.xlu1 %v4487_v9  ;;  %v4763_v61 = vmul.f32 %v7429_v4, %v9841_v12  ;;  %v10094_v6 = vpop.f32.mrb[72].mxu0 }
 0x47b   : > { %v4764_v26 = vmul.f32 %v7431_v23, %v9849_v10  ;;  %6499 = vmatprep.mubr.msk.bf16.mxu0 %vm4375_vm1, %v4825_v17  ;;  %v4399_v29 = vpop.xlane.xlu1 %4398  ;;  %v4639_v51 = vadd.f32 1e-05, %v4575_v5  ;;  %4491 = vadd.xlane.f32.xlu0 %v4490_v31  ;;  %v10098_v46 = vpop.f32.mrb[73].mxu0  ;;  %v4493_v10 = vsel %vm4375_vm1, %v4350_v54, 0.0  ;;  %v4353_v36 = vmul.f32 %v10094_v6, %v10094_v6 }
 0x47c   : > { %7434 = vrsqrt.f32 %v4638_v34  ;;  %v4576_v59 = vmul.f32 0.03125, %v4399_v29  ;;  %v4351_v25 = vmul.f32 %v10098_v46, %v10098_v46  ;;  %v10102_v12 = vpop.f32.mrb[74].mxu0 }
 0x47d   : > { %v4826_v19 = vpack.c.bf16 %v4764_v26, %v4763_v61  ;;  %7436 = vrsqrt.f32 %v4639_v51  ;;  %v10108_v62 = vpop.f32.mrb[75].mxu0  ;;  %v4354_v15 = vmul.f32 %v10102_v12, %v10102_v12  ;;  %v4502_v11 = vsel %vm4375_vm1, %v4353_v36, 0.0 }
 0x47e   : > { %v4640_v47 = vadd.f32 1e-05, %v4576_v59  ;;  %4494 = vadd.xlane.f32.xlu1 %v4493_v10  ;;  %v4352_v20 = vmul.f32 %v10108_v62, %v10108_v62  ;;  %v4496_v4 = vsel %vm4375_vm1, %v4351_v25, 0.0 }
 0x47f   : > { %6500 = vmatmul.mubr.msk.bf16.vlgmr.msra.gmra.mrb[80].mxu0 %vm4375_vm1, %v4826_v19  ;;  %4497 = vadd.xlane.f32.xlu0 %v4496_v4  ;;  %v4505_v5 = vsel %vm4375_vm1, %v4354_v15, 0.0 }
 0x480   : > { %7438 = vrsqrt.f32 %v4640_v47  ;;  %6516 = vmatpush3.bf16.msra.mxu0 %v10024_v49  ;;  %v4499_v44 = vsel %vm4375_vm1, %v4352_v20, 0.0 }
 0x481   : > { %6517 = vmatprep.subr.bf16.mxu0 %v6907_v55 }
 0x482   : > { %4500 = vadd.xlane.f32.xlu1 %v4499_v44  ;;  %v10120_v54 = vpop.f32.mrb[76].mxu0 }
 0x483   : > { %v7433_v9 = vpop.eup %7432  ;;  %4503 = vadd.xlane.f32.xlu0 %v4502_v11  ;;  %v10123_v17 = vpop.f32.mrb[77].mxu0  ;;  %v4357_v26 = vmul.f32 %v10120_v54, %v10120_v54 }
 0x484   : > { %6518 = vmatpush3.bf16.msra.mxu0 %v6907_v55  ;;  %v4355_v23 = vmul.f32 %v10123_v17, %v10123_v17  ;;  %v4402_v49 = vpop.xlane.xlu0 %4401  ;;  %v10127_v34 = vpop.f32.mrb[78].mxu0  ;;  %v4765_v25 = vmul.f32 %v7433_v9, %v9890_v58 }
 0x485   : > { %v4577_v29 = vmul.f32 0.03125, %v4402_v49  ;;  %v10132_v31 = vpop.f32.mrb[79].mxu0  ;;  %v4358_v20 = vmul.f32 %v10127_v34, %v10127_v34 }
 0x486   : > { %v7435_v61 = vpop.eup %7434  ;;  %4506 = vadd.xlane.f32.xlu1 %v4505_v5  ;;  %v4356_v51 = vmul.f32 %v10132_v31, %v10132_v31  ;;  %v4405_v59 = vpop.xlane.xlu1 %4404  ;;  %v4508_v19 = vsel %vm4375_vm1, %v4355_v23, 0.0 }
 0x487   : > { %v4766_v10 = vmul.f32 %v7435_v61, %v9896_v41  ;;  %v7437_v55 = vpop.eup %7436  ;;  %v4641_v47 = vadd.f32 1e-05, %v4577_v29  ;;  %v4578_v36 = vmul.f32 0.03125, %v4405_v59  ;;  %4509 = vadd.xlane.f32.xlu0 %v4508_v19  ;;  %v4514_v41 = vsel %vm4375_vm1, %v4357_v26, 0.0  ;;  %v10151_v26 = vld [vmem:[%s10414_s4 + $0x20] sm:$0xff]  }
 0x488   : > { %v4408_v4 = vpop.xlane.xlu0 %4407  ;;  %v4511_v15 = vsel %vm4375_vm1, %v4356_v51, 0.0  ;;  %v4767_v9 = vmul.f32 %v7437_v55, %v9888_v50  ;;  %v4517_v51 = vsel %vm4375_vm1, %v4358_v20, 0.0  ;;  %6535 = vmatprep.subr.bf16.mxu0 %v10151_v26 }
 0x489   : > { %v4827_v44 = vpack.c.bf16 %v4766_v10, %v4765_v25  ;;  %7440 = vrsqrt.f32 %v4641_v47  ;;  %v4642_v49 = vadd.f32 1e-05, %v4578_v36  ;;  %v4579_v5 = vmul.f32 0.03125, %v4408_v4 }
 0x48a   : > { %v7439_v11 = vpop.eup %7438  ;;  %4512 = vadd.xlane.f32.xlu1 %v4511_v15  ;;  %v4411_v58 = vpop.xlane.xlu1 %4410 }
 0x48b   : > { %6503 = vmatprep.mubr.msk.bf16.mxu0 %vm4375_vm1, %v4827_v44  ;;  %v4768_v23 = vmul.f32 %v7439_v11, %v9894_v42  ;;  %7442 = vrsqrt.f32 %v4642_v49  ;;  %v4643_v61 = vadd.f32 1e-05, %v4579_v5  ;;  %v4580_v29 = vmul.f32 0.03125, %v4411_v58  ;;  %4515 = vadd.xlane.f32.xlu0 %v4514_v41 }
 0x48d   : > { %v4828_v59 = vpack.c.bf16 %v4768_v23, %v4767_v9  ;;  %7444 = vrsqrt.f32 %v4643_v61  ;;  %v4644_v19 = vadd.f32 1e-05, %v4580_v29 }
 0x48e   : > { %4518 = vadd.xlane.f32.xlu1 %v4517_v51 }
 0x48f   : > { %6504 = vmatmul.mubr.msk.bf16.gmra.mrb[84].mxu0 %vm4375_vm1, %v4828_v59  ;;  %7446 = vrsqrt.f32 %v4644_v19 }
 0x493   : > { %v7441_v50 = vpop.eup %7440 }
 0x494   : > { %v4414_v42 = vpop.xlane.xlu0 %4413  ;;  %v4769_v47 = vmul.f32 %v7441_v50, %v9922_v13 }
 0x495   : > { %v7443_v25 = vpop.eup %7442  ;;  %v4581_v10 = vmul.f32 0.03125, %v4414_v42 }
 0x496   : > { %v4417_v55 = vpop.xlane.xlu1 %4416  ;;  %v4770_v36 = vmul.f32 %v7443_v25, %v9928_v21 }
 0x497   : > { %v7445_v20 = vpop.eup %7444  ;;  %v4645_v4 = vadd.f32 1e-05, %v4581_v10  ;;  %v4582_v15 = vmul.f32 0.03125, %v4417_v55 }
 0x498   : > { %v4420_v44 = vpop.xlane.xlu0 %4419  ;;  %v4829_v11 = vpack.c.bf16 %v4770_v36, %v4769_v47  ;;  %v4771_v9 = vmul.f32 %v7445_v20, %v9920_v30 }
 0x499   : > { %v7447_v49 = vpop.eup %7446  ;;  %7448 = vrsqrt.f32 %v4645_v4  ;;  %v4646_v5 = vadd.f32 1e-05, %v4582_v15  ;;  %v4583_v58 = vmul.f32 0.03125, %v4420_v44 }
 0x49a   : > { %6507 = vmatprep.mubr.msk.bf16.mxu0 %vm4375_vm1, %v4829_v11  ;;  %v4423_v41 = vpop.xlane.xlu1 %4422  ;;  %v4772_v23 = vmul.f32 %v7447_v49, %v9926_v16 }
 0x49b   : > { %7450 = vrsqrt.f32 %v4646_v5  ;;  %v4647_v13 = vadd.f32 1e-05, %v4583_v58  ;;  %v4584_v61 = vmul.f32 0.03125, %v4423_v41 }
 0x49c   : > { %v4830_v21 = vpack.c.bf16 %v4772_v23, %v4771_v9 }
 0x49d   : > { %7452 = vrsqrt.f32 %v4647_v13  ;;  %v4648_v29 = vadd.f32 1e-05, %v4584_v61 }
 0x49e   : > { %6508 = vmatmul.mubr.msk.bf16.gmra.mrb[88].mxu0 %vm4375_vm1, %v4830_v21 }
 0x49f   : > { %7454 = vrsqrt.f32 %v4648_v29 }
 0x4a3   : > { %v7449_v51 = vpop.eup %7448 }
 0x4a4   : > { %v4773_v19 = vmul.f32 %v7449_v51, %v9948_v7 }
 0x4a5   : > { %v7451_v59 = vpop.eup %7450 }
 0x4a6   : > { %v4774_v50 = vmul.f32 %v7451_v59, %v9954_v37 }
 0x4a7   : > { %v7453_v42 = vpop.eup %7452 }
 0x4a8   : > { %v4831_v25 = vpack.c.bf16 %v4774_v50, %v4773_v19  ;;  %v4775_v16 = vmul.f32 %v7453_v42, %v9946_v39 }
 0x4a9   : > { %v7455_v30 = vpop.eup %7454 }
 0x4aa   : > { %6511 = vmatprep.mubr.msk.bf16.mxu0 %vm4375_vm1, %v4831_v25  ;;  %v4776_v10 = vmul.f32 %v7455_v30, %v9952_v48 }
 0x4ab   : > { %v10165_v55 = vpop.f32.mrb[96].mxu1 }
 0x4ac   : > { %v10167_v47 = vpop.f32.mrb[97].mxu1  ;;  %v4832_v36 = vpack.c.bf16 %v4776_v10, %v4775_v16  ;;  %v4361_v4 = vmul.f32 %v10165_v55, %v10165_v55 }
 0x4ad   : > { %v4359_v20 = vmul.f32 %v10167_v47, %v10167_v47  ;;  %v10171_v7 = vpop.f32.mrb[98].mxu1 }
 0x4ae   : > { %v10173_v37 = vpop.f32.mrb[99].mxu1  ;;  %6512 = vmatmul.mubr.msk.bf16.gmra.mrb[92].mxu0 %vm4375_vm1, %v4832_v36  ;;  %v4362_v15 = vmul.f32 %v10171_v7, %v10171_v7  ;;  %v4526_v49 = vsel %vm4375_vm1, %v4361_v4, 0.0 }
 0x4af   : > { %v4360_v39 = vmul.f32 %v10173_v37, %v10173_v37  ;;  %v4520_v48 = vsel %vm4375_vm1, %v4359_v20, 0.0 }
 0x4b0   : > { %4521 = vadd.xlane.f32.xlu0 %v4520_v48  ;;  %v4529_v9 = vsel %vm4375_vm1, %v4362_v15, 0.0 }
 0x4b1   : > { %v4523_v44 = vsel %vm4375_vm1, %v4360_v39, 0.0 }
 0x4b2   : > { %4524 = vadd.xlane.f32.xlu1 %v4523_v44 }
 0x4b4   : > { %v10184_v11 = vpop.f32.mrb[100].mxu1  ;;  %4527 = vadd.xlane.f32.xlu0 %v4526_v49 }
 0x4b5   : > { %v10187_v5 = vpop.f32.mrb[101].mxu1  ;;  %v4365_v13 = vmul.f32 %v10184_v11, %v10184_v11 }
 0x4b6   : > { %v4363_v58 = vmul.f32 %v10187_v5, %v10187_v5  ;;  %v10191_v41 = vpop.f32.mrb[102].mxu1  ;;  %4530 = vadd.xlane.f32.xlu1 %v4529_v9 }
 0x4b7   : > { %v10194_v23 = vpop.f32.mrb[103].mxu1  ;;  %v4366_v29 = vmul.f32 %v10191_v41, %v10191_v41  ;;  %v4538_v19 = vsel %vm4375_vm1, %v4365_v13, 0.0 }
 0x4b8   : > { %v4364_v61 = vmul.f32 %v10194_v23, %v10194_v23  ;;  %v4532_v21 = vsel %vm4375_vm1, %v4363_v58, 0.0 }
 0x4b9   : > { %4533 = vadd.xlane.f32.xlu0 %v4532_v21  ;;  %v4541_v30 = vsel %vm4375_vm1, %v4366_v29, 0.0 }
 0x4ba   : > { %v4535_v51 = vsel %vm4375_vm1, %v4364_v61, 0.0 }
 0x4bb   : > { %4536 = vadd.xlane.f32.xlu1 %v4535_v51 }
 0x4bc   : > { %v10204_v59 = vpop.f32.mrb[104].mxu1 }
 0x4bd   : > { %4539 = vadd.xlane.f32.xlu0 %v4538_v19  ;;  %v10207_v50 = vpop.f32.mrb[105].mxu1  ;;  %v4369_v10 = vmul.f32 %v10204_v59, %v10204_v59 }
 0x4be   : > { %v4367_v42 = vmul.f32 %v10207_v50, %v10207_v50  ;;  %v10211_v25 = vpop.f32.mrb[106].mxu1 }
 0x4bf   : > { %4542 = vadd.xlane.f32.xlu1 %v4541_v30  ;;  %v10214_v16 = vpop.f32.mrb[107].mxu1  ;;  %v4370_v4 = vmul.f32 %v10211_v25, %v10211_v25  ;;  %v4550_v48 = vsel %vm4375_vm1, %v4369_v10, 0.0 }
 0x4c0   : > { %v4368_v36 = vmul.f32 %v10214_v16, %v10214_v16  ;;  %v4544_v20 = vsel %vm4375_vm1, %v4367_v42, 0.0 }
 0x4c1   : > { %4545 = vadd.xlane.f32.xlu0 %v4544_v20  ;;  %v4553_v9 = vsel %vm4375_vm1, %v4370_v4, 0.0 }
 0x4c2   : > { %v4547_v39 = vsel %vm4375_vm1, %v4368_v36, 0.0 }
 0x4c3   : > { %4548 = vadd.xlane.f32.xlu1 %v4547_v39 }
 0x4c4   : > { %v4426_v15 = vpop.xlane.xlu0 %4425 }
 0x4c5   : > { %4551 = vadd.xlane.f32.xlu0 %v4550_v48  ;;  %v10225_v44 = vpop.f32.mrb[108].mxu1  ;;  %v4585_v49 = vmul.f32 0.03125, %v4426_v15 }
 0x4c6   : > { %11278 = vst [vmem:[#allocation83_spill] sm:$0xff] %v10225_v44  ;;  %v10227_v58 = vpop.f32.mrb[109].mxu1  ;;  %v4429_v21 = vpop.xlane.xlu1 %4428  ;;  %v4373_v42 = vmul.f32 %v10225_v44, %v10225_v44 }
 0x4c7   : > { %v4371_v13 = vmul.f32 %v10227_v58, %v10227_v58  ;;  %4554 = vadd.xlane.f32.xlu1 %v4553_v9  ;;  %v10232_v61 = vpop.f32.mrb[110].mxu1  ;;  %v4649_v29 = vadd.f32 1e-05, %v4585_v49  ;;  %v4586_v51 = vmul.f32 0.03125, %v4429_v21 }
 0x4c8   : > { %11279 = vst [vmem:[#allocation102_spill] sm:$0xff] %v10232_v61  ;;  %v10234_v19 = vpop.f32.mrb[111].mxu1  ;;  %v4432_v10 = vpop.xlane.xlu0 %4431  ;;  %v4374_v39 = vmul.f32 %v10232_v61, %v10232_v61  ;;  %v4562_v21 = vsel %vm4375_vm1, %v4373_v42, 0.0 }
 0x4c9   : > { %v4372_v30 = vmul.f32 %v10234_v19, %v10234_v19  ;;  %v4556_v36 = vsel %vm4375_vm1, %v4371_v13, 0.0  ;;  %7456 = vrsqrt.f32 %v4649_v29  ;;  %v4650_v20 = vadd.f32 1e-05, %v4586_v51 }
 0x4ca   : > { %v4587_v4 = vmul.f32 0.03125, %v4432_v10  ;;  %4557 = vadd.xlane.f32.xlu0 %v4556_v36  ;;  %v4435_v48 = vpop.xlane.xlu1 %4434  ;;  %v4565_v13 = vsel %vm4375_vm1, %v4374_v39, 0.0 }
 0x4cb   : > { %v4559_v15 = vsel %vm4375_vm1, %v4372_v30, 0.0  ;;  %7458 = vrsqrt.f32 %v4650_v20  ;;  %v4588_v9 = vmul.f32 0.03125, %v4435_v48 }
 0x4cc   : > { %v4651_v49 = vadd.f32 1e-05, %v4587_v4  ;;  %4560 = vadd.xlane.f32.xlu1 %v4559_v15 }
 0x4cd   : > { %v4652_v44 = vadd.f32 1e-05, %v4588_v9 }
 0x4ce   : > { %7460 = vrsqrt.f32 %v4651_v49  ;;  %4563 = vadd.xlane.f32.xlu0 %v4562_v21 }
 0x4cf   : > { %7462 = vrsqrt.f32 %v4652_v44 }
 0x4d0   : > { %4566 = vadd.xlane.f32.xlu1 %v4565_v13 }
 0x4d3   : > { %v7457_v29 = vpop.eup %7456 }
 0x4d4   : > { %v4438_v51 = vpop.xlane.xlu0 %4437  ;;  %v4777_v30 = vmul.f32 %v7457_v29, %v9968_v28 }
 0x4d5   : > { %v7459_v10 = vpop.eup %7458  ;;  %v4589_v36 = vmul.f32 0.03125, %v4438_v51 }
 0x4d6   : > { %v4441_v61 = vpop.xlane.xlu1 %4440  ;;  %v4778_v20 = vmul.f32 %v7459_v10, %v9974_v1 }
 0x4d7   : > { %v4653_v48 = vadd.f32 1e-05, %v4589_v36  ;;  %v4590_v15 = vmul.f32 0.03125, %v4441_v61  ;;  %v6909_v61 = vld [vmem:[%s10414_s4 + $0x28] sm:$0xff]  }
 0x4d8   : > { %v7461_v4 = vpop.eup %7460  ;;  %v4444_v42 = vpop.xlane.xlu0 %4443  ;;  %v4833_v49 = vpack.c.bf16 %v4778_v20, %v4777_v30 }
 0x4d9   : > { %v7463_v9 = vpop.eup %7462  ;;  %7464 = vrsqrt.f32 %v4653_v48  ;;  %v4654_v21 = vadd.f32 1e-05, %v4590_v15  ;;  %v4591_v39 = vmul.f32 0.03125, %v4444_v42  ;;  %v4779_v44 = vmul.f32 %v7461_v4, %v9966_v32  ;;  %v10259_v32 = vld [vmem:[%s10414_s4 + $0x30] sm:$0xff]  }
 0x4da   : > { %v4780_v13 = vmul.f32 %v7463_v9, %v9972_v53  ;;  %6519 = vmatprep.mubr.msk.bf16.mxu0 %vm4375_vm1, %v4833_v49  ;;  %v4447_v51 = vpop.xlane.xlu1 %4446 }
 0x4db   : > { %7466 = vrsqrt.f32 %v4654_v21  ;;  %v4655_v28 = vadd.f32 1e-05, %v4591_v39  ;;  %v4592_v29 = vmul.f32 0.03125, %v4447_v51 }
 0x4dc   : > { %v4834_v1 = vpack.c.bf16 %v4780_v13, %v4779_v44 }
 0x4dd   : > { %7468 = vrsqrt.f32 %v4655_v28  ;;  %v4656_v10 = vadd.f32 1e-05, %v4592_v29 }
 0x4de   : > { %6520 = vmatmul.mubr.msk.bf16.vlgmr.msra.gmra.mrb[80].mxu0 %vm4375_vm1, %v4834_v1 }
 0x4df   : > { %7470 = vrsqrt.f32 %v4656_v10  ;;  %6536 = vmatpush3.bf16.msra.mxu0 %v10151_v26 }
 0x4e0   : > { %6537 = vmatprep.subr.bf16.mxu0 %v6909_v61 }
 0x4e3   : > { %v7465_v53 = vpop.eup %7464  ;;  %6538 = vmatpush3.bf16.msra.mxu0 %v6909_v61 }
 0x4e4   : > { %v4450_v36 = vpop.xlane.xlu0 %4449  ;;  %6555 = vmatprep.subr.bf16.mxu0 %v10259_v32  ;;  %v4781_v48 = vmul.f32 %v7465_v53, %v9988_v56 }
 0x4e5   : > { %v7467_v30 = vpop.eup %7466  ;;  %v4593_v20 = vmul.f32 0.03125, %v4450_v36 }
 0x4e6   : > { %v4453_v4 = vpop.xlane.xlu1 %4452  ;;  %v4782_v15 = vmul.f32 %v7467_v30, %v9994_v22 }
 0x4e7   : > { %v7469_v42 = vpop.eup %7468  ;;  %v4657_v26 = vadd.f32 1e-05, %v4593_v20  ;;  %v4594_v49 = vmul.f32 0.03125, %v4453_v4 }
 0x4e8   : > { %v4456_v9 = vpop.xlane.xlu0 %4455  ;;  %v4835_v21 = vpack.c.bf16 %v4782_v15, %v4781_v48  ;;  %v4783_v28 = vmul.f32 %v7469_v42, %v9986_v3 }
 0x4e9   : > { %v7471_v39 = vpop.eup %7470  ;;  %7472 = vrsqrt.f32 %v4657_v26  ;;  %v4658_v44 = vadd.f32 1e-05, %v4594_v49  ;;  %v4595_v13 = vmul.f32 0.03125, %v4456_v9 }
 0x4ea   : > { %6523 = vmatprep.mubr.msk.bf16.mxu0 %vm4375_vm1, %v4835_v21  ;;  %v4459_v51 = vpop.xlane.xlu1 %4458  ;;  %v4784_v29 = vmul.f32 %v7471_v39, %v9992_v33 }
 0x4eb   : > { %7474 = vrsqrt.f32 %v4658_v44  ;;  %v4659_v56 = vadd.f32 1e-05, %v4595_v13  ;;  %v4596_v1 = vmul.f32 0.03125, %v4459_v51 }
 0x4ec   : > { %v4836_v22 = vpack.c.bf16 %v4784_v29, %v4783_v28 }
 0x4ed   : > { %7476 = vrsqrt.f32 %v4659_v56  ;;  %v4660_v61 = vadd.f32 1e-05, %v4596_v1 }
 0x4ee   : > { %6524 = vmatmul.mubr.msk.bf16.gmra.mrb[84].mxu0 %vm4375_vm1, %v4836_v22 }
 0x4ef   : > { %7478 = vrsqrt.f32 %v4660_v61 }
 0x4f0   : > { %v4462_v10 = vpop.xlane.xlu0 %4461 }
 0x4f1   : > { %v4597_v53 = vmul.f32 0.03125, %v4462_v10 }
 0x4f2   : > { %v4465_v36 = vpop.xlane.xlu1 %4464 }
 0x4f3   : > { %v7473_v30 = vpop.eup %7472  ;;  %v4661_v20 = vadd.f32 1e-05, %v4597_v53  ;;  %v4598_v4 = vmul.f32 0.03125, %v4465_v36 }
 0x4f4   : > { %v4468_v48 = vpop.xlane.xlu0 %4467  ;;  %v4785_v26 = vmul.f32 %v7473_v30, %v10008_v14 }
 0x4f5   : > { %v7475_v15 = vpop.eup %7474  ;;  %7480 = vrsqrt.f32 %v4661_v20  ;;  %v4662_v3 = vadd.f32 1e-05, %v4598_v4  ;;  %v4599_v33 = vmul.f32 0.03125, %v4468_v48 }
 0x4f6   : > { %v4471_v42 = vpop.xlane.xlu1 %4470  ;;  %v4786_v49 = vmul.f32 %v7475_v15, %v10014_v35 }
 0x4f7   : > { %v7477_v9 = vpop.eup %7476  ;;  %7482 = vrsqrt.f32 %v4662_v3  ;;  %v4663_v21 = vadd.f32 1e-05, %v4599_v33  ;;  %v4600_v39 = vmul.f32 0.03125, %v4471_v42 }
 0x4f8   : > { %v4837_v44 = vpack.c.bf16 %v4786_v49, %v4785_v26  ;;  %v4787_v28 = vmul.f32 %v7477_v9, %v10006_v45 }
 0x4f9   : > { %v7479_v13 = vpop.eup %7478  ;;  %7484 = vrsqrt.f32 %v4663_v21  ;;  %v4664_v51 = vadd.f32 1e-05, %v4600_v39 }
 0x4fa   : > { %6527 = vmatprep.mubr.msk.bf16.mxu0 %vm4375_vm1, %v4837_v44  ;;  %v4788_v29 = vmul.f32 %v7479_v13, %v10012_v27 }
 0x4fb   : > { %7486 = vrsqrt.f32 %v4664_v51 }
 0x4fc   : > { %v4474_v56 = vpop.xlane.xlu0 %4473  ;;  %v4838_v1 = vpack.c.bf16 %v4788_v29, %v4787_v28 }
 0x4fd   : > { %v4601_v14 = vmul.f32 0.03125, %v4474_v56 }
 0x4fe   : > { %6528 = vmatmul.mubr.msk.bf16.gmra.mrb[88].mxu0 %vm4375_vm1, %v4838_v1  ;;  %v4477_v35 = vpop.xlane.xlu1 %4476 }
 0x4ff   : > { %v7481_v22 = vpop.eup %7480  ;;  %v4665_v61 = vadd.f32 1e-05, %v4601_v14  ;;  %v4602_v10 = vmul.f32 0.03125, %v4477_v35 }
 0x500   : > { %v4480_v53 = vpop.xlane.xlu0 %4479  ;;  %v4789_v45 = vmul.f32 %v7481_v22, %v10034_v40 }
 0x501   : > { %v7483_v36 = vpop.eup %7482  ;;  %7488 = vrsqrt.f32 %v4665_v61  ;;  %v4666_v30 = vadd.f32 1e-05, %v4602_v10  ;;  %v4603_v20 = vmul.f32 0.03125, %v4480_v53 }
 0x502   : > { %v4483_v4 = vpop.xlane.xlu1 %4482  ;;  %v4790_v27 = vmul.f32 %v7483_v36, %v10040_v52 }
 0x503   : > { %v7485_v48 = vpop.eup %7484  ;;  %7490 = vrsqrt.f32 %v4666_v30  ;;  %v4667_v15 = vadd.f32 1e-05, %v4603_v20  ;;  %v4604_v3 = vmul.f32 0.03125, %v4483_v4 }
 0x504   : > { %v4486_v33 = vpop.xlane.xlu0 %4485  ;;  %v4839_v42 = vpack.c.bf16 %v4790_v27, %v4789_v45  ;;  %v4791_v39 = vmul.f32 %v7485_v48, %v10032_v57 }
 0x505   : > { %v7487_v26 = vpop.eup %7486  ;;  %7492 = vrsqrt.f32 %v4667_v15  ;;  %v4668_v49 = vadd.f32 1e-05, %v4604_v3  ;;  %v4605_v9 = vmul.f32 0.03125, %v4486_v33 }
 0x506   : > { %6531 = vmatprep.mubr.msk.bf16.mxu0 %vm4375_vm1, %v4839_v42  ;;  %v4792_v44 = vmul.f32 %v7487_v26, %v10038_v63 }
 0x507   : > { %v4489_v21 = vpop.xlane.xlu1 %4488  ;;  %7494 = vrsqrt.f32 %v4668_v49  ;;  %v4669_v40 = vadd.f32 1e-05, %v4605_v9 }
 0x508   : > { %v4606_v52 = vmul.f32 0.03125, %v4489_v21  ;;  %v4492_v13 = vpop.xlane.xlu0 %4491  ;;  %v4840_v51 = vpack.c.bf16 %v4792_v44, %v4791_v39  ;;  %v6911_v39 = vld [vmem:[%s10414_s4 + $0x38] sm:$0xff]  }
 0x509   : > { %7496 = vrsqrt.f32 %v4669_v40  ;;  %v4607_v29 = vmul.f32 0.03125, %v4492_v13 }
 0x50a   : > { %v4670_v28 = vadd.f32 1e-05, %v4606_v52  ;;  %6532 = vmatmul.mubr.msk.bf16.gmra.mrb[92].mxu0 %vm4375_vm1, %v4840_v51 }
 0x50b   : > { %v4495_v56 = vpop.xlane.xlu1 %4494  ;;  %v7489_v1 = vpop.eup %7488  ;;  %v4671_v14 = vadd.f32 1e-05, %v4607_v29 }
 0x50c   : > { %7498 = vrsqrt.f32 %v4670_v28  ;;  %v4608_v35 = vmul.f32 0.03125, %v4495_v56  ;;  %v4498_v22 = vpop.xlane.xlu0 %4497  ;;  %v4793_v53 = vmul.f32 %v7489_v1, %v10054_v43 }
 0x50d   : > { %v7491_v61 = vpop.eup %7490  ;;  %7500 = vrsqrt.f32 %v4671_v14  ;;  %v4609_v63 = vmul.f32 0.03125, %v4498_v22 }
 0x50e   : > { %v4672_v57 = vadd.f32 1e-05, %v4608_v35  ;;  %v4794_v36 = vmul.f32 %v7491_v61, %v10060_v38 }
 0x50f   : > { %v4501_v10 = vpop.xlane.xlu1 %4500  ;;  %v7493_v30 = vpop.eup %7492  ;;  %v4673_v20 = vadd.f32 1e-05, %v4609_v63 }
 0x510   : > { %7502 = vrsqrt.f32 %v4672_v57  ;;  %v4610_v4 = vmul.f32 0.03125, %v4501_v10  ;;  %v4504_v45 = vpop.xlane.xlu0 %4503  ;;  %v4841_v27 = vpack.c.bf16 %v4794_v36, %v4793_v53  ;;  %v4795_v33 = vmul.f32 %v7493_v30, %v10052_v18 }
 0x511   : > { %v7495_v48 = vpop.eup %7494  ;;  %7504 = vrsqrt.f32 %v4673_v20  ;;  %v4611_v3 = vmul.f32 0.03125, %v4504_v45 }
 0x512   : > { %v4674_v15 = vadd.f32 1e-05, %v4610_v4  ;;  %v4796_v42 = vmul.f32 %v7495_v48, %v10058_v8  ;;  %6539 = vmatprep.mubr.msk.bf16.mxu0 %vm4375_vm1, %v4841_v27 }
 0x513   : > { %v4507_v26 = vpop.xlane.xlu1 %4506  ;;  %v7497_v43 = vpop.eup %7496  ;;  %v4675_v38 = vadd.f32 1e-05, %v4611_v3 }
 0x514   : > { %7506 = vrsqrt.f32 %v4674_v15  ;;  %v4612_v49 = vmul.f32 0.03125, %v4507_v26  ;;  %v4842_v9 = vpack.c.bf16 %v4796_v42, %v4795_v33  ;;  %v4510_v21 = vpop.xlane.xlu0 %4509  ;;  %v4797_v8 = vmul.f32 %v7497_v43, %v10073_v24 }
 0x515   : > { %7508 = vrsqrt.f32 %v4675_v38  ;;  %v4613_v52 = vmul.f32 0.03125, %v4510_v21 }
 0x516   : > { %v7499_v44 = vpop.eup %7498  ;;  %v4676_v40 = vadd.f32 1e-05, %v4612_v49  ;;  %6540 = vmatmul.mubr.msk.bf16.vlgmr.msra.gmra.mrb[80].mxu0 %vm4375_vm1, %v4842_v9 }
 0x517   : > { %v4513_v18 = vpop.xlane.xlu1 %4512  ;;  %v4798_v13 = vmul.f32 %v7499_v44, %v10082_v60  ;;  %v7501_v51 = vpop.eup %7500  ;;  %v4677_v28 = vadd.f32 1e-05, %v4613_v52  ;;  %6556 = vmatpush3.bf16.msra.mxu0 %v10259_v32 }
 0x518   : > { %7510 = vrsqrt.f32 %v4676_v40  ;;  %v4614_v29 = vmul.f32 0.03125, %v4513_v18  ;;  %v4516_v56 = vpop.xlane.xlu0 %4515  ;;  %6557 = vmatprep.subr.bf16.mxu0 %v6911_v39  ;;  %v4799_v24 = vmul.f32 %v7501_v51, %v10070_v0 }
 0x519   : > { %v4843_v1 = vpack.c.bf16 %v4798_v13, %v4797_v8  ;;  %7512 = vrsqrt.f32 %v4677_v28  ;;  %v4615_v22 = vmul.f32 0.03125, %v4516_v56 }
 0x51a   : > { %v7503_v14 = vpop.eup %7502  ;;  %v4678_v35 = vadd.f32 1e-05, %v4614_v29 }
 0x51b   : > { %6543 = vmatprep.mubr.msk.bf16.mxu0 %vm4375_vm1, %v4843_v1  ;;  %v4519_v61 = vpop.xlane.xlu1 %4518  ;;  %v4800_v60 = vmul.f32 %v7503_v14, %v10077_v2  ;;  %v7505_v57 = vpop.eup %7504  ;;  %v4679_v63 = vadd.f32 1e-05, %v4615_v22  ;;  %6558 = vmatpush3.bf16.msra.mxu0 %v6911_v39 }
 0x51c   : > { %7514 = vrsqrt.f32 %v4678_v35  ;;  %v4616_v10 = vmul.f32 0.03125, %v4519_v61  ;;  %v4801_v30 = vmul.f32 %v7505_v57, %v10098_v46 }
 0x51d   : > { %v4844_v32 = vpack.c.bf16 %v4800_v60, %v4799_v24  ;;  %7516 = vrsqrt.f32 %v4679_v63 }
 0x51e   : > { %v7507_v53 = vpop.eup %7506  ;;  %v4680_v36 = vadd.f32 1e-05, %v4616_v10 }
 0x51f   : > { %6544 = vmatmul.mubr.msk.bf16.gmra.mrb[84].mxu0 %vm4375_vm1, %v4844_v32  ;;  %v4802_v20 = vmul.f32 %v7507_v53, %v10108_v62  ;;  %v7509_v4 = vpop.eup %7508 }
 0x520   : > { %7518 = vrsqrt.f32 %v4680_v36  ;;  %v4803_v2 = vmul.f32 %v7509_v4, %v10094_v6 }
 0x521   : > { %v4845_v0 = vpack.c.bf16 %v4802_v20, %v4801_v30 }
 0x522   : > { %v7511_v45 = vpop.eup %7510 }
 0x523   : > { %6547 = vmatprep.mubr.msk.bf16.mxu0 %vm4375_vm1, %v4845_v0  ;;  %v4804_v27 = vmul.f32 %v7511_v45, %v10102_v12  ;;  %v7513_v48 = vpop.eup %7512 }
 0x524   : > { %v4805_v33 = vmul.f32 %v7513_v48, %v10123_v17 }
 0x525   : > { %v4846_v15 = vpack.c.bf16 %v4804_v27, %v4803_v2 }
 0x526   : > { %v7515_v3 = vpop.eup %7514 }
 0x527   : > { %6548 = vmatmul.mubr.msk.bf16.gmra.mrb[88].mxu0 %vm4375_vm1, %v4846_v15  ;;  %v4806_v46 = vmul.f32 %v7515_v3, %v10132_v31  ;;  %v7517_v62 = vpop.eup %7516 }
 0x528   : > { %v4807_v43 = vmul.f32 %v7517_v62, %v10120_v54 }
 0x529   : > { %v4847_v42 = vpack.c.bf16 %v4806_v46, %v4805_v33 }
 0x52a   : > { %v7519_v26 = vpop.eup %7518 }
 0x52b   : > { %6551 = vmatprep.mubr.msk.bf16.mxu0 %vm4375_vm1, %v4847_v42  ;;  %v4808_v6 = vmul.f32 %v7519_v26, %v10127_v34 }
 0x52d   : > { %v4848_v38 = vpack.c.bf16 %v4808_v6, %v4807_v43 }
 0x52f   : > { %6552 = vmatmul.mubr.msk.bf16.gmra.mrb[92].mxu0 %vm4375_vm1, %v4848_v38 }
 0x53d   : > { %v4522_v12 = vpop.xlane.xlu0 %4521 }
 0x53e   : > { %v4617_v49 = vmul.f32 0.03125, %v4522_v12 }
 0x53f   : > { %v4525_v9 = vpop.xlane.xlu1 %4524 }
 0x540   : > { %v4681_v21 = vadd.f32 1e-05, %v4617_v49  ;;  %v4618_v39 = vmul.f32 0.03125, %v4525_v9 }
 0x541   : > { %v4528_v17 = vpop.xlane.xlu0 %4527 }
 0x542   : > { %7520 = vrsqrt.f32 %v4681_v21  ;;  %v4682_v31 = vadd.f32 1e-05, %v4618_v39  ;;  %v4619_v44 = vmul.f32 0.03125, %v4528_v17 }
 0x543   : > { %v4531_v40 = vpop.xlane.xlu1 %4530 }
 0x544   : > { %7522 = vrsqrt.f32 %v4682_v31  ;;  %v4683_v52 = vadd.f32 1e-05, %v4619_v44  ;;  %v4620_v18 = vmul.f32 0.03125, %v4531_v40 }
 0x546   : > { %v4534_v8 = vpop.xlane.xlu0 %4533  ;;  %7524 = vrsqrt.f32 %v4683_v52  ;;  %v4684_v54 = vadd.f32 1e-05, %v4620_v18 }
 0x547   : > { %v4621_v34 = vmul.f32 0.03125, %v4534_v8 }
 0x548   : > { %v4537_v13 = vpop.xlane.xlu1 %4536  ;;  %7526 = vrsqrt.f32 %v4684_v54 }
 0x549   : > { %v4685_v51 = vadd.f32 1e-05, %v4621_v34  ;;  %v4622_v28 = vmul.f32 0.03125, %v4537_v13 }
 0x54a   : > { %v4540_v29 = vpop.xlane.xlu0 %4539 }
 0x54b   : > { %7528 = vrsqrt.f32 %v4685_v51  ;;  %v4686_v56 = vadd.f32 1e-05, %v4622_v28  ;;  %v4623_v1 = vmul.f32 0.03125, %v4540_v29 }
 0x54c   : > { %v4543_v14 = vpop.xlane.xlu1 %4542  ;;  %v7521_v35 = vpop.eup %7520 }
 0x54d   : > { %7530 = vrsqrt.f32 %v4686_v56  ;;  %v4687_v22 = vadd.f32 1e-05, %v4623_v1  ;;  %v4624_v61 = vmul.f32 0.03125, %v4543_v14  ;;  %v4809_v32 = vmul.f32 %v7521_v35, %v10167_v47 }
 0x54e   : > { %v4546_v24 = vpop.xlane.xlu0 %4545  ;;  %v7523_v60 = vpop.eup %7522 }
 0x54f   : > { %7532 = vrsqrt.f32 %v4687_v22  ;;  %v4688_v57 = vadd.f32 1e-05, %v4624_v61  ;;  %v4625_v63 = vmul.f32 0.03125, %v4546_v24  ;;  %v4810_v53 = vmul.f32 %v7523_v60, %v10173_v37  ;;  %v11280_v60 = vld [vmem:[#allocation83_spill] sm:$0xff] }
 0x550   : > { %v4549_v10 = vpop.xlane.xlu1 %4548  ;;  %v7525_v36 = vpop.eup %7524 }
 0x551   : > { %7534 = vrsqrt.f32 %v4688_v57  ;;  %v4689_v30 = vadd.f32 1e-05, %v4625_v63  ;;  %v4626_v20 = vmul.f32 0.03125, %v4549_v10  ;;  %v4849_v0 = vpack.c.bf16 %v4810_v53, %v4809_v32  ;;  %v11281_v57 = vld [vmem:[#allocation102_spill] sm:$0xff] }
 0x552   : > { %v4552_v4 = vpop.xlane.xlu0 %4551  ;;  %v7527_v45 = vpop.eup %7526  ;;  %v4811_v48 = vmul.f32 %v7525_v36, %v10165_v55 }
 0x553   : > { %7536 = vrsqrt.f32 %v4689_v30  ;;  %v4690_v2 = vadd.f32 1e-05, %v4626_v20  ;;  %v4627_v27 = vmul.f32 0.03125, %v4552_v4  ;;  %v4812_v15 = vmul.f32 %v7527_v45, %v10171_v7  ;;  %6559 = vmatprep.mubr.msk.bf16.mxu0 %vm4375_vm1, %v4849_v0 }
 0x554   : > { %v4555_v3 = vpop.xlane.xlu1 %4554 }
 0x555   : > { %v7529_v47 = vpop.eup %7528  ;;  %7538 = vrsqrt.f32 %v4690_v2  ;;  %v4691_v37 = vadd.f32 1e-05, %v4627_v27  ;;  %v4628_v33 = vmul.f32 0.03125, %v4555_v3  ;;  %v4850_v46 = vpack.c.bf16 %v4812_v15, %v4811_v48 }
 0x556   : > { %v4813_v6 = vmul.f32 %v7529_v47, %v10187_v5 }
 0x557   : > { %v7531_v62 = vpop.eup %7530  ;;  %7540 = vrsqrt.f32 %v4691_v37  ;;  %v4692_v42 = vadd.f32 1e-05, %v4628_v33  ;;  %v4558_v26 = vpop.xlane.xlu0 %4557  ;;  %6560 = vmatmul.mubr.msk.bf16.vlgmr.msra.gmra.mrb[80].mxu0 %vm4375_vm1, %v4850_v46 }
 0x558   : > { %v4629_v43 = vmul.f32 0.03125, %v4558_v26  ;;  %v4814_v55 = vmul.f32 %v7531_v62, %v10194_v23 }
 0x559   : > { %v7533_v7 = vpop.eup %7532  ;;  %7542 = vrsqrt.f32 %v4692_v42  ;;  %v4561_v38 = vpop.xlane.xlu1 %4560 }
 0x55a   : > { %v4693_v12 = vadd.f32 1e-05, %v4629_v43  ;;  %v4630_v49 = vmul.f32 0.03125, %v4561_v38  ;;  %v4851_v9 = vpack.c.bf16 %v4814_v55, %v4813_v6  ;;  %v4815_v17 = vmul.f32 %v7533_v7, %v10184_v11 }
 0x55b   : > { %v7535_v21 = vpop.eup %7534  ;;  %v4564_v39 = vpop.xlane.xlu0 %4563 }
 0x55c   : > { %7544 = vrsqrt.f32 %v4693_v12  ;;  %v4694_v31 = vadd.f32 1e-05, %v4630_v49  ;;  %v4631_v44 = vmul.f32 0.03125, %v4564_v39  ;;  %6563 = vmatprep.mubr.msk.bf16.mxu0 %vm4375_vm1, %v4851_v9  ;;  %v4816_v40 = vmul.f32 %v7535_v21, %v10191_v41 }
 0x55d   : > { %v7537_v5 = vpop.eup %7536  ;;  %v4567_v52 = vpop.xlane.xlu1 %4566 }
 0x55e   : > { %7546 = vrsqrt.f32 %v4694_v31  ;;  %v4695_v23 = vadd.f32 1e-05, %v4631_v44  ;;  %v4632_v18 = vmul.f32 0.03125, %v4567_v52  ;;  %v4852_v8 = vpack.c.bf16 %v4816_v40, %v4815_v17 }
 0x55f   : > { %v7539_v54 = vpop.eup %7538  ;;  %v4817_v11 = vmul.f32 %v7537_v5, %v10207_v50 }
 0x560   : > { %7548 = vrsqrt.f32 %v4695_v23  ;;  %v4696_v34 = vadd.f32 1e-05, %v4632_v18  ;;  %6564 = vmatmul.mubr.msk.bf16.gmra.mrb[84].mxu0 %vm4375_vm1, %v4852_v8  ;;  %v4818_v13 = vmul.f32 %v7539_v54, %v10214_v16 }
 0x561   : > { %v7541_v51 = vpop.eup %7540 }
 0x562   : > { %7550 = vrsqrt.f32 %v4696_v34  ;;  %v4853_v28 = vpack.c.bf16 %v4818_v13, %v4817_v11  ;;  %v4819_v41 = vmul.f32 %v7541_v51, %v10204_v59 }
 0x563   : > { %v7543_v29 = vpop.eup %7542 }
 0x564   : > { %6567 = vmatprep.mubr.msk.bf16.mxu0 %vm4375_vm1, %v4853_v28  ;;  %v4820_v56 = vmul.f32 %v7543_v29, %v10211_v25 }
 0x566   : > { %v7545_v1 = vpop.eup %7544  ;;  %v4854_v14 = vpack.c.bf16 %v4820_v56, %v4819_v41 }
 0x567   : > { %v4821_v50 = vmul.f32 %v7545_v1, %v10227_v58 }
 0x568   : > { %v7547_v35 = vpop.eup %7546  ;;  %6568 = vmatmul.mubr.msk.bf16.gmra.mrb[88].mxu0 %vm4375_vm1, %v4854_v14 }
 0x569   : > { %v4822_v16 = vmul.f32 %v7547_v35, %v10234_v19 }
 0x56a   : > { %v7549_v22 = vpop.eup %7548 }
 0x56b   : > { %v4855_v61 = vpack.c.bf16 %v4822_v16, %v4821_v50  ;;  %v4823_v59 = vmul.f32 %v7549_v22, %v11280_v60 }
 0x56c   : > { %v7551_v24 = vpop.eup %7550 }
 0x56d   : > { %6571 = vmatprep.mubr.msk.bf16.mxu0 %vm4375_vm1, %v4855_v61  ;;  %v4824_v63 = vmul.f32 %v7551_v24, %v11281_v57 }
 0x56f   : > { %v4856_v25 = vpack.c.bf16 %v4824_v63, %v4823_v59 }
 0x571   : > { %6572 = vmatmul.mubr.msk.bf16.gmra.mrb[92].mxu0 %vm4375_vm1, %v4856_v25 }
 0x62a   : > { %v6561_v10 = vpop.f32.mrb[80].mxu0 }
 0x62b   : > { %5455 = vst [vmem:[%s10335_s30 + $0x10] sm:$0xff] %v6561_v10  ;;  %v5342_v58 = vpop.f32.mrb[81].mxu0 }
 0x62c   : > { %5453 = vst [vmem:[%s10335_s30] sm:$0xff] %v5342_v58  ;;  %v6562_v19 = vpop.f32.mrb[82].mxu0 }
 0x62d   : > { %5456 = vst [vmem:[%s10335_s30 + $0x18] sm:$0xff] %v6562_v19  ;;  %v5345_v32 = vpop.f32.mrb[83].mxu0 }
 0x62e   : > { %5454 = vst [vmem:[%s10335_s30 + $0x8] sm:$0xff] %v5345_v32 }
 0x633   : > { %v6565_v53 = vpop.f32.mrb[84].mxu0 }
 0x634   : > { %5459 = vst [vmem:[%s10335_s30 + $0x30] sm:$0xff] %v6565_v53  ;;  %v5358_v36 = vpop.f32.mrb[85].mxu0 }
 0x635   : > { %5457 = vst [vmem:[%s10335_s30 + $0x20] sm:$0xff] %v5358_v36  ;;  %v6566_v30 = vpop.f32.mrb[86].mxu0 }
 0x636   : > { %5460 = vst [vmem:[%s10335_s30 + $0x38] sm:$0xff] %v6566_v30  ;;  %v5361_v20 = vpop.f32.mrb[87].mxu0 }
 0x637   : > { %5458 = vst [vmem:[%s10335_s30 + $0x28] sm:$0xff] %v5361_v20 }
 0x63b   : > { %v6569_v4 = vpop.f32.mrb[88].mxu0 }
 0x63c   : > { %5463 = vst [vmem:[%s10335_s30 + $0x50] sm:$0xff] %v6569_v4  ;;  %v5374_v0 = vpop.f32.mrb[89].mxu0 }
 0x63d   : > { %5461 = vst [vmem:[%s10335_s30 + $0x40] sm:$0xff] %v5374_v0  ;;  %v6570_v45 = vpop.f32.mrb[90].mxu0 }
 0x63e   : > { %5464 = vst [vmem:[%s10335_s30 + $0x58] sm:$0xff] %v6570_v45  ;;  %v5377_v2 = vpop.f32.mrb[91].mxu0 }
 0x63f   : > { %5462 = vst [vmem:[%s10335_s30 + $0x48] sm:$0xff] %v5377_v2 }
 0x644   : > { %v6573_v27 = vpop.f32.mrb[92].mxu0 }
 0x645   : > { %5467 = vst [vmem:[%s10335_s30 + $0x70] sm:$0xff] %v6573_v27  ;;  %v5390_v48 = vpop.f32.mrb[93].mxu0 }
 0x646   : > { %5465 = vst [vmem:[%s10335_s30 + $0x60] sm:$0xff] %v5390_v48  ;;  %v6574_v15 = vpop.f32.mrb[94].mxu0 }
 0x647   : > { %5468 = vst [vmem:[%s10335_s30 + $0x78] sm:$0xff] %v6574_v15  ;;  %v5393_v3 = vpop.f32.mrb[95].mxu0 }
 0x648   : > { %5466 = vst [vmem:[%s10335_s30 + $0x68] sm:$0xff] %v5393_v3 }
 0x649   : > { %7565 = shalt.err (!%p7562_p5)
}
 0x64a   : > { %s7566_s17 = scalar_lea.hbm %s10355_s12, 2048  ;;  %s7570_s0 = scalar_lea.hbm %s10415_s5, 4096 }
 0x64b   : > { %p7567_p6 = scmp.ne.s32.totalorder %s10355_s12, %s7566_s17  ;;  %p7571_p10 = scmp.lt.u32.totalorder %s10355_s12, %s10415_s5 }
 0x64c   : > { %p7572_p11 = scmp.lt.u32.totalorder %s7570_s0, %s7566_s17  ;;  %p7574_p13 = scmp.lt.u32.totalorder %s7566_s17, %s10355_s12 }
 0x64d   : > { %p7568_p7 = pnand %p7567_p6, %p7708_p4 }
 0x64e   : > { %p7573_p12 = por %p7572_p11, %p7571_p10 }
 0x64f   : > { %p7569_p9 = pneg %p7568_p7 }
 0x650   : > { %p7575_p0 = por %p7574_p13, %p7573_p12 }
 0x652   : > { %p7576_p1 = pnand %p7575_p0, %p7569_p9 }
 0x654   : > { %7579 = shalt.err (!%p7576_p1)
}
 0x655   : > { %s7633_s30 = smov 128   ;;  %s7634_s8 = smov 8  }
 0x656   : > { %6687 = dma.vmem_to_hbm [thread:$0]  (%p7708_p4), %s10357_s9, 2048, %s10355_s12, %s10364_s23, %s7633_s30, %s7633_s30, %s7634_s8  }
 0x657 PF: > { %p6693_p2 = scmp.ge.s32.totalorder %s7630_s25, 2  ;;  %s5500_s10 = sand.u32 1, %s7610_s20  }
 0x658   : > { %s5501_s11 = scalar_lea.sflag [#allocation4], %s5500_s10 }
 0x659   : > { %p6690_p3 = pnand %p6693_p2, %p7715_p8 }
 0x65b   : > { %7605 = dma.done.wait (!%p6690_p3), %s5501_s11, 2048  }
 0x65c   : > { %7607 = vsyncadd (!%p6690_p3), %s5501_s11, 4294965248  ;;  %s19_s25 = sadd.s32 1, %s7630_s25   ;;  %s11282_s20 = smov %s7614_s21 }
 0x65d   : > { %p16_p5 = scmp.ge.s32.totalorder %s19_s25, 4   ;;  %s11283_s21 = smov %s7618_s22 }
 0x65e   : > { %s11284_s22 = smov %s7721_s7  ;;  %s11285_s23 = smov %s7626_s24 }
 0x65f   : > { %s11286_s24 = smov %s11288_s27  ;;  %18 = sbr.rel (!%p16_p5) target bundleno = 6 (0x6), region = 81 }
 0x666   :  { %5506 = vsyncpa [#allocation4], 1 }
 0x667   :  { %5508 = vsyncpa [#allocation4 + $0x1], 1 }

// kernel: tpu_custom_call.1
= control target key start
LH: loop header
LB: loop body
LE: loop exit
PB: predicated region body
PF: predicated region fallthrough
CT: control target
= control target key end

     0   :  { %s10404_s0 = inlined_call_operand.<no memory space> [shape: f32[1], index: 0, kind: input, shape index: {}]   ;;  %s10405_s1 = inlined_call_operand.vmem [shape: bf16[2,8,128,16], index: 1, kind: input, shape index: {}]   ;;  %s10406_s2 = inlined_call_operand.vmem [shape: bf16[2,8,128,16], index: 2, kind: input, shape index: {}]   ;;  %s10407_s3 = inlined_call_operand.vmem [shape: bf16[2,4,128,32], index: 3, kind: input, shape index: {}]   ;;  %s10408_s4 = inlined_call_operand.vmem [shape: bf16[4,32,128], index: 4, kind: input, shape index: {}]   ;;  %s10409_s5 = inlined_call_operand.hbm [shape: f32[2,128,128], index: 5, kind: output, shape index: {}]  }
   0x1   :  { %10 = sst [smem:[#allocation2]] %s10404_s0 }
   0x2   :  { %11 = vsyncpa [#allocation4], 0 }
   0x3   :  { %13 = vsyncpa [#allocation4 + $0x1], 0  ;;  %s7662_s20 = smov 0   ;;  %s7664_s21 = smov 0  }
   0x4   :  { %s7666_s22 = smov 0   ;;  %s7668_s23 = smov 0  }
   0x5   :  { %s7670_s24 = smov 0   ;;  %s7672_s25 = smov 0  }
   0x6 LB: > { %s5588_s0 = sadd.s32 4294967295, %s7624_s25   ;;  %s5589_s26 = sadd.s32 4294967294, %s7624_s25   ;;  %s7624_s25 = sphi %s7672_s25, %s19_s25   ;;  %s7620_s24 = sphi %s7670_s24, %s11280_s24   ;;  %s7616_s23 = sphi %s7668_s23, %s11279_s23   ;;  %s7612_s22 = sphi %s7666_s22, %s11278_s22   ;;  %s7608_s21 = sphi %s7664_s21, %s11277_s21   ;;  %s7604_s20 = sphi %s7662_s20, %s11276_s20  }
   0x7   : > { %s31_s27 = sadd.s32 1, %s7620_s24  ;;  %s162_s28 = sadd.s32 1, %s7612_s22 }
   0x8   : > { %p33_p0 = scmp.ge.s32.totalorder %s31_s27, 2  ;;  %p172_p1 = scmp.ne.s32.totalorder %s7612_s22, %s7608_s21 }
   0x9   : > { %p173_p2 = scmp.eq.s32.totalorder %s5588_s0, 1  ;;  %p178_p3 = scmp.ne.s32.totalorder %s7608_s21, %s7604_s20 }
   0xa   : > { %s11282_s27 = smov (%p33_p0, %s31_s27), 0  ;;  %p179_p5 = scmp.eq.s32.totalorder %s5589_s26, 1 }
   0xb   : > { %p7702_p4 = por %p173_p2, %p172_p1  ;;  %s157_s30 = ssub.s32 %s7620_s24, %s11282_s27 }
   0xc   : > { %p5592_p6 = scmp.ge.s32.totalorder %s7624_s25, 1  ;;  %p160_p7 = scmp.eq.s32.totalorder %s157_s30, 0 }
   0xd   : > { %p7709_p8 = por %p179_p5, %p178_p3  ;;  %p232_p9 = scmp.lt.s32.totalorder %s7624_s25, 3 }
   0xe   : > { %s7715_s7 = scalar_select %p160_p7, %s7612_s22, %s162_s28  }
   0xf   : > { %p233_p10 = pnand %p5592_p6, %p232_p9 }
  0x11   : > { %236 = sbr.rel (%p233_p10) target bundleno = 1623 (0x657), region = 40 }
  0x18   : > { %p275_p11 = scmp.lt.s32.totalorder %s7616_s23, 1  ;;  %vm697_vm0 = vcmask 130048   ;;  %s9383_s0 = sld [smem:[#allocation2]]  ;;  %vm4375_vm1 = vcmask 261120  }
  0x19   : > { %s271_s26 = sand.u32 1, %s7608_s21   ;;  %s7626_s14 = smov [#allocation3]  }
  0x1a   : > { %s7719_s8 = scalar_select %p275_p11, %s7616_s23, 1 }
  0x1b   : > { %s5593_s28 = sshll.u32 %s271_s26, 7 }
  0x1c   : > { %s5869_s9 = sshll.u32 %s7719_s8, 9  ;;  %s5871_s16 = sshll.u32 %s7719_s8, 8 }
  0x1d   : > { %s7725_s12 = scalar_lea.vmem %s10406_s2, %s5869_s9  ;;  %s7746_s15 = scalar_lea.vmem %s10405_s1, %s5869_s9 }
  0x1e   : > { %v6738_v0 = vld [vmem:[%s7725_s12] sm:$0xff]   ;;  %v6740_v3 = vld [vmem:[%s7725_s12 + $0x8] sm:$0xff]   ;;  %v6742_v7 = vld [vmem:[%s7725_s12 + $0x10] sm:$0xff]   ;;  %s8872_s19 = scalar_lea.vmem %s10407_s3, %s5871_s16  ;;  %s10329_s30 = scalar_lea.vmem [#allocation3], %s5593_s28 }
  0x1f   : > { %v6739_v1 = vld [vmem:[%s7725_s12 + $0x80] sm:$0xff]   ;;  %6617 = vmatprep.subr.msk.bf16.mxu1 %vm697_vm0, %v6738_v0  ;;  %v723_v2 = vsel %vm697_vm0, %v6738_v0, 0  ;;  %v6741_v5 = vld [vmem:[%s7725_s12 + $0x88] sm:$0xff]   ;;  %v726_v6 = vsel %vm697_vm0, %v6740_v3, 0  ;;  %v6743_v9 = vld [vmem:[%s7725_s12 + $0x90] sm:$0xff]   ;;  %v729_v12 = vsel %vm697_vm0, %v6742_v7, 0 }
  0x20   : > { %6633 = vmatprep.subr.msk.bf16.mxu0 %vm697_vm0, %v6739_v1  ;;  %6106 = vmatpush3.bf16.xpose.msra.mxu1 %v723_v2  ;;  %v1173_v4 = vsel %vm697_vm0, %v6739_v1, 0  ;;  %v1176_v8 = vsel %vm697_vm0, %v6741_v5, 0  ;;  %v6744_v10 = vld [vmem:[%s7725_s12 + $0x18] sm:$0xff]   ;;  %v6754_v13 = vld [vmem:[%s7746_s15] sm:$0xff]   ;;  %v1179_v14 = vsel %vm697_vm0, %v6743_v9, 0  ;;  %v6748_v21 = vld [vmem:[%s7725_s12 + $0x28] sm:$0xff]  }
  0x21   : > { %6170 = vmatpush3.bf16.xpose.msra.mxu0 %v1173_v4  ;;  %6618 = vmatprep.subr.msk.bf16.mxu1 %vm697_vm0, %v6740_v3  ;;  %v6745_v11 = vld [vmem:[%s7725_s12 + $0x98] sm:$0xff]   ;;  %v6755_v15 = vld [vmem:[%s7746_s15 + $0x80] sm:$0xff]   ;;  %v732_v16 = vsel %vm697_vm0, %v6744_v10, 0  ;;  %v6749_v23 = vld [vmem:[%s7725_s12 + $0xa8] sm:$0xff]   ;;  %v738_v24 = vsel %vm697_vm0, %v6748_v21, 0  ;;  %s5872_s8 = sshll.u32 %s7616_s23, 11 }
  0x22   : > { %6634 = vmatprep.subr.msk.bf16.mxu0 %vm697_vm0, %v6741_v5  ;;  %6121 = vmatprep.mubr.msk.bf16.mxu1 %vm697_vm0, %v6754_v13  ;;  %v6746_v17 = vld [vmem:[%s7725_s12 + $0x20] sm:$0xff]   ;;  %v1182_v18 = vsel %vm697_vm0, %v6745_v11, 0  ;;  %v6750_v25 = vld [vmem:[%s7725_s12 + $0x30] sm:$0xff]   ;;  %v1188_v26 = vsel %vm697_vm0, %v6749_v23, 0  ;;  %v6752_v29 = vld [vmem:[%s7725_s12 + $0x38] sm:$0xff]   ;;  %s5485_s9 = sshll.u32 %s10329_s30, 4  ;;  %s10351_s9 = int_to_ptr.vmem [resolvable:$true] %s5485_s9 }
  0x23   : > { %6185 = vmatprep.mubr.msk.bf16.mxu0 %vm697_vm0, %v6755_v15  ;;  %v6747_v19 = vld [vmem:[%s7725_s12 + $0xa0] sm:$0xff]   ;;  %v735_v20 = vsel %vm697_vm0, %v6746_v17, 0  ;;  %v6751_v27 = vld [vmem:[%s7725_s12 + $0xb0] sm:$0xff]   ;;  %v741_v28 = vsel %vm697_vm0, %v6750_v25, 0  ;;  %v6753_v31 = vld [vmem:[%s7725_s12 + $0xb8] sm:$0xff]   ;;  %v744_v32 = vsel %vm697_vm0, %v6752_v29, 0 }
  0x24   : > { %v1185_v22 = vsel %vm697_vm0, %v6747_v19, 0  ;;  %v1191_v30 = vsel %vm697_vm0, %v6751_v27, 0  ;;  %v6757_v33 = vld [vmem:[%s7725_s12 + $0x40] sm:$0xff]   ;;  %v1194_v34 = vsel %vm697_vm0, %v6753_v31, 0  ;;  %v6756_v36 = vld [vmem:[%s7746_s15 + $0x8] sm:$0xff]   ;;  %v6762_v42 = vld [vmem:[%s7746_s15 + $0x10] sm:$0xff]  }
  0x25   : > { %v6759_v35 = vld [vmem:[%s7725_s12 + $0x100] sm:$0xff]   ;;  %v6758_v37 = vld [vmem:[%s7746_s15 + $0x88] sm:$0xff]   ;;  %v948_v39 = vsel %vm697_vm0, %v6757_v33, 0  ;;  %v6765_v43 = vld [vmem:[%s7746_s15 + $0x90] sm:$0xff]   ;;  %s10358_s23 = scalar_lea.sflag [#allocation4], %s271_s26  ;;  %s7546_s13 = scalar_lea.vmem %s10351_s9, 2048 }
  0x26   : > { %v6760_v38 = vld [vmem:[%s7725_s12 + $0x48] sm:$0xff]   ;;  %v1623_v41 = vsel %vm697_vm0, %v6759_v35, 0  ;;  %v6763_v44 = vld [vmem:[%s7746_s15 + $0x18] sm:$0xff]   ;;  %v6764_v45 = vld [vmem:[%s7725_s12 + $0x50] sm:$0xff]   ;;  %p7547_p12 = scmp.ne.s32.totalorder %s10351_s9, %s7546_s13 }
  0x27   : > { %v6761_v40 = vld [vmem:[%s7725_s12 + $0x108] sm:$0xff]   ;;  %v6767_v46 = vld [vmem:[%s7746_s15 + $0x98] sm:$0xff]   ;;  %v951_v47 = vsel %vm697_vm0, %v6760_v38, 0  ;;  %v6766_v48 = vld [vmem:[%s7725_s12 + $0x110] sm:$0xff]   ;;  %v954_v55 = vsel %vm697_vm0, %v6764_v45, 0 }
  0x28   : > { %6108 = vmatpush3.bf16.xpose.msra.mxu1 %v726_v6  ;;  %v1626_v49 = vsel %vm697_vm0, %v6761_v40, 0  ;;  %v6770_v50 = vld [vmem:[%s7746_s15 + $0x20] sm:$0xff]   ;;  %v6768_v52 = vld [vmem:[%s7725_s12 + $0x58] sm:$0xff]   ;;  %v6771_v53 = vld [vmem:[%s7746_s15 + $0x28] sm:$0xff]   ;;  %v1629_v57 = vsel %vm697_vm0, %v6766_v48, 0  ;;  %p7548_p13 = pnand %p7547_p12, %p7702_p4 }
  0x29   : > { %6172 = vmatpush3.bf16.xpose.msra.mxu0 %v1176_v8  ;;  %6619 = vmatprep.subr.msk.bf16.mxu1 %vm697_vm0, %v6742_v7  ;;  %v6773_v51 = vld [vmem:[%s7746_s15 + $0xa0] sm:$0xff]   ;;  %v6775_v54 = vld [vmem:[%s7746_s15 + $0xa8] sm:$0xff]   ;;  %v6769_v56 = vld [vmem:[%s7725_s12 + $0x118] sm:$0xff]   ;;  %v957_v63 = vsel %vm697_vm0, %v6768_v52, 0 }
  0x2a   : > { %6635 = vmatprep.subr.msk.bf16.mxu0 %vm697_vm0, %v6743_v9  ;;  %v6778_v58 = vld [vmem:[%s7746_s15 + $0x30] sm:$0xff]   ;;  %v6772_v60 = vld [vmem:[%s7725_s12 + $0x60] sm:$0xff]   ;;  %v6779_v61 = vld [vmem:[%s7746_s15 + $0x38] sm:$0xff]   ;;  %v1632_v1 = vsel %vm697_vm0, %v6769_v56, 0  ;;  %p7549_p0 = pneg %p7548_p13 }
  0x2b   : > { %v6781_v59 = vld [vmem:[%s7746_s15 + $0xb0] sm:$0xff]   ;;  %v6783_v62 = vld [vmem:[%s7746_s15 + $0xb8] sm:$0xff]   ;;  %v6774_v0 = vld [vmem:[%s7725_s12 + $0x120] sm:$0xff]   ;;  %v960_v7 = vsel %vm697_vm0, %v6772_v60, 0 }
  0x2c   : > { %v6786_v2 = vld [vmem:[%s7746_s15 + $0x40] sm:$0xff]   ;;  %v6776_v4 = vld [vmem:[%s7725_s12 + $0x68] sm:$0xff]   ;;  %v6780_v6 = vld [vmem:[%s7725_s12 + $0x70] sm:$0xff]   ;;  %v1635_v9 = vsel %vm697_vm0, %v6774_v0, 0 }
  0x2d   : > { %v6787_v3 = vld [vmem:[%s7746_s15 + $0x100] sm:$0xff]   ;;  %v6777_v5 = vld [vmem:[%s7725_s12 + $0x128] sm:$0xff]   ;;  %v6782_v8 = vld [vmem:[%s7725_s12 + $0x130] sm:$0xff]  }
  0x2e   : > { %v1641_v13 = vsel %vm697_vm0, %v6782_v8, 0  ;;  %v6785_v15 = vld [vmem:[%s7725_s12 + $0x138] sm:$0xff]  }
  0x30   : > { %6110 = vmatpush3.bf16.xpose.msra.mxu1 %v729_v12  ;;  %v966_v12 = vsel %vm697_vm0, %v6780_v6, 0 }
  0x31   : > { %6174 = vmatpush3.bf16.xpose.msra.mxu0 %v1179_v14  ;;  %6620 = vmatprep.subr.msk.bf16.mxu1 %vm697_vm0, %v6744_v10  ;;  %v963_v10 = vsel %vm697_vm0, %v6776_v4, 0  ;;  %v6784_v14 = vld [vmem:[%s7725_s12 + $0x78] sm:$0xff]  }
  0x32   : > { %6636 = vmatprep.subr.msk.bf16.mxu0 %vm697_vm0, %v6745_v11  ;;  %v1638_v11 = vsel %vm697_vm0, %v6777_v5, 0 }
  0x38   : > { %6112 = vmatpush3.bf16.xpose.msra.mxu1 %v732_v16  ;;  %v969_v16 = vsel %vm697_vm0, %v6784_v14, 0 }
  0x39   : > { %6176 = vmatpush3.bf16.xpose.msra.mxu0 %v1182_v18  ;;  %6621 = vmatprep.subr.msk.bf16.mxu1 %vm697_vm0, %v6746_v17  ;;  %v6789_v17 = vld [vmem:[%s7725_s12 + $0xc0] sm:$0xff]   ;;  %v1644_v18 = vsel %vm697_vm0, %v6785_v15, 0 }
  0x3a   : > { %6637 = vmatprep.subr.msk.bf16.mxu0 %vm697_vm0, %v6747_v19  ;;  %v6791_v19 = vld [vmem:[%s7725_s12 + $0x180] sm:$0xff]  }
  0x40   : > { %6114 = vmatpush3.bf16.xpose.msra.mxu1 %v735_v20  ;;  %v6788_v20 = vld [vmem:[%s7746_s15 + $0x48] sm:$0xff]  }
  0x41   : > { %6178 = vmatpush3.bf16.xpose.msra.mxu0 %v1185_v22  ;;  %6622 = vmatprep.subr.msk.bf16.mxu1 %vm697_vm0, %v6748_v21  ;;  %v6790_v21 = vld [vmem:[%s7746_s15 + $0x108] sm:$0xff]   ;;  %v1398_v22 = vsel %vm697_vm0, %v6789_v17, 0 }
  0x42   : > { %6638 = vmatprep.subr.msk.bf16.mxu0 %vm697_vm0, %v6749_v23  ;;  %v6792_v23 = vld [vmem:[%s7725_s12 + $0xc8] sm:$0xff]  }
  0x48   : > { %6116 = vmatpush3.bf16.xpose.msra.mxu1 %v738_v24  ;;  %v2073_v24 = vsel %vm697_vm0, %v6791_v19, 0 }
  0x49   : > { %6180 = vmatpush3.bf16.xpose.msra.mxu0 %v1188_v26  ;;  %6623 = vmatprep.subr.msk.bf16.mxu1 %vm697_vm0, %v6750_v25  ;;  %v6793_v25 = vld [vmem:[%s7725_s12 + $0x188] sm:$0xff]   ;;  %v6794_v26 = vld [vmem:[%s7746_s15 + $0x50] sm:$0xff]  }
  0x4a   : > { %6639 = vmatprep.subr.msk.bf16.mxu0 %vm697_vm0, %v6751_v27  ;;  %v6797_v27 = vld [vmem:[%s7746_s15 + $0x110] sm:$0xff]  }
  0x50   : > { %6118 = vmatpush3.bf16.xpose.msra.mxu1 %v741_v28  ;;  %v6795_v28 = vld [vmem:[%s7746_s15 + $0x58] sm:$0xff]  }
  0x51   : > { %6182 = vmatpush3.bf16.xpose.msra.mxu0 %v1191_v30  ;;  %6624 = vmatprep.subr.msk.bf16.mxu1 %vm697_vm0, %v6752_v29  ;;  %v6798_v29 = vld [vmem:[%s7746_s15 + $0x118] sm:$0xff]   ;;  %v1401_v30 = vsel %vm697_vm0, %v6792_v23, 0 }
  0x52   : > { %6640 = vmatprep.subr.msk.bf16.mxu0 %vm697_vm0, %v6753_v31  ;;  %v6796_v31 = vld [vmem:[%s7725_s12 + $0xd0] sm:$0xff]  }
  0x58   : > { %6120 = vmatpush3.bf16.xpose.msra.mxu1 %v744_v32  ;;  %v2076_v32 = vsel %vm697_vm0, %v6793_v25, 0 }
  0x59   : > { %6184 = vmatpush3.bf16.xpose.msra.mxu0 %v1194_v34  ;;  %6625 = vmatprep.subr.msk.bf16.mxu1 %vm697_vm0, %v6757_v33  ;;  %v6799_v33 = vld [vmem:[%s7725_s12 + $0x190] sm:$0xff]   ;;  %v6802_v34 = vld [vmem:[%s7746_s15 + $0x60] sm:$0xff]  }
  0x5a   : > { %6649 = vmatprep.subr.msk.bf16.mxu0 %vm697_vm0, %v6759_v35  ;;  %v6805_v35 = vld [vmem:[%s7746_s15 + $0x120] sm:$0xff]  }
  0x5f   : > { %6122 = vmatmul.mubr.msk.bf16.vlgmr.msra.gmra.mrb[0].mxu1 %vm697_vm0, %v6756_v36  ;;  %v6803_v36 = vld [vmem:[%s7746_s15 + $0x68] sm:$0xff]  }
  0x60   : > { %6186 = vmatmul.mubr.msk.bf16.vlgmr.msra.gmra.mrb[0].mxu0 %vm697_vm0, %v6758_v37  ;;  %6138 = vmatpush3.bf16.xpose.msra.mxu1 %v948_v39  ;;  %v6806_v37 = vld [vmem:[%s7746_s15 + $0x128] sm:$0xff]   ;;  %v6800_v39 = vld [vmem:[%s7725_s12 + $0xd8] sm:$0xff]  }
  0x61   : > { %6234 = vmatpush3.bf16.xpose.msra.mxu0 %v1623_v41  ;;  %6626 = vmatprep.subr.msk.bf16.mxu1 %vm697_vm0, %v6760_v38  ;;  %v1404_v38 = vsel %vm697_vm0, %v6796_v31, 0  ;;  %v6801_v41 = vld [vmem:[%s7725_s12 + $0x198] sm:$0xff]  }
  0x62   : > { %6650 = vmatprep.subr.msk.bf16.mxu0 %vm697_vm0, %v6761_v40  ;;  %6125 = vmatprep.mubr.msk.bf16.mxu1 %vm697_vm0, %v6762_v42  ;;  %v2079_v40 = vsel %vm697_vm0, %v6799_v33, 0  ;;  %v6810_v42 = vld [vmem:[%s7746_s15 + $0x70] sm:$0xff]  }
  0x63   : > { %6189 = vmatprep.mubr.msk.bf16.mxu0 %vm697_vm0, %v6765_v43  ;;  %v6813_v43 = vld [vmem:[%s7746_s15 + $0x130] sm:$0xff]  }
  0x67   : > { %6126 = vmatmul.mubr.msk.bf16.gmra.mrb[4].mxu1 %vm697_vm0, %v6763_v44  ;;  %v6811_v44 = vld [vmem:[%s7746_s15 + $0x78] sm:$0xff]  }
  0x68   : > { %6140 = vmatpush3.bf16.xpose.msra.mxu1 %v951_v47  ;;  %6190 = vmatmul.mubr.msk.bf16.gmra.mrb[4].mxu0 %vm697_vm0, %v6767_v46  ;;  %v1407_v46 = vsel %vm697_vm0, %v6800_v39, 0  ;;  %v6804_v47 = vld [vmem:[%s7725_s12 + $0xe0] sm:$0xff]  }
  0x69   : > { %6236 = vmatpush3.bf16.xpose.msra.mxu0 %v1626_v49  ;;  %6627 = vmatprep.subr.msk.bf16.mxu1 %vm697_vm0, %v6764_v45  ;;  %v6814_v45 = vld [vmem:[%s7746_s15 + $0x138] sm:$0xff]   ;;  %v6807_v49 = vld [vmem:[%s7725_s12 + $0x1a0] sm:$0xff]  }
  0x6a   : > { %6651 = vmatprep.subr.msk.bf16.mxu0 %vm697_vm0, %v6766_v48  ;;  %6129 = vmatprep.mubr.msk.bf16.mxu1 %vm697_vm0, %v6770_v50  ;;  %v2082_v48 = vsel %vm697_vm0, %v6801_v41, 0  ;;  %v6818_v50 = vld [vmem:[%s7746_s15 + $0xc0] sm:$0xff]  }
  0x6b   : > { %6193 = vmatprep.mubr.msk.bf16.mxu0 %vm697_vm0, %v6773_v51  ;;  %v6820_v51 = vld [vmem:[%s7746_s15 + $0x180] sm:$0xff]  }
  0x6f   : > { %6130 = vmatmul.mubr.msk.bf16.gmra.mrb[8].mxu1 %vm697_vm0, %v6771_v53  ;;  %v6808_v53 = vld [vmem:[%s7725_s12 + $0xe8] sm:$0xff]  }
  0x70   : > { %6142 = vmatpush3.bf16.xpose.msra.mxu1 %v954_v55  ;;  %6194 = vmatmul.mubr.msk.bf16.gmra.mrb[8].mxu0 %vm697_vm0, %v6775_v54  ;;  %v2085_v54 = vsel %vm697_vm0, %v6807_v49, 0  ;;  %v6809_v55 = vld [vmem:[%s7725_s12 + $0x1a8] sm:$0xff]  }
  0x71   : > { %6238 = vmatpush3.bf16.xpose.msra.mxu0 %v1629_v57  ;;  %6628 = vmatprep.subr.msk.bf16.mxu1 %vm697_vm0, %v6768_v52  ;;  %v1410_v52 = vsel %vm697_vm0, %v6804_v47, 0  ;;  %v6812_v57 = vld [vmem:[%s7725_s12 + $0xf0] sm:$0xff]  }
  0x72   : > { %6652 = vmatprep.subr.msk.bf16.mxu0 %vm697_vm0, %v6769_v56  ;;  %6133 = vmatprep.mubr.msk.bf16.mxu1 %vm697_vm0, %v6778_v58  ;;  %v1413_v56 = vsel %vm697_vm0, %v6808_v53, 0  ;;  %v2088_v58 = vsel %vm697_vm0, %v6809_v55, 0 }
  0x73   : > { %6197 = vmatprep.mubr.msk.bf16.mxu0 %vm697_vm0, %v6781_v59  ;;  %v6815_v59 = vld [vmem:[%s7725_s12 + $0x1b0] sm:$0xff]  }
  0x77   : > { %6134 = vmatmul.mubr.msk.bf16.gmra.mrb[12].mxu1 %vm697_vm0, %v6779_v61  ;;  %v6816_v61 = vld [vmem:[%s7725_s12 + $0xf8] sm:$0xff]  }
  0x78   : > { %6144 = vmatpush3.bf16.xpose.msra.mxu1 %v957_v63  ;;  %6198 = vmatmul.mubr.msk.bf16.gmra.mrb[12].mxu0 %vm697_vm0, %v6783_v62  ;;  %v2091_v62 = vsel %vm697_vm0, %v6815_v59, 0  ;;  %v6817_v63 = vld [vmem:[%s7725_s12 + $0x1b8] sm:$0xff]  }
  0x79   : > { %6240 = vmatpush3.bf16.xpose.msra.mxu0 %v1632_v1  ;;  %6629 = vmatprep.subr.msk.bf16.mxu1 %vm697_vm0, %v6772_v60  ;;  %v1416_v60 = vsel %vm697_vm0, %v6812_v57, 0  ;;  %v6834_v1 = vld [vmem:[%s7725_s12 + $0x140] sm:$0xff]  }
  0x7a   : > { %6653 = vmatprep.subr.msk.bf16.mxu0 %vm697_vm0, %v6774_v0  ;;  %6153 = vmatprep.mubr.msk.bf16.mxu1 %vm697_vm0, %v6786_v2  ;;  %v1419_v0 = vsel %vm697_vm0, %v6816_v61, 0  ;;  %v2094_v2 = vsel %vm697_vm0, %v6817_v63, 0 }
  0x7b   : > { %6249 = vmatprep.mubr.msk.bf16.mxu0 %vm697_vm0, %v6787_v3  ;;  %v6819_v3 = vld [vmem:[%s7746_s15 + $0xc8] sm:$0xff]  }
  0x80   : > { %6146 = vmatpush3.bf16.xpose.msra.mxu1 %v960_v7  ;;  %v1848_v7 = vsel %vm697_vm0, %v6834_v1, 0 }
  0x81   : > { %6242 = vmatpush3.bf16.xpose.msra.mxu0 %v1635_v9  ;;  %6630 = vmatprep.subr.msk.bf16.mxu1 %vm697_vm0, %v6776_v4  ;;  %v6821_v4 = vld [vmem:[%s7746_s15 + $0x188] sm:$0xff]   ;;  %v6823_v9 = vld [vmem:[%s7746_s15 + $0xd8] sm:$0xff]  }
  0x82   : > { %6654 = vmatprep.subr.msk.bf16.mxu0 %vm697_vm0, %v6777_v5  ;;  %v6822_v5 = vld [vmem:[%s7746_s15 + $0xd0] sm:$0xff]  }
  0x88   : > { %6148 = vmatpush3.bf16.xpose.msra.mxu1 %v963_v10  ;;  %v6825_v10 = vld [vmem:[%s7746_s15 + $0x198] sm:$0xff]  }
  0x89   : > { %6244 = vmatpush3.bf16.xpose.msra.mxu0 %v1638_v11  ;;  %6631 = vmatprep.subr.msk.bf16.mxu1 %vm697_vm0, %v6780_v6  ;;  %v6824_v6 = vld [vmem:[%s7746_s15 + $0x190] sm:$0xff]   ;;  %v6826_v11 = vld [vmem:[%s7746_s15 + $0xe0] sm:$0xff]  }
  0x8a   : > { %6655 = vmatprep.subr.msk.bf16.mxu0 %vm697_vm0, %v6782_v8  ;;  %v6835_v8 = vld [vmem:[%s7725_s12 + $0x148] sm:$0xff]  }
  0x90   : > { %6150 = vmatpush3.bf16.xpose.msra.mxu1 %v966_v12  ;;  %v6828_v12 = vld [vmem:[%s7746_s15 + $0x1a0] sm:$0xff]  }
  0x91   : > { %6246 = vmatpush3.bf16.xpose.msra.mxu0 %v1641_v13  ;;  %6632 = vmatprep.subr.msk.bf16.mxu1 %vm697_vm0, %v6784_v14  ;;  %v1851_v13 = vsel %vm697_vm0, %v6835_v8, 0  ;;  %v6836_v14 = vld [vmem:[%s7725_s12 + $0x150] sm:$0xff]  }
  0x92   : > { %6656 = vmatprep.subr.msk.bf16.mxu0 %vm697_vm0, %v6785_v15  ;;  %v6827_v15 = vld [vmem:[%s7746_s15 + $0xe8] sm:$0xff]  }
  0x98   : > { %6152 = vmatpush3.bf16.xpose.msra.mxu1 %v969_v16  ;;  %v6829_v16 = vld [vmem:[%s7746_s15 + $0x1a8] sm:$0xff]  }
  0x99   : > { %6248 = vmatpush3.bf16.xpose.msra.mxu0 %v1644_v18  ;;  %6641 = vmatprep.subr.msk.bf16.mxu1 %vm697_vm0, %v6789_v17  ;;  %v6830_v17 = vld [vmem:[%s7746_s15 + $0xf0] sm:$0xff]  }
  0x9a   : > { %6665 = vmatprep.subr.msk.bf16.mxu0 %vm697_vm0, %v6791_v19  ;;  %v6832_v18 = vld [vmem:[%s7746_s15 + $0x1b0] sm:$0xff]   ;;  %v1854_v19 = vsel %vm697_vm0, %v6836_v14, 0 }
  0x9f   : > { %6154 = vmatmul.mubr.msk.bf16.vlgmr.msra.gmra.mrb[16].mxu1 %vm697_vm0, %v6788_v20  ;;  %v6837_v20 = vld [vmem:[%s7725_s12 + $0x158] sm:$0xff]  }
  0xa0   : > { %6250 = vmatmul.mubr.msk.bf16.vlgmr.msra.gmra.mrb[16].mxu0 %vm697_vm0, %v6790_v21  ;;  %6202 = vmatpush3.bf16.xpose.msra.mxu1 %v1398_v22  ;;  %v6831_v21 = vld [vmem:[%s7746_s15 + $0xf8] sm:$0xff]  }
  0xa1   : > { %6298 = vmatpush3.bf16.xpose.msra.mxu0 %v2073_v24  ;;  %6642 = vmatprep.subr.msk.bf16.mxu1 %vm697_vm0, %v6792_v23  ;;  %v6833_v22 = vld [vmem:[%s7746_s15 + $0x1b8] sm:$0xff]   ;;  %v6842_v23 = vld [vmem:[%s7746_s15 + $0x140] sm:$0xff]   ;;  %v1857_v24 = vsel %vm697_vm0, %v6837_v20, 0 }
  0xa2   : > { %6666 = vmatprep.subr.msk.bf16.mxu0 %vm697_vm0, %v6793_v25  ;;  %6157 = vmatprep.mubr.msk.bf16.mxu1 %vm697_vm0, %v6794_v26  ;;  %v6838_v25 = vld [vmem:[%s7725_s12 + $0x160] sm:$0xff]  }
  0xa3   : > { %6253 = vmatprep.mubr.msk.bf16.mxu0 %vm697_vm0, %v6797_v27  ;;  %v1860_v26 = vsel %vm697_vm0, %v6838_v25, 0  ;;  %v6839_v27 = vld [vmem:[%s7725_s12 + $0x168] sm:$0xff]  }
  0xa7   : > { %6158 = vmatmul.mubr.msk.bf16.gmra.mrb[20].mxu1 %vm697_vm0, %v6795_v28  ;;  %v1863_v28 = vsel %vm697_vm0, %v6839_v27, 0 }
  0xa8   : > { %6204 = vmatpush3.bf16.xpose.msra.mxu1 %v1401_v30  ;;  %6254 = vmatmul.mubr.msk.bf16.gmra.mrb[20].mxu0 %vm697_vm0, %v6798_v29  ;;  %v6840_v29 = vld [vmem:[%s7725_s12 + $0x170] sm:$0xff]  }
  0xa9   : > { %6300 = vmatpush3.bf16.xpose.msra.mxu0 %v2076_v32  ;;  %6643 = vmatprep.subr.msk.bf16.mxu1 %vm697_vm0, %v6796_v31  ;;  %v1866_v30 = vsel %vm697_vm0, %v6840_v29, 0  ;;  %v6841_v31 = vld [vmem:[%s7725_s12 + $0x178] sm:$0xff]  }
  0xaa   : > { %6667 = vmatprep.subr.msk.bf16.mxu0 %vm697_vm0, %v6799_v33  ;;  %6161 = vmatprep.mubr.msk.bf16.mxu1 %vm697_vm0, %v6802_v34  ;;  %v1869_v32 = vsel %vm697_vm0, %v6841_v31, 0  ;;  %v6850_v33 = vld [vmem:[%s7725_s12 + $0x1c0] sm:$0xff]   ;;  %v6843_v34 = vld [vmem:[%s7746_s15 + $0x148] sm:$0xff]  }
  0xab   : > { %6257 = vmatprep.mubr.msk.bf16.mxu0 %vm697_vm0, %v6805_v35  ;;  %v6844_v35 = vld [vmem:[%s7746_s15 + $0x150] sm:$0xff]  }
  0xaf   : > { %6162 = vmatmul.mubr.msk.bf16.gmra.mrb[24].mxu1 %vm697_vm0, %v6803_v36  ;;  %v2298_v36 = vsel %vm697_vm0, %v6850_v33, 0 }
  0xb0   : > { %6206 = vmatpush3.bf16.xpose.msra.mxu1 %v1404_v38  ;;  %6258 = vmatmul.mubr.msk.bf16.gmra.mrb[24].mxu0 %vm697_vm0, %v6806_v37  ;;  %v6851_v37 = vld [vmem:[%s7725_s12 + $0x1c8] sm:$0xff]   ;;  %v6845_v38 = vld [vmem:[%s7746_s15 + $0x158] sm:$0xff]  }
  0xb1   : > { %6302 = vmatpush3.bf16.xpose.msra.mxu0 %v2079_v40  ;;  %6644 = vmatprep.subr.msk.bf16.mxu1 %vm697_vm0, %v6800_v39  ;;  %v6846_v39 = vld [vmem:[%s7746_s15 + $0x160] sm:$0xff]   ;;  %v2301_v40 = vsel %vm697_vm0, %v6851_v37, 0 }
  0xb2   : > { %6668 = vmatprep.subr.msk.bf16.mxu0 %vm697_vm0, %v6801_v41  ;;  %6165 = vmatprep.mubr.msk.bf16.mxu1 %vm697_vm0, %v6810_v42  ;;  %v6852_v41 = vld [vmem:[%s7725_s12 + $0x1d0] sm:$0xff]   ;;  %v6847_v42 = vld [vmem:[%s7746_s15 + $0x168] sm:$0xff]  }
  0xb3   : > { %6261 = vmatprep.mubr.msk.bf16.mxu0 %vm697_vm0, %v6813_v43  ;;  %v6848_v43 = vld [vmem:[%s7746_s15 + $0x170] sm:$0xff]  }
  0xb7   : > { %6166 = vmatmul.mubr.msk.bf16.gmra.mrb[28].mxu1 %vm697_vm0, %v6811_v44  ;;  %v2304_v44 = vsel %vm697_vm0, %v6852_v41, 0 }
  0xb8   : > { %6208 = vmatpush3.bf16.xpose.msra.mxu1 %v1407_v46  ;;  %6262 = vmatmul.mubr.msk.bf16.gmra.mrb[28].mxu0 %vm697_vm0, %v6814_v45  ;;  %v6853_v45 = vld [vmem:[%s7725_s12 + $0x1d8] sm:$0xff]  }
  0xb9   : > { %6304 = vmatpush3.bf16.xpose.msra.mxu0 %v2082_v48  ;;  %6645 = vmatprep.subr.msk.bf16.mxu1 %vm697_vm0, %v6804_v47 }
  0xba   : > { %6669 = vmatprep.subr.msk.bf16.mxu0 %vm697_vm0, %v6807_v49  ;;  %6217 = vmatprep.mubr.msk.bf16.mxu1 %vm697_vm0, %v6818_v50 }
  0xbb   : > { %6313 = vmatprep.mubr.msk.bf16.mxu0 %vm697_vm0, %v6820_v51  ;;  %v6849_v51 = vld [vmem:[%s7746_s15 + $0x178] sm:$0xff]  }
  0xc0   : > { %6210 = vmatpush3.bf16.xpose.msra.mxu1 %v1410_v52 }
  0xc1   : > { %6306 = vmatpush3.bf16.xpose.msra.mxu0 %v2085_v54  ;;  %6646 = vmatprep.subr.msk.bf16.mxu1 %vm697_vm0, %v6808_v53 }
  0xc2   : > { %6670 = vmatprep.subr.msk.bf16.mxu0 %vm697_vm0, %v6809_v55  ;;  %v2307_v55 = vsel %vm697_vm0, %v6853_v45, 0 }
  0xc8   : > { %6212 = vmatpush3.bf16.xpose.msra.mxu1 %v1413_v56  ;;  %v6854_v56 = vld [vmem:[%s7725_s12 + $0x1e0] sm:$0xff]  }
  0xc9   : > { %6308 = vmatpush3.bf16.xpose.msra.mxu0 %v2088_v58  ;;  %6647 = vmatprep.subr.msk.bf16.mxu1 %vm697_vm0, %v6812_v57  ;;  %v6858_v57 = vld [vmem:[%s7746_s15 + $0x1c0] sm:$0xff]  }
  0xca   : > { %6671 = vmatprep.subr.msk.bf16.mxu0 %vm697_vm0, %v6815_v59 }
  0xd0   : > { %6214 = vmatpush3.bf16.xpose.msra.mxu1 %v1416_v60 }
  0xd1   : > { %6310 = vmatpush3.bf16.xpose.msra.mxu0 %v2091_v62  ;;  %6648 = vmatprep.subr.msk.bf16.mxu1 %vm697_vm0, %v6816_v61 }
  0xd2   : > { %6672 = vmatprep.subr.msk.bf16.mxu0 %vm697_vm0, %v6817_v63 }
  0xd8   : > { %6216 = vmatpush3.bf16.xpose.msra.mxu1 %v1419_v0 }
  0xd9   : > { %6312 = vmatpush3.bf16.xpose.msra.mxu0 %v2094_v2  ;;  %6657 = vmatprep.subr.msk.bf16.mxu1 %vm697_vm0, %v6834_v1  ;;  %v2310_v2 = vsel %vm697_vm0, %v6854_v56, 0 }
  0xdf   : > { %6218 = vmatmul.mubr.msk.bf16.vlgmr.msra.gmra.mrb[32].mxu1 %vm697_vm0, %v6819_v3  ;;  %v6855_v3 = vld [vmem:[%s7725_s12 + $0x1e8] sm:$0xff]  }
  0xe0   : > { %6314 = vmatmul.mubr.msk.bf16.vlgmr.msra.gmra.mrb[32].mxu0 %vm697_vm0, %v6821_v4  ;;  %6221 = vmatprep.mubr.msk.bf16.mxu1 %vm697_vm0, %v6822_v5 }
  0xe1   : > { %6317 = vmatprep.mubr.msk.bf16.mxu0 %vm697_vm0, %v6824_v6  ;;  %6266 = vmatpush3.bf16.xpose.msra.mxu1 %v1848_v7 }
  0xe2   : > { %6658 = vmatprep.subr.msk.bf16.mxu1 %vm697_vm0, %v6835_v8 }
  0xe7   : > { %6222 = vmatmul.mubr.msk.bf16.gmra.mrb[36].mxu1 %vm697_vm0, %v6823_v9 }
  0xe8   : > { %6318 = vmatmul.mubr.msk.bf16.gmra.mrb[36].mxu0 %vm697_vm0, %v6825_v10  ;;  %6225 = vmatprep.mubr.msk.bf16.mxu1 %vm697_vm0, %v6826_v11 }
  0xe9   : > { %6321 = vmatprep.mubr.msk.bf16.mxu0 %vm697_vm0, %v6828_v12  ;;  %6268 = vmatpush3.bf16.xpose.msra.mxu1 %v1851_v13  ;;  %v2313_v12 = vsel %vm697_vm0, %v6855_v3, 0  ;;  %v6856_v13 = vld [vmem:[%s7725_s12 + $0x1f0] sm:$0xff]  }
  0xea   : > { %6659 = vmatprep.subr.msk.bf16.mxu1 %vm697_vm0, %v6836_v14 }
  0xef   : > { %6226 = vmatmul.mubr.msk.bf16.gmra.mrb[40].mxu1 %vm697_vm0, %v6827_v15 }
  0xf0   : > { %6322 = vmatmul.mubr.msk.bf16.gmra.mrb[40].mxu0 %vm697_vm0, %v6829_v16  ;;  %6229 = vmatprep.mubr.msk.bf16.mxu1 %vm697_vm0, %v6830_v17 }
  0xf1   : > { %6325 = vmatprep.mubr.msk.bf16.mxu0 %vm697_vm0, %v6832_v18  ;;  %6270 = vmatpush3.bf16.xpose.msra.mxu1 %v1854_v19 }
  0xf2   : > { %6660 = vmatprep.subr.msk.bf16.mxu1 %vm697_vm0, %v6837_v20 }
  0xf7   : > { %6230 = vmatmul.mubr.msk.bf16.gmra.mrb[44].mxu1 %vm697_vm0, %v6831_v21 }
  0xf8   : > { %6326 = vmatmul.mubr.msk.bf16.gmra.mrb[44].mxu0 %vm697_vm0, %v6833_v22  ;;  %6281 = vmatprep.mubr.msk.bf16.mxu1 %vm697_vm0, %v6842_v23  ;;  %v2316_v22 = vsel %vm697_vm0, %v6856_v13, 0  ;;  %v6857_v23 = vld [vmem:[%s7725_s12 + $0x1f8] sm:$0xff]   ;;  %s10349_s12 = scalar_lea.hbm %s10409_s5, %s5872_s8 }
  0xf9   : > { %6272 = vmatpush3.bf16.xpose.msra.mxu1 %v1857_v24  ;;  %v2319_v24 = vsel %vm697_vm0, %v6857_v23, 0 }
  0xfa   : > { %6661 = vmatprep.subr.msk.bf16.mxu1 %vm697_vm0, %v6838_v25  ;;  %v6859_v25 = vld [vmem:[%s7746_s15 + $0x1c8] sm:$0xff]  }
 0x101   : > { %6274 = vmatpush3.bf16.xpose.msra.mxu1 %v1860_v26  ;;  %v6860_v26 = vld [vmem:[%s7746_s15 + $0x1d0] sm:$0xff]  }
 0x102   : > { %6662 = vmatprep.subr.msk.bf16.mxu1 %vm697_vm0, %v6839_v27  ;;  %v6861_v27 = vld [vmem:[%s7746_s15 + $0x1d8] sm:$0xff]  }
 0x109   : > { %6276 = vmatpush3.bf16.xpose.msra.mxu1 %v1863_v28  ;;  %v6862_v28 = vld [vmem:[%s7746_s15 + $0x1e0] sm:$0xff]  }
 0x10a   : > { %6663 = vmatprep.subr.msk.bf16.mxu1 %vm697_vm0, %v6840_v29  ;;  %v6863_v29 = vld [vmem:[%s7746_s15 + $0x1e8] sm:$0xff]  }
 0x111   : > { %6278 = vmatpush3.bf16.xpose.msra.mxu1 %v1866_v30  ;;  %v6864_v30 = vld [vmem:[%s7746_s15 + $0x1f0] sm:$0xff]  }
 0x112   : > { %6664 = vmatprep.subr.msk.bf16.mxu1 %vm697_vm0, %v6841_v31 }
 0x119   : > { %6280 = vmatpush3.bf16.xpose.msra.mxu1 %v1869_v32 }
 0x11a   : > { %6673 = vmatprep.subr.msk.bf16.mxu1 %vm697_vm0, %v6850_v33 }
 0x120   : > { %6282 = vmatmul.mubr.msk.bf16.vlgmr.msra.gmra.mrb[48].mxu1 %vm697_vm0, %v6843_v34 }
 0x121   : > { %6285 = vmatprep.mubr.msk.bf16.mxu1 %vm697_vm0, %v6844_v35  ;;  %6330 = vmatpush3.bf16.xpose.msra.mxu1 %v2298_v36  ;;  %v6865_v36 = vld [vmem:[%s7746_s15 + $0x1f8] sm:$0xff]   ;;  %s7550_s15 = sshll.u32 %s7626_s14, 4  ;;  %s7551_s15 = int_to_ptr.vmem [resolvable:$false] %s7550_s15 }
 0x122   : > { %6674 = vmatprep.subr.msk.bf16.mxu1 %vm697_vm0, %v6851_v37  ;;  %s7552_s16 = scalar_lea.vmem %s7551_s15, 4096  ;;  %p7553_p1 = scmp.lt.s32.totalorder %s10351_s9, %s7551_s15 }
 0x123   : > { %p7554_p2 = scmp.lt.s32.totalorder %s7552_s16, %s7546_s13 }
 0x125   : > { %p7555_p3 = por %p7554_p2, %p7553_p1 }
 0x127   : > { %p7556_p5 = pnand %p7555_p3, %p7549_p0 }
 0x128   : > { %6286 = vmatmul.mubr.msk.bf16.gmra.mrb[52].mxu1 %vm697_vm0, %v6845_v38 }
 0x129   : > { %6289 = vmatprep.mubr.msk.bf16.mxu1 %vm697_vm0, %v6846_v39  ;;  %6332 = vmatpush3.bf16.xpose.msra.mxu1 %v2301_v40 }
 0x12a   : > { %6675 = vmatprep.subr.msk.bf16.mxu1 %vm697_vm0, %v6852_v41 }
 0x130   : > { %6290 = vmatmul.mubr.msk.bf16.gmra.mrb[56].mxu1 %vm697_vm0, %v6847_v42 }
 0x131   : > { %6293 = vmatprep.mubr.msk.bf16.mxu1 %vm697_vm0, %v6848_v43  ;;  %6334 = vmatpush3.bf16.xpose.msra.mxu1 %v2304_v44 }
 0x132   : > { %v8020_v46 = vpop.f32.mrb[0].mxu1  ;;  %6676 = vmatprep.subr.msk.bf16.mxu1 %vm697_vm0, %v6853_v45 }
 0x133   : > { %v8023_v47 = vpop.f32.mrb[0].mxu0  ;;  %2422 = vmax.xlane.f32.xlu0 %v8020_v46  ;;  %v8026_v48 = vpop.f32.mrb[1].mxu1 }
 0x134   : > { %v8028_v49 = vpop.f32.mrb[1].mxu0  ;;  %v8030_v50 = vpop.f32.mrb[2].mxu1 }
 0x135   : > { %v8033_v52 = vpop.f32.mrb[2].mxu0  ;;  %2424 = vmax.xlane.f32.xlu1 %v8030_v50  ;;  %v8036_v53 = vpop.f32.mrb[3].mxu1 }
 0x136   : > { %v8038_v54 = vpop.f32.mrb[3].mxu0 }
 0x137   : > { %2486 = vmax.xlane.f32.xlu0 %v8023_v47 }
 0x138   : > { %6294 = vmatmul.mubr.msk.bf16.gmra.mrb[60].mxu1 %vm697_vm0, %v6849_v51 }
 0x139   : > { %2488 = vmax.xlane.f32.xlu1 %v8033_v52  ;;  %6336 = vmatpush3.bf16.xpose.msra.mxu1 %v2307_v55 }
 0x13a   : > { %v8046_v58 = vpop.f32.mrb[4].mxu1  ;;  %6677 = vmatprep.subr.msk.bf16.mxu1 %vm697_vm0, %v6854_v56  ;;  %6345 = vmatprep.mubr.msk.bf16.mxu1 %vm697_vm0, %v6858_v57 }
 0x13b   : > { %2418 = vmax.xlane.f32.xlu0 %v8026_v48  ;;  %v8050_v59 = vpop.f32.mrb[5].mxu1  ;;  %v8052_v60 = vpop.f32.mrb[4].mxu0 }
 0x13c   : > { %v8055_v61 = vpop.f32.mrb[6].mxu1  ;;  %v8057_v62 = vpop.f32.mrb[5].mxu0 }
 0x13d   : > { %2420 = vmax.xlane.f32.xlu1 %v8036_v53  ;;  %v8060_v63 = vpop.f32.mrb[7].mxu1  ;;  %v8062_v0 = vpop.f32.mrb[6].mxu0 }
 0x13e   : > { %v8064_v1 = vpop.f32.mrb[7].mxu0 }
 0x13f   : > { %2482 = vmax.xlane.f32.xlu0 %v8028_v49 }
 0x141   : > { %2484 = vmax.xlane.f32.xlu1 %v8038_v54  ;;  %6338 = vmatpush3.bf16.xpose.msra.mxu1 %v2310_v2 }
 0x142   : > { %v8070_v4 = vpop.f32.mrb[8].mxu1  ;;  %6678 = vmatprep.subr.msk.bf16.mxu1 %vm697_vm0, %v6855_v3 }
 0x143   : > { %2430 = vmax.xlane.f32.xlu0 %v8046_v58  ;;  %v8074_v5 = vpop.f32.mrb[9].mxu1  ;;  %v8076_v6 = vpop.f32.mrb[8].mxu0 }
 0x144   : > { %v8078_v7 = vpop.f32.mrb[10].mxu1  ;;  %v8080_v8 = vpop.f32.mrb[9].mxu0 }
 0x145   : > { %2432 = vmax.xlane.f32.xlu1 %v8055_v61  ;;  %v8083_v9 = vpop.f32.mrb[11].mxu1  ;;  %v8085_v10 = vpop.f32.mrb[10].mxu0 }
 0x146   : > { %v8087_v11 = vpop.f32.mrb[11].mxu0 }
 0x147   : > { %2494 = vmax.xlane.f32.xlu0 %v8052_v60 }
 0x149   : > { %2496 = vmax.xlane.f32.xlu1 %v8062_v0  ;;  %6340 = vmatpush3.bf16.xpose.msra.mxu1 %v2313_v12 }
 0x14a   : > { %v8093_v14 = vpop.f32.mrb[12].mxu1  ;;  %6679 = vmatprep.subr.msk.bf16.mxu1 %vm697_vm0, %v6856_v13 }
 0x14b   : > { %10695 = vst [vmem:[#allocation6_spill] sm:$0xff] %v8093_v14  ;;  %2426 = vmax.xlane.f32.xlu0 %v8050_v59  ;;  %v8097_v15 = vpop.f32.mrb[13].mxu1  ;;  %v8099_v16 = vpop.f32.mrb[12].mxu0 }
 0x14c   : > { %10696 = vst [vmem:[#allocation7_spill] sm:$0xff] %v8097_v15  ;;  %10697 = vst [vmem:[#allocation8_spill] sm:$0xff] %v8099_v16  ;;  %v8101_v17 = vpop.f32.mrb[14].mxu1  ;;  %v8103_v18 = vpop.f32.mrb[13].mxu0 }
 0x14d   : > { %10698 = vst [vmem:[#allocation9_spill] sm:$0xff] %v8101_v17  ;;  %10699 = vst [vmem:[#allocation10_spill] sm:$0xff] %v8103_v18  ;;  %2428 = vmax.xlane.f32.xlu1 %v8060_v63  ;;  %v8106_v19 = vpop.f32.mrb[15].mxu1  ;;  %v8108_v20 = vpop.f32.mrb[14].mxu0 }
 0x14e   : > { %10700 = vst [vmem:[#allocation11_spill] sm:$0xff] %v8106_v19  ;;  %10701 = vst [vmem:[#allocation12_spill] sm:$0xff] %v8108_v20  ;;  %v8110_v21 = vpop.f32.mrb[15].mxu0 }
 0x14f   : > { %10702 = vst [vmem:[#allocation13_spill] sm:$0xff] %v8110_v21  ;;  %2490 = vmax.xlane.f32.xlu0 %v8057_v62 }
 0x151   : > { %2492 = vmax.xlane.f32.xlu1 %v8064_v1  ;;  %6342 = vmatpush3.bf16.xpose.msra.mxu1 %v2316_v22 }
 0x152   : > { %6680 = vmatprep.subr.msk.bf16.mxu1 %vm697_vm0, %v6857_v23 }
 0x153   : > { %2438 = vmax.xlane.f32.xlu0 %v8070_v4 }
 0x155   : > { %2440 = vmax.xlane.f32.xlu1 %v8078_v7 }
 0x157   : > { %2502 = vmax.xlane.f32.xlu0 %v8076_v6 }
 0x159   : > { %2504 = vmax.xlane.f32.xlu1 %v8085_v10  ;;  %6344 = vmatpush3.bf16.xpose.msra.mxu1 %v2319_v24 }
 0x15b   : > { %2434 = vmax.xlane.f32.xlu0 %v8074_v5 }
 0x15d   : > { %2436 = vmax.xlane.f32.xlu1 %v8083_v9 }
 0x15f   : > { %2498 = vmax.xlane.f32.xlu0 %v8080_v8 }
 0x160   : > { %6346 = vmatmul.mubr.msk.bf16.vlgmr.msra.gmra.mrb[64].mxu1 %vm697_vm0, %v6859_v25 }
 0x161   : > { %2500 = vmax.xlane.f32.xlu1 %v8087_v11  ;;  %6349 = vmatprep.mubr.msk.bf16.mxu1 %vm697_vm0, %v6860_v26 }
 0x163   : > { %2446 = vmax.xlane.f32.xlu0 %v8093_v14 }
 0x165   : > { %2448 = vmax.xlane.f32.xlu1 %v8101_v17 }
 0x167   : > { %2510 = vmax.xlane.f32.xlu0 %v8099_v16 }
 0x168   : > { %6350 = vmatmul.mubr.msk.bf16.gmra.mrb[68].mxu1 %vm697_vm0, %v6861_v27 }
 0x169   : > { %2512 = vmax.xlane.f32.xlu1 %v8108_v20  ;;  %6353 = vmatprep.mubr.msk.bf16.mxu1 %vm697_vm0, %v6862_v28 }
 0x16b   : > { %2442 = vmax.xlane.f32.xlu0 %v8097_v15 }
 0x16d   : > { %2444 = vmax.xlane.f32.xlu1 %v8106_v19 }
 0x16f   : > { %2506 = vmax.xlane.f32.xlu0 %v8103_v18 }
 0x170   : > { %6354 = vmatmul.mubr.msk.bf16.gmra.mrb[72].mxu1 %vm697_vm0, %v6863_v29 }
 0x171   : > { %2508 = vmax.xlane.f32.xlu1 %v8110_v21  ;;  %6357 = vmatprep.mubr.msk.bf16.mxu1 %vm697_vm0, %v6864_v30 }
 0x172   : > { %v8146_v31 = vpop.f32.mrb[16].mxu1 }
 0x173   : > { %v8148_v32 = vpop.f32.mrb[16].mxu0  ;;  %v8150_v33 = vpop.f32.mrb[17].mxu1 }
 0x174   : > { %v8152_v34 = vpop.f32.mrb[17].mxu0  ;;  %2550 = vmax.xlane.f32.xlu0 %v8148_v32  ;;  %v8155_v35 = vpop.f32.mrb[18].mxu1 }
 0x175   : > { %10703 = vst [vmem:[#allocation14_spill] sm:$0xff] %v8155_v35  ;;  %v8158_v37 = vpop.f32.mrb[18].mxu0  ;;  %2454 = vmax.xlane.f32.xlu1 %v8146_v31  ;;  %v8161_v38 = vpop.f32.mrb[19].mxu1 }
 0x176   : > { %10704 = vst [vmem:[#allocation15_spill] sm:$0xff] %v8158_v37  ;;  %v8163_v39 = vpop.f32.mrb[19].mxu0 }
 0x177   : > { %10705 = vst [vmem:[#allocation16_spill] sm:$0xff] %v8163_v39 }
 0x178   : > { %2450 = vmax.xlane.f32.xlu0 %v8150_v33  ;;  %6358 = vmatmul.mubr.msk.bf16.gmra.mrb[76].mxu1 %vm697_vm0, %v6865_v36 }
 0x179   : > { %2456 = vmax.xlane.f32.xlu1 %v8155_v35 }
 0x17a   : > { %v8168_v40 = vpop.f32.mrb[20].mxu1 }
 0x17b   : > { %10706 = vst [vmem:[#allocation17_spill] sm:$0xff] %v8168_v40  ;;  %v8170_v41 = vpop.f32.mrb[21].mxu1  ;;  %v8172_v42 = vpop.f32.mrb[20].mxu0 }
 0x17c   : > { %10707 = vst [vmem:[#allocation18_spill] sm:$0xff] %v8170_v41  ;;  %10708 = vst [vmem:[#allocation19_spill] sm:$0xff] %v8172_v42  ;;  %2546 = vmax.xlane.f32.xlu0 %v8152_v34  ;;  %v8175_v43 = vpop.f32.mrb[22].mxu1  ;;  %v8177_v44 = vpop.f32.mrb[21].mxu0 }
 0x17d   : > { %10709 = vst [vmem:[#allocation20_spill] sm:$0xff] %v8175_v43  ;;  %10710 = vst [vmem:[#allocation21_spill] sm:$0xff] %v8177_v44  ;;  %2552 = vmax.xlane.f32.xlu1 %v8158_v37  ;;  %v8180_v45 = vpop.f32.mrb[23].mxu1  ;;  %v8182_v51 = vpop.f32.mrb[22].mxu0 }
 0x17e   : > { %10711 = vst [vmem:[#allocation22_spill] sm:$0xff] %v8180_v45  ;;  %10712 = vst [vmem:[#allocation23_spill] sm:$0xff] %v8182_v51  ;;  %v8184_v55 = vpop.f32.mrb[23].mxu0 }
 0x17f   : > { %10713 = vst [vmem:[#allocation24_spill] sm:$0xff] %v8184_v55 }
 0x180   : > { %2452 = vmax.xlane.f32.xlu0 %v8161_v38 }
 0x181   : > { %2548 = vmax.xlane.f32.xlu1 %v8163_v39 }
 0x182   : > { %v8188_v56 = vpop.f32.mrb[24].mxu1 }
 0x183   : > { %10714 = vst [vmem:[#allocation25_spill] sm:$0xff] %v8188_v56  ;;  %v8190_v57 = vpop.f32.mrb[25].mxu1  ;;  %v8192_v2 = vpop.f32.mrb[24].mxu0 }
 0x184   : > { %10715 = vst [vmem:[#allocation26_spill] sm:$0xff] %v8190_v57  ;;  %10716 = vst [vmem:[#allocation27_spill] sm:$0xff] %v8192_v2  ;;  %2462 = vmax.xlane.f32.xlu0 %v8168_v40  ;;  %v8195_v3 = vpop.f32.mrb[26].mxu1  ;;  %v8197_v12 = vpop.f32.mrb[25].mxu0 }
 0x185   : > { %10717 = vst [vmem:[#allocation28_spill] sm:$0xff] %v8195_v3  ;;  %10718 = vst [vmem:[#allocation29_spill] sm:$0xff] %v8197_v12  ;;  %2464 = vmax.xlane.f32.xlu1 %v8175_v43  ;;  %v8200_v13 = vpop.f32.mrb[27].mxu1  ;;  %v8202_v22 = vpop.f32.mrb[26].mxu0 }
 0x186   : > { %10719 = vst [vmem:[#allocation30_spill] sm:$0xff] %v8200_v13  ;;  %10720 = vst [vmem:[#allocation31_spill] sm:$0xff] %v8202_v22  ;;  %v8204_v23 = vpop.f32.mrb[27].mxu0 }
 0x187   : > { %10721 = vst [vmem:[#allocation32_spill] sm:$0xff] %v8204_v23 }
 0x188   : > { %2558 = vmax.xlane.f32.xlu0 %v8172_v42 }
 0x189   : > { %2560 = vmax.xlane.f32.xlu1 %v8182_v51 }
 0x18a   : > { %v8208_v24 = vpop.f32.mrb[28].mxu1 }
 0x18b   : > { %10722 = vst [vmem:[#allocation33_spill] sm:$0xff] %v8208_v24  ;;  %v8210_v25 = vpop.f32.mrb[29].mxu1  ;;  %v8212_v26 = vpop.f32.mrb[28].mxu0 }
 0x18c   : > { %10723 = vst [vmem:[#allocation34_spill] sm:$0xff] %v8210_v25  ;;  %10724 = vst [vmem:[#allocation35_spill] sm:$0xff] %v8212_v26  ;;  %2458 = vmax.xlane.f32.xlu0 %v8170_v41  ;;  %v8215_v27 = vpop.f32.mrb[30].mxu1  ;;  %v8217_v28 = vpop.f32.mrb[29].mxu0 }
 0x18d   : > { %10725 = vst [vmem:[#allocation36_spill] sm:$0xff] %v8215_v27  ;;  %10726 = vst [vmem:[#allocation37_spill] sm:$0xff] %v8217_v28  ;;  %2460 = vmax.xlane.f32.xlu1 %v8180_v45  ;;  %v8220_v29 = vpop.f32.mrb[31].mxu1  ;;  %v8222_v30 = vpop.f32.mrb[30].mxu0 }
 0x18e   : > { %10727 = vst [vmem:[#allocation38_spill] sm:$0xff] %v8220_v29  ;;  %10728 = vst [vmem:[#allocation39_spill] sm:$0xff] %v8222_v30  ;;  %v8224_v36 = vpop.f32.mrb[31].mxu0 }
 0x18f   : > { %10729 = vst [vmem:[#allocation40_spill] sm:$0xff] %v8224_v36 }
 0x190   : > { %2554 = vmax.xlane.f32.xlu0 %v8177_v44 }
 0x191   : > { %2556 = vmax.xlane.f32.xlu1 %v8184_v55 }
 0x194   : > { %2470 = vmax.xlane.f32.xlu0 %v8188_v56 }
 0x195   : > { %2472 = vmax.xlane.f32.xlu1 %v8195_v3 }
 0x198   : > { %2566 = vmax.xlane.f32.xlu0 %v8192_v2 }
 0x199   : > { %2568 = vmax.xlane.f32.xlu1 %v8202_v22 }
 0x19c   : > { %2466 = vmax.xlane.f32.xlu0 %v8190_v57 }
 0x19d   : > { %2468 = vmax.xlane.f32.xlu1 %v8200_v13 }
 0x1a0   : > { %2562 = vmax.xlane.f32.xlu0 %v8197_v12 }
 0x1a1   : > { %2564 = vmax.xlane.f32.xlu1 %v8204_v23 }
 0x1a4   : > { %2478 = vmax.xlane.f32.xlu0 %v8208_v24 }
 0x1a5   : > { %2480 = vmax.xlane.f32.xlu1 %v8215_v27 }
 0x1a8   : > { %2574 = vmax.xlane.f32.xlu0 %v8212_v26 }
 0x1a9   : > { %2576 = vmax.xlane.f32.xlu1 %v8222_v30 }
 0x1ac   : > { %2474 = vmax.xlane.f32.xlu0 %v8210_v25 }
 0x1ad   : > { %2476 = vmax.xlane.f32.xlu1 %v8220_v29 }
 0x1b0   : > { %2570 = vmax.xlane.f32.xlu0 %v8217_v28 }
 0x1b1   : > { %2572 = vmax.xlane.f32.xlu1 %v8224_v36 }
 0x1b2   : > { %v8244_v37 = vpop.f32.mrb[32].mxu1 }
 0x1b3   : > { %10730 = vst [vmem:[#allocation41_spill] sm:$0xff] %v8244_v37  ;;  %v8246_v35 = vpop.f32.mrb[32].mxu0  ;;  %v8248_v23 = vpop.f32.mrb[33].mxu1 }
 0x1b4   : > { %10731 = vst [vmem:[#allocation42_spill] sm:$0xff] %v8246_v35  ;;  %10732 = vst [vmem:[#allocation43_spill] sm:$0xff] %v8248_v23  ;;  %2518 = vmax.xlane.f32.xlu0 %v8244_v37  ;;  %v8251_v27 = vpop.f32.mrb[34].mxu1  ;;  %v8253_v26 = vpop.f32.mrb[33].mxu0 }
 0x1b5   : > { %10733 = vst [vmem:[#allocation44_spill] sm:$0xff] %v8251_v27  ;;  %10734 = vst [vmem:[#allocation45_spill] sm:$0xff] %v8253_v26  ;;  %v8255_v30 = vpop.f32.mrb[34].mxu0  ;;  %2520 = vmax.xlane.f32.xlu1 %v8251_v27  ;;  %v8258_v29 = vpop.f32.mrb[35].mxu1 }
 0x1b6   : > { %10735 = vst [vmem:[#allocation46_spill] sm:$0xff] %v8255_v30  ;;  %10736 = vst [vmem:[#allocation47_spill] sm:$0xff] %v8258_v29  ;;  %v8260_v28 = vpop.f32.mrb[35].mxu0 }
 0x1b7   : > { %10737 = vst [vmem:[#allocation48_spill] sm:$0xff] %v8260_v28 }
 0x1b8   : > { %2614 = vmax.xlane.f32.xlu0 %v8246_v35 }
 0x1b9   : > { %2616 = vmax.xlane.f32.xlu1 %v8255_v30 }
 0x1ba   : > { %v8264_v36 = vpop.f32.mrb[36].mxu1 }
 0x1bb   : > { %10738 = vst [vmem:[#allocation49_spill] sm:$0xff] %v8264_v36  ;;  %v8266_v25 = vpop.f32.mrb[37].mxu1  ;;  %v8268_v37 = vpop.f32.mrb[36].mxu0 }
 0x1bc   : > { %10739 = vst [vmem:[#allocation50_spill] sm:$0xff] %v8266_v25  ;;  %10740 = vst [vmem:[#allocation51_spill] sm:$0xff] %v8268_v37  ;;  %2514 = vmax.xlane.f32.xlu0 %v8248_v23  ;;  %v8271_v24 = vpop.f32.mrb[38].mxu1  ;;  %v8273_v12 = vpop.f32.mrb[37].mxu0 }
 0x1bd   : > { %10741 = vst [vmem:[#allocation52_spill] sm:$0xff] %v8271_v24  ;;  %10742 = vst [vmem:[#allocation53_spill] sm:$0xff] %v8273_v12  ;;  %2516 = vmax.xlane.f32.xlu1 %v8258_v29  ;;  %v8276_v27 = vpop.f32.mrb[39].mxu1  ;;  %v8278_v13 = vpop.f32.mrb[38].mxu0 }
 0x1be   : > { %10743 = vst [vmem:[#allocation54_spill] sm:$0xff] %v8276_v27  ;;  %10744 = vst [vmem:[#allocation55_spill] sm:$0xff] %v8278_v13  ;;  %v8280_v35 = vpop.f32.mrb[39].mxu0 }
 0x1bf   : > { %10745 = vst [vmem:[#allocation56_spill] sm:$0xff] %v8280_v35 }
 0x1c0   : > { %2610 = vmax.xlane.f32.xlu0 %v8253_v26  ;;  %v2423_v30 = vpop.xlane.xlu0 %2422 }
 0x1c1   : > { %2612 = vmax.xlane.f32.xlu1 %v8260_v28 }
 0x1c2   : > { %v2425_v57 = vpop.xlane.xlu1 %2424  ;;  %v8284_v22 = vpop.f32.mrb[40].mxu1 }
 0x1c3   : > { %10746 = vst [vmem:[#allocation57_spill] sm:$0xff] %v8284_v22  ;;  %v8286_v23 = vpop.f32.mrb[41].mxu1  ;;  %v8288_v2 = vpop.f32.mrb[40].mxu0 }
 0x1c4   : > { %10747 = vst [vmem:[#allocation58_spill] sm:$0xff] %v8286_v23  ;;  %10748 = vst [vmem:[#allocation59_spill] sm:$0xff] %v8288_v2  ;;  %2526 = vmax.xlane.f32.xlu0 %v8264_v36  ;;  %v2487_v29 = vpop.xlane.xlu0 %2486  ;;  %v8291_v3 = vpop.f32.mrb[42].mxu1 }
 0x1c5   : > { %10749 = vst [vmem:[#allocation60_spill] sm:$0xff] %v8291_v3  ;;  %2528 = vmax.xlane.f32.xlu1 %v8271_v24  ;;  %v8294_v56 = vpop.f32.mrb[43].mxu1  ;;  %v8296_v26 = vpop.f32.mrb[41].mxu0 }
 0x1c6   : > { %10750 = vst [vmem:[#allocation61_spill] sm:$0xff] %v8294_v56  ;;  %10751 = vst [vmem:[#allocation62_spill] sm:$0xff] %v8296_v26  ;;  %v2489_v55 = vpop.xlane.xlu1 %2488  ;;  %v8298_v28 = vpop.f32.mrb[42].mxu0 }
 0x1c7   : > { %10752 = vst [vmem:[#allocation63_spill] sm:$0xff] %v8298_v28  ;;  %v8300_v44 = vpop.f32.mrb[43].mxu0  ;;  %v2709_v14 = vsub.f32 %v8033_v52, %v2489_v55 }
 0x1c8   : > { %10753 = vst [vmem:[#allocation64_spill] sm:$0xff] %v8300_v44  ;;  %2622 = vmax.xlane.f32.xlu0 %v8268_v37  ;;  %v2419_v21 = vpop.xlane.xlu0 %2418 }
 0x1c9   : > { %2624 = vmax.xlane.f32.xlu1 %v8278_v13 }
 0x1ca   : > { %v2421_v36 = vpop.xlane.xlu1 %2420  ;;  %v8304_v18 = vpop.f32.mrb[44].mxu1 }
 0x1cb   : > { %10754 = vst [vmem:[#allocation65_spill] sm:$0xff] %v8304_v18  ;;  %v8306_v45 = vpop.f32.mrb[45].mxu1  ;;  %v8308_v24 = vpop.f32.mrb[44].mxu0 }
 0x1cc   : > { %10755 = vst [vmem:[#allocation66_spill] sm:$0xff] %v8306_v45  ;;  %10756 = vst [vmem:[#allocation67_spill] sm:$0xff] %v8308_v24  ;;  %2522 = vmax.xlane.f32.xlu0 %v8266_v25  ;;  %v2483_v41 = vpop.xlane.xlu0 %2482  ;;  %v8311_v19 = vpop.f32.mrb[46].mxu1 }
 0x1cd   : > { %10757 = vst [vmem:[#allocation68_spill] sm:$0xff] %v8311_v19  ;;  %2524 = vmax.xlane.f32.xlu1 %v8276_v27  ;;  %v8314_v15 = vpop.f32.mrb[47].mxu1  ;;  %v8316_v37 = vpop.f32.mrb[45].mxu0 }
 0x1ce   : > { %10758 = vst [vmem:[#allocation69_spill] sm:$0xff] %v8314_v15  ;;  %10759 = vst [vmem:[#allocation70_spill] sm:$0xff] %v8316_v37  ;;  %v2485_v51 = vpop.xlane.xlu1 %2484  ;;  %v8318_v13 = vpop.f32.mrb[46].mxu0 }
 0x1cf   : > { %10760 = vst [vmem:[#allocation71_spill] sm:$0xff] %v8318_v13  ;;  %v8320_v42 = vpop.f32.mrb[47].mxu0 }
 0x1d0   : > { %10761 = vst [vmem:[#allocation72_spill] sm:$0xff] %v8320_v42  ;;  %2618 = vmax.xlane.f32.xlu0 %v8273_v12  ;;  %v8323_v20 = vpop.xlane.xlu0 %2430 }
 0x1d1   : > { %2620 = vmax.xlane.f32.xlu1 %v8280_v35 }
 0x1d2   : > { %v8326_v25 = vpop.xlane.xlu1 %2432 }
 0x1d4   : > { %2534 = vmax.xlane.f32.xlu0 %v8284_v22  ;;  %v8329_v27 = vpop.xlane.xlu0 %2494 }
 0x1d5   : > { %2536 = vmax.xlane.f32.xlu1 %v8291_v3 }
 0x1d6   : > { %v8332_v16 = vpop.xlane.xlu1 %2496 }
 0x1d8   : > { %2630 = vmax.xlane.f32.xlu0 %v8288_v2  ;;  %v8335_v43 = vpop.xlane.xlu0 %2426  ;;  %v2676_v2 = vsub.f32 %v8020_v46, %v2423_v30 }
 0x1d9   : > { %2632 = vmax.xlane.f32.xlu1 %v8298_v28  ;;  %v2677_v28 = vsub.f32 %v8030_v50, %v2425_v57  ;;  %v2674_v57 = vsub.f32 %v8026_v48, %v2419_v21 }
 0x1da   : > { %v8338_v12 = vpop.xlane.xlu1 %2428  ;;  %v2806_v17 = vmul.f32 1.442695, %v2676_v2  ;;  %v2872_v2 = vmul.f32 1.442695, %v2709_v14 }
 0x1db   : > { %v2802_v55 = vmul.f32 1.442695, %v2674_v57  ;;  %v2713_v57 = vsub.f32 %v8062_v0, %v8332_v16  ;;  %v2679_v16 = vsub.f32 %v8060_v63, %v8338_v12 }
 0x1dc   : > { %2530 = vmax.xlane.f32.xlu0 %v8286_v23  ;;  %v8341_v35 = vpop.xlane.xlu0 %2490  ;;  %6906 = vpow2.f32 %v2806_v17  ;;  %v2707_v17 = vsub.f32 %v8038_v54, %v2485_v51 }
 0x1dd   : > { %2532 = vmax.xlane.f32.xlu1 %v8294_v56  ;;  %v2708_v56 = vsub.f32 %v8023_v47, %v2487_v29  ;;  %v2675_v47 = vsub.f32 %v8036_v53, %v2421_v36  ;;  %v2880_v0 = vmul.f32 1.442695, %v2713_v57  ;;  %v2812_v12 = vmul.f32 1.442695, %v2679_v16 }
 0x1de   : > { %v8344_v22 = vpop.xlane.xlu1 %2492 }
 0x1df   : > { %v2870_v50 = vmul.f32 1.442695, %v2708_v56  ;;  %v2804_v48 = vmul.f32 1.442695, %v2675_v47  ;;  %v2680_v56 = vsub.f32 %v8046_v58, %v8323_v20 }
 0x1e0   : > { %2626 = vmax.xlane.f32.xlu0 %v8296_v26  ;;  %v8347_v3 = vpop.xlane.xlu0 %2438  ;;  %v2808_v26 = vmul.f32 1.442695, %v2677_v28  ;;  %v2706_v28 = vsub.f32 %v8028_v49, %v2483_v41  ;;  %v2868_v49 = vmul.f32 1.442695, %v2707_v17  ;;  %v2681_v41 = vsub.f32 %v8055_v61, %v8326_v25 }
 0x1e1   : > { %2628 = vmax.xlane.f32.xlu1 %v8300_v44  ;;  %v2814_v20 = vmul.f32 1.442695, %v2680_v56 }
 0x1e2   : > { %v8352_v40 = vpop.xlane.xlu1 %2440  ;;  %6908 = vpow2.f32 %v2808_v26  ;;  %v2866_v14 = vmul.f32 1.442695, %v2706_v28  ;;  %v2816_v25 = vmul.f32 1.442695, %v2681_v41 }
 0x1e3   : > { %6910 = vpow2.f32 %v2870_v50  ;;  %v2712_v50 = vsub.f32 %v8052_v60, %v8329_v27 }
 0x1e4   : > { %2542 = vmax.xlane.f32.xlu0 %v8304_v18  ;;  %v8355_v23 = vpop.xlane.xlu0 %2502  ;;  %6912 = vpow2.f32 %v2872_v2  ;;  %v10833_v18 = vld [vmem:[#allocation30_spill] sm:$0xff] }
 0x1e5   : > { %2544 = vmax.xlane.f32.xlu1 %v8311_v19  ;;  %6914 = vpow2.f32 %v2802_v55  ;;  %v2878_v27 = vmul.f32 1.442695, %v2712_v50  ;;  %v2711_v50 = vsub.f32 %v8064_v1, %v8344_v22  ;;  %v2685_v22 = vsub.f32 %v8078_v7, %v8352_v40 }
 0x1e6   : > { %v8360_v39 = vpop.xlane.xlu1 %2504  ;;  %6916 = vpow2.f32 %v2804_v48  ;;  %v8388_v54 = vpop.eup %6906  ;;  %v2678_v48 = vsub.f32 %v8050_v59, %v8335_v43  ;;  %v2716_v40 = vsub.f32 %v8076_v6, %v8355_v23 }
 0x1e7   : > { %10762 = vst [vmem:[#allocation73_spill] sm:$0xff] %v8388_v54  ;;  %6918 = vpow2.f32 %v2866_v14  ;;  %v2876_v1 = vmul.f32 1.442695, %v2711_v50 }
 0x1e8   : > { %2638 = vmax.xlane.f32.xlu0 %v8308_v24  ;;  %v8363_v46 = vpop.xlane.xlu0 %2434  ;;  %6920 = vpow2.f32 %v2868_v49  ;;  %v2810_v43 = vmul.f32 1.442695, %v2678_v48  ;;  %v2886_v23 = vmul.f32 1.442695, %v2716_v40 }
 0x1e9   : > { %2640 = vmax.xlane.f32.xlu1 %v8318_v13  ;;  %6922 = vpow2.f32 %v2814_v20  ;;  %v2710_v20 = vsub.f32 %v8057_v62, %v8341_v35  ;;  %v2684_v35 = vsub.f32 %v8070_v4, %v8347_v3 }
 0x1ea   : > { %v8368_v29 = vpop.xlane.xlu1 %2436  ;;  %6924 = vpow2.f32 %v2816_v25 }
 0x1eb   : > { %6926 = vpow2.f32 %v2878_v27  ;;  %v2874_v62 = vmul.f32 1.442695, %v2710_v20  ;;  %v2822_v7 = vmul.f32 1.442695, %v2684_v35 }
 0x1ec   : > { %2538 = vmax.xlane.f32.xlu0 %v8306_v45  ;;  %v8371_v52 = vpop.xlane.xlu0 %2498  ;;  %v8392_v30 = vpop.eup %6908  ;;  %6928 = vpow2.f32 %v2880_v0  ;;  %v2824_v0 = vmul.f32 1.442695, %v2685_v22 }
 0x1ed   : > { %2540 = vmax.xlane.f32.xlu1 %v8314_v15  ;;  %10764 = vst [vmem:[#allocation75_spill] sm:$0xff] %v8392_v30  ;;  %v8410_v55 = vpop.eup %6910  ;;  %6930 = vpow2.f32 %v2810_v43  ;;  %v2717_v43 = vsub.f32 %v8085_v10, %v8360_v39  ;;  %v2683_v39 = vsub.f32 %v8083_v9, %v8368_v29  ;;  %v2714_v9 = vsub.f32 %v8080_v8, %v8371_v52  ;;  %v10793_v8 = vld [vmem:[#allocation16_spill] sm:$0xff]  ;;  %v10797_v52 = vld [vmem:[#allocation17_spill] sm:$0xff] }
 0x1ee   : > { %v8376_v21 = vpop.xlane.xlu1 %2500  ;;  %10768 = vst [vmem:[#allocation79_spill] sm:$0xff] %v8410_v55  ;;  %v8412_v28 = vpop.eup %6912  ;;  %6932 = vpow2.f32 %v2812_v12 }
 0x1ef   : > { %10769 = vst [vmem:[#allocation80_spill] sm:$0xff] %v8412_v28  ;;  %v8424_v14 = vpop.eup %6914  ;;  %6934 = vpow2.f32 %v2874_v62  ;;  %v2888_v10 = vmul.f32 1.442695, %v2717_v43  ;;  %v2820_v43 = vmul.f32 1.442695, %v2683_v39 }
 0x1f0   : > { %2634 = vmax.xlane.f32.xlu0 %v8316_v37  ;;  %v8379_v53 = vpop.xlane.xlu0 %2446  ;;  %10770 = vst [vmem:[#allocation81_spill] sm:$0xff] %v8424_v14  ;;  %v8428_v49 = vpop.eup %6916  ;;  %6936 = vpow2.f32 %v2876_v1  ;;  %v2682_v1 = vsub.f32 %v8074_v5, %v8363_v46  ;;  %v10814_v37 = vld [vmem:[#allocation13_spill] sm:$0xff] }
 0x1f1   : > { %2636 = vmax.xlane.f32.xlu1 %v8320_v42  ;;  %10772 = vst [vmem:[#allocation83_spill] sm:$0xff] %v8428_v49  ;;  %6938 = vpow2.f32 %v2822_v7 }
 0x1f2   : > { %v8386_v26 = vpop.xlane.xlu1 %2448  ;;  %6940 = vpow2.f32 %v2824_v0  ;;  %v2818_v46 = vmul.f32 1.442695, %v2682_v1 }
 0x1f3   : > { %v8390_v51 = vpop.f32.mrb[48].mxu1  ;;  %6942 = vpow2.f32 %v2886_v23 }
 0x1f4   : > { %10763 = vst [vmem:[#allocation74_spill] sm:$0xff] %v8390_v51  ;;  %3062 = vadd.xlane.f32.xlu0 %v8388_v54  ;;  %v8395_v36 = vpop.xlane.xlu0 %2510  ;;  %v8397_v58 = vpop.f32.mrb[49].mxu1  ;;  %6944 = vpow2.f32 %v2888_v10  ;;  %v2882_v10 = vmul.f32 1.442695, %v2714_v9  ;;  %v10803_v9 = vld [vmem:[#allocation19_spill] sm:$0xff] }
 0x1f5   : > { %10765 = vst [vmem:[#allocation76_spill] sm:$0xff] %v8397_v58  ;;  %3064 = vadd.xlane.f32.xlu1 %v8392_v30  ;;  %v8402_v61 = vpop.f32.mrb[50].mxu1  ;;  %6946 = vpow2.f32 %v2818_v46  ;;  %v10799_v46 = vld [vmem:[#allocation20_spill] sm:$0xff]  ;;  %v10808_v54 = vld [vmem:[#allocation11_spill] sm:$0xff] }
 0x1f6   : > { %10766 = vst [vmem:[#allocation77_spill] sm:$0xff] %v8402_v61  ;;  %v8406_v2 = vpop.xlane.xlu1 %2512  ;;  %v8408_v47 = vpop.f32.mrb[51].mxu1  ;;  %6948 = vpow2.f32 %v2820_v43 }
 0x1f7   : > { %10767 = vst [vmem:[#allocation78_spill] sm:$0xff] %v8408_v47 }
 0x1f8   : > { %3126 = vadd.xlane.f32.xlu0 %v8410_v55  ;;  %v8415_v60 = vpop.xlane.xlu0 %2442 }
 0x1f9   : > { %3128 = vadd.xlane.f32.xlu1 %v8412_v28  ;;  %v8446_v28 = vpop.eup %6918  ;;  %6950 = vpow2.f32 %v2882_v10  ;;  %v10805_v10 = vld [vmem:[#allocation23_spill] sm:$0xff] }
 0x1fa   : > { %v8422_v17 = vpop.xlane.xlu1 %2444  ;;  %10776 = vst [vmem:[#allocation87_spill] sm:$0xff] %v8446_v28  ;;  %v8448_v27 = vpop.eup %6920 }
 0x1fb   : > { %v8426_v56 = vpop.f32.mrb[52].mxu1  ;;  %10777 = vst [vmem:[#allocation88_spill] sm:$0xff] %v8448_v27 }
 0x1fc   : > { %10771 = vst [vmem:[#allocation82_spill] sm:$0xff] %v8426_v56  ;;  %3058 = vadd.xlane.f32.xlu0 %v8424_v14  ;;  %v8431_v41 = vpop.xlane.xlu0 %2506  ;;  %v8433_v59 = vpop.f32.mrb[53].mxu1  ;;  %v10802_v14 = vld [vmem:[#allocation12_spill] sm:$0xff] }
 0x1fd   : > { %10773 = vst [vmem:[#allocation84_spill] sm:$0xff] %v8433_v59  ;;  %3060 = vadd.xlane.f32.xlu1 %v8428_v49  ;;  %v8438_v63 = vpop.f32.mrb[54].mxu1 }
 0x1fe   : > { %10774 = vst [vmem:[#allocation85_spill] sm:$0xff] %v8438_v63  ;;  %v8442_v25 = vpop.xlane.xlu1 %2508  ;;  %v8444_v57 = vpop.f32.mrb[55].mxu1 }
 0x1ff   : > { %10775 = vst [vmem:[#allocation86_spill] sm:$0xff] %v8444_v57 }
 0x200   : > { %3122 = vadd.xlane.f32.xlu0 %v8446_v28  ;;  %v8462_v28 = vpop.eup %6922 }
 0x201   : > { %v8453_v48 = vpop.xlane.xlu0 %2550  ;;  %3124 = vadd.xlane.f32.xlu1 %v8448_v27  ;;  %10778 = vst [vmem:[#allocation89_spill] sm:$0xff] %v8462_v28  ;;  %v8468_v3 = vpop.eup %6924  ;;  %v2715_v27 = vsub.f32 %v8087_v11, %v8376_v21  ;;  %v10795_v11 = vld [vmem:[#allocation6_spill] sm:$0xff] }
 0x202   : > { %v8460_v16 = vpop.xlane.xlu1 %2454  ;;  %10780 = vst [vmem:[#allocation91_spill] sm:$0xff] %v8468_v3  ;;  %v8488_v35 = vpop.eup %6926  ;;  %v2688_v21 = vsub.f32 %v10795_v11, %v8379_v53 }
 0x203   : > { %v8466_v4 = vpop.f32.mrb[56].mxu1  ;;  %10784 = vst [vmem:[#allocation95_spill] sm:$0xff] %v8488_v35  ;;  %v8490_v6 = vpop.eup %6928 }
 0x204   : > { %10779 = vst [vmem:[#allocation90_spill] sm:$0xff] %v8466_v4  ;;  %3070 = vadd.xlane.f32.xlu0 %v8462_v28  ;;  %v8471_v20 = vpop.f32.mrb[57].mxu1  ;;  %10785 = vst [vmem:[#allocation96_spill] sm:$0xff] %v8490_v6  ;;  %v10796_v28 = vld [vmem:[#allocation9_spill] sm:$0xff]  ;;  %v2830_v43 = vmul.f32 1.442695, %v2688_v21 }
 0x205   : > { %10781 = vst [vmem:[#allocation92_spill] sm:$0xff] %v8471_v20  ;;  %v8475_v12 = vpop.xlane.xlu0 %2450  ;;  %3072 = vadd.xlane.f32.xlu1 %v8468_v3  ;;  %v8478_v50 = vpop.f32.mrb[58].mxu1  ;;  %v2689_v49 = vsub.f32 %v10796_v28, %v8386_v26  ;;  %v10809_v21 = vld [vmem:[#allocation18_spill] sm:$0xff] }
 0x206   : > { %10782 = vst [vmem:[#allocation93_spill] sm:$0xff] %v8478_v50  ;;  %v8484_v55 = vpop.xlane.xlu1 %2456  ;;  %v8486_v62 = vpop.f32.mrb[59].mxu1 }
 0x207   : > { %10783 = vst [vmem:[#allocation94_spill] sm:$0xff] %v8486_v62  ;;  %v2832_v28 = vmul.f32 1.442695, %v2689_v49  ;;  %v10807_v49 = vld [vmem:[#allocation7_spill] sm:$0xff] }
 0x208   : > { %3134 = vadd.xlane.f32.xlu0 %v8488_v35  ;;  %v8504_v35 = vpop.eup %6930 }
 0x209   : > { %v8495_v22 = vpop.xlane.xlu0 %2546  ;;  %3136 = vadd.xlane.f32.xlu1 %v8490_v6  ;;  %10786 = vst [vmem:[#allocation97_spill] sm:$0xff] %v8504_v35  ;;  %v8508_v40 = vpop.eup %6932  ;;  %v2884_v6 = vmul.f32 1.442695, %v2715_v27  ;;  %v10801_v27 = vld [vmem:[#allocation8_spill] sm:$0xff] }
 0x20a   : > { %v8502_v3 = vpop.xlane.xlu1 %2552  ;;  %10788 = vst [vmem:[#allocation99_spill] sm:$0xff] %v8508_v40  ;;  %v8528_v1 = vpop.eup %6934  ;;  %v2720_v11 = vsub.f32 %v10801_v27, %v8395_v36  ;;  %v2686_v27 = vsub.f32 %v10807_v49, %v8415_v60 }
 0x20b   : > { %v8506_v7 = vpop.f32.mrb[60].mxu1  ;;  %10792 = vst [vmem:[#allocation103_spill] sm:$0xff] %v8528_v1  ;;  %6952 = vpow2.f32 %v2884_v6 }
 0x20c   : > { %10787 = vst [vmem:[#allocation98_spill] sm:$0xff] %v8506_v7  ;;  %3066 = vadd.xlane.f32.xlu0 %v8504_v35  ;;  %v8511_v5 = vpop.f32.mrb[61].mxu1  ;;  %6954 = vpow2.f32 %v2830_v43  ;;  %v2894_v6 = vmul.f32 1.442695, %v2720_v11  ;;  %v10811_v43 = vld [vmem:[#allocation22_spill] sm:$0xff]  ;;  %v10815_v11 = vld [vmem:[#allocation21_spill] sm:$0xff] }
 0x20d   : > { %10789 = vst [vmem:[#allocation100_spill] sm:$0xff] %v8511_v5  ;;  %v8515_v29 = vpop.xlane.xlu0 %2452  ;;  %3068 = vadd.xlane.f32.xlu1 %v8508_v40  ;;  %v8518_v0 = vpop.f32.mrb[62].mxu1  ;;  %6956 = vpow2.f32 %v2832_v28  ;;  %v2826_v28 = vmul.f32 1.442695, %v2686_v27  ;;  %v10821_v27 = vld [vmem:[#allocation28_spill] sm:$0xff] }
 0x20e   : > { %10790 = vst [vmem:[#allocation101_spill] sm:$0xff] %v8518_v0  ;;  %v8524_v35 = vpop.xlane.xlu1 %2548  ;;  %v8526_v23 = vpop.f32.mrb[63].mxu1  ;;  %6958 = vpow2.f32 %v2894_v6  ;;  %v10817_v6 = vld [vmem:[#allocation24_spill] sm:$0xff] }
 0x20f   : > { %10791 = vst [vmem:[#allocation102_spill] sm:$0xff] %v8526_v23  ;;  %v8532_v40 = vpop.eup %6936 }
 0x210   : > { %10794 = vst [vmem:[#allocation16_spill] sm:$0xff] %v8532_v40  ;;  %3130 = vadd.xlane.f32.xlu0 %v8528_v1  ;;  %v8546_v1 = vpop.eup %6938 }
 0x211   : > { %v8537_v39 = vpop.xlane.xlu0 %2462  ;;  %3132 = vadd.xlane.f32.xlu1 %v8532_v40  ;;  %10798 = vst [vmem:[#allocation6_spill] sm:$0xff] %v8546_v1  ;;  %v8550_v53 = vpop.eup %6940  ;;  %v2721_v40 = vsub.f32 %v10802_v14, %v8406_v2 }
 0x212   : > { %v8544_v30 = vpop.xlane.xlu1 %2464  ;;  %10800 = vst [vmem:[#allocation9_spill] sm:$0xff] %v8550_v53 }
 0x213   : > { %v2896_v14 = vmul.f32 1.442695, %v2721_v40  ;;  %v10813_v40 = vld [vmem:[#allocation10_spill] sm:$0xff] }
 0x214   : > { %3078 = vadd.xlane.f32.xlu0 %v8546_v1  ;;  %v8564_v1 = vpop.eup %6942  ;;  %v2718_v49 = vsub.f32 %v10813_v40, %v8431_v41 }
 0x215   : > { %v8555_v26 = vpop.xlane.xlu0 %2558  ;;  %3080 = vadd.xlane.f32.xlu1 %v8550_v53  ;;  %10804 = vst [vmem:[#allocation17_spill] sm:$0xff] %v8564_v1  ;;  %v8568_v36 = vpop.eup %6944  ;;  %v2687_v53 = vsub.f32 %v10808_v54, %v8422_v17  ;;  %6960 = vpow2.f32 %v2896_v14 }
 0x216   : > { %v8562_v42 = vpop.xlane.xlu1 %2560  ;;  %10806 = vst [vmem:[#allocation20_spill] sm:$0xff] %v8568_v36  ;;  %6962 = vpow2.f32 %v2826_v28  ;;  %v2890_v14 = vmul.f32 1.442695, %v2718_v49 }
 0x217   : > { %v2828_v17 = vmul.f32 1.442695, %v2687_v53 }
 0x218   : > { %3142 = vadd.xlane.f32.xlu0 %v8564_v1  ;;  %v8582_v1 = vpop.eup %6946 }
 0x219   : > { %v8573_v2 = vpop.xlane.xlu0 %2458  ;;  %3144 = vadd.xlane.f32.xlu1 %v8568_v36  ;;  %10810 = vst [vmem:[#allocation8_spill] sm:$0xff] %v8582_v1  ;;  %v8586_v60 = vpop.eup %6948  ;;  %v2719_v36 = vsub.f32 %v10814_v37, %v8442_v25  ;;  %6964 = vpow2.f32 %v2828_v17  ;;  %v10819_v25 = vld [vmem:[#allocation25_spill] sm:$0xff] }
 0x21a   : > { %v8580_v15 = vpop.xlane.xlu1 %2460  ;;  %10812 = vst [vmem:[#allocation12_spill] sm:$0xff] %v8586_v60  ;;  %6966 = vpow2.f32 %v2890_v14 }
 0x21b   : > { %v2892_v37 = vmul.f32 1.442695, %v2719_v36  ;;  %v10824_v36 = vld [vmem:[#allocation27_spill] sm:$0xff] }
 0x21c   : > { %3074 = vadd.xlane.f32.xlu0 %v8582_v1  ;;  %v8600_v1 = vpop.eup %6950 }
 0x21d   : > { %v8591_v54 = vpop.xlane.xlu0 %2554  ;;  %3076 = vadd.xlane.f32.xlu1 %v8586_v60  ;;  %10816 = vst [vmem:[#allocation19_spill] sm:$0xff] %v8600_v1  ;;  %v8604_v41 = vpop.eup %6952  ;;  %6968 = vpow2.f32 %v2892_v37 }
 0x21e   : > { %v8598_v13 = vpop.xlane.xlu1 %2556  ;;  %10818 = vst [vmem:[#allocation23_spill] sm:$0xff] %v8604_v41  ;;  %v8614_v60 = vpop.eup %6954 }
 0x21f   : > { %10820 = vst [vmem:[#allocation7_spill] sm:$0xff] %v8614_v60  ;;  %v8618_v19 = vpop.eup %6956 }
 0x220   : > { %3138 = vadd.xlane.f32.xlu0 %v8600_v1  ;;  %10822 = vst [vmem:[#allocation11_spill] sm:$0xff] %v8618_v19  ;;  %v8628_v40 = vpop.eup %6958 }
 0x221   : > { %v8607_v53 = vpop.xlane.xlu0 %2470  ;;  %3140 = vadd.xlane.f32.xlu1 %v8604_v41  ;;  %10826 = vst [vmem:[#allocation10_spill] sm:$0xff] %v8628_v40  ;;  %v8632_v1 = vpop.eup %6960 }
 0x222   : > { %v8612_v45 = vpop.xlane.xlu1 %2472  ;;  %10828 = vst [vmem:[#allocation13_spill] sm:$0xff] %v8632_v1  ;;  %v8642_v49 = vpop.eup %6962 }
 0x223   : > { %10832 = vst [vmem:[#allocation25_spill] sm:$0xff] %v8642_v49 }
 0x224   : > { %3086 = vadd.xlane.f32.xlu0 %v8614_v60 }
 0x225   : > { %v8621_v28 = vpop.xlane.xlu0 %2566  ;;  %3088 = vadd.xlane.f32.xlu1 %v8618_v19 }
 0x226   : > { %10823 = vst [vmem:[#allocation18_spill] sm:$0xff] %v8621_v28  ;;  %v8626_v17 = vpop.xlane.xlu1 %2568  ;;  %v8646_v28 = vpop.eup %6964 }
 0x227   : > { %10825 = vst [vmem:[#allocation22_spill] sm:$0xff] %v8626_v17  ;;  %10834 = vst [vmem:[#allocation28_spill] sm:$0xff] %v8646_v28  ;;  %v8656_v19 = vpop.eup %6966 }
 0x228   : > { %3150 = vadd.xlane.f32.xlu0 %v8628_v40  ;;  %10838 = vst [vmem:[#allocation104_spill] sm:$0xff] %v8656_v19  ;;  %v8660_v41 = vpop.eup %6968  ;;  %v10843_v40 = vld [vmem:[#allocation36_spill] sm:$0xff] }
 0x229   : > { %v8635_v14 = vpop.xlane.xlu0 %2466  ;;  %3152 = vadd.xlane.f32.xlu1 %v8632_v1 }
 0x22a   : > { %10829 = vst [vmem:[#allocation21_spill] sm:$0xff] %v8635_v14  ;;  %v8640_v60 = vpop.xlane.xlu1 %2468  ;;  %v10839_v14 = vld [vmem:[#allocation32_spill] sm:$0xff] }
 0x22b   : > { %10831 = vst [vmem:[#allocation24_spill] sm:$0xff] %v8640_v60  ;;  %10840 = vst [vmem:[#allocation32_spill] sm:$0xff] %v8660_v41 }
 0x22c   : > { %3082 = vadd.xlane.f32.xlu0 %v8642_v49  ;;  %v10854_v49 = vld [vmem:[#allocation38_spill] sm:$0xff] }
 0x22d   : > { %v8649_v24 = vpop.xlane.xlu0 %2562  ;;  %3084 = vadd.xlane.f32.xlu1 %v8646_v28 }
 0x22e   : > { %10835 = vst [vmem:[#allocation27_spill] sm:$0xff] %v8649_v24  ;;  %v8654_v17 = vpop.xlane.xlu1 %2564  ;;  %v10850_v24 = vld [vmem:[#allocation39_spill] sm:$0xff] }
 0x22f   : > { %10837 = vst [vmem:[#allocation30_spill] sm:$0xff] %v8654_v17 }
 0x230   : > { %3146 = vadd.xlane.f32.xlu0 %v8656_v19 }
 0x231   : > { %v8663_v44 = vpop.xlane.xlu0 %2478  ;;  %3148 = vadd.xlane.f32.xlu1 %v8660_v41 }
 0x232   : > { %10841 = vst [vmem:[#allocation105_spill] sm:$0xff] %v8663_v44  ;;  %v8668_v60 = vpop.xlane.xlu1 %2480 }
 0x233   : > { %v8672_v1 = vpop.f32.mrb[64].mxu1 }
 0x234   : > { %10844 = vst [vmem:[#allocation36_spill] sm:$0xff] %v8672_v1  ;;  %2582 = vmax.xlane.f32.xlu0 %v8390_v51  ;;  %v8675_v37 = vpop.f32.mrb[65].mxu1 }
 0x235   : > { %10845 = vst [vmem:[#allocation106_spill] sm:$0xff] %v8675_v37  ;;  %v8677_v17 = vpop.xlane.xlu0 %2574  ;;  %2584 = vmax.xlane.f32.xlu1 %v8402_v61  ;;  %v8680_v19 = vpop.f32.mrb[66].mxu1 }
 0x236   : > { %10846 = vst [vmem:[#allocation107_spill] sm:$0xff] %v8677_v17  ;;  %10847 = vst [vmem:[#allocation108_spill] sm:$0xff] %v8680_v19  ;;  %v8684_v44 = vpop.xlane.xlu1 %2576  ;;  %v8686_v28 = vpop.f32.mrb[67].mxu1  ;;  %v10862_v17 = vld [vmem:[#allocation40_spill] sm:$0xff] }
 0x237   : > { %10849 = vst [vmem:[#allocation109_spill] sm:$0xff] %v8686_v28 }
 0x238   : > { %2578 = vmax.xlane.f32.xlu0 %v8397_v58 }
 0x239   : > { %v8691_v51 = vpop.xlane.xlu0 %2474  ;;  %2580 = vmax.xlane.f32.xlu1 %v8408_v47 }
 0x23a   : > { %10851 = vst [vmem:[#allocation39_spill] sm:$0xff] %v8691_v51  ;;  %v8696_v19 = vpop.xlane.xlu1 %2476 }
 0x23b   : > { %10853 = vst [vmem:[#allocation110_spill] sm:$0xff] %v8696_v19  ;;  %v8700_v41 = vpop.f32.mrb[68].mxu1  ;;  %v10870_v19 = vld [vmem:[#allocation15_spill] sm:$0xff] }
 0x23c   : > { %10855 = vst [vmem:[#allocation38_spill] sm:$0xff] %v8700_v41  ;;  %2590 = vmax.xlane.f32.xlu0 %v8426_v56  ;;  %v8703_v28 = vpop.f32.mrb[69].mxu1 }
 0x23d   : > { %10856 = vst [vmem:[#allocation111_spill] sm:$0xff] %v8703_v28  ;;  %v8705_v1 = vpop.xlane.xlu0 %2570  ;;  %2592 = vmax.xlane.f32.xlu1 %v8438_v63  ;;  %v8708_v58 = vpop.f32.mrb[70].mxu1  ;;  %v10863_v63 = vld [vmem:[#allocation14_spill] sm:$0xff] }
 0x23e   : > { %10857 = vst [vmem:[#allocation112_spill] sm:$0xff] %v8705_v1  ;;  %10858 = vst [vmem:[#allocation113_spill] sm:$0xff] %v8708_v58  ;;  %v8712_v51 = vpop.xlane.xlu1 %2572  ;;  %v8714_v61 = vpop.f32.mrb[71].mxu1  ;;  %v2693_v28 = vsub.f32 %v10863_v63, %v8484_v55  ;;  %v10864_v58 = vld [vmem:[#allocation41_spill] sm:$0xff] }
 0x23f   : > { %10860 = vst [vmem:[#allocation114_spill] sm:$0xff] %v8712_v51  ;;  %10861 = vst [vmem:[#allocation115_spill] sm:$0xff] %v8714_v61  ;;  %v2741_v61 = vsub.f32 %v10870_v19, %v8502_v3  ;;  %v10876_v3 = vld [vmem:[#allocation43_spill] sm:$0xff]  ;;  %v10880_v1 = vld [vmem:[#allocation45_spill] sm:$0xff] }
 0x240   : > { %2586 = vmax.xlane.f32.xlu0 %v8433_v59  ;;  %v2840_v63 = vmul.f32 1.442695, %v2693_v28 }
 0x241   : > { %v8719_v56 = vpop.xlane.xlu0 %2518  ;;  %2588 = vmax.xlane.f32.xlu1 %v8444_v57  ;;  %v10869_v57 = vsub.f32 %v8146_v31, %v8460_v16  ;;  %v10874_v31 = vld [vmem:[#allocation46_spill] sm:$0xff]  ;;  %v10875_v16 = vsub.f32 %v8148_v32, %v8453_v48  ;;  %v2936_v19 = vmul.f32 1.442695, %v2741_v61 }
 0x242   : > { %v8726_v37 = vpop.xlane.xlu1 %2520 }
 0x243   : > { %10865 = vst [vmem:[#allocation40_spill] sm:$0xff] %v8726_v37  ;;  %v8730_v47 = vpop.f32.mrb[72].mxu1  ;;  %v2838_v59 = vmul.f32 1.442695, %v10869_v57  ;;  %v10871_v37 = vld [vmem:[#allocation42_spill] sm:$0xff]  ;;  %v10877_v57 = vld [vmem:[#allocation47_spill] sm:$0xff] }
 0x244   : > { %10867 = vst [vmem:[#allocation14_spill] sm:$0xff] %v8730_v47  ;;  %2598 = vmax.xlane.f32.xlu0 %v8466_v4  ;;  %v8733_v41 = vpop.f32.mrb[73].mxu1 }
 0x245   : > { %10868 = vst [vmem:[#allocation41_spill] sm:$0xff] %v8733_v41  ;;  %v8738_v51 = vpop.xlane.xlu0 %2614  ;;  %2600 = vmax.xlane.f32.xlu1 %v8478_v50  ;;  %v8741_v55 = vpop.f32.mrb[74].mxu1  ;;  %v2934_v50 = vmul.f32 1.442695, %v10875_v16  ;;  %6970 = vpow2.f32 %v2838_v59  ;;  %v10878_v59 = vsub.f32 %v8150_v33, %v8475_v12  ;;  %v10879_v16 = vsub.f32 %v8161_v38, %v8515_v29  ;;  %v10881_v33 = vld [vmem:[#allocation48_spill] sm:$0xff] }
 0x246   : > { %v8747_v4 = vpop.xlane.xlu1 %2616  ;;  %v8749_v41 = vpop.f32.mrb[75].mxu1  ;;  %6972 = vpow2.f32 %v2840_v63  ;;  %v10883_v38 = vsub.f32 %v10793_v8, %v8524_v35 }
 0x247   : > { %10872 = vst [vmem:[#allocation15_spill] sm:$0xff] %v8747_v4  ;;  %10873 = vst [vmem:[#allocation42_spill] sm:$0xff] %v8749_v41  ;;  %6974 = vpow2.f32 %v2934_v50  ;;  %v2834_v48 = vmul.f32 1.442695, %v10878_v59  ;;  %v2836_v4 = vmul.f32 1.442695, %v10879_v16 }
 0x248   : > { %2594 = vmax.xlane.f32.xlu0 %v8471_v20  ;;  %6976 = vpow2.f32 %v2936_v19  ;;  %v10882_v19 = vsub.f32 %v8152_v34, %v8495_v22  ;;  %v2932_v29 = vmul.f32 1.442695, %v10883_v38  ;;  %v10884_v16 = vld [vmem:[#allocation49_spill] sm:$0xff]  ;;  %v10890_v34 = vld [vmem:[#allocation51_spill] sm:$0xff] }
 0x249   : > { %v8757_v28 = vpop.xlane.xlu0 %2514  ;;  %2596 = vmax.xlane.f32.xlu1 %v8486_v62  ;;  %6978 = vpow2.f32 %v2834_v48  ;;  %v10886_v48 = vld [vmem:[#allocation52_spill] sm:$0xff] }
 0x24a   : > { %v8762_v41 = vpop.xlane.xlu1 %2516  ;;  %v2930_v59 = vmul.f32 1.442695, %v10882_v19  ;;  %6980 = vpow2.f32 %v2836_v4  ;;  %v10888_v4 = vsub.f32 %v10797_v52, %v8537_v39  ;;  %v10889_v19 = vsub.f32 %v10799_v46, %v8544_v30  ;;  %v10896_v52 = vld [vmem:[#allocation50_spill] sm:$0xff] }
 0x24b   : > { %v8766_v20 = vpop.f32.mrb[76].mxu1 }
 0x24c   : > { %2606 = vmax.xlane.f32.xlu0 %v8506_v7  ;;  %v8769_v32 = vpop.f32.mrb[77].mxu1  ;;  %6982 = vpow2.f32 %v2930_v59  ;;  %v2846_v35 = vmul.f32 1.442695, %v10888_v4  ;;  %v2848_v38 = vmul.f32 1.442695, %v10889_v19  ;;  %v10892_v59 = vld [vmem:[#allocation55_spill] sm:$0xff]  ;;  %v10895_v4 = vsub.f32 %v10805_v10, %v8562_v42 }
 0x24d   : > { %v8774_v61 = vpop.xlane.xlu0 %2610  ;;  %2608 = vmax.xlane.f32.xlu1 %v8518_v0  ;;  %v8777_v63 = vpop.f32.mrb[78].mxu1  ;;  %6984 = vpow2.f32 %v2932_v29  ;;  %v10894_v29 = vsub.f32 %v10803_v9, %v8555_v26  ;;  %v10898_v9 = vld [vmem:[#allocation54_spill] sm:$0xff]  ;;  %v10900_v42 = vsub.f32 %v10809_v21, %v8573_v2  ;;  %v10902_v26 = vld [vmem:[#allocation53_spill] sm:$0xff]  ;;  %v10905_v21 = vld [vmem:[#allocation56_spill] sm:$0xff] }
 0x24e   : > { %v8784_v62 = vpop.xlane.xlu1 %2612  ;;  %v8786_v50 = vpop.f32.mrb[79].mxu1  ;;  %6986 = vpow2.f32 %v2846_v35  ;;  %v2944_v19 = vmul.f32 1.442695, %v10895_v4  ;;  %v10901_v4 = vsub.f32 %v10811_v43, %v8580_v15  ;;  %v10907_v15 = vsub.f32 %v10815_v11, %v8591_v54  ;;  %v10911_v54 = vld [vmem:[#allocation60_spill] sm:$0xff] }
 0x24f   : > { %v2942_v30 = vmul.f32 1.442695, %v10894_v29  ;;  %6988 = vpow2.f32 %v2848_v38  ;;  %v2842_v10 = vmul.f32 1.442695, %v10900_v42  ;;  %v10908_v42 = vsub.f32 %v10817_v6, %v8598_v13 }
 0x250   : > { %2602 = vmax.xlane.f32.xlu0 %v8511_v5  ;;  %v8804_v5 = vpop.eup %6970  ;;  %v2844_v7 = vmul.f32 1.442695, %v10901_v4  ;;  %v2938_v43 = vmul.f32 1.442695, %v10907_v15  ;;  %v10913_v13 = vsub.f32 %v10819_v25, %v8607_v53 }
 0x251   : > { %v8794_v0 = vpop.xlane.xlu0 %2526  ;;  %2604 = vmax.xlane.f32.xlu1 %v8526_v23  ;;  %10885 = vst [vmem:[#allocation46_spill] sm:$0xff] %v8804_v5  ;;  %v8808_v22 = vpop.eup %6972  ;;  %6990 = vpow2.f32 %v2942_v30  ;;  %v2940_v4 = vmul.f32 1.442695, %v10908_v42  ;;  %v10914_v42 = vsub.f32 %v10821_v27, %v8612_v45  ;;  %v10921_v45 = vld [vmem:[#allocation18_spill] sm:$0xff] }
 0x252   : > { %v8802_v12 = vpop.xlane.xlu1 %2528  ;;  %10887 = vst [vmem:[#allocation43_spill] sm:$0xff] %v8808_v22  ;;  %6992 = vpow2.f32 %v2944_v19  ;;  %v2854_v6 = vmul.f32 1.442695, %v10913_v13  ;;  %v10922_v27 = vsub.f32 %v10824_v36, %v10921_v45 }
 0x253   : > { %6994 = vpow2.f32 %v2842_v10 }
 0x254   : > { %3094 = vadd.xlane.f32.xlu0 %v8804_v5  ;;  %v8824_v5 = vpop.eup %6974  ;;  %6996 = vpow2.f32 %v2844_v7  ;;  %v6867_v7 = vld [vmem:[%s8872_s19 + $0x8] sm:$0xff]  }
 0x255   : > { %v8814_v8 = vpop.xlane.xlu0 %2622  ;;  %3096 = vadd.xlane.f32.xlu1 %v8808_v22  ;;  %10891 = vst [vmem:[#allocation47_spill] sm:$0xff] %v8824_v5  ;;  %v8828_v39 = vpop.eup %6976  ;;  %6998 = vpow2.f32 %v2938_v43 }
 0x256   : > { %v8822_v23 = vpop.xlane.xlu1 %2624  ;;  %10893 = vst [vmem:[#allocation45_spill] sm:$0xff] %v8828_v39  ;;  %v8844_v35 = vpop.eup %6978  ;;  %7000 = vpow2.f32 %v2940_v4  ;;  %v6868_v4 = vld [vmem:[%s8872_s19 + $0x10] sm:$0xff]  }
 0x257   : > { %10897 = vst [vmem:[#allocation48_spill] sm:$0xff] %v8844_v35  ;;  %v8848_v29 = vpop.eup %6980  ;;  %7002 = vpow2.f32 %v2854_v6 }
 0x258   : > { %3190 = vadd.xlane.f32.xlu0 %v8824_v5  ;;  %10899 = vst [vmem:[#allocation49_spill] sm:$0xff] %v8848_v29  ;;  %v8865_v30 = vpop.eup %6982  ;;  %v6866_v5 = vld [vmem:[%s8872_s19] sm:$0xff]  }
 0x259   : > { %v8834_v46 = vpop.xlane.xlu0 %2522  ;;  %3192 = vadd.xlane.f32.xlu1 %v8828_v39  ;;  %10904 = vst [vmem:[#allocation51_spill] sm:$0xff] %v8865_v30  ;;  %v8874_v19 = vpop.eup %6984  ;;  %6361 = vmatprep.subr.bf16.mxu0 %v6866_v5 }
 0x25a   : > { %v8842_v22 = vpop.xlane.xlu1 %2524  ;;  %10906 = vst [vmem:[#allocation55_spill] sm:$0xff] %v8874_v19  ;;  %v8891_v11 = vpop.eup %6986  ;;  %6362 = vmatpush3.bf16.msra.mxu0 %v6866_v5  ;;  %v10919_v5 = vld [vmem:[#allocation63_spill] sm:$0xff] }
 0x25b   : > { %10910 = vst [vmem:[#allocation50_spill] sm:$0xff] %v8891_v11  ;;  %v8895_v15 = vpop.eup %6988  ;;  %6363 = vmatprep.subr.bf16.mxu0 %v6867_v7 }
 0x25c   : > { %3090 = vadd.xlane.f32.xlu0 %v8844_v35  ;;  %10912 = vst [vmem:[#allocation54_spill] sm:$0xff] %v8895_v15  ;;  %v2856_v35 = vmul.f32 1.442695, %v10914_v42  ;;  %v8912_v25 = vpop.eup %6990  ;;  %v2950_v42 = vmul.f32 1.442695, %v10922_v27 }
 0x25d   : > { %v8854_v38 = vpop.xlane.xlu0 %2618  ;;  %3092 = vadd.xlane.f32.xlu1 %v8848_v29  ;;  %v10909_v29 = vld [vmem:[#allocation57_spill] sm:$0xff]  ;;  %v8916_v13 = vpop.eup %6992 }
 0x25e   : > { %v8862_v39 = vpop.xlane.xlu1 %2620  ;;  %10918 = vst [vmem:[#allocation57_spill] sm:$0xff] %v8912_v25  ;;  %10920 = vst [vmem:[#allocation60_spill] sm:$0xff] %v8916_v13  ;;  %6364 = vmatpush3.bf16.msra.mxu0 %v6867_v7  ;;  %7004 = vpow2.f32 %v2856_v35  ;;  %v8933_v45 = vpop.eup %6994  ;;  %v10930_v7 = vld [vmem:[#allocation61_spill] sm:$0xff] }
 0x25f   : > { %10903 = vst [vmem:[#allocation52_spill] sm:$0xff] %v8862_v39  ;;  %6365 = vmatprep.subr.bf16.mxu0 %v6868_v4  ;;  %v8937_v27 = vpop.eup %6996  ;;  %v6869_v35 = vld [vmem:[%s8872_s19 + $0x18] sm:$0xff]   ;;  %7006 = vpow2.f32 %v2950_v42 }
 0x260   : > { %3186 = vadd.xlane.f32.xlu0 %v8865_v30  ;;  %v10923_v30 = vld [vmem:[#allocation31_spill] sm:$0xff]  ;;  %v10948_v42 = vld [vmem:[#allocation65_spill] sm:$0xff] }
 0x261   : > { %v8883_v2 = vpop.xlane.xlu0 %2534  ;;  %3188 = vadd.xlane.f32.xlu1 %v8874_v19  ;;  %10929 = vst [vmem:[#allocation31_spill] sm:$0xff] %v8933_v45 }
 0x262   : > { %v8889_v39 = vpop.xlane.xlu1 %2536  ;;  %6366 = vmatpush3.bf16.msra.mxu0 %v6868_v4 }
 0x263   : > { %6367 = vmatprep.subr.bf16.mxu0 %v6869_v35 }
 0x264   : > { %3102 = vadd.xlane.f32.xlu0 %v8891_v11 }
 0x265   : > { %v8905_v19 = vpop.xlane.xlu0 %2630  ;;  %3104 = vadd.xlane.f32.xlu1 %v8895_v15  ;;  %v10924_v15 = vld [vmem:[#allocation22_spill] sm:$0xff] }
 0x266   : > { %10915 = vst [vmem:[#allocation53_spill] sm:$0xff] %v8905_v19  ;;  %v8910_v53 = vpop.xlane.xlu1 %2632  ;;  %v10925_v11 = vsub.f32 %v10923_v30, %v10924_v15  ;;  %10931 = vst [vmem:[#allocation22_spill] sm:$0xff] %v8937_v27  ;;  %v10932_v30 = vld [vmem:[#allocation26_spill] sm:$0xff]  ;;  %6368 = vmatpush3.bf16.msra.mxu0 %v6869_v35 }
 0x267   : > { %10917 = vst [vmem:[#allocation56_spill] sm:$0xff] %v8910_v53  ;;  %v10935_v53 = vld [vmem:[#allocation24_spill] sm:$0xff] }
 0x268   : > { %3198 = vadd.xlane.f32.xlu0 %v8912_v25  ;;  %v2952_v19 = vmul.f32 1.442695, %v10925_v11  ;;  %v10933_v11 = vld [vmem:[#allocation21_spill] sm:$0xff] }
 0x269   : > { %v8926_v10 = vpop.xlane.xlu0 %2530  ;;  %3200 = vadd.xlane.f32.xlu1 %v8916_v13  ;;  %v10934_v15 = vsub.f32 %v10932_v30, %v10933_v11  ;;  %v10936_v13 = vsub.f32 %v10833_v18, %v10935_v53  ;;  %v8954_v11 = vpop.eup %6998  ;;  %v10943_v18 = vld [vmem:[#allocation29_spill] sm:$0xff]  ;;  %v10944_v53 = vld [vmem:[#allocation27_spill] sm:$0xff] }
 0x26a   : > { %10926 = vst [vmem:[#allocation63_spill] sm:$0xff] %v8926_v10  ;;  %v8931_v36 = vpop.xlane.xlu1 %2532  ;;  %7008 = vpow2.f32 %v2952_v19  ;;  %10940 = vst [vmem:[#allocation21_spill] sm:$0xff] %v8954_v11  ;;  %v6870_v19 = vld [vmem:[%s8872_s19 + $0x20] sm:$0xff]  }
 0x26b   : > { %10928 = vst [vmem:[#allocation18_spill] sm:$0xff] %v8931_v36  ;;  %v2850_v25 = vmul.f32 1.442695, %v10934_v15  ;;  %v2852_v10 = vmul.f32 1.442695, %v10936_v13  ;;  %v8958_v15 = vpop.eup %7000  ;;  %v10945_v13 = vsub.f32 %v10943_v18, %v10944_v53  ;;  %v10946_v36 = vld [vmem:[#allocation30_spill] sm:$0xff]  ;;  %6369 = vmatprep.subr.bf16.mxu0 %v6870_v19 }
 0x26c   : > { %3098 = vadd.xlane.f32.xlu0 %v8933_v45  ;;  %10942 = vst [vmem:[#allocation24_spill] sm:$0xff] %v8958_v15  ;;  %v8975_v18 = vpop.eup %7002  ;;  %v6871_v53 = vld [vmem:[%s8872_s19 + $0x28] sm:$0xff]   ;;  %6370 = vmatpush3.bf16.msra.mxu0 %v6870_v19 }
 0x26d   : > { %v8947_v43 = vpop.xlane.xlu0 %2626  ;;  %3100 = vadd.xlane.f32.xlu1 %v8937_v27  ;;  %v2946_v45 = vmul.f32 1.442695, %v10945_v13  ;;  %7010 = vpow2.f32 %v2850_v25  ;;  %v10947_v27 = vsub.f32 %v10839_v14, %v10946_v36  ;;  %10950 = vst [vmem:[#allocation27_spill] sm:$0xff] %v8975_v18  ;;  %v8980_v14 = vpop.eup %7004  ;;  %v10953_v36 = vld [vmem:[#allocation33_spill] sm:$0xff]  ;;  %6371 = vmatprep.subr.bf16.mxu0 %v6871_v53  ;;  %v10977_v25 = vld [vmem:[#allocation70_spill] sm:$0xff] }
 0x26e   : > { %10937 = vst [vmem:[#allocation61_spill] sm:$0xff] %v8947_v43  ;;  %v8952_v30 = vpop.xlane.xlu1 %2628  ;;  %7012 = vpow2.f32 %v2852_v10  ;;  %10952 = vst [vmem:[#allocation30_spill] sm:$0xff] %v8980_v14  ;;  %v10956_v10 = vsub.f32 %v10843_v40, %v8668_v60  ;;  %v10963_v40 = vld [vmem:[#allocation35_spill] sm:$0xff] }
 0x26f   : > { %10939 = vst [vmem:[#allocation26_spill] sm:$0xff] %v8952_v30  ;;  %v2948_v43 = vmul.f32 1.442695, %v10947_v27  ;;  %v10954_v27 = vld [vmem:[#allocation105_spill] sm:$0xff]  ;;  %7014 = vpow2.f32 %v2946_v45  ;;  %v10967_v45 = vld [vmem:[#allocation66_spill] sm:$0xff] }
 0x270   : > { %3194 = vadd.xlane.f32.xlu0 %v8954_v11  ;;  %v10955_v13 = vsub.f32 %v10953_v36, %v10954_v27  ;;  %v2864_v30 = vmul.f32 1.442695, %v10956_v10  ;;  %v8996_v36 = vpop.eup %7006  ;;  %v6872_v27 = vld [vmem:[%s8872_s19 + $0x30] sm:$0xff]   ;;  %6372 = vmatpush3.bf16.msra.mxu0 %v6871_v53  ;;  %v10969_v53 = vld [vmem:[#allocation69_spill] sm:$0xff] }
 0x271   : > { %v8968_v6 = vpop.xlane.xlu0 %2542  ;;  %3196 = vadd.xlane.f32.xlu1 %v8958_v15  ;;  %7016 = vpow2.f32 %v2948_v43  ;;  %10960 = vst [vmem:[#allocation105_spill] sm:$0xff] %v8996_v36  ;;  %v10966_v43 = vsub.f32 %v10850_v24, %v8684_v44  ;;  %6373 = vmatprep.subr.bf16.mxu0 %v6872_v27  ;;  %v10971_v44 = vld [vmem:[#allocation34_spill] sm:$0xff]  ;;  %v10972_v24 = vld [vmem:[#allocation39_spill] sm:$0xff] }
 0x272   : > { %v8973_v4 = vpop.xlane.xlu1 %2544  ;;  %v2862_v15 = vmul.f32 1.442695, %v10955_v13  ;;  %v10964_v13 = vld [vmem:[#allocation107_spill] sm:$0xff] }
 0x273   : > { %10949 = vst [vmem:[#allocation29_spill] sm:$0xff] %v8973_v4  ;;  %v10965_v10 = vsub.f32 %v10963_v40, %v10964_v13  ;;  %v2960_v4 = vmul.f32 1.442695, %v10966_v43  ;;  %v6873_v13 = vld [vmem:[%s8872_s19 + $0x38] sm:$0xff]  }
 0x274   : > { %3110 = vadd.xlane.f32.xlu0 %v8975_v18  ;;  %v9001_v60 = vpop.eup %7008  ;;  %7018 = vpow2.f32 %v2862_v15  ;;  %6374 = vmatpush3.bf16.msra.mxu0 %v6872_v27  ;;  %v10980_v27 = vld [vmem:[#allocation72_spill] sm:$0xff]  ;;  %v10985_v18 = vld [vmem:[#allocation114_spill] sm:$0xff] }
 0x275   : > { %v8989_v11 = vpop.xlane.xlu0 %2638  ;;  %3112 = vadd.xlane.f32.xlu1 %v8980_v14  ;;  %10962 = vst [vmem:[#allocation116_spill] sm:$0xff] %v9001_v60  ;;  %v2958_v14 = vmul.f32 1.442695, %v10965_v10  ;;  %7020 = vpow2.f32 %v2864_v30  ;;  %v10973_v30 = vsub.f32 %v10971_v44, %v10972_v24  ;;  %6375 = vmatprep.subr.bf16.mxu0 %v6873_v13 }
 0x276   : > { %10957 = vst [vmem:[#allocation65_spill] sm:$0xff] %v8989_v11  ;;  %v8994_v35 = vpop.xlane.xlu1 %2640 }
 0x277   : > { %10959 = vst [vmem:[#allocation33_spill] sm:$0xff] %v8994_v35  ;;  %v9017_v40 = vpop.eup %7010  ;;  %7022 = vpow2.f32 %v2958_v14  ;;  %v2858_v43 = vmul.f32 1.442695, %v10973_v30  ;;  %v10975_v35 = vld [vmem:[#allocation110_spill] sm:$0xff]  ;;  %v10983_v30 = vld [vmem:[#allocation112_spill] sm:$0xff] }
 0x278   : > { %3206 = vadd.xlane.f32.xlu0 %v8996_v36  ;;  %10968 = vst [vmem:[#allocation35_spill] sm:$0xff] %v9017_v40  ;;  %v9022_v10 = vpop.eup %7012  ;;  %7024 = vpow2.f32 %v2960_v4  ;;  %v10976_v15 = vsub.f32 %v10854_v49, %v10975_v35  ;;  %6376 = vmatpush3.bf16.msra.mxu0 %v6873_v13  ;;  %v10982_v4 = vld [vmem:[#allocation37_spill] sm:$0xff] }
 0x279   : > { %v9010_v11 = vpop.xlane.xlu0 %2538  ;;  %3208 = vadd.xlane.f32.xlu1 %v9001_v60  ;;  %10970 = vst [vmem:[#allocation107_spill] sm:$0xff] %v9022_v10  ;;  %v9038_v14 = vpop.eup %7014  ;;  %7026 = vpow2.f32 %v2858_v43  ;;  %v10984_v49 = vsub.f32 %v10982_v4, %v10983_v30 }
 0x27a   : > { %v9015_v19 = vpop.xlane.xlu1 %2540  ;;  %v2860_v60 = vmul.f32 1.442695, %v10976_v15  ;;  %10979 = vst [vmem:[#allocation34_spill] sm:$0xff] %v9038_v14 }
 0x27b   : > { %v9042_v24 = vpop.eup %7016  ;;  %v2954_v35 = vmul.f32 1.442695, %v10984_v49 }
 0x27c   : > { %3106 = vadd.xlane.f32.xlu0 %v9017_v40  ;;  %10981 = vst [vmem:[#allocation39_spill] sm:$0xff] %v9042_v24  ;;  %7028 = vpow2.f32 %v2860_v60 }
 0x27d   : > { %v9028_v36 = vpop.xlane.xlu0 %2634  ;;  %3108 = vadd.xlane.f32.xlu1 %v9022_v10  ;;  %v10986_v10 = vsub.f32 %v10862_v17, %v10985_v18  ;;  %7030 = vpow2.f32 %v2954_v35 }
 0x27e   : > { %10974 = vst [vmem:[#allocation66_spill] sm:$0xff] %v9028_v36  ;;  %v9036_v40 = vpop.xlane.xlu1 %2636 }
 0x27f   : > { %10978 = vst [vmem:[#allocation69_spill] sm:$0xff] %v9036_v40  ;;  %v2956_v36 = vmul.f32 1.442695, %v10986_v10  ;;  %v9056_v40 = vpop.eup %7018 }
 0x280   : > { %3202 = vadd.xlane.f32.xlu0 %v9038_v14  ;;  %10987 = vst [vmem:[#allocation110_spill] sm:$0xff] %v9056_v40  ;;  %v9058_v14 = vpop.eup %7020 }
 0x281   : > { %v9048_v15 = vpop.xlane.xlu0 %3062  ;;  %3204 = vadd.xlane.f32.xlu1 %v9042_v24  ;;  %10988 = vst [vmem:[#allocation70_spill] sm:$0xff] %v9058_v14  ;;  %7032 = vpow2.f32 %v2956_v36  ;;  %v9066_v60 = vpop.eup %7022 }
 0x282   : > { %v9054_v44 = vpop.xlane.xlu1 %3064  ;;  %10991 = vst [vmem:[#allocation112_spill] sm:$0xff] %v9066_v60  ;;  %v9068_v17 = vpop.eup %7024 }
 0x283   : > { %10992 = vst [vmem:[#allocation114_spill] sm:$0xff] %v9068_v17  ;;  %v9076_v4 = vpop.eup %7026 }
 0x284   : > { %3118 = vadd.xlane.f32.xlu0 %v9056_v40  ;;  %10993 = vst [vmem:[#allocation117_spill] sm:$0xff] %v9076_v4  ;;  %v11008_v40 = vld [vmem:[#allocation38_spill] sm:$0xff] }
 0x285   : > { %v9061_v13 = vpop.xlane.xlu0 %3126  ;;  %3120 = vadd.xlane.f32.xlu1 %v9058_v14  ;;  %v11006_v14 = vld [vmem:[#allocation109_spill] sm:$0xff] }
 0x286   : > { %10989 = vst [vmem:[#allocation72_spill] sm:$0xff] %v9061_v13  ;;  %v9064_v43 = vpop.xlane.xlu1 %3128  ;;  %v9078_v30 = vpop.eup %7028 }
 0x287   : > { %10990 = vst [vmem:[#allocation37_spill] sm:$0xff] %v9064_v43  ;;  %10994 = vst [vmem:[#allocation118_spill] sm:$0xff] %v9078_v30  ;;  %v9086_v35 = vpop.eup %7030  ;;  %v11000_v43 = vld [vmem:[#allocation36_spill] sm:$0xff] }
 0x288   : > { %3214 = vadd.xlane.f32.xlu0 %v9066_v60  ;;  %10997 = vst [vmem:[#allocation121_spill] sm:$0xff] %v9086_v35 }
 0x289   : > { %v9071_v18 = vpop.xlane.xlu0 %3058  ;;  %3216 = vadd.xlane.f32.xlu1 %v9068_v17 }
 0x28a   : > { %v9074_v10 = vpop.xlane.xlu1 %3060 }
 0x28b   : > { %v9088_v60 = vpop.eup %7032 }
 0x28c   : > { %3114 = vadd.xlane.f32.xlu0 %v9076_v4  ;;  %10998 = vst [vmem:[#allocation122_spill] sm:$0xff] %v9088_v60 }
 0x28d   : > { %v9081_v36 = vpop.xlane.xlu0 %3122  ;;  %3116 = vadd.xlane.f32.xlu1 %v9078_v30 }
 0x28e   : > { %10995 = vst [vmem:[#allocation119_spill] sm:$0xff] %v9081_v36  ;;  %v9084_v49 = vpop.xlane.xlu1 %3124  ;;  %v11002_v36 = vld [vmem:[#allocation108_spill] sm:$0xff] }
 0x28f   : > { %10996 = vst [vmem:[#allocation120_spill] sm:$0xff] %v9084_v49  ;;  %v11004_v49 = vld [vmem:[#allocation106_spill] sm:$0xff] }
 0x290   : > { %3210 = vadd.xlane.f32.xlu0 %v9086_v35 }
 0x291   : > { %v9091_v17 = vpop.xlane.xlu0 %3070  ;;  %3212 = vadd.xlane.f32.xlu1 %v9088_v60 }
 0x292   : > { %v9094_v24 = vpop.xlane.xlu1 %3072 }
 0x293   : > { %10999 = vst [vmem:[#allocation123_spill] sm:$0xff] %v9094_v24  ;;  %v11010_v24 = vld [vmem:[#allocation113_spill] sm:$0xff] }
 0x294   : > { %2646 = vmax.xlane.f32.xlu0 %v11000_v43 }
 0x295   : > { %v9097_v13 = vpop.xlane.xlu0 %3134  ;;  %2648 = vmax.xlane.f32.xlu1 %v11002_v36 }
 0x296   : > { %11001 = vst [vmem:[#allocation124_spill] sm:$0xff] %v9097_v13  ;;  %v9100_v30 = vpop.xlane.xlu1 %3136  ;;  %v11012_v13 = vld [vmem:[#allocation111_spill] sm:$0xff] }
 0x297   : > { %11003 = vst [vmem:[#allocation125_spill] sm:$0xff] %v9100_v30  ;;  %v11014_v30 = vld [vmem:[#allocation115_spill] sm:$0xff] }
 0x298   : > { %2642 = vmax.xlane.f32.xlu0 %v11004_v49 }
 0x299   : > { %v9103_v4 = vpop.xlane.xlu0 %3066  ;;  %2644 = vmax.xlane.f32.xlu1 %v11006_v14  ;;  %v11016_v14 = vsub.f32 %v10864_v58, %v8719_v56  ;;  %v11023_v58 = vld [vmem:[#allocation42_spill] sm:$0xff]  ;;  %v11024_v56 = vld [vmem:[#allocation15_spill] sm:$0xff] }
 0x29a   : > { %11005 = vst [vmem:[#allocation126_spill] sm:$0xff] %v9103_v4  ;;  %v9106_v35 = vpop.xlane.xlu1 %3068 }
 0x29b   : > { %11007 = vst [vmem:[#allocation127_spill] sm:$0xff] %v9106_v35 }
 0x29c   : > { %2654 = vmax.xlane.f32.xlu0 %v11008_v40  ;;  %v2902_v40 = vmul.f32 1.442695, %v11016_v14  ;;  %v11025_v14 = vsub.f32 %v10874_v31, %v11024_v56 }
 0x29d   : > { %v9109_v60 = vpop.xlane.xlu0 %3130  ;;  %2656 = vmax.xlane.f32.xlu1 %v11010_v24 }
 0x29e   : > { %11009 = vst [vmem:[#allocation128_spill] sm:$0xff] %v9109_v60  ;;  %v9112_v43 = vpop.xlane.xlu1 %3132  ;;  %v11018_v60 = vld [vmem:[#allocation44_spill] sm:$0xff]  ;;  %7034 = vpow2.f32 %v2902_v40  ;;  %v11026_v40 = vsub.f32 %v10876_v3, %v8757_v28  ;;  %v11029_v3 = vsub.f32 %v10881_v33, %v8784_v62  ;;  %v11031_v62 = vsub.f32 %v10886_v48, %v8802_v12 }
 0x29f   : > { %11011 = vst [vmem:[#allocation129_spill] sm:$0xff] %v9112_v43  ;;  %v11019_v43 = vld [vmem:[#allocation40_spill] sm:$0xff]  ;;  %v11036_v12 = vsub.f32 %v10892_v59, %v8822_v23  ;;  %v11039_v23 = vsub.f32 %v10898_v9, %v8842_v22 }
 0x2a0   : > { %2650 = vmax.xlane.f32.xlu0 %v11012_v13  ;;  %v11020_v24 = vsub.f32 %v11018_v60, %v11019_v43  ;;  %v2912_v33 = vmul.f32 1.442695, %v11031_v62  ;;  %v11044_v22 = vld [vmem:[#allocation52_spill] sm:$0xff] }
 0x2a1   : > { %v9115_v36 = vpop.xlane.xlu0 %3078  ;;  %2652 = vmax.xlane.f32.xlu1 %v11014_v30  ;;  %v3008_v48 = vmul.f32 1.442695, %v11036_v12  ;;  %v2908_v59 = vmul.f32 1.442695, %v11039_v23  ;;  %v11045_v9 = vsub.f32 %v10905_v21, %v11044_v22  ;;  %v11047_v21 = vsub.f32 %v10911_v54, %v8889_v39  ;;  %v11053_v39 = vld [vmem:[#allocation56_spill] sm:$0xff] }
 0x2a2   : > { %11013 = vst [vmem:[#allocation130_spill] sm:$0xff] %v9115_v36  ;;  %v9118_v49 = vpop.xlane.xlu1 %3080  ;;  %v2904_v13 = vmul.f32 1.442695, %v11020_v24  ;;  %v11021_v36 = vld [vmem:[#allocation41_spill] sm:$0xff]  ;;  %v2898_v24 = vmul.f32 1.442695, %v11026_v40  ;;  %v11054_v54 = vsub.f32 %v10919_v5, %v11053_v39 }
 0x2a3   : > { %11015 = vst [vmem:[#allocation131_spill] sm:$0xff] %v9118_v49  ;;  %v2920_v23 = vmul.f32 1.442695, %v11047_v21  ;;  %v11058_v5 = vld [vmem:[#allocation18_spill] sm:$0xff] }
 0x2a4   : > { %2662 = vmax.xlane.f32.xlu0 %v8730_v47  ;;  %v11022_v47 = vsub.f32 %v10871_v37, %v8738_v51  ;;  %7036 = vpow2.f32 %v2904_v13  ;;  %v11028_v13 = vsub.f32 %v10880_v1, %v8774_v61  ;;  %v11030_v1 = vsub.f32 %v10884_v16, %v8794_v0 }
 0x2a5   : > { %v9124_v35 = vpop.xlane.xlu0 %3142  ;;  %2664 = vmax.xlane.f32.xlu1 %v8741_v55  ;;  %v11035_v0 = vsub.f32 %v10890_v34, %v8814_v8  ;;  %v11037_v34 = vsub.f32 %v10896_v52, %v8834_v46  ;;  %v6874_v52 = vld [vmem:[%s8872_s19 + $0x40] sm:$0xff]   ;;  %v11043_v46 = vsub.f32 %v10902_v26, %v8854_v38  ;;  %v6875_v26 = vld [vmem:[%s8872_s19 + $0x48] sm:$0xff]   ;;  %v11046_v38 = vsub.f32 %v10909_v29, %v8883_v2  ;;  %v6876_v29 = vld [vmem:[%s8872_s19 + $0x50] sm:$0xff]  }
 0x2a6   : > { %11017 = vst [vmem:[#allocation132_spill] sm:$0xff] %v9124_v35  ;;  %v9130_v4 = vpop.xlane.xlu1 %3144  ;;  %v2998_v30 = vmul.f32 1.442695, %v11022_v47  ;;  %v3000_v35 = vmul.f32 1.442695, %v11025_v14  ;;  %v11027_v47 = vsub.f32 %v10877_v57, %v8762_v41  ;;  %6393 = vmatprep.subr.bf16.mxu1 %v6874_v52  ;;  %v11050_v2 = vld [vmem:[#allocation59_spill] sm:$0xff]  ;;  %v11059_v39 = vsub.f32 %v10930_v7, %v11058_v5 }
 0x2a7   : > { %v2994_v60 = vmul.f32 1.442695, %v11028_v13  ;;  %v2910_v61 = vmul.f32 1.442695, %v11030_v1  ;;  %v3006_v16 = vmul.f32 1.442695, %v11035_v0  ;;  %6394 = vmatpush3.bf16.msra.mxu1 %v6874_v52 }
 0x2a8   : > { %2658 = vmax.xlane.f32.xlu0 %v11021_v36  ;;  %7038 = vpow2.f32 %v2998_v30  ;;  %v2900_v37 = vmul.f32 1.442695, %v11027_v47  ;;  %v2996_v30 = vmul.f32 1.442695, %v11029_v3  ;;  %v9168_v57 = vpop.eup %7034  ;;  %v2906_v8 = vmul.f32 1.442695, %v11037_v34  ;;  %6395 = vmatprep.subr.bf16.mxu1 %v6875_v26 }
 0x2a9   : > { %v9136_v49 = vpop.xlane.xlu0 %3074  ;;  %2660 = vmax.xlane.f32.xlu1 %v11023_v58  ;;  %7040 = vpow2.f32 %v3000_v35  ;;  %v3002_v62 = vmul.f32 1.442695, %v11043_v46  ;;  %v3004_v0 = vmul.f32 1.442695, %v11045_v9  ;;  %v2918_v34 = vmul.f32 1.442695, %v11046_v38 }
 0x2aa   : > { %v9142_v43 = vpop.xlane.xlu1 %3076  ;;  %7042 = vpow2.f32 %v2898_v24  ;;  %v11065_v7 = vld [vmem:[#allocation64_spill] sm:$0xff]  ;;  %v11066_v5 = vld [vmem:[#allocation26_spill] sm:$0xff] }
 0x2ab   : > { %7044 = vpow2.f32 %v2900_v37  ;;  %6396 = vmatpush3.bf16.msra.mxu1 %v6875_v26  ;;  %v3016_v26 = vmul.f32 1.442695, %v11054_v54 }
 0x2ac   : > { %2670 = vmax.xlane.f32.xlu0 %v8766_v20  ;;  %7046 = vpow2.f32 %v2994_v60  ;;  %6397 = vmatprep.subr.bf16.mxu1 %v6876_v29 }
 0x2ad   : > { %v9148_v51 = vpop.xlane.xlu0 %3138  ;;  %2672 = vmax.xlane.f32.xlu1 %v8777_v63  ;;  %7048 = vpow2.f32 %v2996_v30 }
 0x2ae   : > { %v9154_v31 = vpop.xlane.xlu1 %3140  ;;  %v9170_v35 = vpop.eup %7036  ;;  %7050 = vpow2.f32 %v2910_v61 }
 0x2af   : > { %7052 = vpow2.f32 %v2912_v33  ;;  %6398 = vmatpush3.bf16.msra.mxu1 %v6876_v29  ;;  %v2916_v29 = vmul.f32 1.442695, %v11059_v39  ;;  %v11067_v39 = vsub.f32 %v11065_v7, %v11066_v5  ;;  %v11070_v7 = vld [vmem:[#allocation29_spill] sm:$0xff] }
 0x2b0   : > { %2666 = vmax.xlane.f32.xlu0 %v8769_v32  ;;  %7054 = vpow2.f32 %v3006_v16 }
 0x2b1   : > { %v9160_v28 = vpop.xlane.xlu0 %3086  ;;  %2668 = vmax.xlane.f32.xlu1 %v8786_v50  ;;  %7056 = vpow2.f32 %v3008_v48 }
 0x2b2   : > { %v9166_v41 = vpop.xlane.xlu1 %3088  ;;  %v9184_v40 = vpop.eup %7038  ;;  %7058 = vpow2.f32 %v2906_v8 }
 0x2b3   : > { %11033 = vst [vmem:[#allocation40_spill] sm:$0xff] %v9184_v40  ;;  %v9186_v24 = vpop.eup %7040  ;;  %7060 = vpow2.f32 %v2908_v59 }
 0x2b4   : > { %3158 = vadd.xlane.f32.xlu0 %v9168_v57  ;;  %11034 = vst [vmem:[#allocation41_spill] sm:$0xff] %v9186_v24  ;;  %v9200_v13 = vpop.eup %7042  ;;  %7062 = vpow2.f32 %v3002_v62  ;;  %v11051_v62 = vld [vmem:[#allocation53_spill] sm:$0xff] }
 0x2b5   : > { %v9176_v56 = vpop.xlane.xlu0 %3150  ;;  %3160 = vadd.xlane.f32.xlu1 %v9170_v35  ;;  %v9202_v60 = vpop.eup %7044  ;;  %7064 = vpow2.f32 %v3004_v0  ;;  %v11052_v22 = vsub.f32 %v11050_v2, %v11051_v62  ;;  %v6877_v2 = vld [vmem:[%s8872_s19 + $0x58] sm:$0xff]   ;;  %v11055_v62 = vld [vmem:[#allocation58_spill] sm:$0xff] }
 0x2b6   : > { %v9182_v14 = vpop.xlane.xlu1 %3152  ;;  %v9216_v1 = vpop.eup %7046  ;;  %7066 = vpow2.f32 %v2918_v34  ;;  %6399 = vmatprep.subr.bf16.mxu1 %v6877_v2 }
 0x2b7   : > { %11032 = vst [vmem:[#allocation44_spill] sm:$0xff] %v9182_v14  ;;  %11041 = vst [vmem:[#allocation133_spill] sm:$0xff] %v9216_v1  ;;  %v9218_v61 = vpop.eup %7048  ;;  %v3014_v9 = vmul.f32 1.442695, %v11052_v22  ;;  %7068 = vpow2.f32 %v2920_v23  ;;  %v11056_v22 = vld [vmem:[#allocation63_spill] sm:$0xff]  ;;  %6400 = vmatpush3.bf16.msra.mxu1 %v6877_v2 }
 0x2b8   : > { %3254 = vadd.xlane.f32.xlu0 %v9184_v40  ;;  %11042 = vst [vmem:[#allocation134_spill] sm:$0xff] %v9218_v61  ;;  %v9233_v12 = vpop.eup %7050  ;;  %v11057_v23 = vsub.f32 %v11055_v62, %v11056_v22  ;;  %v6878_v62 = vld [vmem:[%s8872_s19 + $0x60] sm:$0xff]  }
 0x2b9   : > { %v9192_v47 = vpop.xlane.xlu0 %3082  ;;  %3256 = vadd.xlane.f32.xlu1 %v9186_v24  ;;  %v9235_v48 = vpop.eup %7052  ;;  %7070 = vpow2.f32 %v3014_v9  ;;  %v11062_v22 = vld [vmem:[#allocation62_spill] sm:$0xff]  ;;  %v3012_v24 = vmul.f32 1.442695, %v11067_v39  ;;  %6401 = vmatprep.subr.bf16.mxu1 %v6878_v62 }
 0x2ba   : > { %v9198_v37 = vpop.xlane.xlu1 %3084  ;;  %v9250_v52 = vpop.eup %7054  ;;  %7072 = vpow2.f32 %v3016_v26 }
 0x2bb   : > { %11048 = vst [vmem:[#allocation52_spill] sm:$0xff] %v9250_v52  ;;  %v9252_v46 = vpop.eup %7056  ;;  %6402 = vmatpush3.bf16.msra.mxu1 %v6878_v62 }
 0x2bc   : > { %3154 = vadd.xlane.f32.xlu0 %v9200_v13  ;;  %11049 = vst [vmem:[#allocation135_spill] sm:$0xff] %v9252_v46  ;;  %v9267_v21 = vpop.eup %7058 }
 0x2bd   : > { %v9208_v3 = vpop.xlane.xlu0 %3146  ;;  %3156 = vadd.xlane.f32.xlu1 %v9202_v60  ;;  %v9269_v34 = vpop.eup %7060 }
 0x2be   : > { %11038 = vst [vmem:[#allocation42_spill] sm:$0xff] %v9208_v3  ;;  %v9214_v30 = vpop.xlane.xlu1 %3148 }
 0x2bf   : > { %11040 = vst [vmem:[#allocation15_spill] sm:$0xff] %v9214_v30 }
 0x2c0   : > { %3250 = vadd.xlane.f32.xlu0 %v9216_v1 }
 0x2c1   : > { %v9225_v33 = vpop.xlane.xlu0 %2582  ;;  %3252 = vadd.xlane.f32.xlu1 %v9218_v61  ;;  %v9284_v61 = vpop.eup %7062 }
 0x2c2   : > { %v9231_v16 = vpop.xlane.xlu1 %2584  ;;  %11060 = vst [vmem:[#allocation59_spill] sm:$0xff] %v9284_v61  ;;  %v9286_v9 = vpop.eup %7064 }
 0x2c3   : > { %11061 = vst [vmem:[#allocation53_spill] sm:$0xff] %v9286_v9 }
 0x2c4   : > { %3166 = vadd.xlane.f32.xlu0 %v9233_v12 }
 0x2c5   : > { %v9242_v8 = vpop.xlane.xlu0 %2578  ;;  %3168 = vadd.xlane.f32.xlu1 %v9235_v48 }
 0x2c6   : > { %v9248_v59 = vpop.xlane.xlu1 %2580 }
 0x2c8   : > { %3262 = vadd.xlane.f32.xlu0 %v9250_v52  ;;  %v2914_v52 = vmul.f32 1.442695, %v11057_v23  ;;  %v11063_v23 = vld [vmem:[#allocation61_spill] sm:$0xff] }
 0x2c9   : > { %v9259_v0 = vpop.xlane.xlu0 %2590  ;;  %3264 = vadd.xlane.f32.xlu1 %v9252_v46  ;;  %v11064_v26 = vsub.f32 %v11062_v22, %v11063_v23 }
 0x2ca   : > { %v9265_v38 = vpop.xlane.xlu1 %2592  ;;  %7074 = vpow2.f32 %v2914_v52  ;;  %v6879_v52 = vld [vmem:[%s8872_s19 + $0x68] sm:$0xff]  }
 0x2cb   : > { %v3010_v1 = vmul.f32 1.442695, %v11064_v26  ;;  %7076 = vpow2.f32 %v2916_v29  ;;  %v11068_v29 = vsub.f32 %v10948_v42, %v8968_v6  ;;  %6403 = vmatprep.subr.bf16.mxu1 %v6879_v52  ;;  %v11069_v26 = vld [vmem:[#allocation68_spill] sm:$0xff]  ;;  %v11074_v6 = vsub.f32 %v10967_v45, %v9010_v11  ;;  %v11078_v45 = vld [vmem:[#allocation69_spill] sm:$0xff] }
 0x2cc   : > { %3162 = vadd.xlane.f32.xlu0 %v9267_v21  ;;  %v11071_v5 = vsub.f32 %v11069_v26, %v11070_v7  ;;  %6404 = vmatpush3.bf16.msra.mxu1 %v6879_v52  ;;  %v11076_v52 = vld [vmem:[#allocation66_spill] sm:$0xff] }
 0x2cd   : > { %v9276_v46 = vpop.xlane.xlu0 %2586  ;;  %3164 = vadd.xlane.f32.xlu1 %v9269_v34  ;;  %7078 = vpow2.f32 %v3010_v1  ;;  %v2926_v22 = vmul.f32 1.442695, %v11068_v29  ;;  %v6880_v1 = vld [vmem:[%s8872_s19 + $0x70] sm:$0xff]   ;;  %v2922_v42 = vmul.f32 1.442695, %v11074_v6  ;;  %v11077_v7 = vsub.f32 %v10977_v25, %v11076_v52 }
 0x2ce   : > { %v9282_v54 = vpop.xlane.xlu1 %2588  ;;  %7080 = vpow2.f32 %v3012_v24  ;;  %v2928_v62 = vmul.f32 1.442695, %v11071_v5  ;;  %v11075_v24 = vsub.f32 %v10969_v53, %v9015_v19  ;;  %6405 = vmatprep.subr.bf16.mxu1 %v6880_v1  ;;  %v11080_v19 = vld [vmem:[#allocation74_spill] sm:$0xff] }
 0x2cf   : > { %7082 = vpow2.f32 %v2926_v22  ;;  %v3018_v5 = vmul.f32 1.442695, %v11077_v7  ;;  %v11079_v22 = vsub.f32 %v10980_v27, %v11078_v45  ;;  %v2756_v53 = vsub.f32 %v11080_v19, %v9225_v33  ;;  %v11081_v27 = vld [vmem:[#allocation77_spill] sm:$0xff] }
 0x2d0   : > { %3258 = vadd.xlane.f32.xlu0 %v9284_v61  ;;  %v9301_v61 = vpop.eup %7066  ;;  %v2924_v29 = vmul.f32 1.442695, %v11075_v24  ;;  %7084 = vpow2.f32 %v2928_v62  ;;  %6406 = vmatpush3.bf16.msra.mxu1 %v6880_v1  ;;  %v6881_v24 = vld [vmem:[%s8872_s19 + $0x78] sm:$0xff]   ;;  %v2757_v62 = vsub.f32 %v11081_v27, %v9231_v16  ;;  %v11085_v16 = vld [vmem:[#allocation78_spill] sm:$0xff] }
 0x2d1   : > { %v9293_v40 = vpop.xlane.xlu0 %2598  ;;  %3260 = vadd.xlane.f32.xlu1 %v9286_v9  ;;  %v9304_v30 = vpop.eup %7068  ;;  %v3020_v6 = vmul.f32 1.442695, %v11079_v22  ;;  %7086 = vpow2.f32 %v2922_v42  ;;  %6407 = vmatprep.subr.bf16.mxu1 %v6881_v24  ;;  %v2966_v1 = vmul.f32 1.442695, %v2756_v53  ;;  %v11086_v53 = vld [vmem:[#allocation82_spill] sm:$0xff]  ;;  %v11089_v27 = vld [vmem:[#allocation85_spill] sm:$0xff] }
 0x2d2   : > { %v9299_v2 = vpop.xlane.xlu1 %2600  ;;  %v9318_v9 = vpop.eup %7070  ;;  %7088 = vpow2.f32 %v2924_v29  ;;  %v11084_v29 = vld [vmem:[#allocation76_spill] sm:$0xff]  ;;  %v2968_v22 = vmul.f32 1.442695, %v2757_v62  ;;  %v2761_v62 = vsub.f32 %v11089_v27, %v9265_v38 }
 0x2d3   : > { %11072 = vst [vmem:[#allocation56_spill] sm:$0xff] %v9318_v9  ;;  %v9321_v3 = vpop.eup %7072  ;;  %7090 = vpow2.f32 %v3018_v5  ;;  %v2754_v7 = vsub.f32 %v11084_v29, %v9242_v8  ;;  %v2755_v5 = vsub.f32 %v11085_v16, %v9248_v59  ;;  %v2760_v59 = vsub.f32 %v11086_v53, %v9259_v0 }
 0x2d4   : > { %3174 = vadd.xlane.f32.xlu0 %v9301_v61  ;;  %11073 = vst [vmem:[#allocation58_spill] sm:$0xff] %v9321_v3  ;;  %v9338_v11 = vpop.eup %7074  ;;  %7092 = vpow2.f32 %v3020_v6  ;;  %6408 = vmatpush3.bf16.msra.mxu1 %v6881_v24 }
 0x2d5   : > { %v9310_v23 = vpop.xlane.xlu0 %2594  ;;  %3176 = vadd.xlane.f32.xlu1 %v9304_v30  ;;  %7094 = vrcp.f32 %v9048_v15  ;;  %v2962_v8 = vmul.f32 1.442695, %v2754_v7  ;;  %v11092_v7 = vld [vmem:[#allocation84_spill] sm:$0xff]  ;;  %v2974_v38 = vmul.f32 1.442695, %v2760_v59  ;;  %v11096_v59 = vld [vmem:[#allocation90_spill] sm:$0xff] }
 0x2d6   : > { %v9316_v39 = vpop.xlane.xlu1 %2596  ;;  %7096 = vrcp.f32 %v9054_v44  ;;  %v2964_v44 = vmul.f32 1.442695, %v2755_v5  ;;  %v2758_v16 = vsub.f32 %v11092_v7, %v9276_v46 }
 0x2d7   : > { %7098 = vrcp.f32 %v9071_v18 }
 0x2d8   : > { %3270 = vadd.xlane.f32.xlu0 %v9318_v9  ;;  %v9346_v9 = vpop.eup %7076  ;;  %7100 = vpow2.f32 %v2966_v1  ;;  %v2970_v7 = vmul.f32 1.442695, %v2758_v16 }
 0x2d9   : > { %v9330_v26 = vpop.xlane.xlu0 %2606  ;;  %3272 = vadd.xlane.f32.xlu1 %v9321_v3  ;;  %v9356_v33 = vpop.eup %7078 }
 0x2da   : > { %v9336_v14 = vpop.xlane.xlu1 %2608  ;;  %11082 = vst [vmem:[#allocation63_spill] sm:$0xff] %v9356_v33  ;;  %v9358_v42 = vpop.eup %7080 }
 0x2db   : > { %11083 = vst [vmem:[#allocation18_spill] sm:$0xff] %v9358_v42  ;;  %v9369_v19 = vpop.eup %7082 }
 0x2dc   : > { %3170 = vadd.xlane.f32.xlu0 %v9338_v11  ;;  %v9371_v15 = vpop.eup %7084 }
 0x2dd   : > { %v9349_v25 = vpop.xlane.xlu0 %2602  ;;  %3172 = vadd.xlane.f32.xlu1 %v9346_v9  ;;  %v9379_v18 = vpop.eup %7086 }
 0x2de   : > { %v9354_v52 = vpop.xlane.xlu1 %2604  ;;  %11088 = vst [vmem:[#allocation61_spill] sm:$0xff] %v9379_v18  ;;  %v9387_v29 = vpop.eup %7088 }
 0x2df   : > { %11090 = vst [vmem:[#allocation64_spill] sm:$0xff] %v9387_v29  ;;  %v9390_v0 = vpop.eup %7090 }
 0x2e0   : > { %3266 = vadd.xlane.f32.xlu0 %v9356_v33  ;;  %11091 = vst [vmem:[#allocation26_spill] sm:$0xff] %v9390_v0  ;;  %v9395_v5 = vpop.eup %7092  ;;  %v11098_v33 = vld [vmem:[#allocation123_spill] sm:$0xff] }
 0x2e1   : > { %v3095_v45 = vpop.xlane.xlu0 %3094  ;;  %3268 = vadd.xlane.f32.xlu1 %v9358_v42  ;;  %11093 = vst [vmem:[#allocation68_spill] sm:$0xff] %v9395_v5  ;;  %v7095_v53 = vpop.eup %7094 }
 0x2e2   : > { %v3097_v6 = vpop.xlane.xlu1 %3096  ;;  %7102 = vrcp.f32 %v3095_v45  ;;  %v11094_v45 = vld [vmem:[#allocation86_spill] sm:$0xff] }
 0x2e3   : > { %7104 = vrcp.f32 %v3097_v6 }
 0x2e4   : > { %3182 = vadd.xlane.f32.xlu0 %v9369_v19  ;;  %7106 = vpow2.f32 %v2968_v22  ;;  %v2759_v22 = vsub.f32 %v11094_v45, %v9282_v54  ;;  %v2764_v45 = vsub.f32 %v11096_v59, %v9293_v40  ;;  %v11101_v40 = vld [vmem:[#allocation73_spill] sm:$0xff] }
 0x2e5   : > { %v9376_v24 = vpop.xlane.xlu0 %3190  ;;  %3184 = vadd.xlane.f32.xlu1 %v9371_v15  ;;  %7108 = vrcp.f32 %v9074_v10  ;;  %v2976_v10 = vmul.f32 1.442695, %v2761_v62  ;;  %v3444_v59 = vmul.f32 %v7095_v53, %v11101_v40 }
 0x2e6   : > { %11087 = vst [vmem:[#allocation62_spill] sm:$0xff] %v9376_v24  ;;  %v9385_v1 = vpop.xlane.xlu1 %3192  ;;  %7110 = vpow2.f32 %v2962_v8  ;;  %v7097_v8 = vpop.eup %7096  ;;  %v2972_v54 = vmul.f32 1.442695, %v2759_v22  ;;  %v11103_v24 = vld [vmem:[#allocation43_spill] sm:$0xff] }
 0x2e7   : > { %7112 = vpow2.f32 %v2964_v44  ;;  %v7099_v46 = vpop.eup %7098 }
 0x2e8   : > { %3178 = vadd.xlane.f32.xlu0 %v9379_v18  ;;  %v9402_v44 = vpop.eup %7100  ;;  %v11104_v18 = vld [vmem:[#allocation94_spill] sm:$0xff] }
 0x2e9   : > { %v3091_v6 = vpop.xlane.xlu0 %3090  ;;  %3180 = vadd.xlane.f32.xlu1 %v9387_v29  ;;  %11095 = vst [vmem:[#allocation29_spill] sm:$0xff] %v9402_v44 }
 0x2ea   : > { %7114 = vrcp.f32 %v3091_v6  ;;  %v3093_v27 = vpop.xlane.xlu1 %3092  ;;  %v11097_v6 = vld [vmem:[#allocation93_spill] sm:$0xff] }
 0x2eb   : > { %7116 = vrcp.f32 %v3093_v27  ;;  %v2765_v27 = vsub.f32 %v11097_v6, %v9299_v2  ;;  %v2982_v6 = vmul.f32 1.442695, %v2764_v45  ;;  %v11108_v45 = vld [vmem:[#allocation126_spill] sm:$0xff] }
 0x2ec   : > { %7118 = vrcp.f32 %v9091_v17  ;;  %3274 = vadd.xlane.f32.xlu0 %v9390_v0  ;;  %v7103_v62 = vpop.eup %7102  ;;  %v9412_v17 = vstv %s9383_s0 }
 0x2ed   : > { %7120 = vpow2.f32 %v2974_v38  ;;  %v9406_v42 = vpop.xlane.xlu0 %3186  ;;  %3276 = vadd.xlane.f32.xlu1 %v9395_v5  ;;  %v7105_v0 = vpop.eup %7104  ;;  %v11099_v38 = vld [vmem:[#allocation46_spill] sm:$0xff]  ;;  %v11102_v5 = vld [vmem:[#allocation92_spill] sm:$0xff] }
 0x2ee   : > { %7122 = vpow2.f32 %v2976_v10  ;;  %v9414_v16 = vpop.xlane.xlu1 %3188  ;;  %v3460_v22 = vmul.f32 %v7103_v62, %v11099_v38  ;;  %v9418_v3 = vpop.eup %7106  ;;  %v2762_v10 = vsub.f32 %v11102_v5, %v9310_v23  ;;  %v3461_v29 = vmul.f32 %v7105_v0, %v11103_v24 }
 0x2ef   : > { %7124 = vrcp.f32 %v11098_v33  ;;  %11100 = vst [vmem:[#allocation66_spill] sm:$0xff] %v9418_v3  ;;  %v7109_v2 = vpop.eup %7108  ;;  %v2763_v33 = vsub.f32 %v11104_v18, %v9316_v39  ;;  %v2984_v23 = vmul.f32 1.442695, %v2765_v27  ;;  %v11109_v27 = vld [vmem:[#allocation98_spill] sm:$0xff] }
 0x2f0   : > { %7126 = vpow2.f32 %v2970_v7  ;;  %3222 = vadd.xlane.f32.xlu0 %v9402_v44  ;;  %v3573_v62 = vmul.f32 %v9412_v17, %v3460_v22  ;;  %v9429_v53 = vpop.eup %7110  ;;  %v11106_v7 = vld [vmem:[#allocation75_spill] sm:$0xff]  ;;  %v3574_v24 = vmul.f32 %v9412_v17, %v3461_v29  ;;  %v2978_v39 = vmul.f32 1.442695, %v2762_v10  ;;  %v11111_v10 = vld [vmem:[#allocation101_spill] sm:$0xff] }
 0x2f1   : > { %7128 = vpow2.f32 %v2972_v54  ;;  %v3103_v38 = vpop.xlane.xlu0 %3102  ;;  %3224 = vadd.xlane.f32.xlu1 %v9418_v3  ;;  %11105 = vst [vmem:[#allocation69_spill] sm:$0xff] %v9429_v53  ;;  %v3445_v40 = vmul.f32 %v7097_v8, %v11106_v7  ;;  %v9433_v5 = vpop.eup %7112  ;;  %v2980_v8 = vmul.f32 1.442695, %v2763_v33  ;;  %v2768_v29 = vsub.f32 %v11109_v27, %v9330_v26  ;;  %v11110_v7 = vld [vmem:[#allocation48_spill] sm:$0xff]  ;;  %v11115_v26 = vld [vmem:[#allocation81_spill] sm:$0xff] }
 0x2f2   : > { %7130 = vrcp.f32 %v3103_v38  ;;  %v3105_v0 = vpop.xlane.xlu1 %3104  ;;  %11107 = vst [vmem:[#allocation74_spill] sm:$0xff] %v9433_v5  ;;  %v3637_v18 = vsub.f32 %v3444_v59, %v3573_v62  ;;  %v11112_v62 = vld [vmem:[#allocation49_spill] sm:$0xff]  ;;  %v3442_v27 = vmul.f32 %v7099_v46, %v11115_v26  ;;  %v11118_v46 = vld [vmem:[#allocation102_spill] sm:$0xff] }
 0x2f3   : > { %7132 = vrcp.f32 %v3105_v0  ;;  %v3638_v22 = vsub.f32 %v3445_v40, %v3574_v24  ;;  %v11114_v24 = vld [vmem:[#allocation127_spill] sm:$0xff] }
 0x2f4   : > { %v7115_v54 = vpop.eup %7114  ;;  %7134 = vrcp.f32 %v11108_v45  ;;  %3218 = vadd.xlane.f32.xlu0 %v9429_v53  ;;  %v2769_v45 = vsub.f32 %v11111_v10, %v9336_v14  ;;  %v6882_v53 = vld [vmem:[%s8872_s19 + $0x80] sm:$0xff]   ;;  %v2990_v10 = vmul.f32 1.442695, %v2768_v29 }
 0x2f5   : > { %v7117_v44 = vpop.eup %7116  ;;  %7136 = vpow2.f32 %v2982_v6  ;;  %v9439_v38 = vpop.xlane.xlu0 %3198  ;;  %3220 = vadd.xlane.f32.xlu1 %v9433_v5  ;;  %v3458_v0 = vmul.f32 %v7115_v54, %v11110_v7  ;;  %v3700_v40 = vpack.c.bf16 %v3638_v22, %v3637_v18  ;;  %v11117_v7 = vld [vmem:[#allocation83_spill] sm:$0xff]  ;;  %6425 = vmatprep.subr.bf16.mxu0 %v6882_v53  ;;  %v11121_v29 = vld [vmem:[#allocation130_spill] sm:$0xff] }
 0x2f6   : > { %v7119_v3 = vpop.eup %7118  ;;  %7138 = vpow2.f32 %v2984_v23  ;;  %v9445_v59 = vpop.xlane.xlu1 %3200  ;;  %v3459_v6 = vmul.f32 %v7117_v44, %v11112_v62  ;;  %v11116_v23 = vld [vmem:[#allocation100_spill] sm:$0xff]  ;;  %v3443_v44 = vmul.f32 %v7109_v2, %v11117_v7  ;;  %v2767_v62 = vsub.f32 %v11118_v46, %v9354_v52 }
 0x2f7   : > { %v9448_v33 = vpop.eup %7120  ;;  %7140 = vrcp.f32 %v11114_v24  ;;  %v3571_v5 = vmul.f32 %v9412_v17, %v3458_v0  ;;  %v2766_v14 = vsub.f32 %v11116_v23, %v9349_v25  ;;  %v2992_v24 = vmul.f32 1.442695, %v2769_v45  ;;  %v11122_v45 = vld [vmem:[#allocation50_spill] sm:$0xff] }
 0x2f8   : > { %11113 = vst [vmem:[#allocation77_spill] sm:$0xff] %v9448_v33  ;;  %v9454_v54 = vpop.eup %7122  ;;  %7142 = vpow2.f32 %v2978_v39  ;;  %3230 = vadd.xlane.f32.xlu0 %v9448_v33  ;;  %v3572_v18 = vmul.f32 %v9412_v17, %v3459_v6  ;;  %v2988_v46 = vmul.f32 1.442695, %v2767_v62 }
 0x2f9   : > { %v7125_v22 = vpop.eup %7124  ;;  %7144 = vpow2.f32 %v2980_v8  ;;  %v3099_v0 = vpop.xlane.xlu0 %3098  ;;  %3232 = vadd.xlane.f32.xlu1 %v9454_v54  ;;  %v3635_v26 = vsub.f32 %v3442_v27, %v3571_v5  ;;  %v2986_v6 = vmul.f32 1.442695, %v2766_v14  ;;  %v6883_v27 = vld [vmem:[%s8872_s19 + $0x88] sm:$0xff]  }
 0x2fa   : > { %v9464_v39 = vpop.eup %7126  ;;  %7146 = vrcp.f32 %v3099_v0  ;;  %v3101_v25 = vpop.xlane.xlu1 %3100  ;;  %v3636_v2 = vsub.f32 %v3443_v44, %v3572_v18  ;;  %v11123_v0 = vld [vmem:[#allocation54_spill] sm:$0xff] }
 0x2fb   : > { %11119 = vst [vmem:[#allocation76_spill] sm:$0xff] %v9464_v39  ;;  %v9466_v23 = vpop.eup %7128  ;;  %7148 = vrcp.f32 %v3101_v25 }
 0x2fc   : > { %11120 = vst [vmem:[#allocation78_spill] sm:$0xff] %v9466_v23  ;;  %v7131_v8 = vpop.eup %7130  ;;  %7150 = vrcp.f32 %v11121_v29  ;;  %3226 = vadd.xlane.f32.xlu0 %v9464_v39  ;;  %v3699_v52 = vpack.c.bf16 %v3636_v2, %v3635_v26  ;;  %v11125_v26 = vld [vmem:[#allocation131_spill] sm:$0xff]  ;;  %v11127_v2 = vld [vmem:[#allocation89_spill] sm:$0xff] }
 0x2fd   : > { %v7133_v7 = vpop.eup %7132  ;;  %7152 = vpow2.f32 %v2990_v10  ;;  %v9470_v33 = vpop.xlane.xlu0 %3194  ;;  %3228 = vadd.xlane.f32.xlu1 %v9466_v23  ;;  %v3464_v5 = vmul.f32 %v7131_v8, %v11122_v45  ;;  %v11128_v8 = vld [vmem:[#allocation91_spill] sm:$0xff] }
 0x2fe   : > { %v7135_v44 = vpop.eup %7134  ;;  %7154 = vpow2.f32 %v2992_v24  ;;  %6377 = vmatprep.mubr.bf16.mxu0 %v3699_v52  ;;  %v9475_v18 = vpop.xlane.xlu1 %3196  ;;  %v3465_v14 = vmul.f32 %v7133_v7, %v11123_v0  ;;  %v3448_v24 = vmul.f32 %v7119_v3, %v11127_v2  ;;  %v3449_v29 = vmul.f32 %v7125_v22, %v11128_v8  ;;  %v11131_v2 = vld [vmem:[#allocation31_spill] sm:$0xff] }
 0x2ff   : > { %v9478_v25 = vpop.eup %7136  ;;  %7156 = vrcp.f32 %v11125_v26  ;;  %6378 = vmatmul.mubr.bf16.vlgmr.msra.gmra.mrb[48].mxu0 %v3700_v40  ;;  %v3577_v10 = vmul.f32 %v9412_v17, %v3464_v5  ;;  %v6884_v40 = vld [vmem:[%s8872_s19 + $0x90] sm:$0xff]  }
 0x300   : > { %11124 = vst [vmem:[#allocation82_spill] sm:$0xff] %v9478_v25  ;;  %v9482_v62 = vpop.eup %7138  ;;  %7158 = vpow2.f32 %v2986_v6  ;;  %3238 = vadd.xlane.f32.xlu0 %v9478_v25  ;;  %v3578_v52 = vmul.f32 %v9412_v17, %v3465_v14  ;;  %6426 = vmatpush3.bf16.msra.mxu0 %v6882_v53 }
 0x301   : > { %11126 = vst [vmem:[#allocation85_spill] sm:$0xff] %v9482_v62  ;;  %v7141_v7 = vpop.eup %7140  ;;  %7160 = vpow2.f32 %v2988_v46  ;;  %v3111_v45 = vpop.xlane.xlu0 %3110  ;;  %3240 = vadd.xlane.f32.xlu1 %v9482_v62  ;;  %6427 = vmatprep.subr.bf16.mxu0 %v6883_v27  ;;  %v3641_v0 = vsub.f32 %v3448_v24, %v3577_v10  ;;  %v11132_v24 = vld [vmem:[#allocation22_spill] sm:$0xff] }
 0x302   : > { %v9490_v5 = vpop.eup %7142  ;;  %7162 = vrcp.f32 %v3111_v45  ;;  %v3113_v6 = vpop.xlane.xlu1 %3112  ;;  %v3642_v26 = vsub.f32 %v3449_v29, %v3578_v52  ;;  %v6885_v45 = vld [vmem:[%s8872_s19 + $0x98] sm:$0xff]  }
 0x303   : > { %11129 = vst [vmem:[#allocation84_spill] sm:$0xff] %v9490_v5  ;;  %v9492_v3 = vpop.eup %7144  ;;  %7164 = vrcp.f32 %v3113_v6 }
 0x304   : > { %11130 = vst [vmem:[#allocation86_spill] sm:$0xff] %v9492_v3  ;;  %v7147_v22 = vpop.eup %7146  ;;  %3234 = vadd.xlane.f32.xlu0 %v9490_v5  ;;  %v3702_v53 = vpack.c.bf16 %v3642_v26, %v3641_v0  ;;  %6428 = vmatpush3.bf16.msra.mxu0 %v6883_v27  ;;  %7166 = vrcp.f32 %v9136_v49  ;;  %v11135_v0 = vld [vmem:[#allocation97_spill] sm:$0xff] }
 0x305   : > { %v7149_v46 = vpop.eup %7148  ;;  %v9495_v14 = vpop.xlane.xlu0 %3206  ;;  %3236 = vadd.xlane.f32.xlu1 %v9492_v3  ;;  %v3462_v8 = vmul.f32 %v7147_v22, %v11131_v2  ;;  %6429 = vmatprep.subr.bf16.mxu0 %v6884_v40  ;;  %v3446_v26 = vmul.f32 %v7135_v44, %v11135_v0  ;;  %v11136_v22 = vld [vmem:[#allocation99_spill] sm:$0xff]  ;;  %7168 = vrcp.f32 %v9142_v43 }
 0x306   : > { %v7151_v25 = vpop.eup %7150  ;;  %v9500_v10 = vpop.xlane.xlu1 %3208  ;;  %v3463_v29 = vmul.f32 %v7149_v46, %v11132_v24  ;;  %v3447_v2 = vmul.f32 %v7141_v7, %v11136_v22  ;;  %v11139_v22 = vld [vmem:[#allocation27_spill] sm:$0xff] }
 0x307   : > { %v9503_v52 = vpop.eup %7152  ;;  %v3575_v6 = vmul.f32 %v9412_v17, %v3462_v8  ;;  %v6886_v8 = vld [vmem:[%s8872_s19 + $0xa0] sm:$0xff]  }
 0x308   : > { %11133 = vst [vmem:[#allocation90_spill] sm:$0xff] %v9503_v52  ;;  %v9506_v27 = vpop.eup %7154  ;;  %3246 = vadd.xlane.f32.xlu0 %v9503_v52  ;;  %v3576_v3 = vmul.f32 %v9412_v17, %v3463_v29  ;;  %6430 = vmatpush3.bf16.msra.mxu0 %v6884_v40 }
 0x309   : > { %11134 = vst [vmem:[#allocation93_spill] sm:$0xff] %v9506_v27  ;;  %v7157_v5 = vpop.eup %7156  ;;  %v3107_v46 = vpop.xlane.xlu0 %3106  ;;  %3248 = vadd.xlane.f32.xlu1 %v9506_v27  ;;  %6431 = vmatprep.subr.bf16.mxu0 %v6885_v45  ;;  %v3639_v52 = vsub.f32 %v3446_v26, %v3575_v6  ;;  %v11140_v6 = vld [vmem:[#allocation30_spill] sm:$0xff] }
 0x30a   : > { %v9516_v24 = vpop.eup %7158  ;;  %7170 = vrcp.f32 %v3107_v46  ;;  %v3109_v49 = vpop.xlane.xlu1 %3108  ;;  %v3640_v44 = vsub.f32 %v3447_v2, %v3576_v3  ;;  %v6887_v46 = vld [vmem:[%s8872_s19 + $0xa8] sm:$0xff]  }
 0x30b   : > { %11137 = vst [vmem:[#allocation123_spill] sm:$0xff] %v9516_v24  ;;  %v9518_v0 = vpop.eup %7160  ;;  %7172 = vrcp.f32 %v3109_v49  ;;  %v11142_v49 = vld [vmem:[#allocation9_spill] sm:$0xff] }
 0x30c   : > { %11138 = vst [vmem:[#allocation46_spill] sm:$0xff] %v9518_v0  ;;  %v7163_v7 = vpop.eup %7162  ;;  %3242 = vadd.xlane.f32.xlu0 %v9516_v24  ;;  %v3701_v40 = vpack.c.bf16 %v3640_v44, %v3639_v52  ;;  %6432 = vmatpush3.bf16.msra.mxu0 %v6885_v45  ;;  %7174 = vrcp.f32 %v9160_v28  ;;  %v11141_v45 = vld [vmem:[#allocation6_spill] sm:$0xff]  ;;  %v3453_v44 = vmul.f32 %v7157_v5, %v11142_v49  ;;  %v11146_v24 = vld [vmem:[#allocation107_spill] sm:$0xff] }
 0x30d   : > { %v7165_v43 = vpop.eup %7164  ;;  %v9521_v29 = vpop.xlane.xlu0 %3202  ;;  %3244 = vadd.xlane.f32.xlu1 %v9518_v0  ;;  %v3468_v27 = vmul.f32 %v7163_v7, %v11139_v22  ;;  %6433 = vmatprep.subr.bf16.mxu0 %v6886_v8  ;;  %v3452_v52 = vmul.f32 %v7151_v25, %v11141_v45  ;;  %7176 = vrcp.f32 %v9166_v41  ;;  %v6889_v41 = vld [vmem:[%s8872_s19 + $0xb8] sm:$0xff]  }
 0x30e   : > { %6381 = vmatprep.mubr.bf16.mxu0 %v3701_v40  ;;  %v9526_v3 = vpop.xlane.xlu1 %3204  ;;  %v3469_v26 = vmul.f32 %v7165_v43, %v11140_v6  ;;  %v6888_v40 = vld [vmem:[%s8872_s19 + $0xb0] sm:$0xff]   ;;  %v7167_v22 = vpop.eup %7166 }
 0x30f   : > { %6382 = vmatmul.mubr.bf16.gmra.mrb[52].mxu0 %v3702_v53  ;;  %v3581_v2 = vmul.f32 %v9412_v17, %v3468_v27  ;;  %v7169_v6 = vpop.eup %7168 }
 0x310   : > { %v3582_v0 = vmul.f32 %v9412_v17, %v3469_v26  ;;  %6434 = vmatpush3.bf16.msra.mxu0 %v6886_v8  ;;  %v11144_v8 = vld [vmem:[#allocation35_spill] sm:$0xff] }
 0x311   : > { %v3119_v7 = vpop.xlane.xlu0 %3118  ;;  %6435 = vmatprep.subr.bf16.mxu0 %v6887_v46  ;;  %v3645_v43 = vsub.f32 %v3452_v52, %v3581_v2  ;;  %v11148_v52 = vld [vmem:[#allocation12_spill] sm:$0xff] }
 0x312   : > { %7178 = vrcp.f32 %v3119_v7  ;;  %v3121_v53 = vpop.xlane.xlu1 %3120  ;;  %v3646_v27 = vsub.f32 %v3453_v44, %v3582_v0  ;;  %v11147_v0 = vld [vmem:[#allocation8_spill] sm:$0xff]  ;;  %v3451_v44 = vmul.f32 %v7169_v6, %v11148_v52  ;;  %v11150_v6 = vld [vmem:[#allocation110_spill] sm:$0xff] }
 0x313   : > { %7180 = vrcp.f32 %v3121_v53  ;;  %v3450_v2 = vmul.f32 %v7167_v22, %v11147_v0 }
 0x314   : > { %v7171_v28 = vpop.eup %7170  ;;  %v3704_v25 = vpack.c.bf16 %v3646_v27, %v3645_v43  ;;  %6436 = vmatpush3.bf16.msra.mxu0 %v6887_v46  ;;  %7182 = vrcp.f32 %v9192_v47 }
 0x315   : > { %v7173_v5 = vpop.eup %7172  ;;  %v9536_v45 = vpop.xlane.xlu0 %3214  ;;  %v3466_v26 = vmul.f32 %v7171_v28, %v11144_v8  ;;  %6437 = vmatprep.subr.bf16.mxu0 %v6888_v40  ;;  %7184 = vrcp.f32 %v9198_v37  ;;  %v11152_v37 = vld [vmem:[#allocation70_spill] sm:$0xff] }
 0x316   : > { %11143 = vst [vmem:[#allocation73_spill] sm:$0xff] %v9536_v45  ;;  %v9540_v49 = vpop.xlane.xlu1 %3216  ;;  %v3467_v62 = vmul.f32 %v7173_v5, %v11146_v24  ;;  %v7175_v43 = vpop.eup %7174 }
 0x317   : > { %11145 = vst [vmem:[#allocation92_spill] sm:$0xff] %v9540_v49  ;;  %v3579_v7 = vmul.f32 %v9412_v17, %v3466_v26  ;;  %v7177_v5 = vpop.eup %7176  ;;  %v11159_v49 = vld [vmem:[#allocation118_spill] sm:$0xff] }
 0x318   : > { %v3580_v46 = vmul.f32 %v9412_v17, %v3467_v62  ;;  %6438 = vmatpush3.bf16.msra.mxu0 %v6888_v40 }
 0x319   : > { %v3115_v53 = vpop.xlane.xlu0 %3114  ;;  %6439 = vmatprep.subr.bf16.mxu0 %v6889_v41  ;;  %v3643_v28 = vsub.f32 %v3450_v2, %v3579_v7  ;;  %v11153_v7 = vld [vmem:[#allocation7_spill] sm:$0xff] }
 0x31a   : > { %7186 = vrcp.f32 %v3115_v53  ;;  %v3117_v27 = vpop.xlane.xlu1 %3116  ;;  %v3644_v24 = vsub.f32 %v3451_v44, %v3580_v46  ;;  %v3456_v2 = vmul.f32 %v7175_v43, %v11153_v7  ;;  %v11154_v44 = vld [vmem:[#allocation11_spill] sm:$0xff]  ;;  %v11157_v7 = vld [vmem:[#allocation117_spill] sm:$0xff] }
 0x31b   : > { %7188 = vrcp.f32 %v3117_v27  ;;  %v3457_v46 = vmul.f32 %v7177_v5, %v11154_v44 }
 0x31c   : > { %v7179_v8 = vpop.eup %7178  ;;  %v3703_v47 = vpack.c.bf16 %v3644_v24, %v3643_v28  ;;  %6440 = vmatpush3.bf16.msra.mxu0 %v6889_v41  ;;  %v11155_v28 = vld [vmem:[#allocation36_spill] sm:$0xff] }
 0x31d   : > { %v7181_v22 = vpop.eup %7180  ;;  %v9549_v26 = vpop.xlane.xlu0 %3210  ;;  %v3472_v62 = vmul.f32 %v7179_v8, %v11150_v6 }
 0x31e   : > { %11149 = vst [vmem:[#allocation43_spill] sm:$0xff] %v9549_v26  ;;  %6385 = vmatprep.mubr.bf16.mxu0 %v3703_v47  ;;  %v9552_v40 = vpop.xlane.xlu1 %3212  ;;  %v3473_v0 = vmul.f32 %v7181_v22, %v11152_v37  ;;  %v7183_v27 = vpop.eup %7182 }
 0x31f   : > { %11151 = vst [vmem:[#allocation94_spill] sm:$0xff] %v9552_v40  ;;  %6386 = vmatmul.mubr.bf16.gmra.mrb[56].mxu0 %v3704_v25  ;;  %v3585_v52 = vmul.f32 %v9412_v17, %v3472_v62  ;;  %v7185_v6 = vpop.eup %7184  ;;  %v11156_v40 = vld [vmem:[#allocation108_spill] sm:$0xff] }
 0x320   : > { %v3586_v53 = vmul.f32 %v9412_v17, %v3473_v0  ;;  %v11158_v0 = vld [vmem:[#allocation106_spill] sm:$0xff] }
 0x321   : > { %v2647_v41 = vpop.xlane.xlu0 %2646  ;;  %v3649_v8 = vsub.f32 %v3456_v2, %v3585_v52  ;;  %v11160_v52 = vld [vmem:[#allocation109_spill] sm:$0xff] }
 0x322   : > { %v2788_v24 = vsub.f32 %v11155_v28, %v2647_v41  ;;  %v2649_v45 = vpop.xlane.xlu1 %2648  ;;  %v3650_v47 = vsub.f32 %v3457_v46, %v3586_v53  ;;  %v11162_v28 = vld [vmem:[#allocation28_spill] sm:$0xff] }
 0x323   : > { %v2789_v26 = vsub.f32 %v11156_v40, %v2649_v45  ;;  %v11161_v40 = vld [vmem:[#allocation25_spill] sm:$0xff] }
 0x324   : > { %v7187_v22 = vpop.eup %7186  ;;  %v3030_v25 = vmul.f32 1.442695, %v2788_v24  ;;  %v3706_v37 = vpack.c.bf16 %v3650_v47, %v3649_v8  ;;  %v3454_v53 = vmul.f32 %v7183_v27, %v11161_v40  ;;  %v3455_v24 = vmul.f32 %v7185_v6, %v11162_v28  ;;  %v11165_v6 = vld [vmem:[#allocation111_spill] sm:$0xff] }
 0x325   : > { %v7189_v62 = vpop.eup %7188  ;;  %v3032_v23 = vmul.f32 1.442695, %v2789_v26  ;;  %v2643_v43 = vpop.xlane.xlu0 %2642  ;;  %v3470_v5 = vmul.f32 %v7187_v22, %v11157_v7  ;;  %v11163_v22 = vld [vmem:[#allocation38_spill] sm:$0xff] }
 0x326   : > { %7190 = vpow2.f32 %v3030_v25  ;;  %v2786_v44 = vsub.f32 %v11158_v0, %v2643_v43  ;;  %v2645_v39 = vpop.xlane.xlu1 %2644  ;;  %v3471_v41 = vmul.f32 %v7189_v62, %v11159_v49 }
 0x327   : > { %7192 = vpow2.f32 %v3032_v23  ;;  %v2787_v2 = vsub.f32 %v11160_v52, %v2645_v39  ;;  %v3583_v46 = vmul.f32 %v9412_v17, %v3470_v5  ;;  %v11164_v39 = vld [vmem:[#allocation113_spill] sm:$0xff]  ;;  %v11166_v52 = vld [vmem:[#allocation115_spill] sm:$0xff] }
 0x328   : > { %v3026_v45 = vmul.f32 1.442695, %v2786_v44  ;;  %v3584_v26 = vmul.f32 %v9412_v17, %v3471_v41 }
 0x329   : > { %v3028_v8 = vmul.f32 1.442695, %v2787_v2  ;;  %v2655_v47 = vpop.xlane.xlu0 %2654  ;;  %v3647_v49 = vsub.f32 %v3454_v53, %v3583_v46 }
 0x32a   : > { %7194 = vpow2.f32 %v3026_v45  ;;  %v2792_v25 = vsub.f32 %v11163_v22, %v2655_v47  ;;  %v2657_v43 = vpop.xlane.xlu1 %2656  ;;  %v3648_v23 = vsub.f32 %v3455_v24, %v3584_v26  ;;  %v9574_v45 = vld [vmem:[%s8872_s19 + $0xc0] sm:$0xff]  }
 0x32b   : > { %7196 = vpow2.f32 %v3028_v8  ;;  %v2793_v62 = vsub.f32 %v11164_v39, %v2657_v43  ;;  %6457 = vmatprep.subr.bf16.mxu1 %v9574_v45  ;;  %v11167_v26 = vld [vmem:[#allocation14_spill] sm:$0xff] }
 0x32c   : > { %v3038_v7 = vmul.f32 1.442695, %v2792_v25  ;;  %v3705_v5 = vpack.c.bf16 %v3648_v23, %v3647_v49 }
 0x32d   : > { %v3040_v0 = vmul.f32 1.442695, %v2793_v62  ;;  %v2651_v27 = vpop.xlane.xlu0 %2650 }
 0x32e   : > { %7198 = vpow2.f32 %v3038_v7  ;;  %v2790_v44 = vsub.f32 %v11165_v6, %v2651_v27  ;;  %6389 = vmatprep.mubr.bf16.mxu0 %v3705_v5  ;;  %v2653_v41 = vpop.xlane.xlu1 %2652 }
 0x32f   : > { %7200 = vpow2.f32 %v3040_v0  ;;  %v2791_v2 = vsub.f32 %v11166_v52, %v2653_v41  ;;  %6390 = vmatmul.mubr.bf16.gmra.mrb[60].mxu0 %v3706_v37 }
 0x330   : > { %v9576_v46 = vpop.eup %7190  ;;  %v3034_v40 = vmul.f32 1.442695, %v2790_v44 }
 0x331   : > { %v9578_v53 = vpop.eup %7192  ;;  %v3036_v28 = vmul.f32 1.442695, %v2791_v2  ;;  %v2663_v24 = vpop.xlane.xlu0 %2662  ;;  %3286 = vadd.xlane.f32.xlu0 %v9576_v46 }
 0x332   : > { %7202 = vpow2.f32 %v3034_v40  ;;  %v2796_v8 = vsub.f32 %v11167_v26, %v2663_v24  ;;  %v2665_v47 = vpop.xlane.xlu1 %2664  ;;  %3288 = vadd.xlane.f32.xlu1 %v9578_v53 }
 0x333   : > { %7204 = vpow2.f32 %v3036_v28  ;;  %v2797_v37 = vsub.f32 %v8741_v55, %v2665_v47 }
 0x334   : > { %v9585_v22 = vpop.eup %7194  ;;  %v3046_v25 = vmul.f32 1.442695, %v2796_v8 }
 0x335   : > { %v9587_v43 = vpop.eup %7196  ;;  %v3048_v49 = vmul.f32 1.442695, %v2797_v37  ;;  %v2659_v23 = vpop.xlane.xlu0 %2658  ;;  %3282 = vadd.xlane.f32.xlu0 %v9585_v22 }
 0x336   : > { %7206 = vpow2.f32 %v3046_v25  ;;  %v2794_v39 = vsub.f32 %v11021_v36, %v2659_v23  ;;  %v2661_v62 = vpop.xlane.xlu1 %2660  ;;  %3284 = vadd.xlane.f32.xlu1 %v9587_v43  ;;  %v11170_v25 = vld [vmem:[#allocation37_spill] sm:$0xff] }
 0x337   : > { %7208 = vpow2.f32 %v3048_v49  ;;  %v2795_v7 = vsub.f32 %v11023_v58, %v2661_v62 }
 0x338   : > { %v9593_v5 = vpop.eup %7198  ;;  %v3042_v55 = vmul.f32 1.442695, %v2794_v39  ;;  %v11172_v39 = vld [vmem:[#allocation65_spill] sm:$0xff] }
 0x339   : > { %v9595_v0 = vpop.eup %7200  ;;  %v3044_v27 = vmul.f32 1.442695, %v2795_v7  ;;  %v2671_v6 = vpop.xlane.xlu0 %2670  ;;  %3294 = vadd.xlane.f32.xlu0 %v9593_v5 }
 0x33a   : > { %7210 = vpow2.f32 %v3042_v55  ;;  %v2800_v44 = vsub.f32 %v8766_v20, %v2671_v6  ;;  %v2673_v41 = vpop.xlane.xlu1 %2672  ;;  %3296 = vadd.xlane.f32.xlu1 %v9595_v0  ;;  %v11174_v55 = vld [vmem:[#allocation71_spill] sm:$0xff] }
 0x33b   : > { %7212 = vpow2.f32 %v3044_v27  ;;  %v2801_v36 = vsub.f32 %v8777_v63, %v2673_v41  ;;  %v11168_v63 = vld [vmem:[#allocation72_spill] sm:$0xff]  ;;  %v11175_v27 = vld [vmem:[#allocation33_spill] sm:$0xff] }
 0x33c   : > { %v9601_v52 = vpop.eup %7202  ;;  %v3054_v58 = vmul.f32 1.442695, %v2800_v44  ;;  %v11176_v6 = vsub.f32 %v11174_v55, %v11175_v27 }
 0x33d   : > { %v9603_v2 = vpop.eup %7204  ;;  %v3056_v40 = vmul.f32 1.442695, %v2801_v36  ;;  %3290 = vadd.xlane.f32.xlu0 %v9601_v52  ;;  %v2667_v28 = vpop.xlane.xlu0 %2666 }
 0x33e   : > { %7214 = vpow2.f32 %v3054_v58  ;;  %v2798_v24 = vsub.f32 %v8769_v32, %v2667_v28  ;;  %3292 = vadd.xlane.f32.xlu1 %v9603_v2  ;;  %v2669_v20 = vpop.xlane.xlu1 %2668  ;;  %v11171_v32 = vld [vmem:[#allocation67_spill] sm:$0xff]  ;;  %v3024_v44 = vmul.f32 1.442695, %v11176_v6  ;;  %v11186_v6 = vld [vmem:[#allocation124_spill] sm:$0xff] }
 0x33f   : > { %7216 = vpow2.f32 %v3056_v40  ;;  %v2799_v26 = vsub.f32 %v8786_v50, %v2669_v20  ;;  %v11173_v62 = vsub.f32 %v11171_v32, %v11172_v39 }
 0x340   : > { %v9609_v8 = vpop.eup %7206  ;;  %7218 = vrcp.f32 %v11168_v63  ;;  %v3050_v47 = vmul.f32 1.442695, %v2798_v24  ;;  %v11180_v24 = vld [vmem:[#allocation119_spill] sm:$0xff] }
 0x341   : > { %v9612_v37 = vpop.eup %7208  ;;  %7220 = vrcp.f32 %v11170_v25  ;;  %v3052_v49 = vmul.f32 1.442695, %v2799_v26  ;;  %3302 = vadd.xlane.f32.xlu0 %v9609_v8  ;;  %v3159_v23 = vpop.xlane.xlu0 %3158  ;;  %v3022_v7 = vmul.f32 1.442695, %v11173_v62  ;;  %v11182_v26 = vld [vmem:[#allocation120_spill] sm:$0xff] }
 0x342   : > { %11169 = vst [vmem:[#allocation75_spill] sm:$0xff] %v9612_v37  ;;  %7222 = vpow2.f32 %v3050_v47  ;;  %3304 = vadd.xlane.f32.xlu1 %v9612_v37  ;;  %v3161_v50 = vpop.xlane.xlu1 %3160 }
 0x343   : > { %7224 = vpow2.f32 %v3052_v49 }
 0x344   : > { %v9623_v41 = vpop.eup %7210  ;;  %7226 = vrcp.f32 %v3159_v23 }
 0x345   : > { %11177 = vst [vmem:[#allocation126_spill] sm:$0xff] %v9623_v41  ;;  %v9625_v36 = vpop.eup %7212  ;;  %7228 = vrcp.f32 %v3161_v50  ;;  %3298 = vadd.xlane.f32.xlu0 %v9623_v41  ;;  %v9628_v58 = vpop.xlane.xlu0 %3254 }
 0x346   : > { %11178 = vst [vmem:[#allocation98_spill] sm:$0xff] %v9625_v36  ;;  %7230 = vpow2.f32 %v3022_v7  ;;  %3300 = vadd.xlane.f32.xlu1 %v9625_v36  ;;  %v9631_v40 = vpop.xlane.xlu1 %3256 }
 0x347   : > { %7232 = vpow2.f32 %v3024_v44 }
 0x348   : > { %v9633_v28 = vpop.eup %7214  ;;  %7234 = vrcp.f32 %v11180_v24 }
 0x349   : > { %11179 = vst [vmem:[#allocation48_spill] sm:$0xff] %v9633_v28  ;;  %v9636_v20 = vpop.eup %7216  ;;  %7236 = vrcp.f32 %v11182_v26  ;;  %3310 = vadd.xlane.f32.xlu0 %v9633_v28  ;;  %v3155_v63 = vpop.xlane.xlu0 %3154  ;;  %v11188_v26 = vld [vmem:[#allocation125_spill] sm:$0xff]  ;;  %v11190_v28 = vld [vmem:[#allocation80_spill] sm:$0xff] }
 0x34a   : > { %11181 = vst [vmem:[#allocation101_spill] sm:$0xff] %v9636_v20  ;;  %v7219_v47 = vpop.eup %7218  ;;  %7238 = vrcp.f32 %v3155_v63  ;;  %3312 = vadd.xlane.f32.xlu1 %v9636_v20  ;;  %v3157_v25 = vpop.xlane.xlu1 %3156 }
 0x34b   : > { %v7221_v49 = vpop.eup %7220  ;;  %7240 = vrcp.f32 %v3157_v25 }
 0x34c   : > { %v9641_v23 = vpop.eup %7222  ;;  %7242 = vrcp.f32 %v11186_v6 }
 0x34d   : > { %11183 = vst [vmem:[#allocation49_spill] sm:$0xff] %v9641_v23  ;;  %v9643_v32 = vpop.eup %7224  ;;  %3306 = vadd.xlane.f32.xlu0 %v9641_v23  ;;  %v9646_v39 = vpop.xlane.xlu0 %3250  ;;  %7244 = vrcp.f32 %v11188_v26 }
 0x34e   : > { %11184 = vst [vmem:[#allocation127_spill] sm:$0xff] %v9643_v32  ;;  %v7227_v62 = vpop.eup %7226  ;;  %3308 = vadd.xlane.f32.xlu1 %v9643_v32  ;;  %v9649_v7 = vpop.xlane.xlu1 %3252  ;;  %v11189_v32 = vld [vmem:[#allocation79_spill] sm:$0xff] }
 0x34f   : > { %v7229_v50 = vpop.eup %7228  ;;  %v3492_v55 = vmul.f32 %v7227_v62, %v9168_v57  ;;  %v3476_v23 = vmul.f32 %v7219_v47, %v11189_v32  ;;  %v3477_v57 = vmul.f32 %v7221_v49, %v11190_v28  ;;  %v11191_v32 = vld [vmem:[#allocation128_spill] sm:$0xff] }
 0x350   : > { %v9652_v27 = vpop.eup %7230  ;;  %v3493_v44 = vmul.f32 %v7229_v50, %v9170_v35 }
 0x351   : > { %11185 = vst [vmem:[#allocation81_spill] sm:$0xff] %v9652_v27  ;;  %v9656_v24 = vpop.eup %7232  ;;  %v3589_v63 = vmul.f32 %v9412_v17, %v3492_v55  ;;  %3278 = vadd.xlane.f32.xlu0 %v9652_v27  ;;  %v3167_v25 = vpop.xlane.xlu0 %3166 }
 0x352   : > { %11187 = vst [vmem:[#allocation100_spill] sm:$0xff] %v9656_v24  ;;  %v7235_v20 = vpop.eup %7234  ;;  %v3590_v62 = vmul.f32 %v9412_v17, %v3493_v44  ;;  %7246 = vrcp.f32 %v3167_v25  ;;  %3280 = vadd.xlane.f32.xlu1 %v9656_v24  ;;  %v3169_v35 = vpop.xlane.xlu1 %3168  ;;  %v11192_v44 = vld [vmem:[#allocation87_spill] sm:$0xff] }
 0x353   : > { %v7237_v50 = vpop.eup %7236  ;;  %7248 = vrcp.f32 %v3169_v35  ;;  %v3653_v26 = vsub.f32 %v3476_v23, %v3589_v63  ;;  %v3474_v25 = vmul.f32 %v7235_v20, %v11192_v44  ;;  %v11193_v35 = vld [vmem:[#allocation88_spill] sm:$0xff]  ;;  %v11194_v63 = vld [vmem:[#allocation129_spill] sm:$0xff] }
 0x354   : > { %v7239_v6 = vpop.eup %7238  ;;  %v3654_v36 = vsub.f32 %v3477_v57, %v3590_v62  ;;  %7250 = vrcp.f32 %v11191_v32  ;;  %v3475_v24 = vmul.f32 %v7237_v50, %v11193_v35  ;;  %v6891_v50 = vld [vmem:[%s8872_s19 + $0xc8] sm:$0xff]  }
 0x355   : > { %v7241_v55 = vpop.eup %7240  ;;  %v9665_v41 = vpop.xlane.xlu0 %3262  ;;  %v3490_v27 = vmul.f32 %v7239_v6, %v9200_v13  ;;  %7252 = vrcp.f32 %v11194_v63 }
 0x356   : > { %v9668_v37 = vpop.xlane.xlu1 %3264  ;;  %v3491_v28 = vmul.f32 %v7241_v55, %v9202_v60  ;;  %v3708_v47 = vpack.c.bf16 %v3654_v36, %v3653_v26  ;;  %v7243_v13 = vpop.eup %7242 }
 0x357   : > { %v3587_v49 = vmul.f32 %v9412_v17, %v3490_v27  ;;  %v7245_v36 = vpop.eup %7244 }
 0x358   : > { %v3588_v23 = vmul.f32 %v9412_v17, %v3491_v28 }
 0x359   : > { %v3163_v57 = vpop.xlane.xlu0 %3162  ;;  %v3651_v6 = vsub.f32 %v3474_v25, %v3587_v49  ;;  %v11196_v25 = vld [vmem:[#allocation95_spill] sm:$0xff] }
 0x35a   : > { %7254 = vrcp.f32 %v3163_v57  ;;  %v3165_v62 = vpop.xlane.xlu1 %3164  ;;  %v3652_v60 = vsub.f32 %v3475_v24, %v3588_v23  ;;  %v11195_v24 = vld [vmem:[#allocation132_spill] sm:$0xff]  ;;  %v3480_v35 = vmul.f32 %v7243_v13, %v11196_v25 }
 0x35b   : > { %7256 = vrcp.f32 %v3165_v62  ;;  %v11197_v23 = vld [vmem:[#allocation96_spill] sm:$0xff] }
 0x35c   : > { %v7247_v27 = vpop.eup %7246  ;;  %v3707_v26 = vpack.c.bf16 %v3652_v60, %v3651_v6  ;;  %7258 = vrcp.f32 %v11195_v24  ;;  %v3481_v63 = vmul.f32 %v7245_v36, %v11197_v23  ;;  %v6892_v62 = vld [vmem:[%s8872_s19 + $0xd0] sm:$0xff]   ;;  %v11198_v24 = vld [vmem:[#allocation103_spill] sm:$0xff] }
 0x35d   : > { %v7249_v55 = vpop.eup %7248  ;;  %v9677_v32 = vpop.xlane.xlu0 %3258  ;;  %v3496_v20 = vmul.f32 %v7247_v27, %v9233_v12  ;;  %7260 = vrcp.f32 %v9130_v4 }
 0x35e   : > { %6409 = vmatprep.mubr.bf16.mxu1 %v3707_v26  ;;  %v9681_v28 = vpop.xlane.xlu1 %3260  ;;  %v3497_v44 = vmul.f32 %v7249_v55, %v9235_v48  ;;  %v7251_v48 = vpop.eup %7250 }
 0x35f   : > { %6410 = vmatmul.mubr.bf16.vlgmr.msra.gmra.mrb[80].mxu1 %v3708_v47  ;;  %v3593_v49 = vmul.f32 %v9412_v17, %v3496_v20  ;;  %v7253_v27 = vpop.eup %7252  ;;  %v3478_v25 = vmul.f32 %v7251_v48, %v11198_v24 }
 0x360   : > { %v3594_v57 = vmul.f32 %v9412_v17, %v3497_v44  ;;  %6458 = vmatpush3.bf16.msra.mxu1 %v9574_v45  ;;  %v6893_v45 = vld [vmem:[%s8872_s19 + $0xd8] sm:$0xff]  }
 0x361   : > { %v3175_v12 = vpop.xlane.xlu0 %3174  ;;  %6459 = vmatprep.subr.bf16.mxu1 %v6891_v50  ;;  %v3657_v6 = vsub.f32 %v3480_v35, %v3593_v49  ;;  %v11199_v35 = vld [vmem:[#allocation16_spill] sm:$0xff] }
 0x362   : > { %7262 = vrcp.f32 %v3175_v12  ;;  %v3177_v47 = vpop.xlane.xlu1 %3176  ;;  %v3658_v60 = vsub.f32 %v3481_v63, %v3594_v57  ;;  %v6894_v63 = vld [vmem:[%s8872_s19 + $0xe0] sm:$0xff]  }
 0x363   : > { %7264 = vrcp.f32 %v3177_v47 }
 0x364   : > { %v7255_v13 = vpop.eup %7254  ;;  %v3710_v26 = vpack.c.bf16 %v3658_v60, %v3657_v6  ;;  %6460 = vmatpush3.bf16.msra.mxu1 %v6891_v50  ;;  %7266 = vrcp.f32 %v9148_v51  ;;  %v3479_v50 = vmul.f32 %v7253_v27, %v11199_v35 }
 0x365   : > { %v7257_v36 = vpop.eup %7256  ;;  %v9692_v55 = vpop.xlane.xlu0 %3270  ;;  %v3494_v4 = vmul.f32 %v7255_v13, %v9267_v21  ;;  %6461 = vmatprep.subr.bf16.mxu1 %v6892_v62  ;;  %7268 = vrcp.f32 %v9154_v31  ;;  %v6895_v31 = vld [vmem:[%s8872_s19 + $0xe8] sm:$0xff]  }
 0x366   : > { %v9696_v20 = vpop.xlane.xlu1 %3272  ;;  %v3495_v44 = vmul.f32 %v7257_v36, %v9269_v34  ;;  %v7259_v57 = vpop.eup %7258 }
 0x367   : > { %v3591_v49 = vmul.f32 %v9412_v17, %v3494_v4  ;;  %v7261_v6 = vpop.eup %7260 }
 0x368   : > { %v3592_v23 = vmul.f32 %v9412_v17, %v3495_v44  ;;  %6462 = vmatpush3.bf16.msra.mxu1 %v6892_v62  ;;  %v11200_v44 = vld [vmem:[#allocation17_spill] sm:$0xff] }
 0x369   : > { %v3171_v21 = vpop.xlane.xlu0 %3170  ;;  %6463 = vmatprep.subr.bf16.mxu1 %v6893_v45  ;;  %v3655_v12 = vsub.f32 %v3478_v25, %v3591_v49  ;;  %v11201_v49 = vld [vmem:[#allocation20_spill] sm:$0xff] }
 0x36a   : > { %7270 = vrcp.f32 %v3171_v21  ;;  %v3173_v34 = vpop.xlane.xlu1 %3172  ;;  %v3656_v47 = vsub.f32 %v3479_v50, %v3592_v23  ;;  %v3485_v24 = vmul.f32 %v7261_v6, %v11201_v49  ;;  %v6896_v50 = vld [vmem:[%s8872_s19 + $0xf0] sm:$0xff]  }
 0x36b   : > { %7272 = vrcp.f32 %v3173_v34 }
 0x36c   : > { %v7263_v51 = vpop.eup %7262  ;;  %v3709_v48 = vpack.c.bf16 %v3656_v47, %v3655_v12  ;;  %6464 = vmatpush3.bf16.msra.mxu1 %v6893_v45  ;;  %7274 = vrcp.f32 %v9176_v56  ;;  %v3484_v45 = vmul.f32 %v7259_v57, %v11200_v44  ;;  %v11203_v57 = vld [vmem:[#allocation42_spill] sm:$0xff] }
 0x36d   : > { %v7265_v60 = vpop.eup %7264  ;;  %v9706_v27 = vpop.xlane.xlu0 %3266  ;;  %v3500_v62 = vmul.f32 %v7263_v51, %v9301_v61  ;;  %6465 = vmatprep.subr.bf16.mxu1 %v6894_v63  ;;  %v11202_v61 = vld [vmem:[#allocation44_spill] sm:$0xff] }
 0x36e   : > { %6413 = vmatprep.mubr.bf16.mxu1 %v3709_v48  ;;  %v9710_v13 = vpop.xlane.xlu1 %3268  ;;  %v3501_v36 = vmul.f32 %v7265_v60, %v9304_v30  ;;  %7276 = vrcp.f32 %v11202_v61  ;;  %v7267_v23 = vpop.eup %7266  ;;  %v6897_v48 = vld [vmem:[%s8872_s19 + $0xf8] sm:$0xff]  }
 0x36f   : > { %6414 = vmatmul.mubr.bf16.gmra.mrb[84].mxu1 %v3710_v26  ;;  %v3597_v4 = vmul.f32 %v9412_v17, %v3500_v62  ;;  %v7269_v34 = vpop.eup %7268 }
 0x370   : > { %v3598_v25 = vmul.f32 %v9412_v17, %v3501_v36  ;;  %6466 = vmatpush3.bf16.msra.mxu1 %v6894_v63  ;;  %v11204_v63 = vld [vmem:[#allocation15_spill] sm:$0xff] }
 0x371   : > { %v3183_v35 = vpop.xlane.xlu0 %3182  ;;  %6467 = vmatprep.subr.bf16.mxu1 %v6895_v31  ;;  %v3661_v26 = vsub.f32 %v3484_v45, %v3597_v4  ;;  %v11205_v4 = vld [vmem:[#allocation19_spill] sm:$0xff] }
 0x372   : > { %7278 = vrcp.f32 %v3183_v35  ;;  %v3185_v30 = vpop.xlane.xlu1 %3184  ;;  %v3662_v21 = vsub.f32 %v3485_v24, %v3598_v25  ;;  %v3482_v44 = vmul.f32 %v7267_v23, %v11205_v4  ;;  %v11206_v45 = vld [vmem:[#allocation23_spill] sm:$0xff]  ;;  %v11209_v4 = vld [vmem:[#allocation61_spill] sm:$0xff] }
 0x373   : > { %7280 = vrcp.f32 %v3185_v30  ;;  %v3483_v49 = vmul.f32 %v7269_v34, %v11206_v45 }
 0x374   : > { %v7271_v56 = vpop.eup %7270  ;;  %7282 = vrcp.f32 %v11203_v57  ;;  %v3712_v12 = vpack.c.bf16 %v3662_v21, %v3661_v26  ;;  %6468 = vmatpush3.bf16.msra.mxu1 %v6895_v31 }
 0x375   : > { %v7273_v47 = vpop.eup %7272  ;;  %7284 = vrcp.f32 %v11204_v63  ;;  %v3179_v6 = vpop.xlane.xlu0 %3178  ;;  %v3498_v51 = vmul.f32 %v7271_v56, %v9338_v11  ;;  %6469 = vmatprep.subr.bf16.mxu1 %v6896_v50 }
 0x376   : > { %7286 = vrcp.f32 %v3179_v6  ;;  %v3181_v60 = vpop.xlane.xlu1 %3180  ;;  %v3499_v62 = vmul.f32 %v7273_v47, %v9346_v9  ;;  %v7275_v11 = vpop.eup %7274 }
 0x377   : > { %7288 = vrcp.f32 %v3181_v60  ;;  %v3595_v36 = vmul.f32 %v9412_v17, %v3498_v51  ;;  %v11207_v51 = vld [vmem:[#allocation10_spill] sm:$0xff] }
 0x378   : > { %v3596_v31 = vmul.f32 %v9412_v17, %v3499_v62  ;;  %6470 = vmatpush3.bf16.msra.mxu1 %v6896_v50  ;;  %v7277_v30 = vpop.eup %7276  ;;  %7290 = vrcp.f32 %v9385_v1  ;;  %v11208_v1 = vld [vmem:[#allocation13_spill] sm:$0xff] }
 0x379   : > { %v9729_v24 = vpop.xlane.xlu0 %3274  ;;  %6471 = vmatprep.subr.bf16.mxu1 %v6897_v48  ;;  %v3659_v61 = vsub.f32 %v3482_v44, %v3595_v36  ;;  %v3489_v60 = vmul.f32 %v7277_v30, %v11208_v1  ;;  %v11213_v30 = vld [vmem:[#allocation32_spill] sm:$0xff] }
 0x37a   : > { %v9731_v25 = vpop.xlane.xlu1 %3276  ;;  %v3660_v35 = vsub.f32 %v3483_v49, %v3596_v31 }
 0x37c   : > { %v7279_v9 = vpop.eup %7278  ;;  %v3711_v26 = vpack.c.bf16 %v3660_v35, %v3659_v61  ;;  %6472 = vmatpush3.bf16.msra.mxu1 %v6897_v48  ;;  %v3488_v48 = vmul.f32 %v7275_v11, %v11207_v51  ;;  %v11212_v35 = vld [vmem:[#allocation62_spill] sm:$0xff] }
 0x37d   : > { %v7281_v21 = vpop.eup %7280  ;;  %v3223_v23 = vpop.xlane.xlu0 %3222  ;;  %v3504_v34 = vmul.f32 %v7279_v9, %v9369_v19 }
 0x37e   : > { %v7283_v56 = vpop.eup %7282  ;;  %7292 = vrcp.f32 %v3223_v23  ;;  %6417 = vmatprep.mubr.bf16.mxu1 %v3711_v26  ;;  %v3225_v50 = vpop.xlane.xlu1 %3224  ;;  %v3505_v57 = vmul.f32 %v7281_v21, %v9371_v15 }
 0x37f   : > { %v7285_v47 = vpop.eup %7284  ;;  %7294 = vrcp.f32 %v3225_v50  ;;  %6418 = vmatmul.mubr.bf16.gmra.mrb[88].mxu1 %v3712_v12  ;;  %v3601_v63 = vmul.f32 %v9412_v17, %v3504_v34  ;;  %v11210_v12 = vld [vmem:[#allocation64_spill] sm:$0xff] }
 0x380   : > { %v7287_v6 = vpop.eup %7286  ;;  %7296 = vrcp.f32 %v9406_v42  ;;  %v3602_v19 = vmul.f32 %v9412_v17, %v3505_v57  ;;  %v11211_v42 = vld [vmem:[#allocation104_spill] sm:$0xff]  ;;  %v3487_v9 = vmul.f32 %v7285_v47, %v11213_v30 }
 0x381   : > { %v7289_v62 = vpop.eup %7288  ;;  %7298 = vrcp.f32 %v9414_v16  ;;  %v3219_v36 = vpop.xlane.xlu0 %3218  ;;  %v3502_v15 = vmul.f32 %v7287_v6, %v11209_v4  ;;  %v3665_v49 = vsub.f32 %v3488_v48, %v3601_v63  ;;  %v3486_v61 = vmul.f32 %v7283_v56, %v11211_v42  ;;  %v11214_v48 = vld [vmem:[#allocation66_spill] sm:$0xff] }
 0x382   : > { %7300 = vrcp.f32 %v3219_v36  ;;  %v3221_v44 = vpop.xlane.xlu1 %3220  ;;  %v3503_v45 = vmul.f32 %v7289_v62, %v11210_v12  ;;  %v3666_v31 = vsub.f32 %v3489_v60, %v3602_v19  ;;  %v7291_v57 = vpop.eup %7290  ;;  %v11215_v19 = vld [vmem:[#allocation29_spill] sm:$0xff] }
 0x383   : > { %7302 = vrcp.f32 %v3221_v44  ;;  %v3599_v11 = vmul.f32 %v9412_v17, %v3502_v15  ;;  %v11216_v15 = vld [vmem:[#allocation69_spill] sm:$0xff] }
 0x384   : > { %7304 = vrcp.f32 %v11212_v35  ;;  %v3600_v16 = vmul.f32 %v9412_v17, %v3503_v45  ;;  %v3714_v26 = vpack.c.bf16 %v3666_v31, %v3665_v49  ;;  %v11217_v49 = vld [vmem:[#allocation74_spill] sm:$0xff] }
 0x385   : > { %7306 = vrcp.f32 %v9445_v59  ;;  %v3231_v21 = vpop.xlane.xlu0 %3230  ;;  %v3663_v34 = vsub.f32 %v3486_v61, %v3599_v11  ;;  %v11218_v61 = vld [vmem:[#allocation45_spill] sm:$0xff] }
 0x386   : > { %7308 = vrcp.f32 %v3231_v21  ;;  %v3233_v23 = vpop.xlane.xlu1 %3232  ;;  %v3664_v50 = vsub.f32 %v3487_v9, %v3600_v16  ;;  %v3509_v11 = vmul.f32 %v7291_v57, %v11218_v61  ;;  %v11220_v16 = vld [vmem:[#allocation55_spill] sm:$0xff]  ;;  %v11226_v61 = vld [vmem:[#allocation60_spill] sm:$0xff] }
 0x387   : > { %7310 = vrcp.f32 %v3233_v23 }
 0x388   : > { %v7293_v63 = vpop.eup %7292  ;;  %7312 = vrcp.f32 %v9470_v33  ;;  %v3713_v56 = vpack.c.bf16 %v3664_v50, %v3663_v34  ;;  %v11221_v34 = vld [vmem:[#allocation47_spill] sm:$0xff] }
 0x389   : > { %v7295_v6 = vpop.eup %7294  ;;  %7314 = vrcp.f32 %v9475_v18  ;;  %v3227_v47 = vpop.xlane.xlu0 %3226  ;;  %v3524_v62 = vmul.f32 %v7293_v63, %v11215_v19 }
 0x38a   : > { %v7297_v51 = vpop.eup %7296  ;;  %v3525_v1 = vmul.f32 %v7295_v6, %v11214_v48  ;;  %7316 = vrcp.f32 %v3227_v47  ;;  %6421 = vmatprep.mubr.bf16.mxu1 %v3713_v56  ;;  %v3229_v59 = vpop.xlane.xlu1 %3228 }
 0x38b   : > { %v7299_v60 = vpop.eup %7298  ;;  %7318 = vrcp.f32 %v3229_v59  ;;  %6422 = vmatmul.mubr.bf16.gmra.mrb[92].mxu1 %v3714_v26  ;;  %v3605_v35 = vmul.f32 %v9412_v17, %v3524_v62  ;;  %v11222_v59 = vld [vmem:[#allocation77_spill] sm:$0xff] }
 0x38c   : > { %v7301_v36 = vpop.eup %7300  ;;  %7320 = vrcp.f32 %v9439_v38  ;;  %v3606_v18 = vmul.f32 %v9412_v17, %v3525_v1  ;;  %v3507_v26 = vmul.f32 %v7299_v60, %v11220_v16  ;;  %v11229_v16 = vld [vmem:[#allocation24_spill] sm:$0xff] }
 0x38d   : > { %v7303_v33 = vpop.eup %7302  ;;  %7322 = vrcp.f32 %v9500_v10  ;;  %v3239_v4 = vpop.xlane.xlu0 %3238  ;;  %v3522_v44 = vmul.f32 %v7301_v36, %v11216_v15  ;;  %v11219_v10 = vld [vmem:[#allocation51_spill] sm:$0xff] }
 0x38e   : > { %v7305_v12 = vpop.eup %7304  ;;  %7324 = vrcp.f32 %v3239_v4  ;;  %v3241_v45 = vpop.xlane.xlu1 %3240  ;;  %v3523_v31 = vmul.f32 %v7303_v33, %v11217_v49  ;;  %v3506_v9 = vmul.f32 %v7297_v51, %v11219_v10  ;;  %v3670_v63 = vsub.f32 %v3509_v11, %v3606_v18  ;;  %v11224_v4 = vld [vmem:[#allocation76_spill] sm:$0xff]  ;;  %v11228_v10 = vld [vmem:[#allocation21_spill] sm:$0xff] }
 0x38f   : > { %v7307_v42 = vpop.eup %7306  ;;  %7326 = vrcp.f32 %v3241_v45  ;;  %v3603_v38 = vmul.f32 %v9412_v17, %v3522_v44  ;;  %v3508_v50 = vmul.f32 %v7305_v12, %v11221_v34  ;;  %v11225_v45 = vld [vmem:[#allocation78_spill] sm:$0xff] }
 0x390   : > { %v7309_v30 = vpop.eup %7308  ;;  %7328 = vrcp.f32 %v9521_v29  ;;  %v3604_v21 = vmul.f32 %v9412_v17, %v3523_v31  ;;  %v3513_v11 = vmul.f32 %v7307_v42, %v11226_v61  ;;  %v11230_v34 = vld [vmem:[#allocation94_spill] sm:$0xff]  ;;  %v11237_v61 = vld [vmem:[#allocation116_spill] sm:$0xff] }
 0x391   : > { %v7311_v23 = vpop.eup %7310  ;;  %7330 = vrcp.f32 %v9526_v3  ;;  %v3235_v57 = vpop.xlane.xlu0 %3234  ;;  %v3667_v47 = vsub.f32 %v3506_v9, %v3603_v38  ;;  %v3669_v51 = vsub.f32 %v3508_v50, %v3605_v35  ;;  %v3528_v60 = vmul.f32 %v7309_v30, %v11222_v59  ;;  %v11223_v3 = vld [vmem:[#allocation92_spill] sm:$0xff]  ;;  %v11227_v30 = vld [vmem:[#allocation43_spill] sm:$0xff] }
 0x392   : > { %v7313_v56 = vpop.eup %7312  ;;  %7332 = vrcp.f32 %v3235_v57  ;;  %v3237_v6 = vpop.xlane.xlu1 %3236  ;;  %v3668_v48 = vsub.f32 %v3507_v26, %v3604_v21  ;;  %v3529_v29 = vmul.f32 %v7311_v23, %v9454_v54  ;;  %v11231_v57 = vld [vmem:[#allocation57_spill] sm:$0xff] }
 0x393   : > { %v7315_v1 = vpop.eup %7314  ;;  %7334 = vrcp.f32 %v3237_v6  ;;  %v3716_v18 = vpack.c.bf16 %v3670_v63, %v3669_v51  ;;  %v3609_v35 = vmul.f32 %v9412_v17, %v3528_v60  ;;  %v3510_v9 = vmul.f32 %v7313_v56, %v11228_v10  ;;  %v11232_v51 = vld [vmem:[#allocation85_spill] sm:$0xff] }
 0x394   : > { %v7317_v19 = vpop.eup %7316  ;;  %7336 = vrcp.f32 %v9495_v14  ;;  %v3715_v62 = vpack.c.bf16 %v3668_v48, %v3667_v47  ;;  %v3610_v44 = vmul.f32 %v9412_v17, %v3529_v29  ;;  %v3511_v26 = vmul.f32 %v7315_v1, %v11229_v16  ;;  %v11233_v1 = vld [vmem:[#allocation82_spill] sm:$0xff] }
 0x395   : > { %v7319_v36 = vpop.eup %7318  ;;  %7338 = vrcp.f32 %v11223_v3  ;;  %v3247_v33 = vpop.xlane.xlu0 %3246  ;;  %v3526_v15 = vmul.f32 %v7317_v19, %v11224_v4  ;;  %v11235_v4 = vld [vmem:[#allocation84_spill] sm:$0xff] }
 0x396   : > { %v7321_v12 = vpop.eup %7320  ;;  %7340 = vrcp.f32 %v3247_v33  ;;  %6441 = vmatprep.mubr.bf16.mxu0 %v3715_v62  ;;  %v3249_v54 = vpop.xlane.xlu1 %3248  ;;  %v3527_v49 = vmul.f32 %v7319_v36, %v11225_v45  ;;  %v3674_v6 = vsub.f32 %v3513_v11, %v3610_v44  ;;  %v11234_v36 = vld [vmem:[#allocation73_spill] sm:$0xff] }
 0x397   : > { %v7323_v31 = vpop.eup %7322  ;;  %7342 = vrcp.f32 %v3249_v54  ;;  %6442 = vmatmul.mubr.bf16.vlgmr.msra.gmra.mrb[64].mxu0 %v3716_v18  ;;  %v3607_v14 = vmul.f32 %v9412_v17, %v3526_v15  ;;  %v3512_v63 = vmul.f32 %v7321_v12, %v11231_v57  ;;  %v11236_v54 = vld [vmem:[#allocation86_spill] sm:$0xff] }
 0x398   : > { %v7325_v38 = vpop.eup %7324  ;;  %7344 = vrcp.f32 %v11227_v30  ;;  %v3608_v21 = vmul.f32 %v9412_v17, %v3527_v49  ;;  %v3517_v11 = vmul.f32 %v7323_v31, %v11237_v61  ;;  %v11238_v30 = vld [vmem:[#allocation34_spill] sm:$0xff] }
 0x399   : > { %v7327_v23 = vpop.eup %7326  ;;  %7346 = vrcp.f32 %v11230_v34  ;;  %v3243_v50 = vpop.xlane.xlu0 %3242  ;;  %v3671_v48 = vsub.f32 %v3510_v9, %v3607_v14  ;;  %v3673_v56 = vsub.f32 %v3512_v63, %v3609_v35  ;;  %v3532_v19 = vmul.f32 %v7325_v38, %v11233_v1  ;;  %v11239_v9 = vld [vmem:[#allocation39_spill] sm:$0xff] }
 0x39a   : > { %v7329_v47 = vpop.eup %7328  ;;  %7348 = vrcp.f32 %v3243_v50  ;;  %v3245_v42 = vpop.xlane.xlu1 %3244  ;;  %v3672_v29 = vsub.f32 %v3511_v26, %v3608_v21  ;;  %v3533_v59 = vmul.f32 %v7327_v23, %v11232_v51  ;;  %v11240_v23 = vld [vmem:[#allocation105_spill] sm:$0xff]  ;;  %v11242_v51 = vld [vmem:[#allocation90_spill] sm:$0xff] }
 0x39b   : > { %v7331_v60 = vpop.eup %7330  ;;  %7350 = vrcp.f32 %v3245_v42  ;;  %v3718_v18 = vpack.c.bf16 %v3674_v6, %v3673_v56  ;;  %v3613_v35 = vmul.f32 %v9412_v17, %v3532_v19  ;;  %v3514_v10 = vmul.f32 %v7329_v47, %v11238_v30  ;;  %v11241_v42 = vld [vmem:[#allocation93_spill] sm:$0xff] }
 0x39c   : > { %v7333_v62 = vpop.eup %7332  ;;  %7352 = vrcp.f32 %v11234_v36  ;;  %v3717_v3 = vpack.c.bf16 %v3672_v29, %v3671_v48  ;;  %v3614_v44 = vmul.f32 %v9412_v17, %v3533_v59  ;;  %v3515_v16 = vmul.f32 %v7331_v60, %v11239_v9  ;;  %v11243_v60 = vld [vmem:[#allocation123_spill] sm:$0xff] }
 0x39d   : > { %v7335_v33 = vpop.eup %7334  ;;  %v3530_v15 = vmul.f32 %v7333_v62, %v11235_v4  ;;  %7354 = vrcp.f32 %v9628_v58 }
 0x39e   : > { %v7337_v12 = vpop.eup %7336  ;;  %6445 = vmatprep.mubr.bf16.mxu0 %v3717_v3  ;;  %v3531_v45 = vmul.f32 %v7335_v33, %v11236_v54  ;;  %v3678_v50 = vsub.f32 %v3517_v11, %v3614_v44  ;;  %v11244_v33 = vld [vmem:[#allocation46_spill] sm:$0xff]  ;;  %v11246_v54 = vld [vmem:[#allocation121_spill] sm:$0xff]  ;;  %7356 = vrcp.f32 %v9631_v40 }
 0x39f   : > { %v7339_v49 = vpop.eup %7338  ;;  %6446 = vmatmul.mubr.bf16.gmra.mrb[68].mxu0 %v3718_v18  ;;  %v3611_v14 = vmul.f32 %v9412_v17, %v3530_v15  ;;  %v3516_v34 = vmul.f32 %v7337_v12, %v11240_v23  ;;  %v11245_v15 = vld [vmem:[#allocation114_spill] sm:$0xff] }
 0x3a0   : > { %v7341_v38 = vpop.eup %7340  ;;  %v3612_v26 = vmul.f32 %v9412_v17, %v3531_v45  ;;  %v3521_v44 = vmul.f32 %v7339_v49, %v11245_v15 }
 0x3a1   : > { %v7343_v21 = vpop.eup %7342  ;;  %v3675_v63 = vsub.f32 %v3514_v10, %v3611_v14  ;;  %v3677_v31 = vsub.f32 %v3516_v34, %v3613_v35  ;;  %v3536_v59 = vmul.f32 %v7341_v38, %v11242_v51  ;;  %v11247_v14 = vld [vmem:[#allocation122_spill] sm:$0xff]  ;;  %v11248_v35 = vld [vmem:[#allocation112_spill] sm:$0xff] }
 0x3a2   : > { %v7345_v57 = vpop.eup %7344  ;;  %v3676_v6 = vsub.f32 %v3515_v16, %v3612_v26  ;;  %v3537_v48 = vmul.f32 %v7343_v21, %v11241_v42 }
 0x3a3   : > { %v7347_v29 = vpop.eup %7346  ;;  %v3720_v19 = vpack.c.bf16 %v3678_v50, %v3677_v31  ;;  %v3617_v12 = vmul.f32 %v9412_v17, %v3536_v59  ;;  %v3518_v45 = vmul.f32 %v7345_v57, %v11246_v54 }
 0x3a4   : > { %v7349_v56 = vpop.eup %7348  ;;  %v3719_v1 = vpack.c.bf16 %v3676_v6, %v3675_v63  ;;  %v3618_v36 = vmul.f32 %v9412_v17, %v3537_v48  ;;  %v3519_v61 = vmul.f32 %v7347_v29, %v11247_v14 }
 0x3a5   : > { %v7351_v47 = vpop.eup %7350  ;;  %v3534_v62 = vmul.f32 %v7349_v56, %v11243_v60 }
 0x3a6   : > { %v7353_v3 = vpop.eup %7352  ;;  %6449 = vmatprep.mubr.bf16.mxu0 %v3719_v1  ;;  %v3535_v18 = vmul.f32 %v7351_v47, %v11244_v33  ;;  %v3682_v30 = vsub.f32 %v3521_v44, %v3618_v36  ;;  %v11251_v36 = vld [vmem:[#allocation133_spill] sm:$0xff] }
 0x3a7   : > { %6450 = vmatmul.mubr.bf16.gmra.mrb[72].mxu0 %v3720_v19  ;;  %v3615_v4 = vmul.f32 %v9412_v17, %v3534_v62  ;;  %v3520_v38 = vmul.f32 %v7353_v3, %v11248_v35  ;;  %v7355_v58 = vpop.eup %7354 }
 0x3a8   : > { %v3616_v11 = vmul.f32 %v9412_v17, %v3535_v18  ;;  %v7357_v63 = vpop.eup %7356 }
 0x3a9   : > { %v3679_v10 = vsub.f32 %v3518_v45, %v3615_v4  ;;  %v3681_v16 = vsub.f32 %v3520_v38, %v3617_v12 }
 0x3aa   : > { %v3680_v9 = vsub.f32 %v3519_v61, %v3616_v11 }
 0x3ab   : > { %v3722_v21 = vpack.c.bf16 %v3682_v30, %v3681_v16 }
 0x3ac   : > { %v3721_v26 = vpack.c.bf16 %v3680_v9, %v3679_v10 }
 0x3ae   : > { %6453 = vmatprep.mubr.bf16.mxu0 %v3721_v26 }
 0x3af   : > { %6454 = vmatmul.mubr.bf16.gmra.mrb[76].mxu0 %v3722_v21 }
 0x3be   : > { %v3287_v49 = vpop.xlane.xlu0 %3286 }
 0x3bf   : > { %7358 = vrcp.f32 %v3287_v49  ;;  %v3289_v23 = vpop.xlane.xlu1 %3288 }
 0x3c0   : > { %7360 = vrcp.f32 %v3289_v23  ;;  %v11253_v23 = vld [vmem:[#allocation135_spill] sm:$0xff] }
 0x3c1   : > { %7362 = vrcp.f32 %v9646_v39 }
 0x3c2   : > { %7364 = vrcp.f32 %v9649_v7  ;;  %v3283_v34 = vpop.xlane.xlu0 %3282 }
 0x3c3   : > { %7366 = vrcp.f32 %v3283_v34  ;;  %v3285_v50 = vpop.xlane.xlu1 %3284 }
 0x3c4   : > { %7368 = vrcp.f32 %v3285_v50 }
 0x3c5   : > { %7370 = vrcp.f32 %v9665_v41 }
 0x3c6   : > { %7372 = vrcp.f32 %v9668_v37  ;;  %v3295_v57 = vpop.xlane.xlu0 %3294 }
 0x3c7   : > { %7374 = vrcp.f32 %v3295_v57  ;;  %v3297_v40 = vpop.xlane.xlu1 %3296 }
 0x3c8   : > { %7376 = vrcp.f32 %v3297_v40 }
 0x3c9   : > { %v7359_v6 = vpop.eup %7358  ;;  %7378 = vrcp.f32 %v9677_v32 }
 0x3ca   : > { %v7361_v39 = vpop.eup %7360  ;;  %7380 = vrcp.f32 %v9681_v28  ;;  %v3556_v7 = vmul.f32 %v7359_v6, %v9576_v46  ;;  %v3291_v42 = vpop.xlane.xlu0 %3290 }
 0x3cb   : > { %v7363_v48 = vpop.eup %7362  ;;  %v3557_v41 = vmul.f32 %v7361_v39, %v9578_v53  ;;  %7382 = vrcp.f32 %v3291_v42  ;;  %v3293_v37 = vpop.xlane.xlu1 %3292  ;;  %v11249_v53 = vld [vmem:[#allocation41_spill] sm:$0xff]  ;;  %v11254_v39 = vld [vmem:[#allocation59_spill] sm:$0xff] }
 0x3cc   : > { %v7365_v29 = vpop.eup %7364  ;;  %7384 = vrcp.f32 %v3293_v37  ;;  %v3621_v32 = vmul.f32 %v9412_v17, %v3556_v7  ;;  %v3541_v1 = vmul.f32 %v7357_v63, %v11249_v53  ;;  %v3538_v3 = vmul.f32 %v7363_v48, %v11251_v36 }
 0x3cd   : > { %v7367_v31 = vpop.eup %7366  ;;  %7386 = vrcp.f32 %v9692_v55  ;;  %v3622_v51 = vmul.f32 %v9412_v17, %v3557_v41  ;;  %v11250_v55 = vld [vmem:[#allocation40_spill] sm:$0xff] }
 0x3ce   : > { %v7369_v59 = vpop.eup %7368  ;;  %7388 = vrcp.f32 %v9696_v20  ;;  %v3303_v28 = vpop.xlane.xlu0 %3302  ;;  %v3554_v46 = vmul.f32 %v7367_v31, %v9585_v22  ;;  %v3540_v62 = vmul.f32 %v7355_v58, %v11250_v55  ;;  %v11252_v22 = vld [vmem:[#allocation134_spill] sm:$0xff]  ;;  %v11255_v31 = vld [vmem:[#allocation53_spill] sm:$0xff] }
 0x3cf   : > { %v9824_v56 = vpop.eup %7370  ;;  %7390 = vrcp.f32 %v3303_v28  ;;  %v3305_v47 = vpop.xlane.xlu1 %3304  ;;  %v3555_v19 = vmul.f32 %v7369_v59, %v9587_v43  ;;  %v3539_v18 = vmul.f32 %v7365_v29, %v11252_v22  ;;  %v3686_v15 = vsub.f32 %v3541_v1, %v3622_v51  ;;  %v11256_v59 = vld [vmem:[#allocation52_spill] sm:$0xff] }
 0x3d0   : > { %v7373_v60 = vpop.eup %7372  ;;  %7392 = vrcp.f32 %v3305_v47  ;;  %v3619_v20 = vmul.f32 %v9412_v17, %v3554_v46  ;;  %v3685_v45 = vsub.f32 %v3540_v62, %v3621_v32  ;;  %v3544_v32 = vmul.f32 %v9824_v56, %v11256_v59  ;;  %v11257_v62 = vld [vmem:[#allocation75_spill] sm:$0xff] }
 0x3d1   : > { %v7375_v33 = vpop.eup %7374  ;;  %7394 = vrcp.f32 %v9706_v27  ;;  %v3620_v4 = vmul.f32 %v9412_v17, %v3555_v19  ;;  %v3545_v34 = vmul.f32 %v7373_v60, %v11253_v23 }
 0x3d2   : > { %v7377_v44 = vpop.eup %7376  ;;  %7396 = vrcp.f32 %v9710_v13  ;;  %v3299_v43 = vpop.xlane.xlu0 %3298  ;;  %v3683_v54 = vsub.f32 %v3538_v3, %v3619_v20  ;;  %v3560_v35 = vmul.f32 %v7375_v33, %v9593_v5  ;;  %v3724_v49 = vpack.c.bf16 %v3686_v15, %v3685_v45  ;;  %v11259_v45 = vld [vmem:[#allocation98_spill] sm:$0xff] }
 0x3d3   : > { %v9835_v12 = vpop.f32.mrb[48].mxu0  ;;  %v7379_v14 = vpop.eup %7378  ;;  %7398 = vrcp.f32 %v3299_v43  ;;  %v3684_v27 = vsub.f32 %v3539_v18, %v3620_v4  ;;  %v3561_v38 = vmul.f32 %v7377_v44, %v9595_v0  ;;  %v11258_v43 = vld [vmem:[#allocation126_spill] sm:$0xff] }
 0x3d4   : > { %v9837_v61 = vpop.f32.mrb[49].mxu0  ;;  %v3301_v11 = vpop.xlane.xlu1 %3300  ;;  %v4313_v16 = vmul.f32 %v9835_v12, %v9835_v12  ;;  %v3542_v7 = vmul.f32 %v7379_v14, %v11254_v39  ;;  %v3625_v48 = vmul.f32 %v9412_v17, %v3560_v35 }
 0x3d5   : > { %v7381_v30 = vpop.eup %7380  ;;  %v4311_v13 = vmul.f32 %v9837_v61, %v9837_v61  ;;  %7400 = vrcp.f32 %v3301_v11  ;;  %v9843_v10 = vpop.f32.mrb[50].mxu0  ;;  %v3723_v21 = vpack.c.bf16 %v3684_v27, %v3683_v54  ;;  %v3626_v40 = vmul.f32 %v9412_v17, %v3561_v38  ;;  %v11260_v11 = vld [vmem:[#allocation58_spill] sm:$0xff] }
 0x3d6   : > { %v7383_v9 = vpop.eup %7382  ;;  %v9847_v26 = vpop.f32.mrb[51].mxu0  ;;  %7402 = vrcp.f32 %v9729_v24  ;;  %v4314_v37 = vmul.f32 %v9843_v10, %v9843_v10  ;;  %v3543_v51 = vmul.f32 %v7381_v30, %v11255_v31  ;;  %v4382_v53 = vsel %vm4375_vm1, %v4313_v16, 0.0  ;;  %v11261_v30 = vld [vmem:[#allocation56_spill] sm:$0xff]  ;;  %v11262_v16 = vld [vmem:[#allocation63_spill] sm:$0xff] }
 0x3d7   : > { %v7385_v5 = vpop.eup %7384  ;;  %v4312_v0 = vmul.f32 %v9847_v26, %v9847_v26  ;;  %v3311_v50 = vpop.xlane.xlu0 %3310  ;;  %v4376_v57 = vsel %vm4375_vm1, %v4311_v13, 0.0  ;;  %v3558_v58 = vmul.f32 %v7383_v9, %v9601_v52  ;;  %6473 = vmatprep.mubr.bf16.mxu1 %v3723_v21  ;;  %v3690_v47 = vsub.f32 %v3545_v34, %v3626_v40 }
 0x3d8   : > { %v7387_v63 = vpop.eup %7386  ;;  %4377 = vadd.xlane.f32.xlu0 %v4376_v57  ;;  %v3313_v6 = vpop.xlane.xlu1 %3312  ;;  %v3559_v42 = vmul.f32 %v7385_v5, %v9603_v2  ;;  %7404 = vrcp.f32 %v3311_v50  ;;  %6474 = vmatmul.mubr.bf16.vlgmr.msra.gmra.mrb[96].mxu1 %v3724_v49  ;;  %v4385_v56 = vsel %vm4375_vm1, %v4314_v37, 0.0  ;;  %v3689_v20 = vsub.f32 %v3544_v32, %v3625_v48  ;;  %v11263_v49 = vld [vmem:[#allocation18_spill] sm:$0xff]  ;;  %v11265_v32 = vld [vmem:[#allocation49_spill] sm:$0xff] }
 0x3d9   : > { %v7389_v41 = vpop.eup %7388  ;;  %v4379_v52 = vsel %vm4375_vm1, %v4312_v0, 0.0  ;;  %v3623_v29 = vmul.f32 %v9412_v17, %v3558_v58  ;;  %7406 = vrcp.f32 %v9731_v25  ;;  %v3548_v13 = vmul.f32 %v7387_v63, %v11261_v30 }
 0x3da   : > { %v7391_v24 = vpop.eup %7390  ;;  %4380 = vadd.xlane.f32.xlu1 %v4379_v52  ;;  %v3624_v2 = vmul.f32 %v9412_v17, %v3559_v42  ;;  %7408 = vrcp.f32 %v3313_v6  ;;  %v3726_v44 = vpack.c.bf16 %v3690_v47, %v3689_v20  ;;  %v3549_v27 = vmul.f32 %v7389_v41, %v11260_v11 }
 0x3db   : > { %v7393_v28 = vpop.eup %7392  ;;  %v3307_v46 = vpop.xlane.xlu0 %3306  ;;  %v3687_v1 = vsub.f32 %v3542_v7, %v3623_v29  ;;  %v3564_v55 = vmul.f32 %v7391_v24, %v9609_v8  ;;  %v11264_v29 = vld [vmem:[#allocation48_spill] sm:$0xff] }
 0x3dc   : > { %v7395_v19 = vpop.eup %7394  ;;  %7410 = vrcp.f32 %v3307_v46  ;;  %4383 = vadd.xlane.f32.xlu0 %v4382_v53  ;;  %v3309_v60 = vpop.xlane.xlu1 %3308  ;;  %v3688_v25 = vsub.f32 %v3543_v51, %v3624_v2  ;;  %v3565_v36 = vmul.f32 %v7393_v28, %v11257_v62  ;;  %v11266_v46 = vld [vmem:[#allocation127_spill] sm:$0xff]  ;;  %v11268_v62 = vld [vmem:[#allocation26_spill] sm:$0xff] }
 0x3dd   : > { %v7397_v3 = vpop.eup %7396  ;;  %7412 = vrcp.f32 %v3309_v60  ;;  %v3629_v35 = vmul.f32 %v9412_v17, %v3564_v55  ;;  %v3546_v21 = vmul.f32 %v7395_v19, %v11262_v16 }
 0x3de   : > { %v7399_v33 = vpop.eup %7398  ;;  %4386 = vadd.xlane.f32.xlu1 %v4385_v56  ;;  %v3725_v22 = vpack.c.bf16 %v3688_v25, %v3687_v1  ;;  %v3630_v18 = vmul.f32 %v9412_v17, %v3565_v36  ;;  %v3547_v23 = vmul.f32 %v7397_v3, %v11263_v49  ;;  %v11267_v1 = vld [vmem:[#allocation101_spill] sm:$0xff]  ;;  %v11269_v3 = vld [vmem:[#allocation68_spill] sm:$0xff] }
 0x3df   : > { %v7401_v4 = vpop.eup %7400  ;;  %v3279_v15 = vpop.xlane.xlu0 %3278  ;;  %v3562_v54 = vmul.f32 %v7399_v33, %v11258_v43  ;;  %v3693_v39 = vsub.f32 %v3548_v13, %v3629_v35 }
 0x3e0   : > { %7414 = vrcp.f32 %v3279_v15  ;;  %6477 = vmatprep.mubr.bf16.mxu1 %v3725_v22  ;;  %v3281_v8 = vpop.xlane.xlu1 %3280  ;;  %v3563_v14 = vmul.f32 %v7401_v4, %v11259_v45  ;;  %v7403_v9 = vpop.eup %7402  ;;  %v3694_v5 = vsub.f32 %v3549_v27, %v3630_v18  ;;  %v11270_v18 = vld [vmem:[#allocation81_spill] sm:$0xff] }
 0x3e1   : > { %7416 = vrcp.f32 %v3281_v8  ;;  %6478 = vmatmul.mubr.bf16.gmra.mrb[100].mxu1 %v3726_v44  ;;  %v3627_v38 = vmul.f32 %v9412_v17, %v3562_v54  ;;  %v3550_v36 = vmul.f32 %v7403_v9, %v11268_v62  ;;  %v11271_v54 = vld [vmem:[#allocation100_spill] sm:$0xff] }
 0x3e2   : > { %v3628_v34 = vmul.f32 %v9412_v17, %v3563_v14  ;;  %v7405_v0 = vpop.eup %7404  ;;  %v9882_v50 = vpop.f32.mrb[52].mxu0  ;;  %v3728_v52 = vpack.c.bf16 %v3694_v5, %v3693_v39 }
 0x3e3   : > { %v7407_v57 = vpop.eup %7406  ;;  %v9884_v58 = vpop.f32.mrb[53].mxu0  ;;  %v3691_v40 = vsub.f32 %v3546_v21, %v3627_v38  ;;  %v3568_v24 = vmul.f32 %v7405_v0, %v11264_v29  ;;  %v4317_v51 = vmul.f32 %v9882_v50, %v9882_v50 }
 0x3e4   : > { %v3692_v6 = vsub.f32 %v3547_v23, %v3628_v34  ;;  %v7409_v7 = vpop.eup %7408  ;;  %v4315_v63 = vmul.f32 %v9884_v58, %v9884_v58  ;;  %v9888_v42 = vpop.f32.mrb[54].mxu0  ;;  %v3551_v56 = vmul.f32 %v7407_v57, %v11269_v3  ;;  %v6898_v34 = vld [vmem:[%s10408_s4] sm:$0xff]  }
 0x3e5   : > { %v9890_v41 = vpop.f32.mrb[55].mxu0  ;;  %v3569_v47 = vmul.f32 %v7409_v7, %v11267_v1  ;;  %v4318_v19 = vmul.f32 %v9888_v42, %v9888_v42  ;;  %v4394_v22 = vsel %vm4375_vm1, %v4317_v51, 0.0  ;;  %v3633_v15 = vmul.f32 %v9412_v17, %v3568_v24  ;;  %6489 = vmatprep.subr.bf16.mxu0 %v6898_v34 }
 0x3e6   : > { %v7411_v48 = vpop.eup %7410  ;;  %v3727_v37 = vpack.c.bf16 %v3692_v6, %v3691_v40  ;;  %v4316_v2 = vmul.f32 %v9890_v41, %v9890_v41  ;;  %v4388_v59 = vsel %vm4375_vm1, %v4315_v63, 0.0  ;;  %6490 = vmatpush3.bf16.msra.mxu0 %v6898_v34  ;;  %v6899_v40 = vld [vmem:[%s10408_s4 + $0x8] sm:$0xff]  }
 0x3e7   : > { %v7413_v31 = vpop.eup %7412  ;;  %v3566_v28 = vmul.f32 %v7411_v48, %v11265_v32  ;;  %4389 = vadd.xlane.f32.xlu0 %v4388_v59  ;;  %v3634_v45 = vmul.f32 %v9412_v17, %v3569_v47  ;;  %v4397_v14 = vsel %vm4375_vm1, %v4318_v19, 0.0  ;;  %6491 = vmatprep.subr.bf16.mxu0 %v6899_v40 }
 0x3e8   : > { %6481 = vmatprep.mubr.bf16.mxu1 %v3727_v37  ;;  %v3567_v53 = vmul.f32 %v7413_v31, %v11266_v46  ;;  %v4391_v60 = vsel %vm4375_vm1, %v4316_v2, 0.0 }
 0x3e9   : > { %6482 = vmatmul.mubr.bf16.gmra.mrb[104].mxu1 %v3728_v52  ;;  %v3631_v25 = vmul.f32 %v9412_v17, %v3566_v28  ;;  %4392 = vadd.xlane.f32.xlu1 %v4391_v60 }
 0x3ea   : > { %v7415_v55 = vpop.eup %7414  ;;  %v3632_v20 = vmul.f32 %v9412_v17, %v3567_v53  ;;  %6492 = vmatpush3.bf16.msra.mxu0 %v6899_v40 }
 0x3eb   : > { %v7417_v33 = vpop.eup %7416  ;;  %v3552_v4 = vmul.f32 %v7415_v55, %v11270_v18  ;;  %4395 = vadd.xlane.f32.xlu0 %v4394_v22  ;;  %v3695_v44 = vsub.f32 %v3550_v36, %v3631_v25 }
 0x3ec   : > { %v3696_v43 = vsub.f32 %v3551_v56, %v3632_v20  ;;  %v3553_v8 = vmul.f32 %v7417_v33, %v11271_v54 }
 0x3ed   : > { %4398 = vadd.xlane.f32.xlu1 %v4397_v14  ;;  %v3697_v27 = vsub.f32 %v3552_v4, %v3633_v15 }
 0x3ee   : > { %v3729_v11 = vpack.c.bf16 %v3696_v43, %v3695_v44  ;;  %v3698_v35 = vsub.f32 %v3553_v8, %v3634_v45 }
 0x3f0   : > { %6485 = vmatprep.mubr.bf16.mxu1 %v3729_v11  ;;  %v3730_v38 = vpack.c.bf16 %v3698_v35, %v3697_v27 }
 0x3f2   : > { %6486 = vmatmul.mubr.bf16.gmra.mrb[108].mxu1 %v3730_v38  ;;  %v9914_v30 = vpop.f32.mrb[56].mxu0 }
 0x3f3   : > { %v9916_v13 = vpop.f32.mrb[57].mxu0  ;;  %v4321_v17 = vmul.f32 %v9914_v30, %v9914_v30 }
 0x3f4   : > { %v4319_v9 = vmul.f32 %v9916_v13, %v9916_v13  ;;  %v9920_v16 = vpop.f32.mrb[58].mxu0 }
 0x3f5   : > { %v9922_v21 = vpop.f32.mrb[59].mxu0  ;;  %v4322_v5 = vmul.f32 %v9920_v16, %v9920_v16  ;;  %v4406_v57 = vsel %vm4375_vm1, %v4321_v17, 0.0 }
 0x3f6   : > { %v4320_v49 = vmul.f32 %v9922_v21, %v9922_v21  ;;  %v4400_v23 = vsel %vm4375_vm1, %v4319_v9, 0.0 }
 0x3f7   : > { %4401 = vadd.xlane.f32.xlu0 %v4400_v23  ;;  %v4409_v6 = vsel %vm4375_vm1, %v4322_v5, 0.0 }
 0x3f8   : > { %v4403_v0 = vsel %vm4375_vm1, %v4320_v49, 0.0  ;;  %v10018_v49 = vld [vmem:[%s10408_s4 + $0x10] sm:$0xff]  }
 0x3f9   : > { %4404 = vadd.xlane.f32.xlu1 %v4403_v0  ;;  %6509 = vmatprep.subr.bf16.mxu0 %v10018_v49 }
 0x3fb   : > { %4407 = vadd.xlane.f32.xlu0 %v4406_v57 }
 0x3fd   : > { %4410 = vadd.xlane.f32.xlu1 %v4409_v6 }
 0x402   : > { %v9940_v39 = vpop.f32.mrb[60].mxu0 }
 0x403   : > { %v9942_v7 = vpop.f32.mrb[61].mxu0  ;;  %v4325_v52 = vmul.f32 %v9940_v39, %v9940_v39 }
 0x404   : > { %v4323_v63 = vmul.f32 %v9942_v7, %v9942_v7  ;;  %v9946_v48 = vpop.f32.mrb[62].mxu0 }
 0x405   : > { %v9948_v37 = vpop.f32.mrb[63].mxu0  ;;  %v4326_v31 = vmul.f32 %v9946_v48, %v9946_v48  ;;  %v4418_v2 = vsel %vm4375_vm1, %v4325_v52, 0.0 }
 0x406   : > { %v4324_v29 = vmul.f32 %v9948_v37, %v9948_v37  ;;  %v4412_v24 = vsel %vm4375_vm1, %v4323_v63, 0.0 }
 0x407   : > { %4413 = vadd.xlane.f32.xlu0 %v4412_v24  ;;  %v4421_v59 = vsel %vm4375_vm1, %v4326_v31, 0.0 }
 0x408   : > { %v4415_v51 = vsel %vm4375_vm1, %v4324_v29, 0.0 }
 0x409   : > { %4416 = vadd.xlane.f32.xlu1 %v4415_v51 }
 0x40b   : > { %4419 = vadd.xlane.f32.xlu0 %v4418_v2 }
 0x40d   : > { %4422 = vadd.xlane.f32.xlu1 %v4421_v59 }
 0x432   : > { %v9960_v32 = vpop.f32.mrb[80].mxu1 }
 0x433   : > { %v9962_v28 = vpop.f32.mrb[81].mxu1  ;;  %v4329_v47 = vmul.f32 %v9960_v32, %v9960_v32 }
 0x434   : > { %v4327_v46 = vmul.f32 %v9962_v28, %v9962_v28  ;;  %v9966_v53 = vpop.f32.mrb[82].mxu1 }
 0x435   : > { %v9968_v1 = vpop.f32.mrb[83].mxu1  ;;  %v4330_v25 = vmul.f32 %v9966_v53, %v9966_v53  ;;  %v4430_v62 = vsel %vm4375_vm1, %v4329_v47, 0.0 }
 0x436   : > { %v4328_v19 = vmul.f32 %v9968_v1, %v9968_v1  ;;  %v4424_v60 = vsel %vm4375_vm1, %v4327_v46, 0.0 }
 0x437   : > { %4425 = vadd.xlane.f32.xlu0 %v4424_v60  ;;  %v4433_v36 = vsel %vm4375_vm1, %v4330_v25, 0.0 }
 0x438   : > { %v4427_v55 = vsel %vm4375_vm1, %v4328_v19, 0.0 }
 0x439   : > { %4428 = vadd.xlane.f32.xlu1 %v4427_v55 }
 0x43b   : > { %4431 = vadd.xlane.f32.xlu0 %v4430_v62 }
 0x43d   : > { %4434 = vadd.xlane.f32.xlu1 %v4433_v36 }
 0x442   : > { %v9980_v3 = vpop.f32.mrb[84].mxu1 }
 0x443   : > { %v9982_v56 = vpop.f32.mrb[85].mxu1  ;;  %v4333_v18 = vmul.f32 %v9980_v3, %v9980_v3 }
 0x444   : > { %v4331_v20 = vmul.f32 %v9982_v56, %v9982_v56  ;;  %v9986_v33 = vpop.f32.mrb[86].mxu1 }
 0x445   : > { %v9988_v22 = vpop.f32.mrb[87].mxu1  ;;  %v4334_v44 = vmul.f32 %v9986_v33, %v9986_v33  ;;  %v4442_v54 = vsel %vm4375_vm1, %v4333_v18, 0.0 }
 0x446   : > { %v4332_v4 = vmul.f32 %v9988_v22, %v9988_v22  ;;  %v4436_v15 = vsel %vm4375_vm1, %v4331_v20, 0.0 }
 0x447   : > { %4437 = vadd.xlane.f32.xlu0 %v4436_v15  ;;  %v4445_v8 = vsel %vm4375_vm1, %v4334_v44, 0.0 }
 0x448   : > { %v4439_v43 = vsel %vm4375_vm1, %v4332_v4, 0.0 }
 0x449   : > { %4440 = vadd.xlane.f32.xlu1 %v4439_v43 }
 0x44b   : > { %4443 = vadd.xlane.f32.xlu0 %v4442_v54 }
 0x44d   : > { %4446 = vadd.xlane.f32.xlu1 %v4445_v8 }
 0x452   : > { %v10000_v45 = vpop.f32.mrb[88].mxu1 }
 0x453   : > { %v10002_v14 = vpop.f32.mrb[89].mxu1  ;;  %v4337_v38 = vmul.f32 %v10000_v45, %v10000_v45 }
 0x454   : > { %v4335_v11 = vmul.f32 %v10002_v14, %v10002_v14  ;;  %v10006_v27 = vpop.f32.mrb[90].mxu1 }
 0x455   : > { %v10008_v35 = vpop.f32.mrb[91].mxu1  ;;  %v4338_v23 = vmul.f32 %v10006_v27, %v10006_v27  ;;  %v4454_v5 = vsel %vm4375_vm1, %v4337_v38, 0.0 }
 0x456   : > { %v4336_v9 = vmul.f32 %v10008_v35, %v10008_v35  ;;  %v4448_v17 = vsel %vm4375_vm1, %v4335_v11, 0.0 }
 0x457   : > { %4449 = vadd.xlane.f32.xlu0 %v4448_v17  ;;  %v4457_v0 = vsel %vm4375_vm1, %v4338_v23, 0.0 }
 0x458   : > { %v4451_v34 = vsel %vm4375_vm1, %v4336_v9, 0.0 }
 0x459   : > { %4452 = vadd.xlane.f32.xlu1 %v4451_v34 }
 0x45b   : > { %4455 = vadd.xlane.f32.xlu0 %v4454_v5 }
 0x45d   : > { %4458 = vadd.xlane.f32.xlu1 %v4457_v0 }
 0x45e   : > { %v10026_v57 = vpop.f32.mrb[92].mxu1 }
 0x45f   : > { %v10028_v40 = vpop.f32.mrb[93].mxu1  ;;  %v4341_v29 = vmul.f32 %v10026_v57, %v10026_v57 }
 0x460   : > { %v4339_v6 = vmul.f32 %v10028_v40, %v10028_v40  ;;  %v10032_v63 = vpop.f32.mrb[94].mxu1 }
 0x461   : > { %v10034_v52 = vpop.f32.mrb[95].mxu1  ;;  %v4342_v51 = vmul.f32 %v10032_v63, %v10032_v63  ;;  %v4466_v19 = vsel %vm4375_vm1, %v4341_v29, 0.0 }
 0x462   : > { %v4340_v24 = vmul.f32 %v10034_v52, %v10034_v52  ;;  %v4460_v31 = vsel %vm4375_vm1, %v4339_v6, 0.0 }
 0x463   : > { %4461 = vadd.xlane.f32.xlu0 %v4460_v31  ;;  %v4469_v62 = vsel %vm4375_vm1, %v4342_v51, 0.0 }
 0x464   : > { %v4463_v59 = vsel %vm4375_vm1, %v4340_v24, 0.0 }
 0x465   : > { %v4378_v2 = vpop.xlane.xlu0 %4377  ;;  %4464 = vadd.xlane.f32.xlu1 %v4463_v59 }
 0x466   : > { %v4569_v46 = vmul.f32 0.03125, %v4378_v2 }
 0x467   : > { %v4381_v47 = vpop.xlane.xlu1 %4380  ;;  %4467 = vadd.xlane.f32.xlu0 %v4466_v19 }
 0x468   : > { %v4633_v60 = vadd.f32 1e-05, %v4569_v46  ;;  %v4570_v25 = vmul.f32 0.03125, %v4381_v47 }
 0x469   : > { %v4384_v55 = vpop.xlane.xlu0 %4383  ;;  %4470 = vadd.xlane.f32.xlu1 %v4469_v62 }
 0x46a   : > { %7418 = vrsqrt.f32 %v4633_v60  ;;  %v4634_v36 = vadd.f32 1e-05, %v4570_v25  ;;  %v4571_v20 = vmul.f32 0.03125, %v4384_v55  ;;  %v10046_v18 = vpop.f32.mrb[64].mxu0 }
 0x46b   : > { %v4387_v4 = vpop.xlane.xlu1 %4386  ;;  %v10048_v43 = vpop.f32.mrb[65].mxu0  ;;  %v4345_v9 = vmul.f32 %v10046_v18, %v10046_v18 }
 0x46c   : > { %7420 = vrsqrt.f32 %v4634_v36  ;;  %v4635_v15 = vadd.f32 1e-05, %v4571_v20  ;;  %v4572_v44 = vmul.f32 0.03125, %v4387_v4  ;;  %v4343_v54 = vmul.f32 %v10048_v43, %v10048_v43  ;;  %v10052_v8 = vpop.f32.mrb[66].mxu0 }
 0x46d   : > { %v10054_v38 = vpop.f32.mrb[67].mxu0  ;;  %v4346_v34 = vmul.f32 %v10052_v8, %v10052_v8  ;;  %v4478_v6 = vsel %vm4375_vm1, %v4345_v9, 0.0 }
 0x46e   : > { %7422 = vrsqrt.f32 %v4635_v15  ;;  %v4636_v11 = vadd.f32 1e-05, %v4572_v44  ;;  %v4344_v17 = vmul.f32 %v10054_v38, %v10054_v38  ;;  %v4472_v23 = vsel %vm4375_vm1, %v4343_v54, 0.0 }
 0x46f   : > { %4473 = vadd.xlane.f32.xlu0 %v4472_v23  ;;  %v4481_v59 = vsel %vm4375_vm1, %v4346_v34, 0.0 }
 0x470   : > { %7424 = vrsqrt.f32 %v4636_v11  ;;  %v4475_v5 = vsel %vm4375_vm1, %v4344_v17, 0.0 }
 0x471   : > { %4476 = vadd.xlane.f32.xlu1 %v4475_v5 }
 0x472   : > { %v10064_v0 = vpop.f32.mrb[68].mxu0 }
 0x473   : > { %4479 = vadd.xlane.f32.xlu0 %v4478_v6  ;;  %v10067_v24 = vpop.f32.mrb[69].mxu0  ;;  %v4349_v47 = vmul.f32 %v10064_v0, %v10064_v0 }
 0x474   : > { %v7419_v29 = vpop.eup %7418  ;;  %v4347_v31 = vmul.f32 %v10067_v24, %v10067_v24  ;;  %v4390_v51 = vpop.xlane.xlu0 %4389 }
 0x475   : > { %v10071_v2 = vpop.f32.mrb[70].mxu0  ;;  %v4573_v19 = vmul.f32 0.03125, %v4390_v51  ;;  %4482 = vadd.xlane.f32.xlu1 %v4481_v59  ;;  %v4761_v36 = vmul.f32 %v7419_v29, %v9837_v61 }
 0x476   : > { %v7421_v46 = vpop.eup %7420  ;;  %v10076_v60 = vpop.f32.mrb[71].mxu0  ;;  %v4484_v62 = vsel %vm4375_vm1, %v4347_v31, 0.0  ;;  %v4350_v54 = vmul.f32 %v10071_v2, %v10071_v2  ;;  %v4490_v31 = vsel %vm4375_vm1, %v4349_v47, 0.0 }
 0x477   : > { %v4348_v25 = vmul.f32 %v10076_v60, %v10076_v60  ;;  %v4393_v55 = vpop.xlane.xlu1 %4392  ;;  %v4762_v20 = vmul.f32 %v7421_v46, %v9847_v26  ;;  %v4637_v15 = vadd.f32 1e-05, %v4573_v19  ;;  %4485 = vadd.xlane.f32.xlu0 %v4484_v62 }
 0x478   : > { %v7423_v4 = vpop.eup %7422  ;;  %v4574_v44 = vmul.f32 0.03125, %v4393_v55  ;;  %v4396_v11 = vpop.xlane.xlu0 %4395  ;;  %v6901_v55 = vld [vmem:[%s10408_s4 + $0x18] sm:$0xff]  }
 0x479   : > { %v4487_v9 = vsel %vm4375_vm1, %v4348_v25, 0.0  ;;  %v4825_v17 = vpack.c.bf16 %v4762_v20, %v4761_v36  ;;  %7426 = vrsqrt.f32 %v4637_v15  ;;  %v4575_v5 = vmul.f32 0.03125, %v4396_v11 }
 0x47a   : > { %v7425_v23 = vpop.eup %7424  ;;  %v4638_v34 = vadd.f32 1e-05, %v4574_v44  ;;  %4488 = vadd.xlane.f32.xlu1 %v4487_v9  ;;  %v4763_v61 = vmul.f32 %v7423_v4, %v9835_v12  ;;  %v10088_v6 = vpop.f32.mrb[72].mxu0 }
 0x47b   : > { %v4764_v26 = vmul.f32 %v7425_v23, %v9843_v10  ;;  %6493 = vmatprep.mubr.msk.bf16.mxu0 %vm4375_vm1, %v4825_v17  ;;  %v4399_v29 = vpop.xlane.xlu1 %4398  ;;  %v4639_v51 = vadd.f32 1e-05, %v4575_v5  ;;  %4491 = vadd.xlane.f32.xlu0 %v4490_v31  ;;  %v10092_v46 = vpop.f32.mrb[73].mxu0  ;;  %v4493_v10 = vsel %vm4375_vm1, %v4350_v54, 0.0  ;;  %v4353_v36 = vmul.f32 %v10088_v6, %v10088_v6 }
 0x47c   : > { %7428 = vrsqrt.f32 %v4638_v34  ;;  %v4576_v59 = vmul.f32 0.03125, %v4399_v29  ;;  %v4351_v25 = vmul.f32 %v10092_v46, %v10092_v46  ;;  %v10096_v12 = vpop.f32.mrb[74].mxu0 }
 0x47d   : > { %v4826_v19 = vpack.c.bf16 %v4764_v26, %v4763_v61  ;;  %7430 = vrsqrt.f32 %v4639_v51  ;;  %v10102_v62 = vpop.f32.mrb[75].mxu0  ;;  %v4354_v15 = vmul.f32 %v10096_v12, %v10096_v12  ;;  %v4502_v11 = vsel %vm4375_vm1, %v4353_v36, 0.0 }
 0x47e   : > { %v4640_v47 = vadd.f32 1e-05, %v4576_v59  ;;  %4494 = vadd.xlane.f32.xlu1 %v4493_v10  ;;  %v4352_v20 = vmul.f32 %v10102_v62, %v10102_v62  ;;  %v4496_v4 = vsel %vm4375_vm1, %v4351_v25, 0.0 }
 0x47f   : > { %6494 = vmatmul.mubr.msk.bf16.vlgmr.msra.gmra.mrb[80].mxu0 %vm4375_vm1, %v4826_v19  ;;  %4497 = vadd.xlane.f32.xlu0 %v4496_v4  ;;  %v4505_v5 = vsel %vm4375_vm1, %v4354_v15, 0.0 }
 0x480   : > { %7432 = vrsqrt.f32 %v4640_v47  ;;  %6510 = vmatpush3.bf16.msra.mxu0 %v10018_v49  ;;  %v4499_v44 = vsel %vm4375_vm1, %v4352_v20, 0.0 }
 0x481   : > { %6511 = vmatprep.subr.bf16.mxu0 %v6901_v55 }
 0x482   : > { %4500 = vadd.xlane.f32.xlu1 %v4499_v44  ;;  %v10114_v54 = vpop.f32.mrb[76].mxu0 }
 0x483   : > { %v7427_v9 = vpop.eup %7426  ;;  %4503 = vadd.xlane.f32.xlu0 %v4502_v11  ;;  %v10117_v17 = vpop.f32.mrb[77].mxu0  ;;  %v4357_v26 = vmul.f32 %v10114_v54, %v10114_v54 }
 0x484   : > { %6512 = vmatpush3.bf16.msra.mxu0 %v6901_v55  ;;  %v4355_v23 = vmul.f32 %v10117_v17, %v10117_v17  ;;  %v4402_v49 = vpop.xlane.xlu0 %4401  ;;  %v10121_v34 = vpop.f32.mrb[78].mxu0  ;;  %v4765_v25 = vmul.f32 %v7427_v9, %v9884_v58 }
 0x485   : > { %v4577_v29 = vmul.f32 0.03125, %v4402_v49  ;;  %v10126_v31 = vpop.f32.mrb[79].mxu0  ;;  %v4358_v20 = vmul.f32 %v10121_v34, %v10121_v34 }
 0x486   : > { %v7429_v61 = vpop.eup %7428  ;;  %4506 = vadd.xlane.f32.xlu1 %v4505_v5  ;;  %v4356_v51 = vmul.f32 %v10126_v31, %v10126_v31  ;;  %v4405_v59 = vpop.xlane.xlu1 %4404  ;;  %v4508_v19 = vsel %vm4375_vm1, %v4355_v23, 0.0 }
 0x487   : > { %v4766_v10 = vmul.f32 %v7429_v61, %v9890_v41  ;;  %v7431_v55 = vpop.eup %7430  ;;  %v4641_v47 = vadd.f32 1e-05, %v4577_v29  ;;  %v4578_v36 = vmul.f32 0.03125, %v4405_v59  ;;  %4509 = vadd.xlane.f32.xlu0 %v4508_v19  ;;  %v4514_v41 = vsel %vm4375_vm1, %v4357_v26, 0.0  ;;  %v10145_v26 = vld [vmem:[%s10408_s4 + $0x20] sm:$0xff]  }
 0x488   : > { %v4408_v4 = vpop.xlane.xlu0 %4407  ;;  %v4511_v15 = vsel %vm4375_vm1, %v4356_v51, 0.0  ;;  %v4767_v9 = vmul.f32 %v7431_v55, %v9882_v50  ;;  %v4517_v51 = vsel %vm4375_vm1, %v4358_v20, 0.0  ;;  %6529 = vmatprep.subr.bf16.mxu0 %v10145_v26 }
 0x489   : > { %v4827_v44 = vpack.c.bf16 %v4766_v10, %v4765_v25  ;;  %7434 = vrsqrt.f32 %v4641_v47  ;;  %v4642_v49 = vadd.f32 1e-05, %v4578_v36  ;;  %v4579_v5 = vmul.f32 0.03125, %v4408_v4 }
 0x48a   : > { %v7433_v11 = vpop.eup %7432  ;;  %4512 = vadd.xlane.f32.xlu1 %v4511_v15  ;;  %v4411_v58 = vpop.xlane.xlu1 %4410 }
 0x48b   : > { %6497 = vmatprep.mubr.msk.bf16.mxu0 %vm4375_vm1, %v4827_v44  ;;  %v4768_v23 = vmul.f32 %v7433_v11, %v9888_v42  ;;  %7436 = vrsqrt.f32 %v4642_v49  ;;  %v4643_v61 = vadd.f32 1e-05, %v4579_v5  ;;  %v4580_v29 = vmul.f32 0.03125, %v4411_v58  ;;  %4515 = vadd.xlane.f32.xlu0 %v4514_v41 }
 0x48d   : > { %v4828_v59 = vpack.c.bf16 %v4768_v23, %v4767_v9  ;;  %7438 = vrsqrt.f32 %v4643_v61  ;;  %v4644_v19 = vadd.f32 1e-05, %v4580_v29 }
 0x48e   : > { %4518 = vadd.xlane.f32.xlu1 %v4517_v51 }
 0x48f   : > { %6498 = vmatmul.mubr.msk.bf16.gmra.mrb[84].mxu0 %vm4375_vm1, %v4828_v59  ;;  %7440 = vrsqrt.f32 %v4644_v19 }
 0x493   : > { %v7435_v50 = vpop.eup %7434 }
 0x494   : > { %v4414_v42 = vpop.xlane.xlu0 %4413  ;;  %v4769_v47 = vmul.f32 %v7435_v50, %v9916_v13 }
 0x495   : > { %v7437_v25 = vpop.eup %7436  ;;  %v4581_v10 = vmul.f32 0.03125, %v4414_v42 }
 0x496   : > { %v4417_v55 = vpop.xlane.xlu1 %4416  ;;  %v4770_v36 = vmul.f32 %v7437_v25, %v9922_v21 }
 0x497   : > { %v7439_v20 = vpop.eup %7438  ;;  %v4645_v4 = vadd.f32 1e-05, %v4581_v10  ;;  %v4582_v15 = vmul.f32 0.03125, %v4417_v55 }
 0x498   : > { %v4420_v44 = vpop.xlane.xlu0 %4419  ;;  %v4829_v11 = vpack.c.bf16 %v4770_v36, %v4769_v47  ;;  %v4771_v9 = vmul.f32 %v7439_v20, %v9914_v30 }
 0x499   : > { %v7441_v49 = vpop.eup %7440  ;;  %7442 = vrsqrt.f32 %v4645_v4  ;;  %v4646_v5 = vadd.f32 1e-05, %v4582_v15  ;;  %v4583_v58 = vmul.f32 0.03125, %v4420_v44 }
 0x49a   : > { %6501 = vmatprep.mubr.msk.bf16.mxu0 %vm4375_vm1, %v4829_v11  ;;  %v4423_v41 = vpop.xlane.xlu1 %4422  ;;  %v4772_v23 = vmul.f32 %v7441_v49, %v9920_v16 }
 0x49b   : > { %7444 = vrsqrt.f32 %v4646_v5  ;;  %v4647_v13 = vadd.f32 1e-05, %v4583_v58  ;;  %v4584_v61 = vmul.f32 0.03125, %v4423_v41 }
 0x49c   : > { %v4830_v21 = vpack.c.bf16 %v4772_v23, %v4771_v9 }
 0x49d   : > { %7446 = vrsqrt.f32 %v4647_v13  ;;  %v4648_v29 = vadd.f32 1e-05, %v4584_v61 }
 0x49e   : > { %6502 = vmatmul.mubr.msk.bf16.gmra.mrb[88].mxu0 %vm4375_vm1, %v4830_v21 }
 0x49f   : > { %7448 = vrsqrt.f32 %v4648_v29 }
 0x4a3   : > { %v7443_v51 = vpop.eup %7442 }
 0x4a4   : > { %v4773_v19 = vmul.f32 %v7443_v51, %v9942_v7 }
 0x4a5   : > { %v7445_v59 = vpop.eup %7444 }
 0x4a6   : > { %v4774_v50 = vmul.f32 %v7445_v59, %v9948_v37 }
 0x4a7   : > { %v7447_v42 = vpop.eup %7446 }
 0x4a8   : > { %v4831_v25 = vpack.c.bf16 %v4774_v50, %v4773_v19  ;;  %v4775_v16 = vmul.f32 %v7447_v42, %v9940_v39 }
 0x4a9   : > { %v7449_v30 = vpop.eup %7448 }
 0x4aa   : > { %6505 = vmatprep.mubr.msk.bf16.mxu0 %vm4375_vm1, %v4831_v25  ;;  %v4776_v10 = vmul.f32 %v7449_v30, %v9946_v48 }
 0x4ab   : > { %v10159_v55 = vpop.f32.mrb[96].mxu1 }
 0x4ac   : > { %v10161_v47 = vpop.f32.mrb[97].mxu1  ;;  %v4832_v36 = vpack.c.bf16 %v4776_v10, %v4775_v16  ;;  %v4361_v4 = vmul.f32 %v10159_v55, %v10159_v55 }
 0x4ad   : > { %v4359_v20 = vmul.f32 %v10161_v47, %v10161_v47  ;;  %v10165_v7 = vpop.f32.mrb[98].mxu1 }
 0x4ae   : > { %v10167_v37 = vpop.f32.mrb[99].mxu1  ;;  %6506 = vmatmul.mubr.msk.bf16.gmra.mrb[92].mxu0 %vm4375_vm1, %v4832_v36  ;;  %v4362_v15 = vmul.f32 %v10165_v7, %v10165_v7  ;;  %v4526_v49 = vsel %vm4375_vm1, %v4361_v4, 0.0 }
 0x4af   : > { %v4360_v39 = vmul.f32 %v10167_v37, %v10167_v37  ;;  %v4520_v48 = vsel %vm4375_vm1, %v4359_v20, 0.0 }
 0x4b0   : > { %4521 = vadd.xlane.f32.xlu0 %v4520_v48  ;;  %v4529_v9 = vsel %vm4375_vm1, %v4362_v15, 0.0 }
 0x4b1   : > { %v4523_v44 = vsel %vm4375_vm1, %v4360_v39, 0.0 }
 0x4b2   : > { %4524 = vadd.xlane.f32.xlu1 %v4523_v44 }
 0x4b4   : > { %v10178_v11 = vpop.f32.mrb[100].mxu1  ;;  %4527 = vadd.xlane.f32.xlu0 %v4526_v49 }
 0x4b5   : > { %v10181_v5 = vpop.f32.mrb[101].mxu1  ;;  %v4365_v13 = vmul.f32 %v10178_v11, %v10178_v11 }
 0x4b6   : > { %v4363_v58 = vmul.f32 %v10181_v5, %v10181_v5  ;;  %v10185_v41 = vpop.f32.mrb[102].mxu1  ;;  %4530 = vadd.xlane.f32.xlu1 %v4529_v9 }
 0x4b7   : > { %v10188_v23 = vpop.f32.mrb[103].mxu1  ;;  %v4366_v29 = vmul.f32 %v10185_v41, %v10185_v41  ;;  %v4538_v19 = vsel %vm4375_vm1, %v4365_v13, 0.0 }
 0x4b8   : > { %v4364_v61 = vmul.f32 %v10188_v23, %v10188_v23  ;;  %v4532_v21 = vsel %vm4375_vm1, %v4363_v58, 0.0 }
 0x4b9   : > { %4533 = vadd.xlane.f32.xlu0 %v4532_v21  ;;  %v4541_v30 = vsel %vm4375_vm1, %v4366_v29, 0.0 }
 0x4ba   : > { %v4535_v51 = vsel %vm4375_vm1, %v4364_v61, 0.0 }
 0x4bb   : > { %4536 = vadd.xlane.f32.xlu1 %v4535_v51 }
 0x4bc   : > { %v10198_v59 = vpop.f32.mrb[104].mxu1 }
 0x4bd   : > { %4539 = vadd.xlane.f32.xlu0 %v4538_v19  ;;  %v10201_v50 = vpop.f32.mrb[105].mxu1  ;;  %v4369_v10 = vmul.f32 %v10198_v59, %v10198_v59 }
 0x4be   : > { %v4367_v42 = vmul.f32 %v10201_v50, %v10201_v50  ;;  %v10205_v25 = vpop.f32.mrb[106].mxu1 }
 0x4bf   : > { %4542 = vadd.xlane.f32.xlu1 %v4541_v30  ;;  %v10208_v16 = vpop.f32.mrb[107].mxu1  ;;  %v4370_v4 = vmul.f32 %v10205_v25, %v10205_v25  ;;  %v4550_v48 = vsel %vm4375_vm1, %v4369_v10, 0.0 }
 0x4c0   : > { %v4368_v36 = vmul.f32 %v10208_v16, %v10208_v16  ;;  %v4544_v20 = vsel %vm4375_vm1, %v4367_v42, 0.0 }
 0x4c1   : > { %4545 = vadd.xlane.f32.xlu0 %v4544_v20  ;;  %v4553_v9 = vsel %vm4375_vm1, %v4370_v4, 0.0 }
 0x4c2   : > { %v4547_v39 = vsel %vm4375_vm1, %v4368_v36, 0.0 }
 0x4c3   : > { %4548 = vadd.xlane.f32.xlu1 %v4547_v39 }
 0x4c4   : > { %v4426_v15 = vpop.xlane.xlu0 %4425 }
 0x4c5   : > { %4551 = vadd.xlane.f32.xlu0 %v4550_v48  ;;  %v10219_v44 = vpop.f32.mrb[108].mxu1  ;;  %v4585_v49 = vmul.f32 0.03125, %v4426_v15 }
 0x4c6   : > { %11272 = vst [vmem:[#allocation83_spill] sm:$0xff] %v10219_v44  ;;  %v10221_v58 = vpop.f32.mrb[109].mxu1  ;;  %v4429_v21 = vpop.xlane.xlu1 %4428  ;;  %v4373_v42 = vmul.f32 %v10219_v44, %v10219_v44 }
 0x4c7   : > { %v4371_v13 = vmul.f32 %v10221_v58, %v10221_v58  ;;  %4554 = vadd.xlane.f32.xlu1 %v4553_v9  ;;  %v10226_v61 = vpop.f32.mrb[110].mxu1  ;;  %v4649_v29 = vadd.f32 1e-05, %v4585_v49  ;;  %v4586_v51 = vmul.f32 0.03125, %v4429_v21 }
 0x4c8   : > { %11273 = vst [vmem:[#allocation102_spill] sm:$0xff] %v10226_v61  ;;  %v10228_v19 = vpop.f32.mrb[111].mxu1  ;;  %v4432_v10 = vpop.xlane.xlu0 %4431  ;;  %v4374_v39 = vmul.f32 %v10226_v61, %v10226_v61  ;;  %v4562_v21 = vsel %vm4375_vm1, %v4373_v42, 0.0 }
 0x4c9   : > { %v4372_v30 = vmul.f32 %v10228_v19, %v10228_v19  ;;  %v4556_v36 = vsel %vm4375_vm1, %v4371_v13, 0.0  ;;  %7450 = vrsqrt.f32 %v4649_v29  ;;  %v4650_v20 = vadd.f32 1e-05, %v4586_v51 }
 0x4ca   : > { %v4587_v4 = vmul.f32 0.03125, %v4432_v10  ;;  %4557 = vadd.xlane.f32.xlu0 %v4556_v36  ;;  %v4435_v48 = vpop.xlane.xlu1 %4434  ;;  %v4565_v13 = vsel %vm4375_vm1, %v4374_v39, 0.0 }
 0x4cb   : > { %v4559_v15 = vsel %vm4375_vm1, %v4372_v30, 0.0  ;;  %7452 = vrsqrt.f32 %v4650_v20  ;;  %v4588_v9 = vmul.f32 0.03125, %v4435_v48 }
 0x4cc   : > { %v4651_v49 = vadd.f32 1e-05, %v4587_v4  ;;  %4560 = vadd.xlane.f32.xlu1 %v4559_v15 }
 0x4cd   : > { %v4652_v44 = vadd.f32 1e-05, %v4588_v9 }
 0x4ce   : > { %7454 = vrsqrt.f32 %v4651_v49  ;;  %4563 = vadd.xlane.f32.xlu0 %v4562_v21 }
 0x4cf   : > { %7456 = vrsqrt.f32 %v4652_v44 }
 0x4d0   : > { %4566 = vadd.xlane.f32.xlu1 %v4565_v13 }
 0x4d3   : > { %v7451_v29 = vpop.eup %7450 }
 0x4d4   : > { %v4438_v51 = vpop.xlane.xlu0 %4437  ;;  %v4777_v30 = vmul.f32 %v7451_v29, %v9962_v28 }
 0x4d5   : > { %v7453_v10 = vpop.eup %7452  ;;  %v4589_v36 = vmul.f32 0.03125, %v4438_v51 }
 0x4d6   : > { %v4441_v61 = vpop.xlane.xlu1 %4440  ;;  %v4778_v20 = vmul.f32 %v7453_v10, %v9968_v1 }
 0x4d7   : > { %v4653_v48 = vadd.f32 1e-05, %v4589_v36  ;;  %v4590_v15 = vmul.f32 0.03125, %v4441_v61  ;;  %v6903_v61 = vld [vmem:[%s10408_s4 + $0x28] sm:$0xff]  }
 0x4d8   : > { %v7455_v4 = vpop.eup %7454  ;;  %v4444_v42 = vpop.xlane.xlu0 %4443  ;;  %v4833_v49 = vpack.c.bf16 %v4778_v20, %v4777_v30 }
 0x4d9   : > { %v7457_v9 = vpop.eup %7456  ;;  %7458 = vrsqrt.f32 %v4653_v48  ;;  %v4654_v21 = vadd.f32 1e-05, %v4590_v15  ;;  %v4591_v39 = vmul.f32 0.03125, %v4444_v42  ;;  %v4779_v44 = vmul.f32 %v7455_v4, %v9960_v32  ;;  %v10253_v32 = vld [vmem:[%s10408_s4 + $0x30] sm:$0xff]  }
 0x4da   : > { %v4780_v13 = vmul.f32 %v7457_v9, %v9966_v53  ;;  %6513 = vmatprep.mubr.msk.bf16.mxu0 %vm4375_vm1, %v4833_v49  ;;  %v4447_v51 = vpop.xlane.xlu1 %4446 }
 0x4db   : > { %7460 = vrsqrt.f32 %v4654_v21  ;;  %v4655_v28 = vadd.f32 1e-05, %v4591_v39  ;;  %v4592_v29 = vmul.f32 0.03125, %v4447_v51 }
 0x4dc   : > { %v4834_v1 = vpack.c.bf16 %v4780_v13, %v4779_v44 }
 0x4dd   : > { %7462 = vrsqrt.f32 %v4655_v28  ;;  %v4656_v10 = vadd.f32 1e-05, %v4592_v29 }
 0x4de   : > { %6514 = vmatmul.mubr.msk.bf16.vlgmr.msra.gmra.mrb[80].mxu0 %vm4375_vm1, %v4834_v1 }
 0x4df   : > { %7464 = vrsqrt.f32 %v4656_v10  ;;  %6530 = vmatpush3.bf16.msra.mxu0 %v10145_v26 }
 0x4e0   : > { %6531 = vmatprep.subr.bf16.mxu0 %v6903_v61 }
 0x4e3   : > { %v7459_v53 = vpop.eup %7458  ;;  %6532 = vmatpush3.bf16.msra.mxu0 %v6903_v61 }
 0x4e4   : > { %v4450_v36 = vpop.xlane.xlu0 %4449  ;;  %6549 = vmatprep.subr.bf16.mxu0 %v10253_v32  ;;  %v4781_v48 = vmul.f32 %v7459_v53, %v9982_v56 }
 0x4e5   : > { %v7461_v30 = vpop.eup %7460  ;;  %v4593_v20 = vmul.f32 0.03125, %v4450_v36 }
 0x4e6   : > { %v4453_v4 = vpop.xlane.xlu1 %4452  ;;  %v4782_v15 = vmul.f32 %v7461_v30, %v9988_v22 }
 0x4e7   : > { %v7463_v42 = vpop.eup %7462  ;;  %v4657_v26 = vadd.f32 1e-05, %v4593_v20  ;;  %v4594_v49 = vmul.f32 0.03125, %v4453_v4 }
 0x4e8   : > { %v4456_v9 = vpop.xlane.xlu0 %4455  ;;  %v4835_v21 = vpack.c.bf16 %v4782_v15, %v4781_v48  ;;  %v4783_v28 = vmul.f32 %v7463_v42, %v9980_v3 }
 0x4e9   : > { %v7465_v39 = vpop.eup %7464  ;;  %7466 = vrsqrt.f32 %v4657_v26  ;;  %v4658_v44 = vadd.f32 1e-05, %v4594_v49  ;;  %v4595_v13 = vmul.f32 0.03125, %v4456_v9 }
 0x4ea   : > { %6517 = vmatprep.mubr.msk.bf16.mxu0 %vm4375_vm1, %v4835_v21  ;;  %v4459_v51 = vpop.xlane.xlu1 %4458  ;;  %v4784_v29 = vmul.f32 %v7465_v39, %v9986_v33 }
 0x4eb   : > { %7468 = vrsqrt.f32 %v4658_v44  ;;  %v4659_v56 = vadd.f32 1e-05, %v4595_v13  ;;  %v4596_v1 = vmul.f32 0.03125, %v4459_v51 }
 0x4ec   : > { %v4836_v22 = vpack.c.bf16 %v4784_v29, %v4783_v28 }
 0x4ed   : > { %7470 = vrsqrt.f32 %v4659_v56  ;;  %v4660_v61 = vadd.f32 1e-05, %v4596_v1 }
 0x4ee   : > { %6518 = vmatmul.mubr.msk.bf16.gmra.mrb[84].mxu0 %vm4375_vm1, %v4836_v22 }
 0x4ef   : > { %7472 = vrsqrt.f32 %v4660_v61 }
 0x4f0   : > { %v4462_v10 = vpop.xlane.xlu0 %4461 }
 0x4f1   : > { %v4597_v53 = vmul.f32 0.03125, %v4462_v10 }
 0x4f2   : > { %v4465_v36 = vpop.xlane.xlu1 %4464 }
 0x4f3   : > { %v7467_v30 = vpop.eup %7466  ;;  %v4661_v20 = vadd.f32 1e-05, %v4597_v53  ;;  %v4598_v4 = vmul.f32 0.03125, %v4465_v36 }
 0x4f4   : > { %v4468_v48 = vpop.xlane.xlu0 %4467  ;;  %v4785_v26 = vmul.f32 %v7467_v30, %v10002_v14 }
 0x4f5   : > { %v7469_v15 = vpop.eup %7468  ;;  %7474 = vrsqrt.f32 %v4661_v20  ;;  %v4662_v3 = vadd.f32 1e-05, %v4598_v4  ;;  %v4599_v33 = vmul.f32 0.03125, %v4468_v48 }
 0x4f6   : > { %v4471_v42 = vpop.xlane.xlu1 %4470  ;;  %v4786_v49 = vmul.f32 %v7469_v15, %v10008_v35 }
 0x4f7   : > { %v7471_v9 = vpop.eup %7470  ;;  %7476 = vrsqrt.f32 %v4662_v3  ;;  %v4663_v21 = vadd.f32 1e-05, %v4599_v33  ;;  %v4600_v39 = vmul.f32 0.03125, %v4471_v42 }
 0x4f8   : > { %v4837_v44 = vpack.c.bf16 %v4786_v49, %v4785_v26  ;;  %v4787_v28 = vmul.f32 %v7471_v9, %v10000_v45 }
 0x4f9   : > { %v7473_v13 = vpop.eup %7472  ;;  %7478 = vrsqrt.f32 %v4663_v21  ;;  %v4664_v51 = vadd.f32 1e-05, %v4600_v39 }
 0x4fa   : > { %6521 = vmatprep.mubr.msk.bf16.mxu0 %vm4375_vm1, %v4837_v44  ;;  %v4788_v29 = vmul.f32 %v7473_v13, %v10006_v27 }
 0x4fb   : > { %7480 = vrsqrt.f32 %v4664_v51 }
 0x4fc   : > { %v4474_v56 = vpop.xlane.xlu0 %4473  ;;  %v4838_v1 = vpack.c.bf16 %v4788_v29, %v4787_v28 }
 0x4fd   : > { %v4601_v14 = vmul.f32 0.03125, %v4474_v56 }
 0x4fe   : > { %6522 = vmatmul.mubr.msk.bf16.gmra.mrb[88].mxu0 %vm4375_vm1, %v4838_v1  ;;  %v4477_v35 = vpop.xlane.xlu1 %4476 }
 0x4ff   : > { %v7475_v22 = vpop.eup %7474  ;;  %v4665_v61 = vadd.f32 1e-05, %v4601_v14  ;;  %v4602_v10 = vmul.f32 0.03125, %v4477_v35 }
 0x500   : > { %v4480_v53 = vpop.xlane.xlu0 %4479  ;;  %v4789_v45 = vmul.f32 %v7475_v22, %v10028_v40 }
 0x501   : > { %v7477_v36 = vpop.eup %7476  ;;  %7482 = vrsqrt.f32 %v4665_v61  ;;  %v4666_v30 = vadd.f32 1e-05, %v4602_v10  ;;  %v4603_v20 = vmul.f32 0.03125, %v4480_v53 }
 0x502   : > { %v4483_v4 = vpop.xlane.xlu1 %4482  ;;  %v4790_v27 = vmul.f32 %v7477_v36, %v10034_v52 }
 0x503   : > { %v7479_v48 = vpop.eup %7478  ;;  %7484 = vrsqrt.f32 %v4666_v30  ;;  %v4667_v15 = vadd.f32 1e-05, %v4603_v20  ;;  %v4604_v3 = vmul.f32 0.03125, %v4483_v4 }
 0x504   : > { %v4486_v33 = vpop.xlane.xlu0 %4485  ;;  %v4839_v42 = vpack.c.bf16 %v4790_v27, %v4789_v45  ;;  %v4791_v39 = vmul.f32 %v7479_v48, %v10026_v57 }
 0x505   : > { %v7481_v26 = vpop.eup %7480  ;;  %7486 = vrsqrt.f32 %v4667_v15  ;;  %v4668_v49 = vadd.f32 1e-05, %v4604_v3  ;;  %v4605_v9 = vmul.f32 0.03125, %v4486_v33 }
 0x506   : > { %6525 = vmatprep.mubr.msk.bf16.mxu0 %vm4375_vm1, %v4839_v42  ;;  %v4792_v44 = vmul.f32 %v7481_v26, %v10032_v63 }
 0x507   : > { %v4489_v21 = vpop.xlane.xlu1 %4488  ;;  %7488 = vrsqrt.f32 %v4668_v49  ;;  %v4669_v40 = vadd.f32 1e-05, %v4605_v9 }
 0x508   : > { %v4606_v52 = vmul.f32 0.03125, %v4489_v21  ;;  %v4492_v13 = vpop.xlane.xlu0 %4491  ;;  %v4840_v51 = vpack.c.bf16 %v4792_v44, %v4791_v39  ;;  %v6905_v39 = vld [vmem:[%s10408_s4 + $0x38] sm:$0xff]  }
 0x509   : > { %7490 = vrsqrt.f32 %v4669_v40  ;;  %v4607_v29 = vmul.f32 0.03125, %v4492_v13 }
 0x50a   : > { %v4670_v28 = vadd.f32 1e-05, %v4606_v52  ;;  %6526 = vmatmul.mubr.msk.bf16.gmra.mrb[92].mxu0 %vm4375_vm1, %v4840_v51 }
 0x50b   : > { %v4495_v56 = vpop.xlane.xlu1 %4494  ;;  %v7483_v1 = vpop.eup %7482  ;;  %v4671_v14 = vadd.f32 1e-05, %v4607_v29 }
 0x50c   : > { %7492 = vrsqrt.f32 %v4670_v28  ;;  %v4608_v35 = vmul.f32 0.03125, %v4495_v56  ;;  %v4498_v22 = vpop.xlane.xlu0 %4497  ;;  %v4793_v53 = vmul.f32 %v7483_v1, %v10048_v43 }
 0x50d   : > { %v7485_v61 = vpop.eup %7484  ;;  %7494 = vrsqrt.f32 %v4671_v14  ;;  %v4609_v63 = vmul.f32 0.03125, %v4498_v22 }
 0x50e   : > { %v4672_v57 = vadd.f32 1e-05, %v4608_v35  ;;  %v4794_v36 = vmul.f32 %v7485_v61, %v10054_v38 }
 0x50f   : > { %v4501_v10 = vpop.xlane.xlu1 %4500  ;;  %v7487_v30 = vpop.eup %7486  ;;  %v4673_v20 = vadd.f32 1e-05, %v4609_v63 }
 0x510   : > { %7496 = vrsqrt.f32 %v4672_v57  ;;  %v4610_v4 = vmul.f32 0.03125, %v4501_v10  ;;  %v4504_v45 = vpop.xlane.xlu0 %4503  ;;  %v4841_v27 = vpack.c.bf16 %v4794_v36, %v4793_v53  ;;  %v4795_v33 = vmul.f32 %v7487_v30, %v10046_v18 }
 0x511   : > { %v7489_v48 = vpop.eup %7488  ;;  %7498 = vrsqrt.f32 %v4673_v20  ;;  %v4611_v3 = vmul.f32 0.03125, %v4504_v45 }
 0x512   : > { %v4674_v15 = vadd.f32 1e-05, %v4610_v4  ;;  %v4796_v42 = vmul.f32 %v7489_v48, %v10052_v8  ;;  %6533 = vmatprep.mubr.msk.bf16.mxu0 %vm4375_vm1, %v4841_v27 }
 0x513   : > { %v4507_v26 = vpop.xlane.xlu1 %4506  ;;  %v7491_v43 = vpop.eup %7490  ;;  %v4675_v38 = vadd.f32 1e-05, %v4611_v3 }
 0x514   : > { %7500 = vrsqrt.f32 %v4674_v15  ;;  %v4612_v49 = vmul.f32 0.03125, %v4507_v26  ;;  %v4842_v9 = vpack.c.bf16 %v4796_v42, %v4795_v33  ;;  %v4510_v21 = vpop.xlane.xlu0 %4509  ;;  %v4797_v8 = vmul.f32 %v7491_v43, %v10067_v24 }
 0x515   : > { %7502 = vrsqrt.f32 %v4675_v38  ;;  %v4613_v52 = vmul.f32 0.03125, %v4510_v21 }
 0x516   : > { %v7493_v44 = vpop.eup %7492  ;;  %v4676_v40 = vadd.f32 1e-05, %v4612_v49  ;;  %6534 = vmatmul.mubr.msk.bf16.vlgmr.msra.gmra.mrb[80].mxu0 %vm4375_vm1, %v4842_v9 }
 0x517   : > { %v4513_v18 = vpop.xlane.xlu1 %4512  ;;  %v4798_v13 = vmul.f32 %v7493_v44, %v10076_v60  ;;  %v7495_v51 = vpop.eup %7494  ;;  %v4677_v28 = vadd.f32 1e-05, %v4613_v52  ;;  %6550 = vmatpush3.bf16.msra.mxu0 %v10253_v32 }
 0x518   : > { %7504 = vrsqrt.f32 %v4676_v40  ;;  %v4614_v29 = vmul.f32 0.03125, %v4513_v18  ;;  %v4516_v56 = vpop.xlane.xlu0 %4515  ;;  %6551 = vmatprep.subr.bf16.mxu0 %v6905_v39  ;;  %v4799_v24 = vmul.f32 %v7495_v51, %v10064_v0 }
 0x519   : > { %v4843_v1 = vpack.c.bf16 %v4798_v13, %v4797_v8  ;;  %7506 = vrsqrt.f32 %v4677_v28  ;;  %v4615_v22 = vmul.f32 0.03125, %v4516_v56 }
 0x51a   : > { %v7497_v14 = vpop.eup %7496  ;;  %v4678_v35 = vadd.f32 1e-05, %v4614_v29 }
 0x51b   : > { %6537 = vmatprep.mubr.msk.bf16.mxu0 %vm4375_vm1, %v4843_v1  ;;  %v4519_v61 = vpop.xlane.xlu1 %4518  ;;  %v4800_v60 = vmul.f32 %v7497_v14, %v10071_v2  ;;  %v7499_v57 = vpop.eup %7498  ;;  %v4679_v63 = vadd.f32 1e-05, %v4615_v22  ;;  %6552 = vmatpush3.bf16.msra.mxu0 %v6905_v39 }
 0x51c   : > { %7508 = vrsqrt.f32 %v4678_v35  ;;  %v4616_v10 = vmul.f32 0.03125, %v4519_v61  ;;  %v4801_v30 = vmul.f32 %v7499_v57, %v10092_v46 }
 0x51d   : > { %v4844_v32 = vpack.c.bf16 %v4800_v60, %v4799_v24  ;;  %7510 = vrsqrt.f32 %v4679_v63 }
 0x51e   : > { %v7501_v53 = vpop.eup %7500  ;;  %v4680_v36 = vadd.f32 1e-05, %v4616_v10 }
 0x51f   : > { %6538 = vmatmul.mubr.msk.bf16.gmra.mrb[84].mxu0 %vm4375_vm1, %v4844_v32  ;;  %v4802_v20 = vmul.f32 %v7501_v53, %v10102_v62  ;;  %v7503_v4 = vpop.eup %7502 }
 0x520   : > { %7512 = vrsqrt.f32 %v4680_v36  ;;  %v4803_v2 = vmul.f32 %v7503_v4, %v10088_v6 }
 0x521   : > { %v4845_v0 = vpack.c.bf16 %v4802_v20, %v4801_v30 }
 0x522   : > { %v7505_v45 = vpop.eup %7504 }
 0x523   : > { %6541 = vmatprep.mubr.msk.bf16.mxu0 %vm4375_vm1, %v4845_v0  ;;  %v4804_v27 = vmul.f32 %v7505_v45, %v10096_v12  ;;  %v7507_v48 = vpop.eup %7506 }
 0x524   : > { %v4805_v33 = vmul.f32 %v7507_v48, %v10117_v17 }
 0x525   : > { %v4846_v15 = vpack.c.bf16 %v4804_v27, %v4803_v2 }
 0x526   : > { %v7509_v3 = vpop.eup %7508 }
 0x527   : > { %6542 = vmatmul.mubr.msk.bf16.gmra.mrb[88].mxu0 %vm4375_vm1, %v4846_v15  ;;  %v4806_v46 = vmul.f32 %v7509_v3, %v10126_v31  ;;  %v7511_v62 = vpop.eup %7510 }
 0x528   : > { %v4807_v43 = vmul.f32 %v7511_v62, %v10114_v54 }
 0x529   : > { %v4847_v42 = vpack.c.bf16 %v4806_v46, %v4805_v33 }
 0x52a   : > { %v7513_v26 = vpop.eup %7512 }
 0x52b   : > { %6545 = vmatprep.mubr.msk.bf16.mxu0 %vm4375_vm1, %v4847_v42  ;;  %v4808_v6 = vmul.f32 %v7513_v26, %v10121_v34 }
 0x52d   : > { %v4848_v38 = vpack.c.bf16 %v4808_v6, %v4807_v43 }
 0x52f   : > { %6546 = vmatmul.mubr.msk.bf16.gmra.mrb[92].mxu0 %vm4375_vm1, %v4848_v38 }
 0x53d   : > { %v4522_v12 = vpop.xlane.xlu0 %4521 }
 0x53e   : > { %v4617_v49 = vmul.f32 0.03125, %v4522_v12 }
 0x53f   : > { %v4525_v9 = vpop.xlane.xlu1 %4524 }
 0x540   : > { %v4681_v21 = vadd.f32 1e-05, %v4617_v49  ;;  %v4618_v39 = vmul.f32 0.03125, %v4525_v9 }
 0x541   : > { %v4528_v17 = vpop.xlane.xlu0 %4527 }
 0x542   : > { %7514 = vrsqrt.f32 %v4681_v21  ;;  %v4682_v31 = vadd.f32 1e-05, %v4618_v39  ;;  %v4619_v44 = vmul.f32 0.03125, %v4528_v17 }
 0x543   : > { %v4531_v40 = vpop.xlane.xlu1 %4530 }
 0x544   : > { %7516 = vrsqrt.f32 %v4682_v31  ;;  %v4683_v52 = vadd.f32 1e-05, %v4619_v44  ;;  %v4620_v18 = vmul.f32 0.03125, %v4531_v40 }
 0x546   : > { %v4534_v8 = vpop.xlane.xlu0 %4533  ;;  %7518 = vrsqrt.f32 %v4683_v52  ;;  %v4684_v54 = vadd.f32 1e-05, %v4620_v18 }
 0x547   : > { %v4621_v34 = vmul.f32 0.03125, %v4534_v8 }
 0x548   : > { %v4537_v13 = vpop.xlane.xlu1 %4536  ;;  %7520 = vrsqrt.f32 %v4684_v54 }
 0x549   : > { %v4685_v51 = vadd.f32 1e-05, %v4621_v34  ;;  %v4622_v28 = vmul.f32 0.03125, %v4537_v13 }
 0x54a   : > { %v4540_v29 = vpop.xlane.xlu0 %4539 }
 0x54b   : > { %7522 = vrsqrt.f32 %v4685_v51  ;;  %v4686_v56 = vadd.f32 1e-05, %v4622_v28  ;;  %v4623_v1 = vmul.f32 0.03125, %v4540_v29 }
 0x54c   : > { %v4543_v14 = vpop.xlane.xlu1 %4542  ;;  %v7515_v35 = vpop.eup %7514 }
 0x54d   : > { %7524 = vrsqrt.f32 %v4686_v56  ;;  %v4687_v22 = vadd.f32 1e-05, %v4623_v1  ;;  %v4624_v61 = vmul.f32 0.03125, %v4543_v14  ;;  %v4809_v32 = vmul.f32 %v7515_v35, %v10161_v47 }
 0x54e   : > { %v4546_v24 = vpop.xlane.xlu0 %4545  ;;  %v7517_v60 = vpop.eup %7516 }
 0x54f   : > { %7526 = vrsqrt.f32 %v4687_v22  ;;  %v4688_v57 = vadd.f32 1e-05, %v4624_v61  ;;  %v4625_v63 = vmul.f32 0.03125, %v4546_v24  ;;  %v4810_v53 = vmul.f32 %v7517_v60, %v10167_v37  ;;  %v11274_v60 = vld [vmem:[#allocation83_spill] sm:$0xff] }
 0x550   : > { %v4549_v10 = vpop.xlane.xlu1 %4548  ;;  %v7519_v36 = vpop.eup %7518 }
 0x551   : > { %7528 = vrsqrt.f32 %v4688_v57  ;;  %v4689_v30 = vadd.f32 1e-05, %v4625_v63  ;;  %v4626_v20 = vmul.f32 0.03125, %v4549_v10  ;;  %v4849_v0 = vpack.c.bf16 %v4810_v53, %v4809_v32  ;;  %v11275_v57 = vld [vmem:[#allocation102_spill] sm:$0xff] }
 0x552   : > { %v4552_v4 = vpop.xlane.xlu0 %4551  ;;  %v7521_v45 = vpop.eup %7520  ;;  %v4811_v48 = vmul.f32 %v7519_v36, %v10159_v55 }
 0x553   : > { %7530 = vrsqrt.f32 %v4689_v30  ;;  %v4690_v2 = vadd.f32 1e-05, %v4626_v20  ;;  %v4627_v27 = vmul.f32 0.03125, %v4552_v4  ;;  %v4812_v15 = vmul.f32 %v7521_v45, %v10165_v7  ;;  %6553 = vmatprep.mubr.msk.bf16.mxu0 %vm4375_vm1, %v4849_v0 }
 0x554   : > { %v4555_v3 = vpop.xlane.xlu1 %4554 }
 0x555   : > { %v7523_v47 = vpop.eup %7522  ;;  %7532 = vrsqrt.f32 %v4690_v2  ;;  %v4691_v37 = vadd.f32 1e-05, %v4627_v27  ;;  %v4628_v33 = vmul.f32 0.03125, %v4555_v3  ;;  %v4850_v46 = vpack.c.bf16 %v4812_v15, %v4811_v48 }
 0x556   : > { %v4813_v6 = vmul.f32 %v7523_v47, %v10181_v5 }
 0x557   : > { %v7525_v62 = vpop.eup %7524  ;;  %7534 = vrsqrt.f32 %v4691_v37  ;;  %v4692_v42 = vadd.f32 1e-05, %v4628_v33  ;;  %v4558_v26 = vpop.xlane.xlu0 %4557  ;;  %6554 = vmatmul.mubr.msk.bf16.vlgmr.msra.gmra.mrb[80].mxu0 %vm4375_vm1, %v4850_v46 }
 0x558   : > { %v4629_v43 = vmul.f32 0.03125, %v4558_v26  ;;  %v4814_v55 = vmul.f32 %v7525_v62, %v10188_v23 }
 0x559   : > { %v7527_v7 = vpop.eup %7526  ;;  %7536 = vrsqrt.f32 %v4692_v42  ;;  %v4561_v38 = vpop.xlane.xlu1 %4560 }
 0x55a   : > { %v4693_v12 = vadd.f32 1e-05, %v4629_v43  ;;  %v4630_v49 = vmul.f32 0.03125, %v4561_v38  ;;  %v4851_v9 = vpack.c.bf16 %v4814_v55, %v4813_v6  ;;  %v4815_v17 = vmul.f32 %v7527_v7, %v10178_v11 }
 0x55b   : > { %v7529_v21 = vpop.eup %7528  ;;  %v4564_v39 = vpop.xlane.xlu0 %4563 }
 0x55c   : > { %7538 = vrsqrt.f32 %v4693_v12  ;;  %v4694_v31 = vadd.f32 1e-05, %v4630_v49  ;;  %v4631_v44 = vmul.f32 0.03125, %v4564_v39  ;;  %6557 = vmatprep.mubr.msk.bf16.mxu0 %vm4375_vm1, %v4851_v9  ;;  %v4816_v40 = vmul.f32 %v7529_v21, %v10185_v41 }
 0x55d   : > { %v7531_v5 = vpop.eup %7530  ;;  %v4567_v52 = vpop.xlane.xlu1 %4566 }
 0x55e   : > { %7540 = vrsqrt.f32 %v4694_v31  ;;  %v4695_v23 = vadd.f32 1e-05, %v4631_v44  ;;  %v4632_v18 = vmul.f32 0.03125, %v4567_v52  ;;  %v4852_v8 = vpack.c.bf16 %v4816_v40, %v4815_v17 }
 0x55f   : > { %v7533_v54 = vpop.eup %7532  ;;  %v4817_v11 = vmul.f32 %v7531_v5, %v10201_v50 }
 0x560   : > { %7542 = vrsqrt.f32 %v4695_v23  ;;  %v4696_v34 = vadd.f32 1e-05, %v4632_v18  ;;  %6558 = vmatmul.mubr.msk.bf16.gmra.mrb[84].mxu0 %vm4375_vm1, %v4852_v8  ;;  %v4818_v13 = vmul.f32 %v7533_v54, %v10208_v16 }
 0x561   : > { %v7535_v51 = vpop.eup %7534 }
 0x562   : > { %7544 = vrsqrt.f32 %v4696_v34  ;;  %v4853_v28 = vpack.c.bf16 %v4818_v13, %v4817_v11  ;;  %v4819_v41 = vmul.f32 %v7535_v51, %v10198_v59 }
 0x563   : > { %v7537_v29 = vpop.eup %7536 }
 0x564   : > { %6561 = vmatprep.mubr.msk.bf16.mxu0 %vm4375_vm1, %v4853_v28  ;;  %v4820_v56 = vmul.f32 %v7537_v29, %v10205_v25 }
 0x566   : > { %v7539_v1 = vpop.eup %7538  ;;  %v4854_v14 = vpack.c.bf16 %v4820_v56, %v4819_v41 }
 0x567   : > { %v4821_v50 = vmul.f32 %v7539_v1, %v10221_v58 }
 0x568   : > { %v7541_v35 = vpop.eup %7540  ;;  %6562 = vmatmul.mubr.msk.bf16.gmra.mrb[88].mxu0 %vm4375_vm1, %v4854_v14 }
 0x569   : > { %v4822_v16 = vmul.f32 %v7541_v35, %v10228_v19 }
 0x56a   : > { %v7543_v22 = vpop.eup %7542 }
 0x56b   : > { %v4855_v61 = vpack.c.bf16 %v4822_v16, %v4821_v50  ;;  %v4823_v59 = vmul.f32 %v7543_v22, %v11274_v60 }
 0x56c   : > { %v7545_v24 = vpop.eup %7544 }
 0x56d   : > { %6565 = vmatprep.mubr.msk.bf16.mxu0 %vm4375_vm1, %v4855_v61  ;;  %v4824_v63 = vmul.f32 %v7545_v24, %v11275_v57 }
 0x56f   : > { %v4856_v25 = vpack.c.bf16 %v4824_v63, %v4823_v59 }
 0x571   : > { %6566 = vmatmul.mubr.msk.bf16.gmra.mrb[92].mxu0 %vm4375_vm1, %v4856_v25 }
 0x62a   : > { %v6555_v10 = vpop.f32.mrb[80].mxu0 }
 0x62b   : > { %5455 = vst [vmem:[%s10329_s30 + $0x10] sm:$0xff] %v6555_v10  ;;  %v5342_v58 = vpop.f32.mrb[81].mxu0 }
 0x62c   : > { %5453 = vst [vmem:[%s10329_s30] sm:$0xff] %v5342_v58  ;;  %v6556_v19 = vpop.f32.mrb[82].mxu0 }
 0x62d   : > { %5456 = vst [vmem:[%s10329_s30 + $0x18] sm:$0xff] %v6556_v19  ;;  %v5345_v32 = vpop.f32.mrb[83].mxu0 }
 0x62e   : > { %5454 = vst [vmem:[%s10329_s30 + $0x8] sm:$0xff] %v5345_v32 }
 0x633   : > { %v6559_v53 = vpop.f32.mrb[84].mxu0 }
 0x634   : > { %5459 = vst [vmem:[%s10329_s30 + $0x30] sm:$0xff] %v6559_v53  ;;  %v5358_v36 = vpop.f32.mrb[85].mxu0 }
 0x635   : > { %5457 = vst [vmem:[%s10329_s30 + $0x20] sm:$0xff] %v5358_v36  ;;  %v6560_v30 = vpop.f32.mrb[86].mxu0 }
 0x636   : > { %5460 = vst [vmem:[%s10329_s30 + $0x38] sm:$0xff] %v6560_v30  ;;  %v5361_v20 = vpop.f32.mrb[87].mxu0 }
 0x637   : > { %5458 = vst [vmem:[%s10329_s30 + $0x28] sm:$0xff] %v5361_v20 }
 0x63b   : > { %v6563_v4 = vpop.f32.mrb[88].mxu0 }
 0x63c   : > { %5463 = vst [vmem:[%s10329_s30 + $0x50] sm:$0xff] %v6563_v4  ;;  %v5374_v0 = vpop.f32.mrb[89].mxu0 }
 0x63d   : > { %5461 = vst [vmem:[%s10329_s30 + $0x40] sm:$0xff] %v5374_v0  ;;  %v6564_v45 = vpop.f32.mrb[90].mxu0 }
 0x63e   : > { %5464 = vst [vmem:[%s10329_s30 + $0x58] sm:$0xff] %v6564_v45  ;;  %v5377_v2 = vpop.f32.mrb[91].mxu0 }
 0x63f   : > { %5462 = vst [vmem:[%s10329_s30 + $0x48] sm:$0xff] %v5377_v2 }
 0x644   : > { %v6567_v27 = vpop.f32.mrb[92].mxu0 }
 0x645   : > { %5467 = vst [vmem:[%s10329_s30 + $0x70] sm:$0xff] %v6567_v27  ;;  %v5390_v48 = vpop.f32.mrb[93].mxu0 }
 0x646   : > { %5465 = vst [vmem:[%s10329_s30 + $0x60] sm:$0xff] %v5390_v48  ;;  %v6568_v15 = vpop.f32.mrb[94].mxu0 }
 0x647   : > { %5468 = vst [vmem:[%s10329_s30 + $0x78] sm:$0xff] %v6568_v15  ;;  %v5393_v3 = vpop.f32.mrb[95].mxu0 }
 0x648   : > { %5466 = vst [vmem:[%s10329_s30 + $0x68] sm:$0xff] %v5393_v3 }
 0x649   : > { %7559 = shalt.err (!%p7556_p5)
}
 0x64a   : > { %s7560_s17 = scalar_lea.hbm %s10349_s12, 2048  ;;  %s7564_s0 = scalar_lea.hbm %s10409_s5, 4096 }
 0x64b   : > { %p7561_p6 = scmp.ne.s32.totalorder %s10349_s12, %s7560_s17  ;;  %p7565_p10 = scmp.lt.u32.totalorder %s10349_s12, %s10409_s5 }
 0x64c   : > { %p7566_p11 = scmp.lt.u32.totalorder %s7564_s0, %s7560_s17  ;;  %p7568_p13 = scmp.lt.u32.totalorder %s7560_s17, %s10349_s12 }
 0x64d   : > { %p7562_p7 = pnand %p7561_p6, %p7702_p4 }
 0x64e   : > { %p7567_p12 = por %p7566_p11, %p7565_p10 }
 0x64f   : > { %p7563_p9 = pneg %p7562_p7 }
 0x650   : > { %p7569_p0 = por %p7568_p13, %p7567_p12 }
 0x652   : > { %p7570_p1 = pnand %p7569_p0, %p7563_p9 }
 0x654   : > { %7573 = shalt.err (!%p7570_p1)
}
 0x655   : > { %s7627_s30 = smov 128   ;;  %s7628_s8 = smov 8  }
 0x656   : > { %6681 = dma.vmem_to_hbm [thread:$0]  (%p7702_p4), %s10351_s9, 2048, %s10349_s12, %s10358_s23, %s7627_s30, %s7627_s30, %s7628_s8  }
 0x657 PF: > { %p6687_p2 = scmp.ge.s32.totalorder %s7624_s25, 2  ;;  %s5500_s10 = sand.u32 1, %s7604_s20  }
 0x658   : > { %s5501_s11 = scalar_lea.sflag [#allocation4], %s5500_s10 }
 0x659   : > { %p6684_p3 = pnand %p6687_p2, %p7709_p8 }
 0x65b   : > { %7599 = dma.done.wait (!%p6684_p3), %s5501_s11, 2048  }
 0x65c   : > { %7601 = vsyncadd (!%p6684_p3), %s5501_s11, 4294965248  ;;  %s19_s25 = sadd.s32 1, %s7624_s25   ;;  %s11276_s20 = smov %s7608_s21 }
 0x65d   : > { %p16_p5 = scmp.ge.s32.totalorder %s19_s25, 4   ;;  %s11277_s21 = smov %s7612_s22 }
 0x65e   : > { %s11278_s22 = smov %s7715_s7  ;;  %s11279_s23 = smov %s7620_s24 }
 0x65f   : > { %s11280_s24 = smov %s11282_s27  ;;  %18 = sbr.rel (!%p16_p5) target bundleno = 6 (0x6), region = 81 }
 0x666   :  { %5506 = vsyncpa [#allocation4], 1 }
 0x667   :  { %5508 = vsyncpa [#allocation4 + $0x1], 1 }

</bundles_post_ra>
